<compile_context>
chip_gen: v5e
topology: v5e:2x2
jax: 0.10.0
libtpu: 0.0.40
codegen_flags: <defaults>
</compile_context>

<pallas_src>
import functools

import jax
import jax.numpy as jnp
from jax.experimental import pallas as pl
from jax.experimental.pallas import tpu as pltpu


def _round_up(a: int, b: int) -> int:
    return (a + b - 1) // b * b


_LANES = 128   # lane tile for the sample axis m
_SUB = 8       # nFeat sub-chunk processed per in-kernel loop step


def _pick_tn_max() -> int:
    """nFeat chunk cap per grid step: 256 on v5e-and-older (16 MiB default
    scoped VMEM), 512 on v6e/v7x (32 MiB default; working set stays < 9 MiB)."""
    try:
        kind = jax.devices()[0].device_kind.lower()
    except Exception:
        return 256
    if any(tag in kind for tag in ("v2", "v3", "v4", "v5")):
        return 256
    return 512


# --------------------------------------------------------------------------
# Kernel 1: second-order max pooling, m on lanes, lower triangle only.
#   xt_ref : (TN, D, TM)   xt[n, i, m] = x[m, n, i]
#   ot_ref : (D*D, TM)     out[i*D + j, m] = max_n x[m,n,i] * x[m,n,j]
#                          (only rows with j < round_up(i+1, 8) are computed;
#                           the rest keep the -inf init and are mirrored from
#                           the lower triangle in the wrapper)
# ot_ref's index_map ignores the n grid axis -> VMEM-resident accumulator.
# --------------------------------------------------------------------------
def _sop_maxpool_kernel(xt_ref, ot_ref, *, d, tn, sub):
    n_id = pl.program_id(1)

    @pl.when(n_id == 0)
    def _init():
        ot_ref[...] = jnp.full(ot_ref.shape, -jnp.inf, dtype=ot_ref.dtype)

    @pl.loop(0, tn // sub)
    def _step(s):
        base = pl.multiple_of(s * sub, sub)
        xs = xt_ref[pl.ds(base, sub)]                    # (sub, d, TM), 2*sub/8 vregs
        for i in range(d):                               # d = 16, fully unrolled
            # lower triangle at sublane-tile granularity: j in [0, jmax)
            jmax = min(d, (i // 8 + 1) * 8)
            rhs = xs if jmax == d else xs[:, :jmax, :]   # (sub, jmax, TM)
            xi = xs[:, i:i + 1, :]                       # (sub, 1, TM), bcast over j
            prod = xi * rhs                              # VPU
            blk = jnp.max(prod, axis=0)                  # reduce over sub (VALU tree)
            rows = pl.ds(i * d, jmax)                    # 8-aligned sublane rows
            ot_ref[rows, :] = jnp.maximum(ot_ref[rows, :], blk)


# --------------------------------------------------------------------------
# Kernel 2: y = V diag(sign(w)*|w|^0.5) V^T, flatten, L2 normalize. m on lanes.
#   at_ref : (D, D, TM)   at[i, k, m] = V[m, i, k] * s_alpha[m, k]
#   vt_ref : (D, D, TM)   vt[k, j, m] = V[m, j, k]
#   ot_ref : (D*D, TM)    out[i*D + j, m] = y[m, i, j] / max(||y[m]||_2, 1e-12)
# Contraction over k is a loop-carried VALU accumulate (no per-k XLU sums,
# no per-m MXU matmuls).
# --------------------------------------------------------------------------
def _recon_l2_kernel(at_ref, vt_ref, ot_ref, *, d):
    parts = []
    for i in range(d):
        a_i = at_ref[i]                                  # (d_k, TM)
        acc = a_i[0:1, :] * vt_ref[0]                    # (d_j, TM)
        for k in range(1, d):
            acc = acc + a_i[k:k + 1, :] * vt_ref[k]      # VPU multiply-add
        parts.append(acc)                                # y[m, i, :]
    sq = parts[0] * parts[0]
    for i in range(1, d):
        sq = sq + parts[i] * parts[i]                    # elementwise, VPU
    nrm2 = jnp.sum(sq, axis=0, keepdims=True)            # one tiny cross-sublane sum
    # F.normalize: y / max(||y||, 1e-12)  ==  y * rsqrt(max(||y||^2, 1e-24))
    inv = jax.lax.rsqrt(jnp.maximum(nrm2, 1e-24))        # EUP
    for i in range(d):
        ot_ref[pl.ds(i * d, d), :] = parts[i] * inv


# --------------------------------------------------------------------------
# Wrapper (padding / transposes / symmetrization / eigh are plain JAX glue).
# --------------------------------------------------------------------------
@jax.jit
def sop_forward(x):
    """x: (B, T, N, D) (lower ranks are unsqueezed like the reference).
    Returns torch.squeeze-style (B, T, D*D) L2-normalized descriptors."""
    x = jnp.asarray(x, jnp.float32)
    while x.ndim < 4:                                    # mirrors torch.unsqueeze(0)
        x = x[None]
    B, T, N, D = x.shape
    M = B * T

    # ---- kernel-1 tiling: m on lanes, balanced nFeat chunking ----
    if M >= _LANES:
        TM = _LANES
        Mp = _round_up(M, TM)
    else:
        Mp = _round_up(M, 8)
        TM = Mp
    tn_max = _pick_tn_max()
    n_chunks = -(-N // tn_max)
    TN = _round_up(-(-N // n_chunks), _SUB)              # padding < 8 rows per chunk
    Np = _round_up(N, TN)

    xm = x.reshape(M, N, D)
    # edge-pad: duplicated rows never change a max; padded m columns are dropped.
    xm = jnp.pad(xm, ((0, Mp - M), (0, Np - N), (0, 0)), mode="edge")
    xt = jnp.transpose(xm, (1, 2, 0))                    # (Np, D, Mp): m on lanes

    grid_m = Mp // TM
    grid_n = Np // TN

    pooled_t = pl.pallas_call(
        functools.partial(_sop_maxpool_kernel, d=D, tn=TN, sub=_SUB),
        out_shape=jax.ShapeDtypeStruct((D * D, Mp), jnp.float32),
        grid=(grid_m, grid_n),
        in_specs=[pl.BlockSpec((TN, D, TM), lambda im, n: (n, 0, im))],
        out_specs=pl.BlockSpec((D * D, TM), lambda im, n: (0, im)),
        compiler_params=pltpu.CompilerParams(
            dimension_semantics=("parallel", "arbitrary")),
    )(xt)

    # ---- slice to real samples BEFORE eigh, NaN fix, mirror lower triangle ----
    pooled_raw = jnp.transpose(pooled_t, (1, 0))[:M].reshape(M, D, D)
    pooled_raw = jnp.where(jnp.isnan(pooled_raw), 0.0, pooled_raw)
    low = jnp.tril(pooled_raw)                           # drops uncomputed (-inf) upper rows
    pooled = low + jnp.swapaxes(jnp.tril(pooled_raw, k=-1), -1, -2)

    # ---- matrix power 0.5 (reference: f64 torch.svd; here f32 eigh) ----
    # pooled is symmetric by construction, so U diag(s^0.5) V^T from the SVD
    # equals V diag(sign(w) * |w|^0.5) V^T from the eigendecomposition.
    w, v = jnp.linalg.eigh(pooled, symmetrize_input=False)
    s_alpha = jnp.sign(w) * jnp.sqrt(jnp.abs(w))         # (M, D)
    a = v * s_alpha[:, None, :]                          # A[m, i, k]

    # ---- kernel-2 tiling (sized from M, not Mp) ----
    if M >= _LANES:
        TM2 = _LANES
        Mp2 = _round_up(M, TM2)
    else:
        Mp2 = _round_up(M, 8)
        TM2 = Mp2
    a_p = jnp.pad(a, ((0, Mp2 - M), (0, 0), (0, 0)))     # zero-pad: safe (y=0 -> out=0)
    v_p = jnp.pad(v, ((0, Mp2 - M), (0, 0), (0, 0)))
    at = jnp.transpose(a_p, (1, 2, 0))                   # (D_i, D_k, Mp2)
    vt = jnp.transpose(v_p, (2, 1, 0))                   # (D_k, D_j, Mp2)

    out_t = pl.pallas_call(
        functools.partial(_recon_l2_kernel, d=D),
        out_shape=jax.ShapeDtypeStruct((D * D, Mp2), jnp.float32),
        grid=(Mp2 // TM2,),
        in_specs=[pl.BlockSpec((D, D, TM2), lambda im: (0, 0, im)),
                  pl.BlockSpec((D, D, TM2), lambda im: (0, 0, im))],
        out_specs=pl.BlockSpec((D * D, TM2), lambda im: (0, im)),
        compiler_params=pltpu.CompilerParams(
            dimension_semantics=("parallel",)),
    )(at, vt)

    out = jnp.transpose(out_t, (1, 0))[:M].reshape(B, T, D * D)
    return jnp.squeeze(out)                              # matches torch.squeeze


def _reference_forward(x):
    """Plain-JAX reference with the same math, for verification."""
    x = jnp.asarray(x, jnp.float32)
    while x.ndim < 4:
        x = x[None]
    B, T, N, D = x.shape
    xm = x.reshape(B * T, N, D)
    op = xm[:, :, :, None] * xm[:, :, None, :]           # (M, N, D, D)
    pooled = jnp.max(op, axis=1)
    pooled = jnp.where(jnp.isnan(pooled), 0.0, pooled)
    w, v = jnp.linalg.eigh(pooled)
    s_alpha = jnp.sign(w) * jnp.sqrt(jnp.abs(w))
    y = jnp.einsum("mik,mk,mjk->mij", v, s_alpha, v)
    yf = y.reshape(B, T, D * D)
    nrm = jnp.maximum(jnp.linalg.norm(yf, axis=-1, keepdims=True), 1e-12)
    return jnp.squeeze(yf / nrm)


def init_params(input_dim=16):
    """Deterministic init of the fc1/fc2 parameters from __init__ (unused in
    forward since do_fc=False): Linear(256,128), Linear(128,64)."""
    sop_dim = input_dim * input_dim
    cs = [4096, 2048, 1024]
    cr = sop_dim / cs[0]
    cs = [int(cr * c) for c in cs]                       # [256, 128, 64]
    k0, k1, k2, k3 = jax.random.split(jax.random.PRNGKey(42), 4)
    return {
        "fc1_w": jax.random.normal(k0, (cs[1], cs[0]), jnp.float32) * 0.02,
        "fc1_b": jax.random.normal(k1, (cs[1],), jnp.float32) * 0.02,
        "fc2_w": jax.random.normal(k2, (cs[2], cs[1]), jnp.float32) * 0.02,
        "fc2_b": jax.random.normal(k3, (cs[2],), jnp.float32) * 0.02,
    }


if __name__ == "__main__":
    key = jax.random.PRNGKey(0)
    # batch=2, tupleLen=2, nFeat=10 (exercises N padding), dimFeat=16
    x = jax.random.normal(key, (2, 2, 10, 16), dtype=jnp.float32)

    _ = init_params(input_dim=16)   # fc1/fc2 exist in __init__, unused (do_fc=False)

    out = jax.block_until_ready(sop_forward(x))
    assert out.shape == (2, 2, 256), out.shape
    assert bool(jnp.all(jnp.isfinite(out)))

    ref = _reference_forward(x)
    max_err = float(jnp.max(jnp.abs(out - ref)))
    assert max_err < 1e-2, max_err

    norms = jnp.linalg.norm(out, axis=-1)
    assert bool(jnp.allclose(norms, 1.0, atol=5e-3))

    print("KERNEL_OK")
</pallas_src>

<mosaic_0001>
module attributes {stable_mosaic.version = 11 : i64} {
  func.func @_sop_maxpool_kernel(%arg0: i32, %arg1: i32, %arg2: memref<16x16x8xf32, #tpu.memory_space<vmem>>, %arg3: memref<256x8xf32, #tpu.memory_space<vmem>>) attributes {dimension_semantics = [#tpu.dimension_semantics<parallel>, #tpu.dimension_semantics<arbitrary>], iteration_bounds = array<i64: 1, 1>, scalar_prefetch = 0 : i64, scratch_operands = 0 : i64, tpu.core_type = #tpu.core_type<tc>, window_params = [{transform_indices = @transform_0, window_bounds = array<i64: 16, 16, 8>}, {transform_indices = @transform_1, window_bounds = array<i64: 256, 8>}]} {
    %c0_i32 = arith.constant 0 : i32
    %0 = arith.cmpi eq, %arg1, %c0_i32 : i32
    %1 = arith.extui %0 : i1 to i32
    %c0_i32_0 = arith.constant 0 : i32
    %2 = arith.cmpi ne, %1, %c0_i32_0 : i32
    scf.if %2 {
      %cst = arith.constant 0xFF800000 : f32
      %4 = vector.broadcast %cst : f32 to vector<256x8xf32>
      %c0 = arith.constant 0 : index
      %c0_3 = arith.constant 0 : index
      %5 = vector.load %arg3[%c0, %c0_3] : memref<256x8xf32, #tpu.memory_space<vmem>>, vector<256x8xf32>
      tpu.vector_store %arg3[%c0, %c0_3], %4 {strides = array<i32>} : memref<256x8xf32, #tpu.memory_space<vmem>>, vector<256x8xf32>,
    } else {
    }
    %c0_i32_1 = arith.constant 0 : i32
    %c2_i32 = arith.constant 2 : i32
    %3 = arith.addi %c0_i32_1, %c2_i32 : i32
    %c1_i32 = arith.constant 1 : i32
    scf.for %arg4 = %c0_i32_1 to %3 step %c1_i32  : i32 {
      %c1_i32_3 = arith.constant 1 : i32
      %4 = arith.muli %arg4, %c1_i32_3 : i32
      %c0_i32_4 = arith.constant 0 : i32
      %5 = arith.addi %c0_i32_4, %4 : i32
      %c8_i32 = arith.constant 8 : i32
      %6 = arith.muli %5, %c8_i32 : i32
      %7 = tpu.assume_multiple %6, 8 : i32
      %8 = arith.index_cast %7 : i32 to index
      %c0 = arith.constant 0 : index
      %c0_5 = arith.constant 0 : index
      %9 = vector.load %arg2[%8, %c0, %c0_5] : memref<16x16x8xf32, #tpu.memory_space<vmem>>, vector<8x16x8xf32>
      %10 = vector.extract_strided_slice %9 {offsets = [0, 0, 0], sizes = [8, 8, 8], strides = [1, 1, 1]} : vector<8x16x8xf32> to vector<8x8x8xf32>
      %11 = vector.extract_strided_slice %9 {offsets = [0, 0, 0], sizes = [8, 1, 8], strides = [1, 1, 1]} : vector<8x16x8xf32> to vector<8x1x8xf32>
      %12 = vector.broadcast %11 : vector<8x1x8xf32> to vector<8x8x8xf32>
      %13 = arith.mulf %12, %10 : vector<8x8x8xf32>
      %cst = arith.constant dense<0xFF800000> : vector<8x8xf32>
      %14 = vector.multi_reduction <maximumf>, %13, %cst [0] : vector<8x8x8xf32> to vector<8x8xf32>
      %c0_6 = arith.constant 0 : index
      %c0_7 = arith.constant 0 : index
      %15 = vector.load %arg3[%c0_6, %c0_7] : memref<256x8xf32, #tpu.memory_space<vmem>>, vector<8x8xf32>
      %16 = arith.maximumf %15, %14 : vector<8x8xf32>
      %c0_8 = arith.constant 0 : index
      %c0_9 = arith.constant 0 : index
      %17 = vector.load %arg3[%c0_8, %c0_9] : memref<256x8xf32, #tpu.memory_space<vmem>>, vector<8x8xf32>
      tpu.vector_store %arg3[%c0_8, %c0_9], %16 {strides = array<i32>} : memref<256x8xf32, #tpu.memory_space<vmem>>, vector<8x8xf32>,
      %18 = vector.extract_strided_slice %9 {offsets = [0, 0, 0], sizes = [8, 8, 8], strides = [1, 1, 1]} : vector<8x16x8xf32> to vector<8x8x8xf32>
      %19 = vector.extract_strided_slice %9 {offsets = [0, 1, 0], sizes = [8, 1, 8], strides = [1, 1, 1]} : vector<8x16x8xf32> to vector<8x1x8xf32>
      %20 = vector.broadcast %19 : vector<8x1x8xf32> to vector<8x8x8xf32>
      %21 = arith.mulf %20, %18 : vector<8x8x8xf32>
      %cst_10 = arith.constant dense<0xFF800000> : vector<8x8xf32>
      %22 = vector.multi_reduction <maximumf>, %21, %cst_10 [0] : vector<8x8x8xf32> to vector<8x8xf32>
      %c16 = arith.constant 16 : index
      %c0_11 = arith.constant 0 : index
      %23 = vector.load %arg3[%c16, %c0_11] : memref<256x8xf32, #tpu.memory_space<vmem>>, vector<8x8xf32>
      %24 = arith.maximumf %23, %22 : vector<8x8xf32>
      %c16_12 = arith.constant 16 : index
      %c0_13 = arith.constant 0 : index
      %25 = vector.load %arg3[%c16_12, %c0_13] : memref<256x8xf32, #tpu.memory_space<vmem>>, vector<8x8xf32>
      tpu.vector_store %arg3[%c16_12, %c0_13], %24 {strides = array<i32>} : memref<256x8xf32, #tpu.memory_space<vmem>>, vector<8x8xf32>,
      %26 = vector.extract_strided_slice %9 {offsets = [0, 0, 0], sizes = [8, 8, 8], strides = [1, 1, 1]} : vector<8x16x8xf32> to vector<8x8x8xf32>
      %27 = vector.extract_strided_slice %9 {offsets = [0, 2, 0], sizes = [8, 1, 8], strides = [1, 1, 1]} : vector<8x16x8xf32> to vector<8x1x8xf32>
      %28 = vector.broadcast %27 : vector<8x1x8xf32> to vector<8x8x8xf32>
      %29 = arith.mulf %28, %26 : vector<8x8x8xf32>
      %cst_14 = arith.constant dense<0xFF800000> : vector<8x8xf32>
      %30 = vector.multi_reduction <maximumf>, %29, %cst_14 [0] : vector<8x8x8xf32> to vector<8x8xf32>
      %c32 = arith.constant 32 : index
      %c0_15 = arith.constant 0 : index
      %31 = vector.load %arg3[%c32, %c0_15] : memref<256x8xf32, #tpu.memory_space<vmem>>, vector<8x8xf32>
      %32 = arith.maximumf %31, %30 : vector<8x8xf32>
      %c32_16 = arith.constant 32 : index
      %c0_17 = arith.constant 0 : index
      %33 = vector.load %arg3[%c32_16, %c0_17] : memref<256x8xf32, #tpu.memory_space<vmem>>, vector<8x8xf32>
      tpu.vector_store %arg3[%c32_16, %c0_17], %32 {strides = array<i32>} : memref<256x8xf32, #tpu.memory_space<vmem>>, vector<8x8xf32>,
      %34 = vector.extract_strided_slice %9 {offsets = [0, 0, 0], sizes = [8, 8, 8], strides = [1, 1, 1]} : vector<8x16x8xf32> to vector<8x8x8xf32>
      %35 = vector.extract_strided_slice %9 {offsets = [0, 3, 0], sizes = [8, 1, 8], strides = [1, 1, 1]} : vector<8x16x8xf32> to vector<8x1x8xf32>
      %36 = vector.broadcast %35 : vector<8x1x8xf32> to vector<8x8x8xf32>
      %37 = arith.mulf %36, %34 : vector<8x8x8xf32>
      %cst_18 = arith.constant dense<0xFF800000> : vector<8x8xf32>
      %38 = vector.multi_reduction <maximumf>, %37, %cst_18 [0] : vector<8x8x8xf32> to vector<8x8xf32>
      %c48 = arith.constant 48 : index
      %c0_19 = arith.constant 0 : index
      %39 = vector.load %arg3[%c48, %c0_19] : memref<256x8xf32, #tpu.memory_space<vmem>>, vector<8x8xf32>
      %40 = arith.maximumf %39, %38 : vector<8x8xf32>
      %c48_20 = arith.constant 48 : index
      %c0_21 = arith.constant 0 : index
      %41 = vector.load %arg3[%c48_20, %c0_21] : memref<256x8xf32, #tpu.memory_space<vmem>>, vector<8x8xf32>
      tpu.vector_store %arg3[%c48_20, %c0_21], %40 {strides = array<i32>} : memref<256x8xf32, #tpu.memory_space<vmem>>, vector<8x8xf32>,
      %42 = vector.extract_strided_slice %9 {offsets = [0, 0, 0], sizes = [8, 8, 8], strides = [1, 1, 1]} : vector<8x16x8xf32> to vector<8x8x8xf32>
      %43 = vector.extract_strided_slice %9 {offsets = [0, 4, 0], sizes = [8, 1, 8], strides = [1, 1, 1]} : vector<8x16x8xf32> to vector<8x1x8xf32>
      %44 = vector.broadcast %43 : vector<8x1x8xf32> to vector<8x8x8xf32>
      %45 = arith.mulf %44, %42 : vector<8x8x8xf32>
      %cst_22 = arith.constant dense<0xFF800000> : vector<8x8xf32>
      %46 = vector.multi_reduction <maximumf>, %45, %cst_22 [0] : vector<8x8x8xf32> to vector<8x8xf32>
      %c64 = arith.constant 64 : index
      %c0_23 = arith.constant 0 : index
      %47 = vector.load %arg3[%c64, %c0_23] : memref<256x8xf32, #tpu.memory_space<vmem>>, vector<8x8xf32>
      %48 = arith.maximumf %47, %46 : vector<8x8xf32>
      %c64_24 = arith.constant 64 : index
      %c0_25 = arith.constant 0 : index
      %49 = vector.load %arg3[%c64_24, %c0_25] : memref<256x8xf32, #tpu.memory_space<vmem>>, vector<8x8xf32>
      tpu.vector_store %arg3[%c64_24, %c0_25], %48 {strides = array<i32>} : memref<256x8xf32, #tpu.memory_space<vmem>>, vector<8x8xf32>,
      %50 = vector.extract_strided_slice %9 {offsets = [0, 0, 0], sizes = [8, 8, 8], strides = [1, 1, 1]} : vector<8x16x8xf32> to vector<8x8x8xf32>
      %51 = vector.extract_strided_slice %9 {offsets = [0, 5, 0], sizes = [8, 1, 8], strides = [1, 1, 1]} : vector<8x16x8xf32> to vector<8x1x8xf32>
      %52 = vector.broadcast %51 : vector<8x1x8xf32> to vector<8x8x8xf32>
      %53 = arith.mulf %52, %50 : vector<8x8x8xf32>
      %cst_26 = arith.constant dense<0xFF800000> : vector<8x8xf32>
      %54 = vector.multi_reduction <maximumf>, %53, %cst_26 [0] : vector<8x8x8xf32> to vector<8x8xf32>
      %c80 = arith.constant 80 : index
      %c0_27 = arith.constant 0 : index
      %55 = vector.load %arg3[%c80, %c0_27] : memref<256x8xf32, #tpu.memory_space<vmem>>, vector<8x8xf32>
      %56 = arith.maximumf %55, %54 : vector<8x8xf32>
      %c80_28 = arith.constant 80 : index
      %c0_29 = arith.constant 0 : index
      %57 = vector.load %arg3[%c80_28, %c0_29] : memref<256x8xf32, #tpu.memory_space<vmem>>, vector<8x8xf32>
      tpu.vector_store %arg3[%c80_28, %c0_29], %56 {strides = array<i32>} : memref<256x8xf32, #tpu.memory_space<vmem>>, vector<8x8xf32>,
      %58 = vector.extract_strided_slice %9 {offsets = [0, 0, 0], sizes = [8, 8, 8], strides = [1, 1, 1]} : vector<8x16x8xf32> to vector<8x8x8xf32>
      %59 = vector.extract_strided_slice %9 {offsets = [0, 6, 0], sizes = [8, 1, 8], strides = [1, 1, 1]} : vector<8x16x8xf32> to vector<8x1x8xf32>
      %60 = vector.broadcast %59 : vector<8x1x8xf32> to vector<8x8x8xf32>
      %61 = arith.mulf %60, %58 : vector<8x8x8xf32>
      %cst_30 = arith.constant dense<0xFF800000> : vector<8x8xf32>
      %62 = vector.multi_reduction <maximumf>, %61, %cst_30 [0] : vector<8x8x8xf32> to vector<8x8xf32>
      %c96 = arith.constant 96 : index
      %c0_31 = arith.constant 0 : index
      %63 = vector.load %arg3[%c96, %c0_31] : memref<256x8xf32, #tpu.memory_space<vmem>>, vector<8x8xf32>
      %64 = arith.maximumf %63, %62 : vector<8x8xf32>
      %c96_32 = arith.constant 96 : index
      %c0_33 = arith.constant 0 : index
      %65 = vector.load %arg3[%c96_32, %c0_33] : memref<256x8xf32, #tpu.memory_space<vmem>>, vector<8x8xf32>
      tpu.vector_store %arg3[%c96_32, %c0_33], %64 {strides = array<i32>} : memref<256x8xf32, #tpu.memory_space<vmem>>, vector<8x8xf32>,
      %66 = vector.extract_strided_slice %9 {offsets = [0, 0, 0], sizes = [8, 8, 8], strides = [1, 1, 1]} : vector<8x16x8xf32> to vector<8x8x8xf32>
      %67 = vector.extract_strided_slice %9 {offsets = [0, 7, 0], sizes = [8, 1, 8], strides = [1, 1, 1]} : vector<8x16x8xf32> to vector<8x1x8xf32>
      %68 = vector.broadcast %67 : vector<8x1x8xf32> to vector<8x8x8xf32>
      %69 = arith.mulf %68, %66 : vector<8x8x8xf32>
      %cst_34 = arith.constant dense<0xFF800000> : vector<8x8xf32>
      %70 = vector.multi_reduction <maximumf>, %69, %cst_34 [0] : vector<8x8x8xf32> to vector<8x8xf32>
      %c112 = arith.constant 112 : index
      %c0_35 = arith.constant 0 : index
      %71 = vector.load %arg3[%c112, %c0_35] : memref<256x8xf32, #tpu.memory_space<vmem>>, vector<8x8xf32>
      %72 = arith.maximumf %71, %70 : vector<8x8xf32>
      %c112_36 = arith.constant 112 : index
      %c0_37 = arith.constant 0 : index
      %73 = vector.load %arg3[%c112_36, %c0_37] : memref<256x8xf32, #tpu.memory_space<vmem>>, vector<8x8xf32>
      tpu.vector_store %arg3[%c112_36, %c0_37], %72 {strides = array<i32>} : memref<256x8xf32, #tpu.memory_space<vmem>>, vector<8x8xf32>,
      %74 = vector.extract_strided_slice %9 {offsets = [0, 8, 0], sizes = [8, 1, 8], strides = [1, 1, 1]} : vector<8x16x8xf32> to vector<8x1x8xf32>
      %75 = vector.broadcast %74 : vector<8x1x8xf32> to vector<8x16x8xf32>
      %76 = arith.mulf %75, %9 : vector<8x16x8xf32>
      %cst_38 = arith.constant dense<0xFF800000> : vector<16x8xf32>
      %77 = vector.multi_reduction <maximumf>, %76, %cst_38 [0] : vector<8x16x8xf32> to vector<16x8xf32>
      %c128 = arith.constant 128 : index
      %c0_39 = arith.constant 0 : index
      %78 = vector.load %arg3[%c128, %c0_39] : memref<256x8xf32, #tpu.memory_space<vmem>>, vector<16x8xf32>
      %79 = arith.maximumf %78, %77 : vector<16x8xf32>
      %c128_40 = arith.constant 128 : index
      %c0_41 = arith.constant 0 : index
      %80 = vector.load %arg3[%c128_40, %c0_41] : memref<256x8xf32, #tpu.memory_space<vmem>>, vector<16x8xf32>
      tpu.vector_store %arg3[%c128_40, %c0_41], %79 {strides = array<i32>} : memref<256x8xf32, #tpu.memory_space<vmem>>, vector<16x8xf32>,
      %81 = vector.extract_strided_slice %9 {offsets = [0, 9, 0], sizes = [8, 1, 8], strides = [1, 1, 1]} : vector<8x16x8xf32> to vector<8x1x8xf32>
      %82 = vector.broadcast %81 : vector<8x1x8xf32> to vector<8x16x8xf32>
      %83 = arith.mulf %82, %9 : vector<8x16x8xf32>
      %cst_42 = arith.constant dense<0xFF800000> : vector<16x8xf32>
      %84 = vector.multi_reduction <maximumf>, %83, %cst_42 [0] : vector<8x16x8xf32> to vector<16x8xf32>
      %c144 = arith.constant 144 : index
      %c0_43 = arith.constant 0 : index
      %85 = vector.load %arg3[%c144, %c0_43] : memref<256x8xf32, #tpu.memory_space<vmem>>, vector<16x8xf32>
      %86 = arith.maximumf %85, %84 : vector<16x8xf32>
      %c144_44 = arith.constant 144 : index
      %c0_45 = arith.constant 0 : index
      %87 = vector.load %arg3[%c144_44, %c0_45] : memref<256x8xf32, #tpu.memory_space<vmem>>, vector<16x8xf32>
      tpu.vector_store %arg3[%c144_44, %c0_45], %86 {strides = array<i32>} : memref<256x8xf32, #tpu.memory_space<vmem>>, vector<16x8xf32>,
      %88 = vector.extract_strided_slice %9 {offsets = [0, 10, 0], sizes = [8, 1, 8], strides = [1, 1, 1]} : vector<8x16x8xf32> to vector<8x1x8xf32>
      %89 = vector.broadcast %88 : vector<8x1x8xf32> to vector<8x16x8xf32>
      %90 = arith.mulf %89, %9 : vector<8x16x8xf32>
      %cst_46 = arith.constant dense<0xFF800000> : vector<16x8xf32>
      %91 = vector.multi_reduction <maximumf>, %90, %cst_46 [0] : vector<8x16x8xf32> to vector<16x8xf32>
      %c160 = arith.constant 160 : index
      %c0_47 = arith.constant 0 : index
      %92 = vector.load %arg3[%c160, %c0_47] : memref<256x8xf32, #tpu.memory_space<vmem>>, vector<16x8xf32>
      %93 = arith.maximumf %92, %91 : vector<16x8xf32>
      %c160_48 = arith.constant 160 : index
      %c0_49 = arith.constant 0 : index
      %94 = vector.load %arg3[%c160_48, %c0_49] : memref<256x8xf32, #tpu.memory_space<vmem>>, vector<16x8xf32>
      tpu.vector_store %arg3[%c160_48, %c0_49], %93 {strides = array<i32>} : memref<256x8xf32, #tpu.memory_space<vmem>>, vector<16x8xf32>,
      %95 = vector.extract_strided_slice %9 {offsets = [0, 11, 0], sizes = [8, 1, 8], strides = [1, 1, 1]} : vector<8x16x8xf32> to vector<8x1x8xf32>
      %96 = vector.broadcast %95 : vector<8x1x8xf32> to vector<8x16x8xf32>
      %97 = arith.mulf %96, %9 : vector<8x16x8xf32>
      %cst_50 = arith.constant dense<0xFF800000> : vector<16x8xf32>
      %98 = vector.multi_reduction <maximumf>, %97, %cst_50 [0] : vector<8x16x8xf32> to vector<16x8xf32>
      %c176 = arith.constant 176 : index
      %c0_51 = arith.constant 0 : index
      %99 = vector.load %arg3[%c176, %c0_51] : memref<256x8xf32, #tpu.memory_space<vmem>>, vector<16x8xf32>
      %100 = arith.maximumf %99, %98 : vector<16x8xf32>
      %c176_52 = arith.constant 176 : index
      %c0_53 = arith.constant 0 : index
      %101 = vector.load %arg3[%c176_52, %c0_53] : memref<256x8xf32, #tpu.memory_space<vmem>>, vector<16x8xf32>
      tpu.vector_store %arg3[%c176_52, %c0_53], %100 {strides = array<i32>} : memref<256x8xf32, #tpu.memory_space<vmem>>, vector<16x8xf32>,
      %102 = vector.extract_strided_slice %9 {offsets = [0, 12, 0], sizes = [8, 1, 8], strides = [1, 1, 1]} : vector<8x16x8xf32> to vector<8x1x8xf32>
      %103 = vector.broadcast %102 : vector<8x1x8xf32> to vector<8x16x8xf32>
      %104 = arith.mulf %103, %9 : vector<8x16x8xf32>
      %cst_54 = arith.constant dense<0xFF800000> : vector<16x8xf32>
      %105 = vector.multi_reduction <maximumf>, %104, %cst_54 [0] : vector<8x16x8xf32> to vector<16x8xf32>
      %c192 = arith.constant 192 : index
      %c0_55 = arith.constant 0 : index
      %106 = vector.load %arg3[%c192, %c0_55] : memref<256x8xf32, #tpu.memory_space<vmem>>, vector<16x8xf32>
      %107 = arith.maximumf %106, %105 : vector<16x8xf32>
      %c192_56 = arith.constant 192 : index
      %c0_57 = arith.constant 0 : index
      %108 = vector.load %arg3[%c192_56, %c0_57] : memref<256x8xf32, #tpu.memory_space<vmem>>, vector<16x8xf32>
      tpu.vector_store %arg3[%c192_56, %c0_57], %107 {strides = array<i32>} : memref<256x8xf32, #tpu.memory_space<vmem>>, vector<16x8xf32>,
      %109 = vector.extract_strided_slice %9 {offsets = [0, 13, 0], sizes = [8, 1, 8], strides = [1, 1, 1]} : vector<8x16x8xf32> to vector<8x1x8xf32>
      %110 = vector.broadcast %109 : vector<8x1x8xf32> to vector<8x16x8xf32>
      %111 = arith.mulf %110, %9 : vector<8x16x8xf32>
      %cst_58 = arith.constant dense<0xFF800000> : vector<16x8xf32>
      %112 = vector.multi_reduction <maximumf>, %111, %cst_58 [0] : vector<8x16x8xf32> to vector<16x8xf32>
      %c208 = arith.constant 208 : index
      %c0_59 = arith.constant 0 : index
      %113 = vector.load %arg3[%c208, %c0_59] : memref<256x8xf32, #tpu.memory_space<vmem>>, vector<16x8xf32>
      %114 = arith.maximumf %113, %112 : vector<16x8xf32>
      %c208_60 = arith.constant 208 : index
      %c0_61 = arith.constant 0 : index
      %115 = vector.load %arg3[%c208_60, %c0_61] : memref<256x8xf32, #tpu.memory_space<vmem>>, vector<16x8xf32>
      tpu.vector_store %arg3[%c208_60, %c0_61], %114 {strides = array<i32>} : memref<256x8xf32, #tpu.memory_space<vmem>>, vector<16x8xf32>,
      %116 = vector.extract_strided_slice %9 {offsets = [0, 14, 0], sizes = [8, 1, 8], strides = [1, 1, 1]} : vector<8x16x8xf32> to vector<8x1x8xf32>
      %117 = vector.broadcast %116 : vector<8x1x8xf32> to vector<8x16x8xf32>
      %118 = arith.mulf %117, %9 : vector<8x16x8xf32>
      %cst_62 = arith.constant dense<0xFF800000> : vector<16x8xf32>
      %119 = vector.multi_reduction <maximumf>, %118, %cst_62 [0] : vector<8x16x8xf32> to vector<16x8xf32>
      %c224 = arith.constant 224 : index
      %c0_63 = arith.constant 0 : index
      %120 = vector.load %arg3[%c224, %c0_63] : memref<256x8xf32, #tpu.memory_space<vmem>>, vector<16x8xf32>
      %121 = arith.maximumf %120, %119 : vector<16x8xf32>
      %c224_64 = arith.constant 224 : index
      %c0_65 = arith.constant 0 : index
      %122 = vector.load %arg3[%c224_64, %c0_65] : memref<256x8xf32, #tpu.memory_space<vmem>>, vector<16x8xf32>
      tpu.vector_store %arg3[%c224_64, %c0_65], %121 {strides = array<i32>} : memref<256x8xf32, #tpu.memory_space<vmem>>, vector<16x8xf32>,
      %123 = vector.extract_strided_slice %9 {offsets = [0, 15, 0], sizes = [8, 1, 8], strides = [1, 1, 1]} : vector<8x16x8xf32> to vector<8x1x8xf32>
      %124 = vector.broadcast %123 : vector<8x1x8xf32> to vector<8x16x8xf32>
      %125 = arith.mulf %124, %9 : vector<8x16x8xf32>
      %cst_66 = arith.constant dense<0xFF800000> : vector<16x8xf32>
      %126 = vector.multi_reduction <maximumf>, %125, %cst_66 [0] : vector<8x16x8xf32> to vector<16x8xf32>
      %c240 = arith.constant 240 : index
      %c0_67 = arith.constant 0 : index
      %127 = vector.load %arg3[%c240, %c0_67] : memref<256x8xf32, #tpu.memory_space<vmem>>, vector<16x8xf32>
      %128 = arith.maximumf %127, %126 : vector<16x8xf32>
      %c240_68 = arith.constant 240 : index
      %c0_69 = arith.constant 0 : index
      %129 = vector.load %arg3[%c240_68, %c0_69] : memref<256x8xf32, #tpu.memory_space<vmem>>, vector<16x8xf32>
      tpu.vector_store %arg3[%c240_68, %c0_69], %128 {strides = array<i32>} : memref<256x8xf32, #tpu.memory_space<vmem>>, vector<16x8xf32>,
    }
    %c2_i32_2 = arith.constant 2 : i32
    return
  }
  func.func @transform_0(%arg0: i32, %arg1: i32) -> (i32, i32, i32) {
    %c0_i32 = arith.constant 0 : i32
    %c0_i32_0 = arith.constant 0 : i32
    return %arg1, %c0_i32, %arg0 : i32, i32, i32
  }
  func.func @transform_1(%arg0: i32, %arg1: i32) -> (i32, i32) {
    %c0_i32 = arith.constant 0 : i32
    %c0_i32_0 = arith.constant 0 : i32
    return %c0_i32, %arg0 : i32, i32
  }
}

module attributes {stable_mosaic.version = 11 : i64} {
  func.func @_recon_l2_kernel(%arg0: i32, %arg1: memref<16x16x8xf32, #tpu.memory_space<vmem>>, %arg2: memref<16x16x8xf32, #tpu.memory_space<vmem>>, %arg3: memref<256x8xf32, #tpu.memory_space<vmem>>) attributes {dimension_semantics = [#tpu.dimension_semantics<parallel>], iteration_bounds = array<i64: 1>, scalar_prefetch = 0 : i64, scratch_operands = 0 : i64, tpu.core_type = #tpu.core_type<tc>, window_params = [{transform_indices = @transform_0, window_bounds = array<i64: 16, 16, 8>}, {transform_indices = @transform_1, window_bounds = array<i64: 16, 16, 8>}, {transform_indices = @transform_2, window_bounds = array<i64: 256, 8>}]} {
    %c0 = arith.constant 0 : index
    %c0_0 = arith.constant 0 : index
    %c0_1 = arith.constant 0 : index
    %0 = vector.load %arg1[%c0, %c0_0, %c0_1] : memref<16x16x8xf32, #tpu.memory_space<vmem>>, vector<1x16x8xf32>
    %1 = vector.shape_cast %0 : vector<1x16x8xf32> to vector<16x8xf32>
    %2 = vector.extract_strided_slice %1 {offsets = [0, 0], sizes = [1, 8], strides = [1, 1]} : vector<16x8xf32> to vector<1x8xf32>
    %c0_2 = arith.constant 0 : index
    %c0_3 = arith.constant 0 : index
    %c0_4 = arith.constant 0 : index
    %3 = vector.load %arg2[%c0_2, %c0_3, %c0_4] : memref<16x16x8xf32, #tpu.memory_space<vmem>>, vector<1x16x8xf32>
    %4 = vector.shape_cast %3 : vector<1x16x8xf32> to vector<16x8xf32>
    %5 = vector.broadcast %2 : vector<1x8xf32> to vector<16x8xf32>
    %6 = arith.mulf %5, %4 : vector<16x8xf32>
    %7 = vector.extract_strided_slice %1 {offsets = [1, 0], sizes = [1, 8], strides = [1, 1]} : vector<16x8xf32> to vector<1x8xf32>
    %c1 = arith.constant 1 : index
    %c0_5 = arith.constant 0 : index
    %c0_6 = arith.constant 0 : index
    %8 = vector.load %arg2[%c1, %c0_5, %c0_6] : memref<16x16x8xf32, #tpu.memory_space<vmem>>, vector<1x16x8xf32>
    %9 = vector.shape_cast %8 : vector<1x16x8xf32> to vector<16x8xf32>
    %10 = vector.broadcast %7 : vector<1x8xf32> to vector<16x8xf32>
    %11 = arith.mulf %10, %9 : vector<16x8xf32>
    %12 = arith.addf %6, %11 : vector<16x8xf32>
    %13 = vector.extract_strided_slice %1 {offsets = [2, 0], sizes = [1, 8], strides = [1, 1]} : vector<16x8xf32> to vector<1x8xf32>
    %c2 = arith.constant 2 : index
    %c0_7 = arith.constant 0 : index
    %c0_8 = arith.constant 0 : index
    %14 = vector.load %arg2[%c2, %c0_7, %c0_8] : memref<16x16x8xf32, #tpu.memory_space<vmem>>, vector<1x16x8xf32>
    %15 = vector.shape_cast %14 : vector<1x16x8xf32> to vector<16x8xf32>
    %16 = vector.broadcast %13 : vector<1x8xf32> to vector<16x8xf32>
    %17 = arith.mulf %16, %15 : vector<16x8xf32>
    %18 = arith.addf %12, %17 : vector<16x8xf32>
    %19 = vector.extract_strided_slice %1 {offsets = [3, 0], sizes = [1, 8], strides = [1, 1]} : vector<16x8xf32> to vector<1x8xf32>
    %c3 = arith.constant 3 : index
    %c0_9 = arith.constant 0 : index
    %c0_10 = arith.constant 0 : index
    %20 = vector.load %arg2[%c3, %c0_9, %c0_10] : memref<16x16x8xf32, #tpu.memory_space<vmem>>, vector<1x16x8xf32>
    %21 = vector.shape_cast %20 : vector<1x16x8xf32> to vector<16x8xf32>
    %22 = vector.broadcast %19 : vector<1x8xf32> to vector<16x8xf32>
    %23 = arith.mulf %22, %21 : vector<16x8xf32>
    %24 = arith.addf %18, %23 : vector<16x8xf32>
    %25 = vector.extract_strided_slice %1 {offsets = [4, 0], sizes = [1, 8], strides = [1, 1]} : vector<16x8xf32> to vector<1x8xf32>
    %c4 = arith.constant 4 : index
    %c0_11 = arith.constant 0 : index
    %c0_12 = arith.constant 0 : index
    %26 = vector.load %arg2[%c4, %c0_11, %c0_12] : memref<16x16x8xf32, #tpu.memory_space<vmem>>, vector<1x16x8xf32>
    %27 = vector.shape_cast %26 : vector<1x16x8xf32> to vector<16x8xf32>
    %28 = vector.broadcast %25 : vector<1x8xf32> to vector<16x8xf32>
    %29 = arith.mulf %28, %27 : vector<16x8xf32>
    %30 = arith.addf %24, %29 : vector<16x8xf32>
    %31 = vector.extract_strided_slice %1 {offsets = [5, 0], sizes = [1, 8], strides = [1, 1]} : vector<16x8xf32> to vector<1x8xf32>
    %c5 = arith.constant 5 : index
    %c0_13 = arith.constant 0 : index
    %c0_14 = arith.constant 0 : index
    %32 = vector.load %arg2[%c5, %c0_13, %c0_14] : memref<16x16x8xf32, #tpu.memory_space<vmem>>, vector<1x16x8xf32>
    %33 = vector.shape_cast %32 : vector<1x16x8xf32> to vector<16x8xf32>
    %34 = vector.broadcast %31 : vector<1x8xf32> to vector<16x8xf32>
    %35 = arith.mulf %34, %33 : vector<16x8xf32>
    %36 = arith.addf %30, %35 : vector<16x8xf32>
    %37 = vector.extract_strided_slice %1 {offsets = [6, 0], sizes = [1, 8], strides = [1, 1]} : vector<16x8xf32> to vector<1x8xf32>
    %c6 = arith.constant 6 : index
    %c0_15 = arith.constant 0 : index
    %c0_16 = arith.constant 0 : index
    %38 = vector.load %arg2[%c6, %c0_15, %c0_16] : memref<16x16x8xf32, #tpu.memory_space<vmem>>, vector<1x16x8xf32>
    %39 = vector.shape_cast %38 : vector<1x16x8xf32> to vector<16x8xf32>
    %40 = vector.broadcast %37 : vector<1x8xf32> to vector<16x8xf32>
    %41 = arith.mulf %40, %39 : vector<16x8xf32>
    %42 = arith.addf %36, %41 : vector<16x8xf32>
    %43 = vector.extract_strided_slice %1 {offsets = [7, 0], sizes = [1, 8], strides = [1, 1]} : vector<16x8xf32> to vector<1x8xf32>
    %c7 = arith.constant 7 : index
    %c0_17 = arith.constant 0 : index
    %c0_18 = arith.constant 0 : index
    %44 = vector.load %arg2[%c7, %c0_17, %c0_18] : memref<16x16x8xf32, #tpu.memory_space<vmem>>, vector<1x16x8xf32>
    %45 = vector.shape_cast %44 : vector<1x16x8xf32> to vector<16x8xf32>
    %46 = vector.broadcast %43 : vector<1x8xf32> to vector<16x8xf32>
    %47 = arith.mulf %46, %45 : vector<16x8xf32>
    %48 = arith.addf %42, %47 : vector<16x8xf32>
    %49 = vector.extract_strided_slice %1 {offsets = [8, 0], sizes = [1, 8], strides = [1, 1]} : vector<16x8xf32> to vector<1x8xf32>
    %c8 = arith.constant 8 : index
    %c0_19 = arith.constant 0 : index
    %c0_20 = arith.constant 0 : index
    %50 = vector.load %arg2[%c8, %c0_19, %c0_20] : memref<16x16x8xf32, #tpu.memory_space<vmem>>, vector<1x16x8xf32>
    %51 = vector.shape_cast %50 : vector<1x16x8xf32> to vector<16x8xf32>
    %52 = vector.broadcast %49 : vector<1x8xf32> to vector<16x8xf32>
    %53 = arith.mulf %52, %51 : vector<16x8xf32>
    %54 = arith.addf %48, %53 : vector<16x8xf32>
    %55 = vector.extract_strided_slice %1 {offsets = [9, 0], sizes = [1, 8], strides = [1, 1]} : vector<16x8xf32> to vector<1x8xf32>
    %c9 = arith.constant 9 : index
    %c0_21 = arith.constant 0 : index
    %c0_22 = arith.constant 0 : index
    %56 = vector.load %arg2[%c9, %c0_21, %c0_22] : memref<16x16x8xf32, #tpu.memory_space<vmem>>, vector<1x16x8xf32>
    %57 = vector.shape_cast %56 : vector<1x16x8xf32> to vector<16x8xf32>
    %58 = vector.broadcast %55 : vector<1x8xf32> to vector<16x8xf32>
    %59 = arith.mulf %58, %57 : vector<16x8xf32>
    %60 = arith.addf %54, %59 : vector<16x8xf32>
    %61 = vector.extract_strided_slice %1 {offsets = [10, 0], sizes = [1, 8], strides = [1, 1]} : vector<16x8xf32> to vector<1x8xf32>
    %c10 = arith.constant 10 : index
    %c0_23 = arith.constant 0 : index
    %c0_24 = arith.constant 0 : index
    %62 = vector.load %arg2[%c10, %c0_23, %c0_24] : memref<16x16x8xf32, #tpu.memory_space<vmem>>, vector<1x16x8xf32>
    %63 = vector.shape_cast %62 : vector<1x16x8xf32> to vector<16x8xf32>
    %64 = vector.broadcast %61 : vector<1x8xf32> to vector<16x8xf32>
    %65 = arith.mulf %64, %63 : vector<16x8xf32>
    %66 = arith.addf %60, %65 : vector<16x8xf32>
    %67 = vector.extract_strided_slice %1 {offsets = [11, 0], sizes = [1, 8], strides = [1, 1]} : vector<16x8xf32> to vector<1x8xf32>
    %c11 = arith.constant 11 : index
    %c0_25 = arith.constant 0 : index
    %c0_26 = arith.constant 0 : index
    %68 = vector.load %arg2[%c11, %c0_25, %c0_26] : memref<16x16x8xf32, #tpu.memory_space<vmem>>, vector<1x16x8xf32>
    %69 = vector.shape_cast %68 : vector<1x16x8xf32> to vector<16x8xf32>
    %70 = vector.broadcast %67 : vector<1x8xf32> to vector<16x8xf32>
    %71 = arith.mulf %70, %69 : vector<16x8xf32>
    %72 = arith.addf %66, %71 : vector<16x8xf32>
    %73 = vector.extract_strided_slice %1 {offsets = [12, 0], sizes = [1, 8], strides = [1, 1]} : vector<16x8xf32> to vector<1x8xf32>
    %c12 = arith.constant 12 : index
    %c0_27 = arith.constant 0 : index
    %c0_28 = arith.constant 0 : index
    %74 = vector.load %arg2[%c12, %c0_27, %c0_28] : memref<16x16x8xf32, #tpu.memory_space<vmem>>, vector<1x16x8xf32>
    %75 = vector.shape_cast %74 : vector<1x16x8xf32> to vector<16x8xf32>
    %76 = vector.broadcast %73 : vector<1x8xf32> to vector<16x8xf32>
    %77 = arith.mulf %76, %75 : vector<16x8xf32>
    %78 = arith.addf %72, %77 : vector<16x8xf32>
    %79 = vector.extract_strided_slice %1 {offsets = [13, 0], sizes = [1, 8], strides = [1, 1]} : vector<16x8xf32> to vector<1x8xf32>
    %c13 = arith.constant 13 : index
    %c0_29 = arith.constant 0 : index
    %c0_30 = arith.constant 0 : index
    %80 = vector.load %arg2[%c13, %c0_29, %c0_30] : memref<16x16x8xf32, #tpu.memory_space<vmem>>, vector<1x16x8xf32>
    %81 = vector.shape_cast %80 : vector<1x16x8xf32> to vector<16x8xf32>
    %82 = vector.broadcast %79 : vector<1x8xf32> to vector<16x8xf32>
    %83 = arith.mulf %82, %81 : vector<16x8xf32>
    %84 = arith.addf %78, %83 : vector<16x8xf32>
    %85 = vector.extract_strided_slice %1 {offsets = [14, 0], sizes = [1, 8], strides = [1, 1]} : vector<16x8xf32> to vector<1x8xf32>
    %c14 = arith.constant 14 : index
    %c0_31 = arith.constant 0 : index
    %c0_32 = arith.constant 0 : index
    %86 = vector.load %arg2[%c14, %c0_31, %c0_32] : memref<16x16x8xf32, #tpu.memory_space<vmem>>, vector<1x16x8xf32>
    %87 = vector.shape_cast %86 : vector<1x16x8xf32> to vector<16x8xf32>
    %88 = vector.broadcast %85 : vector<1x8xf32> to vector<16x8xf32>
    %89 = arith.mulf %88, %87 : vector<16x8xf32>
    %90 = arith.addf %84, %89 : vector<16x8xf32>
    %91 = vector.extract_strided_slice %1 {offsets = [15, 0], sizes = [1, 8], strides = [1, 1]} : vector<16x8xf32> to vector<1x8xf32>
    %c15 = arith.constant 15 : index
    %c0_33 = arith.constant 0 : index
    %c0_34 = arith.constant 0 : index
    %92 = vector.load %arg2[%c15, %c0_33, %c0_34] : memref<16x16x8xf32, #tpu.memory_space<vmem>>, vector<1x16x8xf32>
    %93 = vector.shape_cast %92 : vector<1x16x8xf32> to vector<16x8xf32>
    %94 = vector.broadcast %91 : vector<1x8xf32> to vector<16x8xf32>
    %95 = arith.mulf %94, %93 : vector<16x8xf32>
    %96 = arith.addf %90, %95 : vector<16x8xf32>
    %c1_35 = arith.constant 1 : index
    %c0_36 = arith.constant 0 : index
    %c0_37 = arith.constant 0 : index
    %97 = vector.load %arg1[%c1_35, %c0_36, %c0_37] : memref<16x16x8xf32, #tpu.memory_space<vmem>>, vector<1x16x8xf32>
    %98 = vector.shape_cast %97 : vector<1x16x8xf32> to vector<16x8xf32>
    %99 = vector.extract_strided_slice %98 {offsets = [0, 0], sizes = [1, 8], strides = [1, 1]} : vector<16x8xf32> to vector<1x8xf32>
    %c0_38 = arith.constant 0 : index
    %c0_39 = arith.constant 0 : index
    %c0_40 = arith.constant 0 : index
    %100 = vector.load %arg2[%c0_38, %c0_39, %c0_40] : memref<16x16x8xf32, #tpu.memory_space<vmem>>, vector<1x16x8xf32>
    %101 = vector.shape_cast %100 : vector<1x16x8xf32> to vector<16x8xf32>
    %102 = vector.broadcast %99 : vector<1x8xf32> to vector<16x8xf32>
    %103 = arith.mulf %102, %101 : vector<16x8xf32>
    %104 = vector.extract_strided_slice %98 {offsets = [1, 0], sizes = [1, 8], strides = [1, 1]} : vector<16x8xf32> to vector<1x8xf32>
    %c1_41 = arith.constant 1 : index
    %c0_42 = arith.constant 0 : index
    %c0_43 = arith.constant 0 : index
    %105 = vector.load %arg2[%c1_41, %c0_42, %c0_43] : memref<16x16x8xf32, #tpu.memory_space<vmem>>, vector<1x16x8xf32>
    %106 = vector.shape_cast %105 : vector<1x16x8xf32> to vector<16x8xf32>
    %107 = vector.broadcast %104 : vector<1x8xf32> to vector<16x8xf32>
    %108 = arith.mulf %107, %106 : vector<16x8xf32>
    %109 = arith.addf %103, %108 : vector<16x8xf32>
    %110 = vector.extract_strided_slice %98 {offsets = [2, 0], sizes = [1, 8], strides = [1, 1]} : vector<16x8xf32> to vector<1x8xf32>
    %c2_44 = arith.constant 2 : index
    %c0_45 = arith.constant 0 : index
    %c0_46 = arith.constant 0 : index
    %111 = vector.load %arg2[%c2_44, %c0_45, %c0_46] : memref<16x16x8xf32, #tpu.memory_space<vmem>>, vector<1x16x8xf32>
    %112 = vector.shape_cast %111 : vector<1x16x8xf32> to vector<16x8xf32>
    %113 = vector.broadcast %110 : vector<1x8xf32> to vector<16x8xf32>
    %114 = arith.mulf %113, %112 : vector<16x8xf32>
    %115 = arith.addf %109, %114 : vector<16x8xf32>
    %116 = vector.extract_strided_slice %98 {offsets = [3, 0], sizes = [1, 8], strides = [1, 1]} : vector<16x8xf32> to vector<1x8xf32>
    %c3_47 = arith.constant 3 : index
    %c0_48 = arith.constant 0 : index
    %c0_49 = arith.constant 0 : index
    %117 = vector.load %arg2[%c3_47, %c0_48, %c0_49] : memref<16x16x8xf32, #tpu.memory_space<vmem>>, vector<1x16x8xf32>
    %118 = vector.shape_cast %117 : vector<1x16x8xf32> to vector<16x8xf32>
    %119 = vector.broadcast %116 : vector<1x8xf32> to vector<16x8xf32>
    %120 = arith.mulf %119, %118 : vector<16x8xf32>
    %121 = arith.addf %115, %120 : vector<16x8xf32>
    %122 = vector.extract_strided_slice %98 {offsets = [4, 0], sizes = [1, 8], strides = [1, 1]} : vector<16x8xf32> to vector<1x8xf32>
    %c4_50 = arith.constant 4 : index
    %c0_51 = arith.constant 0 : index
    %c0_52 = arith.constant 0 : index
    %123 = vector.load %arg2[%c4_50, %c0_51, %c0_52] : memref<16x16x8xf32, #tpu.memory_space<vmem>>, vector<1x16x8xf32>
    %124 = vector.shape_cast %123 : vector<1x16x8xf32> to vector<16x8xf32>
    %125 = vector.broadcast %122 : vector<1x8xf32> to vector<16x8xf32>
    %126 = arith.mulf %125, %124 : vector<16x8xf32>
    %127 = arith.addf %121, %126 : vector<16x8xf32>
    %128 = vector.extract_strided_slice %98 {offsets = [5, 0], sizes = [1, 8], strides = [1, 1]} : vector<16x8xf32> to vector<1x8xf32>
    %c5_53 = arith.constant 5 : index
    %c0_54 = arith.constant 0 : index
    %c0_55 = arith.constant 0 : index
    %129 = vector.load %arg2[%c5_53, %c0_54, %c0_55] : memref<16x16x8xf32, #tpu.memory_space<vmem>>, vector<1x16x8xf32>
    %130 = vector.shape_cast %129 : vector<1x16x8xf32> to vector<16x8xf32>
    %131 = vector.broadcast %128 : vector<1x8xf32> to vector<16x8xf32>
    %132 = arith.mulf %131, %130 : vector<16x8xf32>
    %133 = arith.addf %127, %132 : vector<16x8xf32>
    %134 = vector.extract_strided_slice %98 {offsets = [6, 0], sizes = [1, 8], strides = [1, 1]} : vector<16x8xf32> to vector<1x8xf32>
    %c6_56 = arith.constant 6 : index
    %c0_57 = arith.constant 0 : index
    %c0_58 = arith.constant 0 : index
    %135 = vector.load %arg2[%c6_56, %c0_57, %c0_58] : memref<16x16x8xf32, #tpu.memory_space<vmem>>, vector<1x16x8xf32>
    %136 = vector.shape_cast %135 : vector<1x16x8xf32> to vector<16x8xf32>
    %137 = vector.broadcast %134 : vector<1x8xf32> to vector<16x8xf32>
    %138 = arith.mulf %137, %136 : vector<16x8xf32>
    %139 = arith.addf %133, %138 : vector<16x8xf32>
    %140 = vector.extract_strided_slice %98 {offsets = [7, 0], sizes = [1, 8], strides = [1, 1]} : vector<16x8xf32> to vector<1x8xf32>
    %c7_59 = arith.constant 7 : index
    %c0_60 = arith.constant 0 : index
    %c0_61 = arith.constant 0 : index
    %141 = vector.load %arg2[%c7_59, %c0_60, %c0_61] : memref<16x16x8xf32, #tpu.memory_space<vmem>>, vector<1x16x8xf32>
    %142 = vector.shape_cast %141 : vector<1x16x8xf32> to vector<16x8xf32>
    %143 = vector.broadcast %140 : vector<1x8xf32> to vector<16x8xf32>
    %144 = arith.mulf %143, %142 : vector<16x8xf32>
    %145 = arith.addf %139, %144 : vector<16x8xf32>
    %146 = vector.extract_strided_slice %98 {offsets = [8, 0], sizes = [1, 8], strides = [1, 1]} : vector<16x8xf32> to vector<1x8xf32>
    %c8_62 = arith.constant 8 : index
    %c0_63 = arith.constant 0 : index
    %c0_64 = arith.constant 0 : index
    %147 = vector.load %arg2[%c8_62, %c0_63, %c0_64] : memref<16x16x8xf32, #tpu.memory_space<vmem>>, vector<1x16x8xf32>
    %148 = vector.shape_cast %147 : vector<1x16x8xf32> to vector<16x8xf32>
    %149 = vector.broadcast %146 : vector<1x8xf32> to vector<16x8xf32>
    %150 = arith.mulf %149, %148 : vector<16x8xf32>
    %151 = arith.addf %145, %150 : vector<16x8xf32>
    %152 = vector.extract_strided_slice %98 {offsets = [9, 0], sizes = [1, 8], strides = [1, 1]} : vector<16x8xf32> to vector<1x8xf32>
    %c9_65 = arith.constant 9 : index
    %c0_66 = arith.constant 0 : index
    %c0_67 = arith.constant 0 : index
    %153 = vector.load %arg2[%c9_65, %c0_66, %c0_67] : memref<16x16x8xf32, #tpu.memory_space<vmem>>, vector<1x16x8xf32>
    %154 = vector.shape_cast %153 : vector<1x16x8xf32> to vector<16x8xf32>
    %155 = vector.broadcast %152 : vector<1x8xf32> to vector<16x8xf32>
    %156 = arith.mulf %155, %154 : vector<16x8xf32>
    %157 = arith.addf %151, %156 : vector<16x8xf32>
    %158 = vector.extract_strided_slice %98 {offsets = [10, 0], sizes = [1, 8], strides = [1, 1]} : vector<16x8xf32> to vector<1x8xf32>
    %c10_68 = arith.constant 10 : index
    %c0_69 = arith.constant 0 : index
    %c0_70 = arith.constant 0 : index
    %159 = vector.load %arg2[%c10_68, %c0_69, %c0_70] : memref<16x16x8xf32, #tpu.memory_space<vmem>>, vector<1x16x8xf32>
    %160 = vector.shape_cast %159 : vector<1x16x8xf32> to vector<16x8xf32>
    %161 = vector.broadcast %158 : vector<1x8xf32> to vector<16x8xf32>
    %162 = arith.mulf %161, %160 : vector<16x8xf32>
    %163 = arith.addf %157, %162 : vector<16x8xf32>
    %164 = vector.extract_strided_slice %98 {offsets = [11, 0], sizes = [1, 8], strides = [1, 1]} : vector<16x8xf32> to vector<1x8xf32>
    %c11_71 = arith.constant 11 : index
    %c0_72 = arith.constant 0 : index
    %c0_73 = arith.constant 0 : index
    %165 = vector.load %arg2[%c11_71, %c0_72, %c0_73] : memref<16x16x8xf32, #tpu.memory_space<vmem>>, vector<1x16x8xf32>
    %166 = vector.shape_cast %165 : vector<1x16x8xf32> to vector<16x8xf32>
    %167 = vector.broadcast %164 : vector<1x8xf32> to vector<16x8xf32>
    %168 = arith.mulf %167, %166 : vector<16x8xf32>
    %169 = arith.addf %163, %168 : vector<16x8xf32>
    %170 = vector.extract_strided_slice %98 {offsets = [12, 0], sizes = [1, 8], strides = [1, 1]} : vector<16x8xf32> to vector<1x8xf32>
    %c12_74 = arith.constant 12 : index
    %c0_75 = arith.constant 0 : index
    %c0_76 = arith.constant 0 : index
    %171 = vector.load %arg2[%c12_74, %c0_75, %c0_76] : memref<16x16x8xf32, #tpu.memory_space<vmem>>, vector<1x16x8xf32>
    %172 = vector.shape_cast %171 : vector<1x16x8xf32> to vector<16x8xf32>
    %173 = vector.broadcast %170 : vector<1x8xf32> to vector<16x8xf32>
    %174 = arith.mulf %173, %172 : vector<16x8xf32>
    %175 = arith.addf %169, %174 : vector<16x8xf32>
    %176 = vector.extract_strided_slice %98 {offsets = [13, 0], sizes = [1, 8], strides = [1, 1]} : vector<16x8xf32> to vector<1x8xf32>
    %c13_77 = arith.constant 13 : index
    %c0_78 = arith.constant 0 : index
    %c0_79 = arith.constant 0 : index
    %177 = vector.load %arg2[%c13_77, %c0_78, %c0_79] : memref<16x16x8xf32, #tpu.memory_space<vmem>>, vector<1x16x8xf32>
    %178 = vector.shape_cast %177 : vector<1x16x8xf32> to vector<16x8xf32>
    %179 = vector.broadcast %176 : vector<1x8xf32> to vector<16x8xf32>
    %180 = arith.mulf %179, %178 : vector<16x8xf32>
    %181 = arith.addf %175, %180 : vector<16x8xf32>
    %182 = vector.extract_strided_slice %98 {offsets = [14, 0], sizes = [1, 8], strides = [1, 1]} : vector<16x8xf32> to vector<1x8xf32>
    %c14_80 = arith.constant 14 : index
    %c0_81 = arith.constant 0 : index
    %c0_82 = arith.constant 0 : index
    %183 = vector.load %arg2[%c14_80, %c0_81, %c0_82] : memref<16x16x8xf32, #tpu.memory_space<vmem>>, vector<1x16x8xf32>
    %184 = vector.shape_cast %183 : vector<1x16x8xf32> to vector<16x8xf32>
    %185 = vector.broadcast %182 : vector<1x8xf32> to vector<16x8xf32>
    %186 = arith.mulf %185, %184 : vector<16x8xf32>
    %187 = arith.addf %181, %186 : vector<16x8xf32>
    %188 = vector.extract_strided_slice %98 {offsets = [15, 0], sizes = [1, 8], strides = [1, 1]} : vector<16x8xf32> to vector<1x8xf32>
    %c15_83 = arith.constant 15 : index
    %c0_84 = arith.constant 0 : index
    %c0_85 = arith.constant 0 : index
    %189 = vector.load %arg2[%c15_83, %c0_84, %c0_85] : memref<16x16x8xf32, #tpu.memory_space<vmem>>, vector<1x16x8xf32>
    %190 = vector.shape_cast %189 : vector<1x16x8xf32> to vector<16x8xf32>
    %191 = vector.broadcast %188 : vector<1x8xf32> to vector<16x8xf32>
    %192 = arith.mulf %191, %190 : vector<16x8xf32>
    %193 = arith.addf %187, %192 : vector<16x8xf32>
    %c2_86 = arith.constant 2 : index
    %c0_87 = arith.constant 0 : index
    %c0_88 = arith.constant 0 : index
    %194 = vector.load %arg1[%c2_86, %c0_87, %c0_88] : memref<16x16x8xf32, #tpu.memory_space<vmem>>, vector<1x16x8xf32>
    %195 = vector.shape_cast %194 : vector<1x16x8xf32> to vector<16x8xf32>
    %196 = vector.extract_strided_slice %195 {offsets = [0, 0], sizes = [1, 8], strides = [1, 1]} : vector<16x8xf32> to vector<1x8xf32>
    %c0_89 = arith.constant 0 : index
    %c0_90 = arith.constant 0 : index
    %c0_91 = arith.constant 0 : index
    %197 = vector.load %arg2[%c0_89, %c0_90, %c0_91] : memref<16x16x8xf32, #tpu.memory_space<vmem>>, vector<1x16x8xf32>
    %198 = vector.shape_cast %197 : vector<1x16x8xf32> to vector<16x8xf32>
    %199 = vector.broadcast %196 : vector<1x8xf32> to vector<16x8xf32>
    %200 = arith.mulf %199, %198 : vector<16x8xf32>
    %201 = vector.extract_strided_slice %195 {offsets = [1, 0], sizes = [1, 8], strides = [1, 1]} : vector<16x8xf32> to vector<1x8xf32>
    %c1_92 = arith.constant 1 : index
    %c0_93 = arith.constant 0 : index
    %c0_94 = arith.constant 0 : index
    %202 = vector.load %arg2[%c1_92, %c0_93, %c0_94] : memref<16x16x8xf32, #tpu.memory_space<vmem>>, vector<1x16x8xf32>
    %203 = vector.shape_cast %202 : vector<1x16x8xf32> to vector<16x8xf32>
    %204 = vector.broadcast %201 : vector<1x8xf32> to vector<16x8xf32>
    %205 = arith.mulf %204, %203 : vector<16x8xf32>
    %206 = arith.addf %200, %205 : vector<16x8xf32>
    %207 = vector.extract_strided_slice %195 {offsets = [2, 0], sizes = [1, 8], strides = [1, 1]} : vector<16x8xf32> to vector<1x8xf32>
    %c2_95 = arith.constant 2 : index
    %c0_96 = arith.constant 0 : index
    %c0_97 = arith.constant 0 : index
    %208 = vector.load %arg2[%c2_95, %c0_96, %c0_97] : memref<16x16x8xf32, #tpu.memory_space<vmem>>, vector<1x16x8xf32>
    %209 = vector.shape_cast %208 : vector<1x16x8xf32> to vector<16x8xf32>
    %210 = vector.broadcast %207 : vector<1x8xf32> to vector<16x8xf32>
    %211 = arith.mulf %210, %209 : vector<16x8xf32>
    %212 = arith.addf %206, %211 : vector<16x8xf32>
    %213 = vector.extract_strided_slice %195 {offsets = [3, 0], sizes = [1, 8], strides = [1, 1]} : vector<16x8xf32> to vector<1x8xf32>
    %c3_98 = arith.constant 3 : index
    %c0_99 = arith.constant 0 : index
    %c0_100 = arith.constant 0 : index
    %214 = vector.load %arg2[%c3_98, %c0_99, %c0_100] : memref<16x16x8xf32, #tpu.memory_space<vmem>>, vector<1x16x8xf32>
    %215 = vector.shape_cast %214 : vector<1x16x8xf32> to vector<16x8xf32>
    %216 = vector.broadcast %213 : vector<1x8xf32> to vector<16x8xf32>
    %217 = arith.mulf %216, %215 : vector<16x8xf32>
    %218 = arith.addf %212, %217 : vector<16x8xf32>
    %219 = vector.extract_strided_slice %195 {offsets = [4, 0], sizes = [1, 8], strides = [1, 1]} : vector<16x8xf32> to vector<1x8xf32>
    %c4_101 = arith.constant 4 : index
    %c0_102 = arith.constant 0 : index
    %c0_103 = arith.constant 0 : index
    %220 = vector.load %arg2[%c4_101, %c0_102, %c0_103] : memref<16x16x8xf32, #tpu.memory_space<vmem>>, vector<1x16x8xf32>
    %221 = vector.shape_cast %220 : vector<1x16x8xf32> to vector<16x8xf32>
    %222 = vector.broadcast %219 : vector<1x8xf32> to vector<16x8xf32>
    %223 = arith.mulf %222, %221 : vector<16x8xf32>
    %224 = arith.addf %218, %223 : vector<16x8xf32>
    %225 = vector.extract_strided_slice %195 {offsets = [5, 0], sizes = [1, 8], strides = [1, 1]} : vector<16x8xf32> to vector<1x8xf32>
    %c5_104 = arith.constant 5 : index
    %c0_105 = arith.constant 0 : index
    %c0_106 = arith.constant 0 : index
    %226 = vector.load %arg2[%c5_104, %c0_105, %c0_106] : memref<16x16x8xf32, #tpu.memory_space<vmem>>, vector<1x16x8xf32>
    %227 = vector.shape_cast %226 : vector<1x16x8xf32> to vector<16x8xf32>
    %228 = vector.broadcast %225 : vector<1x8xf32> to vector<16x8xf32>
    %229 = arith.mulf %228, %227 : vector<16x8xf32>
    %230 = arith.addf %224, %229 : vector<16x8xf32>
    %231 = vector.extract_strided_slice %195 {offsets = [6, 0], sizes = [1, 8], strides = [1, 1]} : vector<16x8xf32> to vector<1x8xf32>
    %c6_107 = arith.constant 6 : index
    %c0_108 = arith.constant 0 : index
    %c0_109 = arith.constant 0 : index
    %232 = vector.load %arg2[%c6_107, %c0_108, %c0_109] : memref<16x16x8xf32, #tpu.memory_space<vmem>>, vector<1x16x8xf32>
    %233 = vector.shape_cast %232 : vector<1x16x8xf32> to vector<16x8xf32>
    %234 = vector.broadcast %231 : vector<1x8xf32> to vector<16x8xf32>
    %235 = arith.mulf %234, %233 : vector<16x8xf32>
    %236 = arith.addf %230, %235 : vector<16x8xf32>
    %237 = vector.extract_strided_slice %195 {offsets = [7, 0], sizes = [1, 8], strides = [1, 1]} : vector<16x8xf32> to vector<1x8xf32>
    %c7_110 = arith.constant 7 : index
    %c0_111 = arith.constant 0 : index
    %c0_112 = arith.constant 0 : index
    %238 = vector.load %arg2[%c7_110, %c0_111, %c0_112] : memref<16x16x8xf32, #tpu.memory_space<vmem>>, vector<1x16x8xf32>
    %239 = vector.shape_cast %238 : vector<1x16x8xf32> to vector<16x8xf32>
    %240 = vector.broadcast %237 : vector<1x8xf32> to vector<16x8xf32>
    %241 = arith.mulf %240, %239 : vector<16x8xf32>
    %242 = arith.addf %236, %241 : vector<16x8xf32>
    %243 = vector.extract_strided_slice %195 {offsets = [8, 0], sizes = [1, 8], strides = [1, 1]} : vector<16x8xf32> to vector<1x8xf32>
    %c8_113 = arith.constant 8 : index
    %c0_114 = arith.constant 0 : index
    %c0_115 = arith.constant 0 : index
    %244 = vector.load %arg2[%c8_113, %c0_114, %c0_115] : memref<16x16x8xf32, #tpu.memory_space<vmem>>, vector<1x16x8xf32>
    %245 = vector.shape_cast %244 : vector<1x16x8xf32> to vector<16x8xf32>
    %246 = vector.broadcast %243 : vector<1x8xf32> to vector<16x8xf32>
    %247 = arith.mulf %246, %245 : vector<16x8xf32>
    %248 = arith.addf %242, %247 : vector<16x8xf32>
    %249 = vector.extract_strided_slice %195 {offsets = [9, 0], sizes = [1, 8], strides = [1, 1]} : vector<16x8xf32> to vector<1x8xf32>
    %c9_116 = arith.constant 9 : index
    %c0_117 = arith.constant 0 : index
    %c0_118 = arith.constant 0 : index
    %250 = vector.load %arg2[%c9_116, %c0_117, %c0_118] : memref<16x16x8xf32, #tpu.memory_space<vmem>>, vector<1x16x8xf32>
    %251 = vector.shape_cast %250 : vector<1x16x8xf32> to vector<16x8xf32>
    %252 = vector.broadcast %249 : vector<1x8xf32> to vector<16x8xf32>
    %253 = arith.mulf %252, %251 : vector<16x8xf32>
    %254 = arith.addf %248, %253 : vector<16x8xf32>
    %255 = vector.extract_strided_slice %195 {offsets = [10, 0], sizes = [1, 8], strides = [1, 1]} : vector<16x8xf32> to vector<1x8xf32>
    %c10_119 = arith.constant 10 : index
    %c0_120 = arith.constant 0 : index
    %c0_121 = arith.constant 0 : index
    %256 = vector.load %arg2[%c10_119, %c0_120, %c0_121] : memref<16x16x8xf32, #tpu.memory_space<vmem>>, vector<1x16x8xf32>
    %257 = vector.shape_cast %256 : vector<1x16x8xf32> to vector<16x8xf32>
    %258 = vector.broadcast %255 : vector<1x8xf32> to vector<16x8xf32>
    %259 = arith.mulf %258, %257 : vector<16x8xf32>
    %260 = arith.addf %254, %259 : vector<16x8xf32>
    %261 = vector.extract_strided_slice %195 {offsets = [11, 0], sizes = [1, 8], strides = [1, 1]} : vector<16x8xf32> to vector<1x8xf32>
    %c11_122 = arith.constant 11 : index
    %c0_123 = arith.constant 0 : index
    %c0_124 = arith.constant 0 : index
    %262 = vector.load %arg2[%c11_122, %c0_123, %c0_124] : memref<16x16x8xf32, #tpu.memory_space<vmem>>, vector<1x16x8xf32>
    %263 = vector.shape_cast %262 : vector<1x16x8xf32> to vector<16x8xf32>
    %264 = vector.broadcast %261 : vector<1x8xf32> to vector<16x8xf32>
    %265 = arith.mulf %264, %263 : vector<16x8xf32>
    %266 = arith.addf %260, %265 : vector<16x8xf32>
    %267 = vector.extract_strided_slice %195 {offsets = [12, 0], sizes = [1, 8], strides = [1, 1]} : vector<16x8xf32> to vector<1x8xf32>
    %c12_125 = arith.constant 12 : index
    %c0_126 = arith.constant 0 : index
    %c0_127 = arith.constant 0 : index
    %268 = vector.load %arg2[%c12_125, %c0_126, %c0_127] : memref<16x16x8xf32, #tpu.memory_space<vmem>>, vector<1x16x8xf32>
    %269 = vector.shape_cast %268 : vector<1x16x8xf32> to vector<16x8xf32>
    %270 = vector.broadcast %267 : vector<1x8xf32> to vector<16x8xf32>
    %271 = arith.mulf %270, %269 : vector<16x8xf32>
    %272 = arith.addf %266, %271 : vector<16x8xf32>
    %273 = vector.extract_strided_slice %195 {offsets = [13, 0], sizes = [1, 8], strides = [1, 1]} : vector<16x8xf32> to vector<1x8xf32>
    %c13_128 = arith.constant 13 : index
    %c0_129 = arith.constant 0 : index
    %c0_130 = arith.constant 0 : index
    %274 = vector.load %arg2[%c13_128, %c0_129, %c0_130] : memref<16x16x8xf32, #tpu.memory_space<vmem>>, vector<1x16x8xf32>
    %275 = vector.shape_cast %274 : vector<1x16x8xf32> to vector<16x8xf32>
    %276 = vector.broadcast %273 : vector<1x8xf32> to vector<16x8xf32>
    %277 = arith.mulf %276, %275 : vector<16x8xf32>
    %278 = arith.addf %272, %277 : vector<16x8xf32>
    %279 = vector.extract_strided_slice %195 {offsets = [14, 0], sizes = [1, 8], strides = [1, 1]} : vector<16x8xf32> to vector<1x8xf32>
    %c14_131 = arith.constant 14 : index
    %c0_132 = arith.constant 0 : index
    %c0_133 = arith.constant 0 : index
    %280 = vector.load %arg2[%c14_131, %c0_132, %c0_133] : memref<16x16x8xf32, #tpu.memory_space<vmem>>, vector<1x16x8xf32>
    %281 = vector.shape_cast %280 : vector<1x16x8xf32> to vector<16x8xf32>
    %282 = vector.broadcast %279 : vector<1x8xf32> to vector<16x8xf32>
    %283 = arith.mulf %282, %281 : vector<16x8xf32>
    %284 = arith.addf %278, %283 : vector<16x8xf32>
    %285 = vector.extract_strided_slice %195 {offsets = [15, 0], sizes = [1, 8], strides = [1, 1]} : vector<16x8xf32> to vector<1x8xf32>
    %c15_134 = arith.constant 15 : index
    %c0_135 = arith.constant 0 : index
    %c0_136 = arith.constant 0 : index
    %286 = vector.load %arg2[%c15_134, %c0_135, %c0_136] : memref<16x16x8xf32, #tpu.memory_space<vmem>>, vector<1x16x8xf32>
    %287 = vector.shape_cast %286 : vector<1x16x8xf32> to vector<16x8xf32>
    %288 = vector.broadcast %285 : vector<1x8xf32> to vector<16x8xf32>
    %289 = arith.mulf %288, %287 : vector<16x8xf32>
    %290 = arith.addf %284, %289 : vector<16x8xf32>
    %c3_137 = arith.constant 3 : index
    %c0_138 = arith.constant 0 : index
    %c0_139 = arith.constant 0 : index
    %291 = vector.load %arg1[%c3_137, %c0_138, %c0_139] : memref<16x16x8xf32, #tpu.memory_space<vmem>>, vector<1x16x8xf32>
    %292 = vector.shape_cast %291 : vector<1x16x8xf32> to vector<16x8xf32>
    %293 = vector.extract_strided_slice %292 {offsets = [0, 0], sizes = [1, 8], strides = [1, 1]} : vector<16x8xf32> to vector<1x8xf32>
    %c0_140 = arith.constant 0 : index
    %c0_141 = arith.constant 0 : index
    %c0_142 = arith.constant 0 : index
    %294 = vector.load %arg2[%c0_140, %c0_141, %c0_142] : memref<16x16x8xf32, #tpu.memory_space<vmem>>, vector<1x16x8xf32>
    %295 = vector.shape_cast %294 : vector<1x16x8xf32> to vector<16x8xf32>
    %296 = vector.broadcast %293 : vector<1x8xf32> to vector<16x8xf32>
    %297 = arith.mulf %296, %295 : vector<16x8xf32>
    %298 = vector.extract_strided_slice %292 {offsets = [1, 0], sizes = [1, 8], strides = [1, 1]} : vector<16x8xf32> to vector<1x8xf32>
    %c1_143 = arith.constant 1 : index
    %c0_144 = arith.constant 0 : index
    %c0_145 = arith.constant 0 : index
    %299 = vector.load %arg2[%c1_143, %c0_144, %c0_145] : memref<16x16x8xf32, #tpu.memory_space<vmem>>, vector<1x16x8xf32>
    %300 = vector.shape_cast %299 : vector<1x16x8xf32> to vector<16x8xf32>
    %301 = vector.broadcast %298 : vector<1x8xf32> to vector<16x8xf32>
    %302 = arith.mulf %301, %300 : vector<16x8xf32>
    %303 = arith.addf %297, %302 : vector<16x8xf32>
    %304 = vector.extract_strided_slice %292 {offsets = [2, 0], sizes = [1, 8], strides = [1, 1]} : vector<16x8xf32> to vector<1x8xf32>
    %c2_146 = arith.constant 2 : index
    %c0_147 = arith.constant 0 : index
    %c0_148 = arith.constant 0 : index
    %305 = vector.load %arg2[%c2_146, %c0_147, %c0_148] : memref<16x16x8xf32, #tpu.memory_space<vmem>>, vector<1x16x8xf32>
    %306 = vector.shape_cast %305 : vector<1x16x8xf32> to vector<16x8xf32>
    %307 = vector.broadcast %304 : vector<1x8xf32> to vector<16x8xf32>
    %308 = arith.mulf %307, %306 : vector<16x8xf32>
    %309 = arith.addf %303, %308 : vector<16x8xf32>
    %310 = vector.extract_strided_slice %292 {offsets = [3, 0], sizes = [1, 8], strides = [1, 1]} : vector<16x8xf32> to vector<1x8xf32>
    %c3_149 = arith.constant 3 : index
    %c0_150 = arith.constant 0 : index
    %c0_151 = arith.constant 0 : index
    %311 = vector.load %arg2[%c3_149, %c0_150, %c0_151] : memref<16x16x8xf32, #tpu.memory_space<vmem>>, vector<1x16x8xf32>
    %312 = vector.shape_cast %311 : vector<1x16x8xf32> to vector<16x8xf32>
    %313 = vector.broadcast %310 : vector<1x8xf32> to vector<16x8xf32>
    %314 = arith.mulf %313, %312 : vector<16x8xf32>
    %315 = arith.addf %309, %314 : vector<16x8xf32>
    %316 = vector.extract_strided_slice %292 {offsets = [4, 0], sizes = [1, 8], strides = [1, 1]} : vector<16x8xf32> to vector<1x8xf32>
    %c4_152 = arith.constant 4 : index
    %c0_153 = arith.constant 0 : index
    %c0_154 = arith.constant 0 : index
    %317 = vector.load %arg2[%c4_152, %c0_153, %c0_154] : memref<16x16x8xf32, #tpu.memory_space<vmem>>, vector<1x16x8xf32>
    %318 = vector.shape_cast %317 : vector<1x16x8xf32> to vector<16x8xf32>
    %319 = vector.broadcast %316 : vector<1x8xf32> to vector<16x8xf32>
    %320 = arith.mulf %319, %318 : vector<16x8xf32>
    %321 = arith.addf %315, %320 : vector<16x8xf32>
    %322 = vector.extract_strided_slice %292 {offsets = [5, 0], sizes = [1, 8], strides = [1, 1]} : vector<16x8xf32> to vector<1x8xf32>
    %c5_155 = arith.constant 5 : index
    %c0_156 = arith.constant 0 : index
    %c0_157 = arith.constant 0 : index
    %323 = vector.load %arg2[%c5_155, %c0_156, %c0_157] : memref<16x16x8xf32, #tpu.memory_space<vmem>>, vector<1x16x8xf32>
    %324 = vector.shape_cast %323 : vector<1x16x8xf32> to vector<16x8xf32>
    %325 = vector.broadcast %322 : vector<1x8xf32> to vector<16x8xf32>
    %326 = arith.mulf %325, %324 : vector<16x8xf32>
    %327 = arith.addf %321, %326 : vector<16x8xf32>
    %328 = vector.extract_strided_slice %292 {offsets = [6, 0], sizes = [1, 8], strides = [1, 1]} : vector<16x8xf32> to vector<1x8xf32>
    %c6_158 = arith.constant 6 : index
    %c0_159 = arith.constant 0 : index
    %c0_160 = arith.constant 0 : index
    %329 = vector.load %arg2[%c6_158, %c0_159, %c0_160] : memref<16x16x8xf32, #tpu.memory_space<vmem>>, vector<1x16x8xf32>
    %330 = vector.shape_cast %329 : vector<1x16x8xf32> to vector<16x8xf32>
    %331 = vector.broadcast %328 : vector<1x8xf32> to vector<16x8xf32>
    %332 = arith.mulf %331, %330 : vector<16x8xf32>
    %333 = arith.addf %327, %332 : vector<16x8xf32>
    %334 = vector.extract_strided_slice %292 {offsets = [7, 0], sizes = [1, 8], strides = [1, 1]} : vector<16x8xf32> to vector<1x8xf32>
    %c7_161 = arith.constant 7 : index
    %c0_162 = arith.constant 0 : index
    %c0_163 = arith.constant 0 : index
    %335 = vector.load %arg2[%c7_161, %c0_162, %c0_163] : memref<16x16x8xf32, #tpu.memory_space<vmem>>, vector<1x16x8xf32>
    %336 = vector.shape_cast %335 : vector<1x16x8xf32> to vector<16x8xf32>
    %337 = vector.broadcast %334 : vector<1x8xf32> to vector<16x8xf32>
    %338 = arith.mulf %337, %336 : vector<16x8xf32>
    %339 = arith.addf %333, %338 : vector<16x8xf32>
    %340 = vector.extract_strided_slice %292 {offsets = [8, 0], sizes = [1, 8], strides = [1, 1]} : vector<16x8xf32> to vector<1x8xf32>
    %c8_164 = arith.constant 8 : index
    %c0_165 = arith.constant 0 : index
    %c0_166 = arith.constant 0 : index
    %341 = vector.load %arg2[%c8_164, %c0_165, %c0_166] : memref<16x16x8xf32, #tpu.memory_space<vmem>>, vector<1x16x8xf32>
    %342 = vector.shape_cast %341 : vector<1x16x8xf32> to vector<16x8xf32>
    %343 = vector.broadcast %340 : vector<1x8xf32> to vector<16x8xf32>
    %344 = arith.mulf %343, %342 : vector<16x8xf32>
    %345 = arith.addf %339, %344 : vector<16x8xf32>
    %346 = vector.extract_strided_slice %292 {offsets = [9, 0], sizes = [1, 8], strides = [1, 1]} : vector<16x8xf32> to vector<1x8xf32>
    %c9_167 = arith.constant 9 : index
    %c0_168 = arith.constant 0 : index
    %c0_169 = arith.constant 0 : index
    %347 = vector.load %arg2[%c9_167, %c0_168, %c0_169] : memref<16x16x8xf32, #tpu.memory_space<vmem>>, vector<1x16x8xf32>
    %348 = vector.shape_cast %347 : vector<1x16x8xf32> to vector<16x8xf32>
    %349 = vector.broadcast %346 : vector<1x8xf32> to vector<16x8xf32>
    %350 = arith.mulf %349, %348 : vector<16x8xf32>
    %351 = arith.addf %345, %350 : vector<16x8xf32>
    %352 = vector.extract_strided_slice %292 {offsets = [10, 0], sizes = [1, 8], strides = [1, 1]} : vector<16x8xf32> to vector<1x8xf32>
    %c10_170 = arith.constant 10 : index
    %c0_171 = arith.constant 0 : index
    %c0_172 = arith.constant 0 : index
    %353 = vector.load %arg2[%c10_170, %c0_171, %c0_172] : memref<16x16x8xf32, #tpu.memory_space<vmem>>, vector<1x16x8xf32>
    %354 = vector.shape_cast %353 : vector<1x16x8xf32> to vector<16x8xf32>
    %355 = vector.broadcast %352 : vector<1x8xf32> to vector<16x8xf32>
    %356 = arith.mulf %355, %354 : vector<16x8xf32>
    %357 = arith.addf %351, %356 : vector<16x8xf32>
    %358 = vector.extract_strided_slice %292 {offsets = [11, 0], sizes = [1, 8], strides = [1, 1]} : vector<16x8xf32> to vector<1x8xf32>
    %c11_173 = arith.constant 11 : index
    %c0_174 = arith.constant 0 : index
    %c0_175 = arith.constant 0 : index
    %359 = vector.load %arg2[%c11_173, %c0_174, %c0_175] : memref<16x16x8xf32, #tpu.memory_space<vmem>>, vector<1x16x8xf32>
    %360 = vector.shape_cast %359 : vector<1x16x8xf32> to vector<16x8xf32>
    %361 = vector.broadcast %358 : vector<1x8xf32> to vector<16x8xf32>
    %362 = arith.mulf %361, %360 : vector<16x8xf32>
    %363 = arith.addf %357, %362 : vector<16x8xf32>
    %364 = vector.extract_strided_slice %292 {offsets = [12, 0], sizes = [1, 8], strides = [1, 1]} : vector<16x8xf32> to vector<1x8xf32>
    %c12_176 = arith.constant 12 : index
    %c0_177 = arith.constant 0 : index
    %c0_178 = arith.constant 0 : index
    %365 = vector.load %arg2[%c12_176, %c0_177, %c0_178] : memref<16x16x8xf32, #tpu.memory_space<vmem>>, vector<1x16x8xf32>
    %366 = vector.shape_cast %365 : vector<1x16x8xf32> to vector<16x8xf32>
    %367 = vector.broadcast %364 : vector<1x8xf32> to vector<16x8xf32>
    %368 = arith.mulf %367, %366 : vector<16x8xf32>
    %369 = arith.addf %363, %368 : vector<16x8xf32>
    %370 = vector.extract_strided_slice %292 {offsets = [13, 0], sizes = [1, 8], strides = [1, 1]} : vector<16x8xf32> to vector<1x8xf32>
    %c13_179 = arith.constant 13 : index
    %c0_180 = arith.constant 0 : index
    %c0_181 = arith.constant 0 : index
    %371 = vector.load %arg2[%c13_179, %c0_180, %c0_181] : memref<16x16x8xf32, #tpu.memory_space<vmem>>, vector<1x16x8xf32>
    %372 = vector.shape_cast %371 : vector<1x16x8xf32> to vector<16x8xf32>
    %373 = vector.broadcast %370 : vector<1x8xf32> to vector<16x8xf32>
    %374 = arith.mulf %373, %372 : vector<16x8xf32>
    %375 = arith.addf %369, %374 : vector<16x8xf32>
    %376 = vector.extract_strided_slice %292 {offsets = [14, 0], sizes = [1, 8], strides = [1, 1]} : vector<16x8xf32> to vector<1x8xf32>
    %c14_182 = arith.constant 14 : index
    %c0_183 = arith.constant 0 : index
    %c0_184 = arith.constant 0 : index
    %377 = vector.load %arg2[%c14_182, %c0_183, %c0_184] : memref<16x16x8xf32, #tpu.memory_space<vmem>>, vector<1x16x8xf32>
    %378 = vector.shape_cast %377 : vector<1x16x8xf32> to vector<16x8xf32>
    %379 = vector.broadcast %376 : vector<1x8xf32> to vector<16x8xf32>
    %380 = arith.mulf %379, %378 : vector<16x8xf32>
    %381 = arith.addf %375, %380 : vector<16x8xf32>
    %382 = vector.extract_strided_slice %292 {offsets = [15, 0], sizes = [1, 8], strides = [1, 1]} : vector<16x8xf32> to vector<1x8xf32>
    %c15_185 = arith.constant 15 : index
    %c0_186 = arith.constant 0 : index
    %c0_187 = arith.constant 0 : index
    %383 = vector.load %arg2[%c15_185, %c0_186, %c0_187] : memref<16x16x8xf32, #tpu.memory_space<vmem>>, vector<1x16x8xf32>
    %384 = vector.shape_cast %383 : vector<1x16x8xf32> to vector<16x8xf32>
    %385 = vector.broadcast %382 : vector<1x8xf32> to vector<16x8xf32>
    %386 = arith.mulf %385, %384 : vector<16x8xf32>
    %387 = arith.addf %381, %386 : vector<16x8xf32>
    %c4_188 = arith.constant 4 : index
    %c0_189 = arith.constant 0 : index
    %c0_190 = arith.constant 0 : index
    %388 = vector.load %arg1[%c4_188, %c0_189, %c0_190] : memref<16x16x8xf32, #tpu.memory_space<vmem>>, vector<1x16x8xf32>
    %389 = vector.shape_cast %388 : vector<1x16x8xf32> to vector<16x8xf32>
    %390 = vector.extract_strided_slice %389 {offsets = [0, 0], sizes = [1, 8], strides = [1, 1]} : vector<16x8xf32> to vector<1x8xf32>
    %c0_191 = arith.constant 0 : index
    %c0_192 = arith.constant 0 : index
    %c0_193 = arith.constant 0 : index
    %391 = vector.load %arg2[%c0_191, %c0_192, %c0_193] : memref<16x16x8xf32, #tpu.memory_space<vmem>>, vector<1x16x8xf32>
    %392 = vector.shape_cast %391 : vector<1x16x8xf32> to vector<16x8xf32>
    %393 = vector.broadcast %390 : vector<1x8xf32> to vector<16x8xf32>
    %394 = arith.mulf %393, %392 : vector<16x8xf32>
    %395 = vector.extract_strided_slice %389 {offsets = [1, 0], sizes = [1, 8], strides = [1, 1]} : vector<16x8xf32> to vector<1x8xf32>
    %c1_194 = arith.constant 1 : index
    %c0_195 = arith.constant 0 : index
    %c0_196 = arith.constant 0 : index
    %396 = vector.load %arg2[%c1_194, %c0_195, %c0_196] : memref<16x16x8xf32, #tpu.memory_space<vmem>>, vector<1x16x8xf32>
    %397 = vector.shape_cast %396 : vector<1x16x8xf32> to vector<16x8xf32>
    %398 = vector.broadcast %395 : vector<1x8xf32> to vector<16x8xf32>
    %399 = arith.mulf %398, %397 : vector<16x8xf32>
    %400 = arith.addf %394, %399 : vector<16x8xf32>
    %401 = vector.extract_strided_slice %389 {offsets = [2, 0], sizes = [1, 8], strides = [1, 1]} : vector<16x8xf32> to vector<1x8xf32>
    %c2_197 = arith.constant 2 : index
    %c0_198 = arith.constant 0 : index
    %c0_199 = arith.constant 0 : index
    %402 = vector.load %arg2[%c2_197, %c0_198, %c0_199] : memref<16x16x8xf32, #tpu.memory_space<vmem>>, vector<1x16x8xf32>
    %403 = vector.shape_cast %402 : vector<1x16x8xf32> to vector<16x8xf32>
    %404 = vector.broadcast %401 : vector<1x8xf32> to vector<16x8xf32>
    %405 = arith.mulf %404, %403 : vector<16x8xf32>
    %406 = arith.addf %400, %405 : vector<16x8xf32>
    %407 = vector.extract_strided_slice %389 {offsets = [3, 0], sizes = [1, 8], strides = [1, 1]} : vector<16x8xf32> to vector<1x8xf32>
    %c3_200 = arith.constant 3 : index
    %c0_201 = arith.constant 0 : index
    %c0_202 = arith.constant 0 : index
    %408 = vector.load %arg2[%c3_200, %c0_201, %c0_202] : memref<16x16x8xf32, #tpu.memory_space<vmem>>, vector<1x16x8xf32>
    %409 = vector.shape_cast %408 : vector<1x16x8xf32> to vector<16x8xf32>
    %410 = vector.broadcast %407 : vector<1x8xf32> to vector<16x8xf32>
    %411 = arith.mulf %410, %409 : vector<16x8xf32>
    %412 = arith.addf %406, %411 : vector<16x8xf32>
    %413 = vector.extract_strided_slice %389 {offsets = [4, 0], sizes = [1, 8], strides = [1, 1]} : vector<16x8xf32> to vector<1x8xf32>
    %c4_203 = arith.constant 4 : index
    %c0_204 = arith.constant 0 : index
    %c0_205 = arith.constant 0 : index
    %414 = vector.load %arg2[%c4_203, %c0_204, %c0_205] : memref<16x16x8xf32, #tpu.memory_space<vmem>>, vector<1x16x8xf32>
    %415 = vector.shape_cast %414 : vector<1x16x8xf32> to vector<16x8xf32>
    %416 = vector.broadcast %413 : vector<1x8xf32> to vector<16x8xf32>
    %417 = arith.mulf %416, %415 : vector<16x8xf32>
    %418 = arith.addf %412, %417 : vector<16x8xf32>
    %419 = vector.extract_strided_slice %389 {offsets = [5, 0], sizes = [1, 8], strides = [1, 1]} : vector<16x8xf32> to vector<1x8xf32>
    %c5_206 = arith.constant 5 : index
    %c0_207 = arith.constant 0 : index
    %c0_208 = arith.constant 0 : index
    %420 = vector.load %arg2[%c5_206, %c0_207, %c0_208] : memref<16x16x8xf32, #tpu.memory_space<vmem>>, vector<1x16x8xf32>
    %421 = vector.shape_cast %420 : vector<1x16x8xf32> to vector<16x8xf32>
    %422 = vector.broadcast %419 : vector<1x8xf32> to vector<16x8xf32>
    %423 = arith.mulf %422, %421 : vector<16x8xf32>
    %424 = arith.addf %418, %423 : vector<16x8xf32>
    %425 = vector.extract_strided_slice %389 {offsets = [6, 0], sizes = [1, 8], strides = [1, 1]} : vector<16x8xf32> to vector<1x8xf32>
    %c6_209 = arith.constant 6 : index
    %c0_210 = arith.constant 0 : index
    %c0_211 = arith.constant 0 : index
    %426 = vector.load %arg2[%c6_209, %c0_210, %c0_211] : memref<16x16x8xf32, #tpu.memory_space<vmem>>, vector<1x16x8xf32>
    %427 = vector.shape_cast %426 : vector<1x16x8xf32> to vector<16x8xf32>
    %428 = vector.broadcast %425 : vector<1x8xf32> to vector<16x8xf32>
    %429 = arith.mulf %428, %427 : vector<16x8xf32>
    %430 = arith.addf %424, %429 : vector<16x8xf32>
    %431 = vector.extract_strided_slice %389 {offsets = [7, 0], sizes = [1, 8], strides = [1, 1]} : vector<16x8xf32> to vector<1x8xf32>
    %c7_212 = arith.constant 7 : index
    %c0_213 = arith.constant 0 : index
    %c0_214 = arith.constant 0 : index
    %432 = vector.load %arg2[%c7_212, %c0_213, %c0_214] : memref<16x16x8xf32, #tpu.memory_space<vmem>>, vector<1x16x8xf32>
    %433 = vector.shape_cast %432 : vector<1x16x8xf32> to vector<16x8xf32>
    %434 = vector.broadcast %431 : vector<1x8xf32> to vector<16x8xf32>
    %435 = arith.mulf %434, %433 : vector<16x8xf32>
    %436 = arith.addf %430, %435 : vector<16x8xf32>
    %437 = vector.extract_strided_slice %389 {offsets = [8, 0], sizes = [1, 8], strides = [1, 1]} : vector<16x8xf32> to vector<1x8xf32>
    %c8_215 = arith.constant 8 : index
    %c0_216 = arith.constant 0 : index
    %c0_217 = arith.constant 0 : index
    %438 = vector.load %arg2[%c8_215, %c0_216, %c0_217] : memref<16x16x8xf32, #tpu.memory_space<vmem>>, vector<1x16x8xf32>
    %439 = vector.shape_cast %438 : vector<1x16x8xf32> to vector<16x8xf32>
    %440 = vector.broadcast %437 : vector<1x8xf32> to vector<16x8xf32>
    %441 = arith.mulf %440, %439 : vector<16x8xf32>
    %442 = arith.addf %436, %441 : vector<16x8xf32>
    %443 = vector.extract_strided_slice %389 {offsets = [9, 0], sizes = [1, 8], strides = [1, 1]} : vector<16x8xf32> to vector<1x8xf32>
    %c9_218 = arith.constant 9 : index
    %c0_219 = arith.constant 0 : index
    %c0_220 = arith.constant 0 : index
    %444 = vector.load %arg2[%c9_218, %c0_219, %c0_220] : memref<16x16x8xf32, #tpu.memory_space<vmem>>, vector<1x16x8xf32>
    %445 = vector.shape_cast %444 : vector<1x16x8xf32> to vector<16x8xf32>
    %446 = vector.broadcast %443 : vector<1x8xf32> to vector<16x8xf32>
    %447 = arith.mulf %446, %445 : vector<16x8xf32>
    %448 = arith.addf %442, %447 : vector<16x8xf32>
    %449 = vector.extract_strided_slice %389 {offsets = [10, 0], sizes = [1, 8], strides = [1, 1]} : vector<16x8xf32> to vector<1x8xf32>
    %c10_221 = arith.constant 10 : index
    %c0_222 = arith.constant 0 : index
    %c0_223 = arith.constant 0 : index
    %450 = vector.load %arg2[%c10_221, %c0_222, %c0_223] : memref<16x16x8xf32, #tpu.memory_space<vmem>>, vector<1x16x8xf32>
    %451 = vector.shape_cast %450 : vector<1x16x8xf32> to vector<16x8xf32>
    %452 = vector.broadcast %449 : vector<1x8xf32> to vector<16x8xf32>
    %453 = arith.mulf %452, %451 : vector<16x8xf32>
    %454 = arith.addf %448, %453 : vector<16x8xf32>
    %455 = vector.extract_strided_slice %389 {offsets = [11, 0], sizes = [1, 8], strides = [1, 1]} : vector<16x8xf32> to vector<1x8xf32>
    %c11_224 = arith.constant 11 : index
    %c0_225 = arith.constant 0 : index
    %c0_226 = arith.constant 0 : index
    %456 = vector.load %arg2[%c11_224, %c0_225, %c0_226] : memref<16x16x8xf32, #tpu.memory_space<vmem>>, vector<1x16x8xf32>
    %457 = vector.shape_cast %456 : vector<1x16x8xf32> to vector<16x8xf32>
    %458 = vector.broadcast %455 : vector<1x8xf32> to vector<16x8xf32>
    %459 = arith.mulf %458, %457 : vector<16x8xf32>
    %460 = arith.addf %454, %459 : vector<16x8xf32>
    %461 = vector.extract_strided_slice %389 {offsets = [12, 0], sizes = [1, 8], strides = [1, 1]} : vector<16x8xf32> to vector<1x8xf32>
    %c12_227 = arith.constant 12 : index
    %c0_228 = arith.constant 0 : index
    %c0_229 = arith.constant 0 : index
    %462 = vector.load %arg2[%c12_227, %c0_228, %c0_229] : memref<16x16x8xf32, #tpu.memory_space<vmem>>, vector<1x16x8xf32>
    %463 = vector.shape_cast %462 : vector<1x16x8xf32> to vector<16x8xf32>
    %464 = vector.broadcast %461 : vector<1x8xf32> to vector<16x8xf32>
    %465 = arith.mulf %464, %463 : vector<16x8xf32>
    %466 = arith.addf %460, %465 : vector<16x8xf32>
    %467 = vector.extract_strided_slice %389 {offsets = [13, 0], sizes = [1, 8], strides = [1, 1]} : vector<16x8xf32> to vector<1x8xf32>
    %c13_230 = arith.constant 13 : index
    %c0_231 = arith.constant 0 : index
    %c0_232 = arith.constant 0 : index
    %468 = vector.load %arg2[%c13_230, %c0_231, %c0_232] : memref<16x16x8xf32, #tpu.memory_space<vmem>>, vector<1x16x8xf32>
    %469 = vector.shape_cast %468 : vector<1x16x8xf32> to vector<16x8xf32>
    %470 = vector.broadcast %467 : vector<1x8xf32> to vector<16x8xf32>
    %471 = arith.mulf %470, %469 : vector<16x8xf32>
    %472 = arith.addf %466, %471 : vector<16x8xf32>
    %473 = vector.extract_strided_slice %389 {offsets = [14, 0], sizes = [1, 8], strides = [1, 1]} : vector<16x8xf32> to vector<1x8xf32>
    %c14_233 = arith.constant 14 : index
    %c0_234 = arith.constant 0 : index
    %c0_235 = arith.constant 0 : index
    %474 = vector.load %arg2[%c14_233, %c0_234, %c0_235] : memref<16x16x8xf32, #tpu.memory_space<vmem>>, vector<1x16x8xf32>
    %475 = vector.shape_cast %474 : vector<1x16x8xf32> to vector<16x8xf32>
    %476 = vector.broadcast %473 : vector<1x8xf32> to vector<16x8xf32>
    %477 = arith.mulf %476, %475 : vector<16x8xf32>
    %478 = arith.addf %472, %477 : vector<16x8xf32>
    %479 = vector.extract_strided_slice %389 {offsets = [15, 0], sizes = [1, 8], strides = [1, 1]} : vector<16x8xf32> to vector<1x8xf32>
    %c15_236 = arith.constant 15 : index
    %c0_237 = arith.constant 0 : index
    %c0_238 = arith.constant 0 : index
    %480 = vector.load %arg2[%c15_236, %c0_237, %c0_238] : memref<16x16x8xf32, #tpu.memory_space<vmem>>, vector<1x16x8xf32>
    %481 = vector.shape_cast %480 : vector<1x16x8xf32> to vector<16x8xf32>
    %482 = vector.broadcast %479 : vector<1x8xf32> to vector<16x8xf32>
    %483 = arith.mulf %482, %481 : vector<16x8xf32>
    %484 = arith.addf %478, %483 : vector<16x8xf32>
    %c5_239 = arith.constant 5 : index
    %c0_240 = arith.constant 0 : index
    %c0_241 = arith.constant 0 : index
    %485 = vector.load %arg1[%c5_239, %c0_240, %c0_241] : memref<16x16x8xf32, #tpu.memory_space<vmem>>, vector<1x16x8xf32>
    %486 = vector.shape_cast %485 : vector<1x16x8xf32> to vector<16x8xf32>
    %487 = vector.extract_strided_slice %486 {offsets = [0, 0], sizes = [1, 8], strides = [1, 1]} : vector<16x8xf32> to vector<1x8xf32>
    %c0_242 = arith.constant 0 : index
    %c0_243 = arith.constant 0 : index
    %c0_244 = arith.constant 0 : index
    %488 = vector.load %arg2[%c0_242, %c0_243, %c0_244] : memref<16x16x8xf32, #tpu.memory_space<vmem>>, vector<1x16x8xf32>
    %489 = vector.shape_cast %488 : vector<1x16x8xf32> to vector<16x8xf32>
    %490 = vector.broadcast %487 : vector<1x8xf32> to vector<16x8xf32>
    %491 = arith.mulf %490, %489 : vector<16x8xf32>
    %492 = vector.extract_strided_slice %486 {offsets = [1, 0], sizes = [1, 8], strides = [1, 1]} : vector<16x8xf32> to vector<1x8xf32>
    %c1_245 = arith.constant 1 : index
    %c0_246 = arith.constant 0 : index
    %c0_247 = arith.constant 0 : index
    %493 = vector.load %arg2[%c1_245, %c0_246, %c0_247] : memref<16x16x8xf32, #tpu.memory_space<vmem>>, vector<1x16x8xf32>
    %494 = vector.shape_cast %493 : vector<1x16x8xf32> to vector<16x8xf32>
    %495 = vector.broadcast %492 : vector<1x8xf32> to vector<16x8xf32>
    %496 = arith.mulf %495, %494 : vector<16x8xf32>
    %497 = arith.addf %491, %496 : vector<16x8xf32>
    %498 = vector.extract_strided_slice %486 {offsets = [2, 0], sizes = [1, 8], strides = [1, 1]} : vector<16x8xf32> to vector<1x8xf32>
    %c2_248 = arith.constant 2 : index
    %c0_249 = arith.constant 0 : index
    %c0_250 = arith.constant 0 : index
    %499 = vector.load %arg2[%c2_248, %c0_249, %c0_250] : memref<16x16x8xf32, #tpu.memory_space<vmem>>, vector<1x16x8xf32>
    %500 = vector.shape_cast %499 : vector<1x16x8xf32> to vector<16x8xf32>
    %501 = vector.broadcast %498 : vector<1x8xf32> to vector<16x8xf32>
    %502 = arith.mulf %501, %500 : vector<16x8xf32>
    %503 = arith.addf %497, %502 : vector<16x8xf32>
    %504 = vector.extract_strided_slice %486 {offsets = [3, 0], sizes = [1, 8], strides = [1, 1]} : vector<16x8xf32> to vector<1x8xf32>
    %c3_251 = arith.constant 3 : index
    %c0_252 = arith.constant 0 : index
    %c0_253 = arith.constant 0 : index
    %505 = vector.load %arg2[%c3_251, %c0_252, %c0_253] : memref<16x16x8xf32, #tpu.memory_space<vmem>>, vector<1x16x8xf32>
    %506 = vector.shape_cast %505 : vector<1x16x8xf32> to vector<16x8xf32>
    %507 = vector.broadcast %504 : vector<1x8xf32> to vector<16x8xf32>
    %508 = arith.mulf %507, %506 : vector<16x8xf32>
    %509 = arith.addf %503, %508 : vector<16x8xf32>
    %510 = vector.extract_strided_slice %486 {offsets = [4, 0], sizes = [1, 8], strides = [1, 1]} : vector<16x8xf32> to vector<1x8xf32>
    %c4_254 = arith.constant 4 : index
    %c0_255 = arith.constant 0 : index
    %c0_256 = arith.constant 0 : index
    %511 = vector.load %arg2[%c4_254, %c0_255, %c0_256] : memref<16x16x8xf32, #tpu.memory_space<vmem>>, vector<1x16x8xf32>
    %512 = vector.shape_cast %511 : vector<1x16x8xf32> to vector<16x8xf32>
    %513 = vector.broadcast %510 : vector<1x8xf32> to vector<16x8xf32>
    %514 = arith.mulf %513, %512 : vector<16x8xf32>
    %515 = arith.addf %509, %514 : vector<16x8xf32>
    %516 = vector.extract_strided_slice %486 {offsets = [5, 0], sizes = [1, 8], strides = [1, 1]} : vector<16x8xf32> to vector<1x8xf32>
    %c5_257 = arith.constant 5 : index
    %c0_258 = arith.constant 0 : index
    %c0_259 = arith.constant 0 : index
    %517 = vector.load %arg2[%c5_257, %c0_258, %c0_259] : memref<16x16x8xf32, #tpu.memory_space<vmem>>, vector<1x16x8xf32>
    %518 = vector.shape_cast %517 : vector<1x16x8xf32> to vector<16x8xf32>
    %519 = vector.broadcast %516 : vector<1x8xf32> to vector<16x8xf32>
    %520 = arith.mulf %519, %518 : vector<16x8xf32>
    %521 = arith.addf %515, %520 : vector<16x8xf32>
    %522 = vector.extract_strided_slice %486 {offsets = [6, 0], sizes = [1, 8], strides = [1, 1]} : vector<16x8xf32> to vector<1x8xf32>
    %c6_260 = arith.constant 6 : index
    %c0_261 = arith.constant 0 : index
    %c0_262 = arith.constant 0 : index
    %523 = vector.load %arg2[%c6_260, %c0_261, %c0_262] : memref<16x16x8xf32, #tpu.memory_space<vmem>>, vector<1x16x8xf32>
    %524 = vector.shape_cast %523 : vector<1x16x8xf32> to vector<16x8xf32>
    %525 = vector.broadcast %522 : vector<1x8xf32> to vector<16x8xf32>
    %526 = arith.mulf %525, %524 : vector<16x8xf32>
    %527 = arith.addf %521, %526 : vector<16x8xf32>
    %528 = vector.extract_strided_slice %486 {offsets = [7, 0], sizes = [1, 8], strides = [1, 1]} : vector<16x8xf32> to vector<1x8xf32>
    %c7_263 = arith.constant 7 : index
    %c0_264 = arith.constant 0 : index
    %c0_265 = arith.constant 0 : index
    %529 = vector.load %arg2[%c7_263, %c0_264, %c0_265] : memref<16x16x8xf32, #tpu.memory_space<vmem>>, vector<1x16x8xf32>
    %530 = vector.shape_cast %529 : vector<1x16x8xf32> to vector<16x8xf32>
    %531 = vector.broadcast %528 : vector<1x8xf32> to vector<16x8xf32>
    %532 = arith.mulf %531, %530 : vector<16x8xf32>
    %533 = arith.addf %527, %532 : vector<16x8xf32>
    %534 = vector.extract_strided_slice %486 {offsets = [8, 0], sizes = [1, 8], strides = [1, 1]} : vector<16x8xf32> to vector<1x8xf32>
    %c8_266 = arith.constant 8 : index
    %c0_267 = arith.constant 0 : index
    %c0_268 = arith.constant 0 : index
    %535 = vector.load %arg2[%c8_266, %c0_267, %c0_268] : memref<16x16x8xf32, #tpu.memory_space<vmem>>, vector<1x16x8xf32>
    %536 = vector.shape_cast %535 : vector<1x16x8xf32> to vector<16x8xf32>
    %537 = vector.broadcast %534 : vector<1x8xf32> to vector<16x8xf32>
    %538 = arith.mulf %537, %536 : vector<16x8xf32>
    %539 = arith.addf %533, %538 : vector<16x8xf32>
    %540 = vector.extract_strided_slice %486 {offsets = [9, 0], sizes = [1, 8], strides = [1, 1]} : vector<16x8xf32> to vector<1x8xf32>
    %c9_269 = arith.constant 9 : index
    %c0_270 = arith.constant 0 : index
    %c0_271 = arith.constant 0 : index
    %541 = vector.load %arg2[%c9_269, %c0_270, %c0_271] : memref<16x16x8xf32, #tpu.memory_space<vmem>>, vector<1x16x8xf32>
    %542 = vector.shape_cast %541 : vector<1x16x8xf32> to vector<16x8xf32>
    %543 = vector.broadcast %540 : vector<1x8xf32> to vector<16x8xf32>
    %544 = arith.mulf %543, %542 : vector<16x8xf32>
    %545 = arith.addf %539, %544 : vector<16x8xf32>
    %546 = vector.extract_strided_slice %486 {offsets = [10, 0], sizes = [1, 8], strides = [1, 1]} : vector<16x8xf32> to vector<1x8xf32>
    %c10_272 = arith.constant 10 : index
    %c0_273 = arith.constant 0 : index
    %c0_274 = arith.constant 0 : index
    %547 = vector.load %arg2[%c10_272, %c0_273, %c0_274] : memref<16x16x8xf32, #tpu.memory_space<vmem>>, vector<1x16x8xf32>
    %548 = vector.shape_cast %547 : vector<1x16x8xf32> to vector<16x8xf32>
    %549 = vector.broadcast %546 : vector<1x8xf32> to vector<16x8xf32>
    %550 = arith.mulf %549, %548 : vector<16x8xf32>
    %551 = arith.addf %545, %550 : vector<16x8xf32>
    %552 = vector.extract_strided_slice %486 {offsets = [11, 0], sizes = [1, 8], strides = [1, 1]} : vector<16x8xf32> to vector<1x8xf32>
    %c11_275 = arith.constant 11 : index
    %c0_276 = arith.constant 0 : index
    %c0_277 = arith.constant 0 : index
    %553 = vector.load %arg2[%c11_275, %c0_276, %c0_277] : memref<16x16x8xf32, #tpu.memory_space<vmem>>, vector<1x16x8xf32>
    %554 = vector.shape_cast %553 : vector<1x16x8xf32> to vector<16x8xf32>
    %555 = vector.broadcast %552 : vector<1x8xf32> to vector<16x8xf32>
    %556 = arith.mulf %555, %554 : vector<16x8xf32>
    %557 = arith.addf %551, %556 : vector<16x8xf32>
    %558 = vector.extract_strided_slice %486 {offsets = [12, 0], sizes = [1, 8], strides = [1, 1]} : vector<16x8xf32> to vector<1x8xf32>
    %c12_278 = arith.constant 12 : index
    %c0_279 = arith.constant 0 : index
    %c0_280 = arith.constant 0 : index
    %559 = vector.load %arg2[%c12_278, %c0_279, %c0_280] : memref<16x16x8xf32, #tpu.memory_space<vmem>>, vector<1x16x8xf32>
    %560 = vector.shape_cast %559 : vector<1x16x8xf32> to vector<16x8xf32>
    %561 = vector.broadcast %558 : vector<1x8xf32> to vector<16x8xf32>
    %562 = arith.mulf %561, %560 : vector<16x8xf32>
    %563 = arith.addf %557, %562 : vector<16x8xf32>
    %564 = vector.extract_strided_slice %486 {offsets = [13, 0], sizes = [1, 8], strides = [1, 1]} : vector<16x8xf32> to vector<1x8xf32>
    %c13_281 = arith.constant 13 : index
    %c0_282 = arith.constant 0 : index
    %c0_283 = arith.constant 0 : index
    %565 = vector.load %arg2[%c13_281, %c0_282, %c0_283] : memref<16x16x8xf32, #tpu.memory_space<vmem>>, vector<1x16x8xf32>
    %566 = vector.shape_cast %565 : vector<1x16x8xf32> to vector<16x8xf32>
    %567 = vector.broadcast %564 : vector<1x8xf32> to vector<16x8xf32>
    %568 = arith.mulf %567, %566 : vector<16x8xf32>
    %569 = arith.addf %563, %568 : vector<16x8xf32>
    %570 = vector.extract_strided_slice %486 {offsets = [14, 0], sizes = [1, 8], strides = [1, 1]} : vector<16x8xf32> to vector<1x8xf32>
    %c14_284 = arith.constant 14 : index
    %c0_285 = arith.constant 0 : index
    %c0_286 = arith.constant 0 : index
    %571 = vector.load %arg2[%c14_284, %c0_285, %c0_286] : memref<16x16x8xf32, #tpu.memory_space<vmem>>, vector<1x16x8xf32>
    %572 = vector.shape_cast %571 : vector<1x16x8xf32> to vector<16x8xf32>
    %573 = vector.broadcast %570 : vector<1x8xf32> to vector<16x8xf32>
    %574 = arith.mulf %573, %572 : vector<16x8xf32>
    %575 = arith.addf %569, %574 : vector<16x8xf32>
    %576 = vector.extract_strided_slice %486 {offsets = [15, 0], sizes = [1, 8], strides = [1, 1]} : vector<16x8xf32> to vector<1x8xf32>
    %c15_287 = arith.constant 15 : index
    %c0_288 = arith.constant 0 : index
    %c0_289 = arith.constant 0 : index
    %577 = vector.load %arg2[%c15_287, %c0_288, %c0_289] : memref<16x16x8xf32, #tpu.memory_space<vmem>>, vector<1x16x8xf32>
    %578 = vector.shape_cast %577 : vector<1x16x8xf32> to vector<16x8xf32>
    %579 = vector.broadcast %576 : vector<1x8xf32> to vector<16x8xf32>
    %580 = arith.mulf %579, %578 : vector<16x8xf32>
    %581 = arith.addf %575, %580 : vector<16x8xf32>
    %c6_290 = arith.constant 6 : index
    %c0_291 = arith.constant 0 : index
    %c0_292 = arith.constant 0 : index
    %582 = vector.load %arg1[%c6_290, %c0_291, %c0_292] : memref<16x16x8xf32, #tpu.memory_space<vmem>>, vector<1x16x8xf32>
    %583 = vector.shape_cast %582 : vector<1x16x8xf32> to vector<16x8xf32>
    %584 = vector.extract_strided_slice %583 {offsets = [0, 0], sizes = [1, 8], strides = [1, 1]} : vector<16x8xf32> to vector<1x8xf32>
    %c0_293 = arith.constant 0 : index
    %c0_294 = arith.constant 0 : index
    %c0_295 = arith.constant 0 : index
    %585 = vector.load %arg2[%c0_293, %c0_294, %c0_295] : memref<16x16x8xf32, #tpu.memory_space<vmem>>, vector<1x16x8xf32>
    %586 = vector.shape_cast %585 : vector<1x16x8xf32> to vector<16x8xf32>
    %587 = vector.broadcast %584 : vector<1x8xf32> to vector<16x8xf32>
    %588 = arith.mulf %587, %586 : vector<16x8xf32>
    %589 = vector.extract_strided_slice %583 {offsets = [1, 0], sizes = [1, 8], strides = [1, 1]} : vector<16x8xf32> to vector<1x8xf32>
    %c1_296 = arith.constant 1 : index
    %c0_297 = arith.constant 0 : index
    %c0_298 = arith.constant 0 : index
    %590 = vector.load %arg2[%c1_296, %c0_297, %c0_298] : memref<16x16x8xf32, #tpu.memory_space<vmem>>, vector<1x16x8xf32>
    %591 = vector.shape_cast %590 : vector<1x16x8xf32> to vector<16x8xf32>
    %592 = vector.broadcast %589 : vector<1x8xf32> to vector<16x8xf32>
    %593 = arith.mulf %592, %591 : vector<16x8xf32>
    %594 = arith.addf %588, %593 : vector<16x8xf32>
    %595 = vector.extract_strided_slice %583 {offsets = [2, 0], sizes = [1, 8], strides = [1, 1]} : vector<16x8xf32> to vector<1x8xf32>
    %c2_299 = arith.constant 2 : index
    %c0_300 = arith.constant 0 : index
    %c0_301 = arith.constant 0 : index
    %596 = vector.load %arg2[%c2_299, %c0_300, %c0_301] : memref<16x16x8xf32, #tpu.memory_space<vmem>>, vector<1x16x8xf32>
    %597 = vector.shape_cast %596 : vector<1x16x8xf32> to vector<16x8xf32>
    %598 = vector.broadcast %595 : vector<1x8xf32> to vector<16x8xf32>
    %599 = arith.mulf %598, %597 : vector<16x8xf32>
    %600 = arith.addf %594, %599 : vector<16x8xf32>
    %601 = vector.extract_strided_slice %583 {offsets = [3, 0], sizes = [1, 8], strides = [1, 1]} : vector<16x8xf32> to vector<1x8xf32>
    %c3_302 = arith.constant 3 : index
    %c0_303 = arith.constant 0 : index
    %c0_304 = arith.constant 0 : index
    %602 = vector.load %arg2[%c3_302, %c0_303, %c0_304] : memref<16x16x8xf32, #tpu.memory_space<vmem>>, vector<1x16x8xf32>
    %603 = vector.shape_cast %602 : vector<1x16x8xf32> to vector<16x8xf32>
    %604 = vector.broadcast %601 : vector<1x8xf32> to vector<16x8xf32>
    %605 = arith.mulf %604, %603 : vector<16x8xf32>
    %606 = arith.addf %600, %605 : vector<16x8xf32>
    %607 = vector.extract_strided_slice %583 {offsets = [4, 0], sizes = [1, 8], strides = [1, 1]} : vector<16x8xf32> to vector<1x8xf32>
    %c4_305 = arith.constant 4 : index
    %c0_306 = arith.constant 0 : index
    %c0_307 = arith.constant 0 : index
    %608 = vector.load %arg2[%c4_305, %c0_306, %c0_307] : memref<16x16x8xf32, #tpu.memory_space<vmem>>, vector<1x16x8xf32>
    %609 = vector.shape_cast %608 : vector<1x16x8xf32> to vector<16x8xf32>
    %610 = vector.broadcast %607 : vector<1x8xf32> to vector<16x8xf32>
    %611 = arith.mulf %610, %609 : vector<16x8xf32>
    %612 = arith.addf %606, %611 : vector<16x8xf32>
    %613 = vector.extract_strided_slice %583 {offsets = [5, 0], sizes = [1, 8], strides = [1, 1]} : vector<16x8xf32> to vector<1x8xf32>
    %c5_308 = arith.constant 5 : index
    %c0_309 = arith.constant 0 : index
    %c0_310 = arith.constant 0 : index
    %614 = vector.load %arg2[%c5_308, %c0_309, %c0_310] : memref<16x16x8xf32, #tpu.memory_space<vmem>>, vector<1x16x8xf32>
    %615 = vector.shape_cast %614 : vector<1x16x8xf32> to vector<16x8xf32>
    %616 = vector.broadcast %613 : vector<1x8xf32> to vector<16x8xf32>
    %617 = arith.mulf %616, %615 : vector<16x8xf32>
    %618 = arith.addf %612, %617 : vector<16x8xf32>
    %619 = vector.extract_strided_slice %583 {offsets = [6, 0], sizes = [1, 8], strides = [1, 1]} : vector<16x8xf32> to vector<1x8xf32>
    %c6_311 = arith.constant 6 : index
    %c0_312 = arith.constant 0 : index
    %c0_313 = arith.constant 0 : index
    %620 = vector.load %arg2[%c6_311, %c0_312, %c0_313] : memref<16x16x8xf32, #tpu.memory_space<vmem>>, vector<1x16x8xf32>
    %621 = vector.shape_cast %620 : vector<1x16x8xf32> to vector<16x8xf32>
    %622 = vector.broadcast %619 : vector<1x8xf32> to vector<16x8xf32>
    %623 = arith.mulf %622, %621 : vector<16x8xf32>
    %624 = arith.addf %618, %623 : vector<16x8xf32>
    %625 = vector.extract_strided_slice %583 {offsets = [7, 0], sizes = [1, 8], strides = [1, 1]} : vector<16x8xf32> to vector<1x8xf32>
    %c7_314 = arith.constant 7 : index
    %c0_315 = arith.constant 0 : index
    %c0_316 = arith.constant 0 : index
    %626 = vector.load %arg2[%c7_314, %c0_315, %c0_316] : memref<16x16x8xf32, #tpu.memory_space<vmem>>, vector<1x16x8xf32>
    %627 = vector.shape_cast %626 : vector<1x16x8xf32> to vector<16x8xf32>
    %628 = vector.broadcast %625 : vector<1x8xf32> to vector<16x8xf32>
    %629 = arith.mulf %628, %627 : vector<16x8xf32>
    %630 = arith.addf %624, %629 : vector<16x8xf32>
    %631 = vector.extract_strided_slice %583 {offsets = [8, 0], sizes = [1, 8], strides = [1, 1]} : vector<16x8xf32> to vector<1x8xf32>
    %c8_317 = arith.constant 8 : index
    %c0_318 = arith.constant 0 : index
    %c0_319 = arith.constant 0 : index
    %632 = vector.load %arg2[%c8_317, %c0_318, %c0_319] : memref<16x16x8xf32, #tpu.memory_space<vmem>>, vector<1x16x8xf32>
    %633 = vector.shape_cast %632 : vector<1x16x8xf32> to vector<16x8xf32>
    %634 = vector.broadcast %631 : vector<1x8xf32> to vector<16x8xf32>
    %635 = arith.mulf %634, %633 : vector<16x8xf32>
    %636 = arith.addf %630, %635 : vector<16x8xf32>
    %637 = vector.extract_strided_slice %583 {offsets = [9, 0], sizes = [1, 8], strides = [1, 1]} : vector<16x8xf32> to vector<1x8xf32>
    %c9_320 = arith.constant 9 : index
    %c0_321 = arith.constant 0 : index
    %c0_322 = arith.constant 0 : index
    %638 = vector.load %arg2[%c9_320, %c0_321, %c0_322] : memref<16x16x8xf32, #tpu.memory_space<vmem>>, vector<1x16x8xf32>
    %639 = vector.shape_cast %638 : vector<1x16x8xf32> to vector<16x8xf32>
    %640 = vector.broadcast %637 : vector<1x8xf32> to vector<16x8xf32>
    %641 = arith.mulf %640, %639 : vector<16x8xf32>
    %642 = arith.addf %636, %641 : vector<16x8xf32>
    %643 = vector.extract_strided_slice %583 {offsets = [10, 0], sizes = [1, 8], strides = [1, 1]} : vector<16x8xf32> to vector<1x8xf32>
    %c10_323 = arith.constant 10 : index
    %c0_324 = arith.constant 0 : index
    %c0_325 = arith.constant 0 : index
    %644 = vector.load %arg2[%c10_323, %c0_324, %c0_325] : memref<16x16x8xf32, #tpu.memory_space<vmem>>, vector<1x16x8xf32>
    %645 = vector.shape_cast %644 : vector<1x16x8xf32> to vector<16x8xf32>
    %646 = vector.broadcast %643 : vector<1x8xf32> to vector<16x8xf32>
    %647 = arith.mulf %646, %645 : vector<16x8xf32>
    %648 = arith.addf %642, %647 : vector<16x8xf32>
    %649 = vector.extract_strided_slice %583 {offsets = [11, 0], sizes = [1, 8], strides = [1, 1]} : vector<16x8xf32> to vector<1x8xf32>
    %c11_326 = arith.constant 11 : index
    %c0_327 = arith.constant 0 : index
    %c0_328 = arith.constant 0 : index
    %650 = vector.load %arg2[%c11_326, %c0_327, %c0_328] : memref<16x16x8xf32, #tpu.memory_space<vmem>>, vector<1x16x8xf32>
    %651 = vector.shape_cast %650 : vector<1x16x8xf32> to vector<16x8xf32>
    %652 = vector.broadcast %649 : vector<1x8xf32> to vector<16x8xf32>
    %653 = arith.mulf %652, %651 : vector<16x8xf32>
    %654 = arith.addf %648, %653 : vector<16x8xf32>
    %655 = vector.extract_strided_slice %583 {offsets = [12, 0], sizes = [1, 8], strides = [1, 1]} : vector<16x8xf32> to vector<1x8xf32>
    %c12_329 = arith.constant 12 : index
    %c0_330 = arith.constant 0 : index
    %c0_331 = arith.constant 0 : index
    %656 = vector.load %arg2[%c12_329, %c0_330, %c0_331] : memref<16x16x8xf32, #tpu.memory_space<vmem>>, vector<1x16x8xf32>
    %657 = vector.shape_cast %656 : vector<1x16x8xf32> to vector<16x8xf32>
    %658 = vector.broadcast %655 : vector<1x8xf32> to vector<16x8xf32>
    %659 = arith.mulf %658, %657 : vector<16x8xf32>
    %660 = arith.addf %654, %659 : vector<16x8xf32>
    %661 = vector.extract_strided_slice %583 {offsets = [13, 0], sizes = [1, 8], strides = [1, 1]} : vector<16x8xf32> to vector<1x8xf32>
    %c13_332 = arith.constant 13 : index
    %c0_333 = arith.constant 0 : index
    %c0_334 = arith.constant 0 : index
    %662 = vector.load %arg2[%c13_332, %c0_333, %c0_334] : memref<16x16x8xf32, #tpu.memory_space<vmem>>, vector<1x16x8xf32>
    %663 = vector.shape_cast %662 : vector<1x16x8xf32> to vector<16x8xf32>
    %664 = vector.broadcast %661 : vector<1x8xf32> to vector<16x8xf32>
    %665 = arith.mulf %664, %663 : vector<16x8xf32>
    %666 = arith.addf %660, %665 : vector<16x8xf32>
    %667 = vector.extract_strided_slice %583 {offsets = [14, 0], sizes = [1, 8], strides = [1, 1]} : vector<16x8xf32> to vector<1x8xf32>
    %c14_335 = arith.constant 14 : index
    %c0_336 = arith.constant 0 : index
    %c0_337 = arith.constant 0 : index
    %668 = vector.load %arg2[%c14_335, %c0_336, %c0_337] : memref<16x16x8xf32, #tpu.memory_space<vmem>>, vector<1x16x8xf32>
    %669 = vector.shape_cast %668 : vector<1x16x8xf32> to vector<16x8xf32>
    %670 = vector.broadcast %667 : vector<1x8xf32> to vector<16x8xf32>
    %671 = arith.mulf %670, %669 : vector<16x8xf32>
    %672 = arith.addf %666, %671 : vector<16x8xf32>
    %673 = vector.extract_strided_slice %583 {offsets = [15, 0], sizes = [1, 8], strides = [1, 1]} : vector<16x8xf32> to vector<1x8xf32>
    %c15_338 = arith.constant 15 : index
    %c0_339 = arith.constant 0 : index
    %c0_340 = arith.constant 0 : index
    %674 = vector.load %arg2[%c15_338, %c0_339, %c0_340] : memref<16x16x8xf32, #tpu.memory_space<vmem>>, vector<1x16x8xf32>
    %675 = vector.shape_cast %674 : vector<1x16x8xf32> to vector<16x8xf32>
    %676 = vector.broadcast %673 : vector<1x8xf32> to vector<16x8xf32>
    %677 = arith.mulf %676, %675 : vector<16x8xf32>
    %678 = arith.addf %672, %677 : vector<16x8xf32>
    %c7_341 = arith.constant 7 : index
    %c0_342 = arith.constant 0 : index
    %c0_343 = arith.constant 0 : index
    %679 = vector.load %arg1[%c7_341, %c0_342, %c0_343] : memref<16x16x8xf32, #tpu.memory_space<vmem>>, vector<1x16x8xf32>
    %680 = vector.shape_cast %679 : vector<1x16x8xf32> to vector<16x8xf32>
    %681 = vector.extract_strided_slice %680 {offsets = [0, 0], sizes = [1, 8], strides = [1, 1]} : vector<16x8xf32> to vector<1x8xf32>
    %c0_344 = arith.constant 0 : index
    %c0_345 = arith.constant 0 : index
    %c0_346 = arith.constant 0 : index
    %682 = vector.load %arg2[%c0_344, %c0_345, %c0_346] : memref<16x16x8xf32, #tpu.memory_space<vmem>>, vector<1x16x8xf32>
    %683 = vector.shape_cast %682 : vector<1x16x8xf32> to vector<16x8xf32>
    %684 = vector.broadcast %681 : vector<1x8xf32> to vector<16x8xf32>
    %685 = arith.mulf %684, %683 : vector<16x8xf32>
    %686 = vector.extract_strided_slice %680 {offsets = [1, 0], sizes = [1, 8], strides = [1, 1]} : vector<16x8xf32> to vector<1x8xf32>
    %c1_347 = arith.constant 1 : index
    %c0_348 = arith.constant 0 : index
    %c0_349 = arith.constant 0 : index
    %687 = vector.load %arg2[%c1_347, %c0_348, %c0_349] : memref<16x16x8xf32, #tpu.memory_space<vmem>>, vector<1x16x8xf32>
    %688 = vector.shape_cast %687 : vector<1x16x8xf32> to vector<16x8xf32>
    %689 = vector.broadcast %686 : vector<1x8xf32> to vector<16x8xf32>
    %690 = arith.mulf %689, %688 : vector<16x8xf32>
    %691 = arith.addf %685, %690 : vector<16x8xf32>
    %692 = vector.extract_strided_slice %680 {offsets = [2, 0], sizes = [1, 8], strides = [1, 1]} : vector<16x8xf32> to vector<1x8xf32>
    %c2_350 = arith.constant 2 : index
    %c0_351 = arith.constant 0 : index
    %c0_352 = arith.constant 0 : index
    %693 = vector.load %arg2[%c2_350, %c0_351, %c0_352] : memref<16x16x8xf32, #tpu.memory_space<vmem>>, vector<1x16x8xf32>
    %694 = vector.shape_cast %693 : vector<1x16x8xf32> to vector<16x8xf32>
    %695 = vector.broadcast %692 : vector<1x8xf32> to vector<16x8xf32>
    %696 = arith.mulf %695, %694 : vector<16x8xf32>
    %697 = arith.addf %691, %696 : vector<16x8xf32>
    %698 = vector.extract_strided_slice %680 {offsets = [3, 0], sizes = [1, 8], strides = [1, 1]} : vector<16x8xf32> to vector<1x8xf32>
    %c3_353 = arith.constant 3 : index
    %c0_354 = arith.constant 0 : index
    %c0_355 = arith.constant 0 : index
    %699 = vector.load %arg2[%c3_353, %c0_354, %c0_355] : memref<16x16x8xf32, #tpu.memory_space<vmem>>, vector<1x16x8xf32>
    %700 = vector.shape_cast %699 : vector<1x16x8xf32> to vector<16x8xf32>
    %701 = vector.broadcast %698 : vector<1x8xf32> to vector<16x8xf32>
    %702 = arith.mulf %701, %700 : vector<16x8xf32>
    %703 = arith.addf %697, %702 : vector<16x8xf32>
    %704 = vector.extract_strided_slice %680 {offsets = [4, 0], sizes = [1, 8], strides = [1, 1]} : vector<16x8xf32> to vector<1x8xf32>
    %c4_356 = arith.constant 4 : index
    %c0_357 = arith.constant 0 : index
    %c0_358 = arith.constant 0 : index
    %705 = vector.load %arg2[%c4_356, %c0_357, %c0_358] : memref<16x16x8xf32, #tpu.memory_space<vmem>>, vector<1x16x8xf32>
    %706 = vector.shape_cast %705 : vector<1x16x8xf32> to vector<16x8xf32>
    %707 = vector.broadcast %704 : vector<1x8xf32> to vector<16x8xf32>
    %708 = arith.mulf %707, %706 : vector<16x8xf32>
    %709 = arith.addf %703, %708 : vector<16x8xf32>
    %710 = vector.extract_strided_slice %680 {offsets = [5, 0], sizes = [1, 8], strides = [1, 1]} : vector<16x8xf32> to vector<1x8xf32>
    %c5_359 = arith.constant 5 : index
    %c0_360 = arith.constant 0 : index
    %c0_361 = arith.constant 0 : index
    %711 = vector.load %arg2[%c5_359, %c0_360, %c0_361] : memref<16x16x8xf32, #tpu.memory_space<vmem>>, vector<1x16x8xf32>
    %712 = vector.shape_cast %711 : vector<1x16x8xf32> to vector<16x8xf32>
    %713 = vector.broadcast %710 : vector<1x8xf32> to vector<16x8xf32>
    %714 = arith.mulf %713, %712 : vector<16x8xf32>
    %715 = arith.addf %709, %714 : vector<16x8xf32>
    %716 = vector.extract_strided_slice %680 {offsets = [6, 0], sizes = [1, 8], strides = [1, 1]} : vector<16x8xf32> to vector<1x8xf32>
    %c6_362 = arith.constant 6 : index
    %c0_363 = arith.constant 0 : index
    %c0_364 = arith.constant 0 : index
    %717 = vector.load %arg2[%c6_362, %c0_363, %c0_364] : memref<16x16x8xf32, #tpu.memory_space<vmem>>, vector<1x16x8xf32>
    %718 = vector.shape_cast %717 : vector<1x16x8xf32> to vector<16x8xf32>
    %719 = vector.broadcast %716 : vector<1x8xf32> to vector<16x8xf32>
    %720 = arith.mulf %719, %718 : vector<16x8xf32>
    %721 = arith.addf %715, %720 : vector<16x8xf32>
    %722 = vector.extract_strided_slice %680 {offsets = [7, 0], sizes = [1, 8], strides = [1, 1]} : vector<16x8xf32> to vector<1x8xf32>
    %c7_365 = arith.constant 7 : index
    %c0_366 = arith.constant 0 : index
    %c0_367 = arith.constant 0 : index
    %723 = vector.load %arg2[%c7_365, %c0_366, %c0_367] : memref<16x16x8xf32, #tpu.memory_space<vmem>>, vector<1x16x8xf32>
    %724 = vector.shape_cast %723 : vector<1x16x8xf32> to vector<16x8xf32>
    %725 = vector.broadcast %722 : vector<1x8xf32> to vector<16x8xf32>
    %726 = arith.mulf %725, %724 : vector<16x8xf32>
    %727 = arith.addf %721, %726 : vector<16x8xf32>
    %728 = vector.extract_strided_slice %680 {offsets = [8, 0], sizes = [1, 8], strides = [1, 1]} : vector<16x8xf32> to vector<1x8xf32>
    %c8_368 = arith.constant 8 : index
    %c0_369 = arith.constant 0 : index
    %c0_370 = arith.constant 0 : index
    %729 = vector.load %arg2[%c8_368, %c0_369, %c0_370] : memref<16x16x8xf32, #tpu.memory_space<vmem>>, vector<1x16x8xf32>
    %730 = vector.shape_cast %729 : vector<1x16x8xf32> to vector<16x8xf32>
    %731 = vector.broadcast %728 : vector<1x8xf32> to vector<16x8xf32>
    %732 = arith.mulf %731, %730 : vector<16x8xf32>
    %733 = arith.addf %727, %732 : vector<16x8xf32>
    %734 = vector.extract_strided_slice %680 {offsets = [9, 0], sizes = [1, 8], strides = [1, 1]} : vector<16x8xf32> to vector<1x8xf32>
    %c9_371 = arith.constant 9 : index
    %c0_372 = arith.constant 0 : index
    %c0_373 = arith.constant 0 : index
    %735 = vector.load %arg2[%c9_371, %c0_372, %c0_373] : memref<16x16x8xf32, #tpu.memory_space<vmem>>, vector<1x16x8xf32>
    %736 = vector.shape_cast %735 : vector<1x16x8xf32> to vector<16x8xf32>
    %737 = vector.broadcast %734 : vector<1x8xf32> to vector<16x8xf32>
    %738 = arith.mulf %737, %736 : vector<16x8xf32>
    %739 = arith.addf %733, %738 : vector<16x8xf32>
    %740 = vector.extract_strided_slice %680 {offsets = [10, 0], sizes = [1, 8], strides = [1, 1]} : vector<16x8xf32> to vector<1x8xf32>
    %c10_374 = arith.constant 10 : index
    %c0_375 = arith.constant 0 : index
    %c0_376 = arith.constant 0 : index
    %741 = vector.load %arg2[%c10_374, %c0_375, %c0_376] : memref<16x16x8xf32, #tpu.memory_space<vmem>>, vector<1x16x8xf32>
    %742 = vector.shape_cast %741 : vector<1x16x8xf32> to vector<16x8xf32>
    %743 = vector.broadcast %740 : vector<1x8xf32> to vector<16x8xf32>
    %744 = arith.mulf %743, %742 : vector<16x8xf32>
    %745 = arith.addf %739, %744 : vector<16x8xf32>
    %746 = vector.extract_strided_slice %680 {offsets = [11, 0], sizes = [1, 8], strides = [1, 1]} : vector<16x8xf32> to vector<1x8xf32>
    %c11_377 = arith.constant 11 : index
    %c0_378 = arith.constant 0 : index
    %c0_379 = arith.constant 0 : index
    %747 = vector.load %arg2[%c11_377, %c0_378, %c0_379] : memref<16x16x8xf32, #tpu.memory_space<vmem>>, vector<1x16x8xf32>
    %748 = vector.shape_cast %747 : vector<1x16x8xf32> to vector<16x8xf32>
    %749 = vector.broadcast %746 : vector<1x8xf32> to vector<16x8xf32>
    %750 = arith.mulf %749, %748 : vector<16x8xf32>
    %751 = arith.addf %745, %750 : vector<16x8xf32>
    %752 = vector.extract_strided_slice %680 {offsets = [12, 0], sizes = [1, 8], strides = [1, 1]} : vector<16x8xf32> to vector<1x8xf32>
    %c12_380 = arith.constant 12 : index
    %c0_381 = arith.constant 0 : index
    %c0_382 = arith.constant 0 : index
    %753 = vector.load %arg2[%c12_380, %c0_381, %c0_382] : memref<16x16x8xf32, #tpu.memory_space<vmem>>, vector<1x16x8xf32>
    %754 = vector.shape_cast %753 : vector<1x16x8xf32> to vector<16x8xf32>
    %755 = vector.broadcast %752 : vector<1x8xf32> to vector<16x8xf32>
    %756 = arith.mulf %755, %754 : vector<16x8xf32>
    %757 = arith.addf %751, %756 : vector<16x8xf32>
    %758 = vector.extract_strided_slice %680 {offsets = [13, 0], sizes = [1, 8], strides = [1, 1]} : vector<16x8xf32> to vector<1x8xf32>
    %c13_383 = arith.constant 13 : index
    %c0_384 = arith.constant 0 : index
    %c0_385 = arith.constant 0 : index
    %759 = vector.load %arg2[%c13_383, %c0_384, %c0_385] : memref<16x16x8xf32, #tpu.memory_space<vmem>>, vector<1x16x8xf32>
    %760 = vector.shape_cast %759 : vector<1x16x8xf32> to vector<16x8xf32>
    %761 = vector.broadcast %758 : vector<1x8xf32> to vector<16x8xf32>
    %762 = arith.mulf %761, %760 : vector<16x8xf32>
    %763 = arith.addf %757, %762 : vector<16x8xf32>
    %764 = vector.extract_strided_slice %680 {offsets = [14, 0], sizes = [1, 8], strides = [1, 1]} : vector<16x8xf32> to vector<1x8xf32>
    %c14_386 = arith.constant 14 : index
    %c0_387 = arith.constant 0 : index
    %c0_388 = arith.constant 0 : index
    %765 = vector.load %arg2[%c14_386, %c0_387, %c0_388] : memref<16x16x8xf32, #tpu.memory_space<vmem>>, vector<1x16x8xf32>
    %766 = vector.shape_cast %765 : vector<1x16x8xf32> to vector<16x8xf32>
    %767 = vector.broadcast %764 : vector<1x8xf32> to vector<16x8xf32>
    %768 = arith.mulf %767, %766 : vector<16x8xf32>
    %769 = arith.addf %763, %768 : vector<16x8xf32>
    %770 = vector.extract_strided_slice %680 {offsets = [15, 0], sizes = [1, 8], strides = [1, 1]} : vector<16x8xf32> to vector<1x8xf32>
    %c15_389 = arith.constant 15 : index
    %c0_390 = arith.constant 0 : index
    %c0_391 = arith.constant 0 : index
    %771 = vector.load %arg2[%c15_389, %c0_390, %c0_391] : memref<16x16x8xf32, #tpu.memory_space<vmem>>, vector<1x16x8xf32>
    %772 = vector.shape_cast %771 : vector<1x16x8xf32> to vector<16x8xf32>
    %773 = vector.broadcast %770 : vector<1x8xf32> to vector<16x8xf32>
    %774 = arith.mulf %773, %772 : vector<16x8xf32>
    %775 = arith.addf %769, %774 : vector<16x8xf32>
    %c8_392 = arith.constant 8 : index
    %c0_393 = arith.constant 0 : index
    %c0_394 = arith.constant 0 : index
    %776 = vector.load %arg1[%c8_392, %c0_393, %c0_394] : memref<16x16x8xf32, #tpu.memory_space<vmem>>, vector<1x16x8xf32>
    %777 = vector.shape_cast %776 : vector<1x16x8xf32> to vector<16x8xf32>
    %778 = vector.extract_strided_slice %777 {offsets = [0, 0], sizes = [1, 8], strides = [1, 1]} : vector<16x8xf32> to vector<1x8xf32>
    %c0_395 = arith.constant 0 : index
    %c0_396 = arith.constant 0 : index
    %c0_397 = arith.constant 0 : index
    %779 = vector.load %arg2[%c0_395, %c0_396, %c0_397] : memref<16x16x8xf32, #tpu.memory_space<vmem>>, vector<1x16x8xf32>
    %780 = vector.shape_cast %779 : vector<1x16x8xf32> to vector<16x8xf32>
    %781 = vector.broadcast %778 : vector<1x8xf32> to vector<16x8xf32>
    %782 = arith.mulf %781, %780 : vector<16x8xf32>
    %783 = vector.extract_strided_slice %777 {offsets = [1, 0], sizes = [1, 8], strides = [1, 1]} : vector<16x8xf32> to vector<1x8xf32>
    %c1_398 = arith.constant 1 : index
    %c0_399 = arith.constant 0 : index
    %c0_400 = arith.constant 0 : index
    %784 = vector.load %arg2[%c1_398, %c0_399, %c0_400] : memref<16x16x8xf32, #tpu.memory_space<vmem>>, vector<1x16x8xf32>
    %785 = vector.shape_cast %784 : vector<1x16x8xf32> to vector<16x8xf32>
    %786 = vector.broadcast %783 : vector<1x8xf32> to vector<16x8xf32>
    %787 = arith.mulf %786, %785 : vector<16x8xf32>
    %788 = arith.addf %782, %787 : vector<16x8xf32>
    %789 = vector.extract_strided_slice %777 {offsets = [2, 0], sizes = [1, 8], strides = [1, 1]} : vector<16x8xf32> to vector<1x8xf32>
    %c2_401 = arith.constant 2 : index
    %c0_402 = arith.constant 0 : index
    %c0_403 = arith.constant 0 : index
    %790 = vector.load %arg2[%c2_401, %c0_402, %c0_403] : memref<16x16x8xf32, #tpu.memory_space<vmem>>, vector<1x16x8xf32>
    %791 = vector.shape_cast %790 : vector<1x16x8xf32> to vector<16x8xf32>
    %792 = vector.broadcast %789 : vector<1x8xf32> to vector<16x8xf32>
    %793 = arith.mulf %792, %791 : vector<16x8xf32>
    %794 = arith.addf %788, %793 : vector<16x8xf32>
    %795 = vector.extract_strided_slice %777 {offsets = [3, 0], sizes = [1, 8], strides = [1, 1]} : vector<16x8xf32> to vector<1x8xf32>
    %c3_404 = arith.constant 3 : index
    %c0_405 = arith.constant 0 : index
    %c0_406 = arith.constant 0 : index
    %796 = vector.load %arg2[%c3_404, %c0_405, %c0_406] : memref<16x16x8xf32, #tpu.memory_space<vmem>>, vector<1x16x8xf32>
    %797 = vector.shape_cast %796 : vector<1x16x8xf32> to vector<16x8xf32>
    %798 = vector.broadcast %795 : vector<1x8xf32> to vector<16x8xf32>
    %799 = arith.mulf %798, %797 : vector<16x8xf32>
    %800 = arith.addf %794, %799 : vector<16x8xf32>
    %801 = vector.extract_strided_slice %777 {offsets = [4, 0], sizes = [1, 8], strides = [1, 1]} : vector<16x8xf32> to vector<1x8xf32>
    %c4_407 = arith.constant 4 : index
    %c0_408 = arith.constant 0 : index
    %c0_409 = arith.constant 0 : index
    %802 = vector.load %arg2[%c4_407, %c0_408, %c0_409] : memref<16x16x8xf32, #tpu.memory_space<vmem>>, vector<1x16x8xf32>
    %803 = vector.shape_cast %802 : vector<1x16x8xf32> to vector<16x8xf32>
    %804 = vector.broadcast %801 : vector<1x8xf32> to vector<16x8xf32>
    %805 = arith.mulf %804, %803 : vector<16x8xf32>
    %806 = arith.addf %800, %805 : vector<16x8xf32>
    %807 = vector.extract_strided_slice %777 {offsets = [5, 0], sizes = [1, 8], strides = [1, 1]} : vector<16x8xf32> to vector<1x8xf32>
    %c5_410 = arith.constant 5 : index
    %c0_411 = arith.constant 0 : index
    %c0_412 = arith.constant 0 : index
    %808 = vector.load %arg2[%c5_410, %c0_411, %c0_412] : memref<16x16x8xf32, #tpu.memory_space<vmem>>, vector<1x16x8xf32>
    %809 = vector.shape_cast %808 : vector<1x16x8xf32> to vector<16x8xf32>
    %810 = vector.broadcast %807 : vector<1x8xf32> to vector<16x8xf32>
    %811 = arith.mulf %810, %809 : vector<16x8xf32>
    %812 = arith.addf %806, %811 : vector<16x8xf32>
    %813 = vector.extract_strided_slice %777 {offsets = [6, 0], sizes = [1, 8], strides = [1, 1]} : vector<16x8xf32> to vector<1x8xf32>
    %c6_413 = arith.constant 6 : index
    %c0_414 = arith.constant 0 : index
    %c0_415 = arith.constant 0 : index
    %814 = vector.load %arg2[%c6_413, %c0_414, %c0_415] : memref<16x16x8xf32, #tpu.memory_space<vmem>>, vector<1x16x8xf32>
    %815 = vector.shape_cast %814 : vector<1x16x8xf32> to vector<16x8xf32>
    %816 = vector.broadcast %813 : vector<1x8xf32> to vector<16x8xf32>
    %817 = arith.mulf %816, %815 : vector<16x8xf32>
    %818 = arith.addf %812, %817 : vector<16x8xf32>
    %819 = vector.extract_strided_slice %777 {offsets = [7, 0], sizes = [1, 8], strides = [1, 1]} : vector<16x8xf32> to vector<1x8xf32>
    %c7_416 = arith.constant 7 : index
    %c0_417 = arith.constant 0 : index
    %c0_418 = arith.constant 0 : index
    %820 = vector.load %arg2[%c7_416, %c0_417, %c0_418] : memref<16x16x8xf32, #tpu.memory_space<vmem>>, vector<1x16x8xf32>
    %821 = vector.shape_cast %820 : vector<1x16x8xf32> to vector<16x8xf32>
    %822 = vector.broadcast %819 : vector<1x8xf32> to vector<16x8xf32>
    %823 = arith.mulf %822, %821 : vector<16x8xf32>
    %824 = arith.addf %818, %823 : vector<16x8xf32>
    %825 = vector.extract_strided_slice %777 {offsets = [8, 0], sizes = [1, 8], strides = [1, 1]} : vector<16x8xf32> to vector<1x8xf32>
    %c8_419 = arith.constant 8 : index
    %c0_420 = arith.constant 0 : index
    %c0_421 = arith.constant 0 : index
    %826 = vector.load %arg2[%c8_419, %c0_420, %c0_421] : memref<16x16x8xf32, #tpu.memory_space<vmem>>, vector<1x16x8xf32>
    %827 = vector.shape_cast %826 : vector<1x16x8xf32> to vector<16x8xf32>
    %828 = vector.broadcast %825 : vector<1x8xf32> to vector<16x8xf32>
    %829 = arith.mulf %828, %827 : vector<16x8xf32>
    %830 = arith.addf %824, %829 : vector<16x8xf32>
    %831 = vector.extract_strided_slice %777 {offsets = [9, 0], sizes = [1, 8], strides = [1, 1]} : vector<16x8xf32> to vector<1x8xf32>
    %c9_422 = arith.constant 9 : index
    %c0_423 = arith.constant 0 : index
    %c0_424 = arith.constant 0 : index
    %832 = vector.load %arg2[%c9_422, %c0_423, %c0_424] : memref<16x16x8xf32, #tpu.memory_space<vmem>>, vector<1x16x8xf32>
    %833 = vector.shape_cast %832 : vector<1x16x8xf32> to vector<16x8xf32>
    %834 = vector.broadcast %831 : vector<1x8xf32> to vector<16x8xf32>
    %835 = arith.mulf %834, %833 : vector<16x8xf32>
    %836 = arith.addf %830, %835 : vector<16x8xf32>
    %837 = vector.extract_strided_slice %777 {offsets = [10, 0], sizes = [1, 8], strides = [1, 1]} : vector<16x8xf32> to vector<1x8xf32>
    %c10_425 = arith.constant 10 : index
    %c0_426 = arith.constant 0 : index
    %c0_427 = arith.constant 0 : index
    %838 = vector.load %arg2[%c10_425, %c0_426, %c0_427] : memref<16x16x8xf32, #tpu.memory_space<vmem>>, vector<1x16x8xf32>
    %839 = vector.shape_cast %838 : vector<1x16x8xf32> to vector<16x8xf32>
    %840 = vector.broadcast %837 : vector<1x8xf32> to vector<16x8xf32>
    %841 = arith.mulf %840, %839 : vector<16x8xf32>
    %842 = arith.addf %836, %841 : vector<16x8xf32>
    %843 = vector.extract_strided_slice %777 {offsets = [11, 0], sizes = [1, 8], strides = [1, 1]} : vector<16x8xf32> to vector<1x8xf32>
    %c11_428 = arith.constant 11 : index
    %c0_429 = arith.constant 0 : index
    %c0_430 = arith.constant 0 : index
    %844 = vector.load %arg2[%c11_428, %c0_429, %c0_430] : memref<16x16x8xf32, #tpu.memory_space<vmem>>, vector<1x16x8xf32>
    %845 = vector.shape_cast %844 : vector<1x16x8xf32> to vector<16x8xf32>
    %846 = vector.broadcast %843 : vector<1x8xf32> to vector<16x8xf32>
    %847 = arith.mulf %846, %845 : vector<16x8xf32>
    %848 = arith.addf %842, %847 : vector<16x8xf32>
    %849 = vector.extract_strided_slice %777 {offsets = [12, 0], sizes = [1, 8], strides = [1, 1]} : vector<16x8xf32> to vector<1x8xf32>
    %c12_431 = arith.constant 12 : index
    %c0_432 = arith.constant 0 : index
    %c0_433 = arith.constant 0 : index
    %850 = vector.load %arg2[%c12_431, %c0_432, %c0_433] : memref<16x16x8xf32, #tpu.memory_space<vmem>>, vector<1x16x8xf32>
    %851 = vector.shape_cast %850 : vector<1x16x8xf32> to vector<16x8xf32>
    %852 = vector.broadcast %849 : vector<1x8xf32> to vector<16x8xf32>
    %853 = arith.mulf %852, %851 : vector<16x8xf32>
    %854 = arith.addf %848, %853 : vector<16x8xf32>
    %855 = vector.extract_strided_slice %777 {offsets = [13, 0], sizes = [1, 8], strides = [1, 1]} : vector<16x8xf32> to vector<1x8xf32>
    %c13_434 = arith.constant 13 : index
    %c0_435 = arith.constant 0 : index
    %c0_436 = arith.constant 0 : index
    %856 = vector.load %arg2[%c13_434, %c0_435, %c0_436] : memref<16x16x8xf32, #tpu.memory_space<vmem>>, vector<1x16x8xf32>
    %857 = vector.shape_cast %856 : vector<1x16x8xf32> to vector<16x8xf32>
    %858 = vector.broadcast %855 : vector<1x8xf32> to vector<16x8xf32>
    %859 = arith.mulf %858, %857 : vector<16x8xf32>
    %860 = arith.addf %854, %859 : vector<16x8xf32>
    %861 = vector.extract_strided_slice %777 {offsets = [14, 0], sizes = [1, 8], strides = [1, 1]} : vector<16x8xf32> to vector<1x8xf32>
    %c14_437 = arith.constant 14 : index
    %c0_438 = arith.constant 0 : index
    %c0_439 = arith.constant 0 : index
    %862 = vector.load %arg2[%c14_437, %c0_438, %c0_439] : memref<16x16x8xf32, #tpu.memory_space<vmem>>, vector<1x16x8xf32>
    %863 = vector.shape_cast %862 : vector<1x16x8xf32> to vector<16x8xf32>
    %864 = vector.broadcast %861 : vector<1x8xf32> to vector<16x8xf32>
    %865 = arith.mulf %864, %863 : vector<16x8xf32>
    %866 = arith.addf %860, %865 : vector<16x8xf32>
    %867 = vector.extract_strided_slice %777 {offsets = [15, 0], sizes = [1, 8], strides = [1, 1]} : vector<16x8xf32> to vector<1x8xf32>
    %c15_440 = arith.constant 15 : index
    %c0_441 = arith.constant 0 : index
    %c0_442 = arith.constant 0 : index
    %868 = vector.load %arg2[%c15_440, %c0_441, %c0_442] : memref<16x16x8xf32, #tpu.memory_space<vmem>>, vector<1x16x8xf32>
    %869 = vector.shape_cast %868 : vector<1x16x8xf32> to vector<16x8xf32>
    %870 = vector.broadcast %867 : vector<1x8xf32> to vector<16x8xf32>
    %871 = arith.mulf %870, %869 : vector<16x8xf32>
    %872 = arith.addf %866, %871 : vector<16x8xf32>
    %c9_443 = arith.constant 9 : index
    %c0_444 = arith.constant 0 : index
    %c0_445 = arith.constant 0 : index
    %873 = vector.load %arg1[%c9_443, %c0_444, %c0_445] : memref<16x16x8xf32, #tpu.memory_space<vmem>>, vector<1x16x8xf32>
    %874 = vector.shape_cast %873 : vector<1x16x8xf32> to vector<16x8xf32>
    %875 = vector.extract_strided_slice %874 {offsets = [0, 0], sizes = [1, 8], strides = [1, 1]} : vector<16x8xf32> to vector<1x8xf32>
    %c0_446 = arith.constant 0 : index
    %c0_447 = arith.constant 0 : index
    %c0_448 = arith.constant 0 : index
    %876 = vector.load %arg2[%c0_446, %c0_447, %c0_448] : memref<16x16x8xf32, #tpu.memory_space<vmem>>, vector<1x16x8xf32>
    %877 = vector.shape_cast %876 : vector<1x16x8xf32> to vector<16x8xf32>
    %878 = vector.broadcast %875 : vector<1x8xf32> to vector<16x8xf32>
    %879 = arith.mulf %878, %877 : vector<16x8xf32>
    %880 = vector.extract_strided_slice %874 {offsets = [1, 0], sizes = [1, 8], strides = [1, 1]} : vector<16x8xf32> to vector<1x8xf32>
    %c1_449 = arith.constant 1 : index
    %c0_450 = arith.constant 0 : index
    %c0_451 = arith.constant 0 : index
    %881 = vector.load %arg2[%c1_449, %c0_450, %c0_451] : memref<16x16x8xf32, #tpu.memory_space<vmem>>, vector<1x16x8xf32>
    %882 = vector.shape_cast %881 : vector<1x16x8xf32> to vector<16x8xf32>
    %883 = vector.broadcast %880 : vector<1x8xf32> to vector<16x8xf32>
    %884 = arith.mulf %883, %882 : vector<16x8xf32>
    %885 = arith.addf %879, %884 : vector<16x8xf32>
    %886 = vector.extract_strided_slice %874 {offsets = [2, 0], sizes = [1, 8], strides = [1, 1]} : vector<16x8xf32> to vector<1x8xf32>
    %c2_452 = arith.constant 2 : index
    %c0_453 = arith.constant 0 : index
    %c0_454 = arith.constant 0 : index
    %887 = vector.load %arg2[%c2_452, %c0_453, %c0_454] : memref<16x16x8xf32, #tpu.memory_space<vmem>>, vector<1x16x8xf32>
    %888 = vector.shape_cast %887 : vector<1x16x8xf32> to vector<16x8xf32>
    %889 = vector.broadcast %886 : vector<1x8xf32> to vector<16x8xf32>
    %890 = arith.mulf %889, %888 : vector<16x8xf32>
    %891 = arith.addf %885, %890 : vector<16x8xf32>
    %892 = vector.extract_strided_slice %874 {offsets = [3, 0], sizes = [1, 8], strides = [1, 1]} : vector<16x8xf32> to vector<1x8xf32>
    %c3_455 = arith.constant 3 : index
    %c0_456 = arith.constant 0 : index
    %c0_457 = arith.constant 0 : index
    %893 = vector.load %arg2[%c3_455, %c0_456, %c0_457] : memref<16x16x8xf32, #tpu.memory_space<vmem>>, vector<1x16x8xf32>
    %894 = vector.shape_cast %893 : vector<1x16x8xf32> to vector<16x8xf32>
    %895 = vector.broadcast %892 : vector<1x8xf32> to vector<16x8xf32>
    %896 = arith.mulf %895, %894 : vector<16x8xf32>
    %897 = arith.addf %891, %896 : vector<16x8xf32>
    %898 = vector.extract_strided_slice %874 {offsets = [4, 0], sizes = [1, 8], strides = [1, 1]} : vector<16x8xf32> to vector<1x8xf32>
    %c4_458 = arith.constant 4 : index
    %c0_459 = arith.constant 0 : index
    %c0_460 = arith.constant 0 : index
    %899 = vector.load %arg2[%c4_458, %c0_459, %c0_460] : memref<16x16x8xf32, #tpu.memory_space<vmem>>, vector<1x16x8xf32>
    %900 = vector.shape_cast %899 : vector<1x16x8xf32> to vector<16x8xf32>
    %901 = vector.broadcast %898 : vector<1x8xf32> to vector<16x8xf32>
    %902 = arith.mulf %901, %900 : vector<16x8xf32>
    %903 = arith.addf %897, %902 : vector<16x8xf32>
    %904 = vector.extract_strided_slice %874 {offsets = [5, 0], sizes = [1, 8], strides = [1, 1]} : vector<16x8xf32> to vector<1x8xf32>
    %c5_461 = arith.constant 5 : index
    %c0_462 = arith.constant 0 : index
    %c0_463 = arith.constant 0 : index
    %905 = vector.load %arg2[%c5_461, %c0_462, %c0_463] : memref<16x16x8xf32, #tpu.memory_space<vmem>>, vector<1x16x8xf32>
    %906 = vector.shape_cast %905 : vector<1x16x8xf32> to vector<16x8xf32>
    %907 = vector.broadcast %904 : vector<1x8xf32> to vector<16x8xf32>
    %908 = arith.mulf %907, %906 : vector<16x8xf32>
    %909 = arith.addf %903, %908 : vector<16x8xf32>
    %910 = vector.extract_strided_slice %874 {offsets = [6, 0], sizes = [1, 8], strides = [1, 1]} : vector<16x8xf32> to vector<1x8xf32>
    %c6_464 = arith.constant 6 : index
    %c0_465 = arith.constant 0 : index
    %c0_466 = arith.constant 0 : index
    %911 = vector.load %arg2[%c6_464, %c0_465, %c0_466] : memref<16x16x8xf32, #tpu.memory_space<vmem>>, vector<1x16x8xf32>
    %912 = vector.shape_cast %911 : vector<1x16x8xf32> to vector<16x8xf32>
    %913 = vector.broadcast %910 : vector<1x8xf32> to vector<16x8xf32>
    %914 = arith.mulf %913, %912 : vector<16x8xf32>
    %915 = arith.addf %909, %914 : vector<16x8xf32>
    %916 = vector.extract_strided_slice %874 {offsets = [7, 0], sizes = [1, 8], strides = [1, 1]} : vector<16x8xf32> to vector<1x8xf32>
    %c7_467 = arith.constant 7 : index
    %c0_468 = arith.constant 0 : index
    %c0_469 = arith.constant 0 : index
    %917 = vector.load %arg2[%c7_467, %c0_468, %c0_469] : memref<16x16x8xf32, #tpu.memory_space<vmem>>, vector<1x16x8xf32>
    %918 = vector.shape_cast %917 : vector<1x16x8xf32> to vector<16x8xf32>
    %919 = vector.broadcast %916 : vector<1x8xf32> to vector<16x8xf32>
    %920 = arith.mulf %919, %918 : vector<16x8xf32>
    %921 = arith.addf %915, %920 : vector<16x8xf32>
    %922 = vector.extract_strided_slice %874 {offsets = [8, 0], sizes = [1, 8], strides = [1, 1]} : vector<16x8xf32> to vector<1x8xf32>
    %c8_470 = arith.constant 8 : index
    %c0_471 = arith.constant 0 : index
    %c0_472 = arith.constant 0 : index
    %923 = vector.load %arg2[%c8_470, %c0_471, %c0_472] : memref<16x16x8xf32, #tpu.memory_space<vmem>>, vector<1x16x8xf32>
    %924 = vector.shape_cast %923 : vector<1x16x8xf32> to vector<16x8xf32>
    %925 = vector.broadcast %922 : vector<1x8xf32> to vector<16x8xf32>
    %926 = arith.mulf %925, %924 : vector<16x8xf32>
    %927 = arith.addf %921, %926 : vector<16x8xf32>
    %928 = vector.extract_strided_slice %874 {offsets = [9, 0], sizes = [1, 8], strides = [1, 1]} : vector<16x8xf32> to vector<1x8xf32>
    %c9_473 = arith.constant 9 : index
    %c0_474 = arith.constant 0 : index
    %c0_475 = arith.constant 0 : index
    %929 = vector.load %arg2[%c9_473, %c0_474, %c0_475] : memref<16x16x8xf32, #tpu.memory_space<vmem>>, vector<1x16x8xf32>
    %930 = vector.shape_cast %929 : vector<1x16x8xf32> to vector<16x8xf32>
    %931 = vector.broadcast %928 : vector<1x8xf32> to vector<16x8xf32>
    %932 = arith.mulf %931, %930 : vector<16x8xf32>
    %933 = arith.addf %927, %932 : vector<16x8xf32>
    %934 = vector.extract_strided_slice %874 {offsets = [10, 0], sizes = [1, 8], strides = [1, 1]} : vector<16x8xf32> to vector<1x8xf32>
    %c10_476 = arith.constant 10 : index
    %c0_477 = arith.constant 0 : index
    %c0_478 = arith.constant 0 : index
    %935 = vector.load %arg2[%c10_476, %c0_477, %c0_478] : memref<16x16x8xf32, #tpu.memory_space<vmem>>, vector<1x16x8xf32>
    %936 = vector.shape_cast %935 : vector<1x16x8xf32> to vector<16x8xf32>
    %937 = vector.broadcast %934 : vector<1x8xf32> to vector<16x8xf32>
    %938 = arith.mulf %937, %936 : vector<16x8xf32>
    %939 = arith.addf %933, %938 : vector<16x8xf32>
    %940 = vector.extract_strided_slice %874 {offsets = [11, 0], sizes = [1, 8], strides = [1, 1]} : vector<16x8xf32> to vector<1x8xf32>
    %c11_479 = arith.constant 11 : index
    %c0_480 = arith.constant 0 : index
    %c0_481 = arith.constant 0 : index
    %941 = vector.load %arg2[%c11_479, %c0_480, %c0_481] : memref<16x16x8xf32, #tpu.memory_space<vmem>>, vector<1x16x8xf32>
    %942 = vector.shape_cast %941 : vector<1x16x8xf32> to vector<16x8xf32>
    %943 = vector.broadcast %940 : vector<1x8xf32> to vector<16x8xf32>
    %944 = arith.mulf %943, %942 : vector<16x8xf32>
    %945 = arith.addf %939, %944 : vector<16x8xf32>
    %946 = vector.extract_strided_slice %874 {offsets = [12, 0], sizes = [1, 8], strides = [1, 1]} : vector<16x8xf32> to vector<1x8xf32>
    %c12_482 = arith.constant 12 : index
    %c0_483 = arith.constant 0 : index
    %c0_484 = arith.constant 0 : index
    %947 = vector.load %arg2[%c12_482, %c0_483, %c0_484] : memref<16x16x8xf32, #tpu.memory_space<vmem>>, vector<1x16x8xf32>
    %948 = vector.shape_cast %947 : vector<1x16x8xf32> to vector<16x8xf32>
    %949 = vector.broadcast %946 : vector<1x8xf32> to vector<16x8xf32>
    %950 = arith.mulf %949, %948 : vector<16x8xf32>
    %951 = arith.addf %945, %950 : vector<16x8xf32>
    %952 = vector.extract_strided_slice %874 {offsets = [13, 0], sizes = [1, 8], strides = [1, 1]} : vector<16x8xf32> to vector<1x8xf32>
    %c13_485 = arith.constant 13 : index
    %c0_486 = arith.constant 0 : index
    %c0_487 = arith.constant 0 : index
    %953 = vector.load %arg2[%c13_485, %c0_486, %c0_487] : memref<16x16x8xf32, #tpu.memory_space<vmem>>, vector<1x16x8xf32>
    %954 = vector.shape_cast %953 : vector<1x16x8xf32> to vector<16x8xf32>
    %955 = vector.broadcast %952 : vector<1x8xf32> to vector<16x8xf32>
    %956 = arith.mulf %955, %954 : vector<16x8xf32>
    %957 = arith.addf %951, %956 : vector<16x8xf32>
    %958 = vector.extract_strided_slice %874 {offsets = [14, 0], sizes = [1, 8], strides = [1, 1]} : vector<16x8xf32> to vector<1x8xf32>
    %c14_488 = arith.constant 14 : index
    %c0_489 = arith.constant 0 : index
    %c0_490 = arith.constant 0 : index
    %959 = vector.load %arg2[%c14_488, %c0_489, %c0_490] : memref<16x16x8xf32, #tpu.memory_space<vmem>>, vector<1x16x8xf32>
    %960 = vector.shape_cast %959 : vector<1x16x8xf32> to vector<16x8xf32>
    %961 = vector.broadcast %958 : vector<1x8xf32> to vector<16x8xf32>
    %962 = arith.mulf %961, %960 : vector<16x8xf32>
    %963 = arith.addf %957, %962 : vector<16x8xf32>
    %964 = vector.extract_strided_slice %874 {offsets = [15, 0], sizes = [1, 8], strides = [1, 1]} : vector<16x8xf32> to vector<1x8xf32>
    %c15_491 = arith.constant 15 : index
    %c0_492 = arith.constant 0 : index
    %c0_493 = arith.constant 0 : index
    %965 = vector.load %arg2[%c15_491, %c0_492, %c0_493] : memref<16x16x8xf32, #tpu.memory_space<vmem>>, vector<1x16x8xf32>
    %966 = vector.shape_cast %965 : vector<1x16x8xf32> to vector<16x8xf32>
    %967 = vector.broadcast %964 : vector<1x8xf32> to vector<16x8xf32>
    %968 = arith.mulf %967, %966 : vector<16x8xf32>
    %969 = arith.addf %963, %968 : vector<16x8xf32>
    %c10_494 = arith.constant 10 : index
    %c0_495 = arith.constant 0 : index
    %c0_496 = arith.constant 0 : index
    %970 = vector.load %arg1[%c10_494, %c0_495, %c0_496] : memref<16x16x8xf32, #tpu.memory_space<vmem>>, vector<1x16x8xf32>
    %971 = vector.shape_cast %970 : vector<1x16x8xf32> to vector<16x8xf32>
    %972 = vector.extract_strided_slice %971 {offsets = [0, 0], sizes = [1, 8], strides = [1, 1]} : vector<16x8xf32> to vector<1x8xf32>
    %c0_497 = arith.constant 0 : index
    %c0_498 = arith.constant 0 : index
    %c0_499 = arith.constant 0 : index
    %973 = vector.load %arg2[%c0_497, %c0_498, %c0_499] : memref<16x16x8xf32, #tpu.memory_space<vmem>>, vector<1x16x8xf32>
    %974 = vector.shape_cast %973 : vector<1x16x8xf32> to vector<16x8xf32>
    %975 = vector.broadcast %972 : vector<1x8xf32> to vector<16x8xf32>
    %976 = arith.mulf %975, %974 : vector<16x8xf32>
    %977 = vector.extract_strided_slice %971 {offsets = [1, 0], sizes = [1, 8], strides = [1, 1]} : vector<16x8xf32> to vector<1x8xf32>
    %c1_500 = arith.constant 1 : index
    %c0_501 = arith.constant 0 : index
    %c0_502 = arith.constant 0 : index
    %978 = vector.load %arg2[%c1_500, %c0_501, %c0_502] : memref<16x16x8xf32, #tpu.memory_space<vmem>>, vector<1x16x8xf32>
    %979 = vector.shape_cast %978 : vector<1x16x8xf32> to vector<16x8xf32>
    %980 = vector.broadcast %977 : vector<1x8xf32> to vector<16x8xf32>
    %981 = arith.mulf %980, %979 : vector<16x8xf32>
    %982 = arith.addf %976, %981 : vector<16x8xf32>
    %983 = vector.extract_strided_slice %971 {offsets = [2, 0], sizes = [1, 8], strides = [1, 1]} : vector<16x8xf32> to vector<1x8xf32>
    %c2_503 = arith.constant 2 : index
    %c0_504 = arith.constant 0 : index
    %c0_505 = arith.constant 0 : index
    %984 = vector.load %arg2[%c2_503, %c0_504, %c0_505] : memref<16x16x8xf32, #tpu.memory_space<vmem>>, vector<1x16x8xf32>
    %985 = vector.shape_cast %984 : vector<1x16x8xf32> to vector<16x8xf32>
    %986 = vector.broadcast %983 : vector<1x8xf32> to vector<16x8xf32>
    %987 = arith.mulf %986, %985 : vector<16x8xf32>
    %988 = arith.addf %982, %987 : vector<16x8xf32>
    %989 = vector.extract_strided_slice %971 {offsets = [3, 0], sizes = [1, 8], strides = [1, 1]} : vector<16x8xf32> to vector<1x8xf32>
    %c3_506 = arith.constant 3 : index
    %c0_507 = arith.constant 0 : index
    %c0_508 = arith.constant 0 : index
    %990 = vector.load %arg2[%c3_506, %c0_507, %c0_508] : memref<16x16x8xf32, #tpu.memory_space<vmem>>, vector<1x16x8xf32>
    %991 = vector.shape_cast %990 : vector<1x16x8xf32> to vector<16x8xf32>
    %992 = vector.broadcast %989 : vector<1x8xf32> to vector<16x8xf32>
    %993 = arith.mulf %992, %991 : vector<16x8xf32>
    %994 = arith.addf %988, %993 : vector<16x8xf32>
    %995 = vector.extract_strided_slice %971 {offsets = [4, 0], sizes = [1, 8], strides = [1, 1]} : vector<16x8xf32> to vector<1x8xf32>
    %c4_509 = arith.constant 4 : index
    %c0_510 = arith.constant 0 : index
    %c0_511 = arith.constant 0 : index
    %996 = vector.load %arg2[%c4_509, %c0_510, %c0_511] : memref<16x16x8xf32, #tpu.memory_space<vmem>>, vector<1x16x8xf32>
    %997 = vector.shape_cast %996 : vector<1x16x8xf32> to vector<16x8xf32>
    %998 = vector.broadcast %995 : vector<1x8xf32> to vector<16x8xf32>
    %999 = arith.mulf %998, %997 : vector<16x8xf32>
    %1000 = arith.addf %994, %999 : vector<16x8xf32>
    %1001 = vector.extract_strided_slice %971 {offsets = [5, 0], sizes = [1, 8], strides = [1, 1]} : vector<16x8xf32> to vector<1x8xf32>
    %c5_512 = arith.constant 5 : index
    %c0_513 = arith.constant 0 : index
    %c0_514 = arith.constant 0 : index
    %1002 = vector.load %arg2[%c5_512, %c0_513, %c0_514] : memref<16x16x8xf32, #tpu.memory_space<vmem>>, vector<1x16x8xf32>
    %1003 = vector.shape_cast %1002 : vector<1x16x8xf32> to vector<16x8xf32>
    %1004 = vector.broadcast %1001 : vector<1x8xf32> to vector<16x8xf32>
    %1005 = arith.mulf %1004, %1003 : vector<16x8xf32>
    %1006 = arith.addf %1000, %1005 : vector<16x8xf32>
    %1007 = vector.extract_strided_slice %971 {offsets = [6, 0], sizes = [1, 8], strides = [1, 1]} : vector<16x8xf32> to vector<1x8xf32>
    %c6_515 = arith.constant 6 : index
    %c0_516 = arith.constant 0 : index
    %c0_517 = arith.constant 0 : index
    %1008 = vector.load %arg2[%c6_515, %c0_516, %c0_517] : memref<16x16x8xf32, #tpu.memory_space<vmem>>, vector<1x16x8xf32>
    %1009 = vector.shape_cast %1008 : vector<1x16x8xf32> to vector<16x8xf32>
    %1010 = vector.broadcast %1007 : vector<1x8xf32> to vector<16x8xf32>
    %1011 = arith.mulf %1010, %1009 : vector<16x8xf32>
    %1012 = arith.addf %1006, %1011 : vector<16x8xf32>
    %1013 = vector.extract_strided_slice %971 {offsets = [7, 0], sizes = [1, 8], strides = [1, 1]} : vector<16x8xf32> to vector<1x8xf32>
    %c7_518 = arith.constant 7 : index
    %c0_519 = arith.constant 0 : index
    %c0_520 = arith.constant 0 : index
    %1014 = vector.load %arg2[%c7_518, %c0_519, %c0_520] : memref<16x16x8xf32, #tpu.memory_space<vmem>>, vector<1x16x8xf32>
    %1015 = vector.shape_cast %1014 : vector<1x16x8xf32> to vector<16x8xf32>
    %1016 = vector.broadcast %1013 : vector<1x8xf32> to vector<16x8xf32>
    %1017 = arith.mulf %1016, %1015 : vector<16x8xf32>
    %1018 = arith.addf %1012, %1017 : vector<16x8xf32>
    %1019 = vector.extract_strided_slice %971 {offsets = [8, 0], sizes = [1, 8], strides = [1, 1]} : vector<16x8xf32> to vector<1x8xf32>
    %c8_521 = arith.constant 8 : index
    %c0_522 = arith.constant 0 : index
    %c0_523 = arith.constant 0 : index
    %1020 = vector.load %arg2[%c8_521, %c0_522, %c0_523] : memref<16x16x8xf32, #tpu.memory_space<vmem>>, vector<1x16x8xf32>
    %1021 = vector.shape_cast %1020 : vector<1x16x8xf32> to vector<16x8xf32>
    %1022 = vector.broadcast %1019 : vector<1x8xf32> to vector<16x8xf32>
    %1023 = arith.mulf %1022, %1021 : vector<16x8xf32>
    %1024 = arith.addf %1018, %1023 : vector<16x8xf32>
    %1025 = vector.extract_strided_slice %971 {offsets = [9, 0], sizes = [1, 8], strides = [1, 1]} : vector<16x8xf32> to vector<1x8xf32>
    %c9_524 = arith.constant 9 : index
    %c0_525 = arith.constant 0 : index
    %c0_526 = arith.constant 0 : index
    %1026 = vector.load %arg2[%c9_524, %c0_525, %c0_526] : memref<16x16x8xf32, #tpu.memory_space<vmem>>, vector<1x16x8xf32>
    %1027 = vector.shape_cast %1026 : vector<1x16x8xf32> to vector<16x8xf32>
    %1028 = vector.broadcast %1025 : vector<1x8xf32> to vector<16x8xf32>
    %1029 = arith.mulf %1028, %1027 : vector<16x8xf32>
    %1030 = arith.addf %1024, %1029 : vector<16x8xf32>
    %1031 = vector.extract_strided_slice %971 {offsets = [10, 0], sizes = [1, 8], strides = [1, 1]} : vector<16x8xf32> to vector<1x8xf32>
    %c10_527 = arith.constant 10 : index
    %c0_528 = arith.constant 0 : index
    %c0_529 = arith.constant 0 : index
    %1032 = vector.load %arg2[%c10_527, %c0_528, %c0_529] : memref<16x16x8xf32, #tpu.memory_space<vmem>>, vector<1x16x8xf32>
    %1033 = vector.shape_cast %1032 : vector<1x16x8xf32> to vector<16x8xf32>
    %1034 = vector.broadcast %1031 : vector<1x8xf32> to vector<16x8xf32>
    %1035 = arith.mulf %1034, %1033 : vector<16x8xf32>
    %1036 = arith.addf %1030, %1035 : vector<16x8xf32>
    %1037 = vector.extract_strided_slice %971 {offsets = [11, 0], sizes = [1, 8], strides = [1, 1]} : vector<16x8xf32> to vector<1x8xf32>
    %c11_530 = arith.constant 11 : index
    %c0_531 = arith.constant 0 : index
    %c0_532 = arith.constant 0 : index
    %1038 = vector.load %arg2[%c11_530, %c0_531, %c0_532] : memref<16x16x8xf32, #tpu.memory_space<vmem>>, vector<1x16x8xf32>
    %1039 = vector.shape_cast %1038 : vector<1x16x8xf32> to vector<16x8xf32>
    %1040 = vector.broadcast %1037 : vector<1x8xf32> to vector<16x8xf32>
    %1041 = arith.mulf %1040, %1039 : vector<16x8xf32>
    %1042 = arith.addf %1036, %1041 : vector<16x8xf32>
    %1043 = vector.extract_strided_slice %971 {offsets = [12, 0], sizes = [1, 8], strides = [1, 1]} : vector<16x8xf32> to vector<1x8xf32>
    %c12_533 = arith.constant 12 : index
    %c0_534 = arith.constant 0 : index
    %c0_535 = arith.constant 0 : index
    %1044 = vector.load %arg2[%c12_533, %c0_534, %c0_535] : memref<16x16x8xf32, #tpu.memory_space<vmem>>, vector<1x16x8xf32>
    %1045 = vector.shape_cast %1044 : vector<1x16x8xf32> to vector<16x8xf32>
    %1046 = vector.broadcast %1043 : vector<1x8xf32> to vector<16x8xf32>
    %1047 = arith.mulf %1046, %1045 : vector<16x8xf32>
    %1048 = arith.addf %1042, %1047 : vector<16x8xf32>
    %1049 = vector.extract_strided_slice %971 {offsets = [13, 0], sizes = [1, 8], strides = [1, 1]} : vector<16x8xf32> to vector<1x8xf32>
    %c13_536 = arith.constant 13 : index
    %c0_537 = arith.constant 0 : index
    %c0_538 = arith.constant 0 : index
    %1050 = vector.load %arg2[%c13_536, %c0_537, %c0_538] : memref<16x16x8xf32, #tpu.memory_space<vmem>>, vector<1x16x8xf32>
    %1051 = vector.shape_cast %1050 : vector<1x16x8xf32> to vector<16x8xf32>
    %1052 = vector.broadcast %1049 : vector<1x8xf32> to vector<16x8xf32>
    %1053 = arith.mulf %1052, %1051 : vector<16x8xf32>
    %1054 = arith.addf %1048, %1053 : vector<16x8xf32>
    %1055 = vector.extract_strided_slice %971 {offsets = [14, 0], sizes = [1, 8], strides = [1, 1]} : vector<16x8xf32> to vector<1x8xf32>
    %c14_539 = arith.constant 14 : index
    %c0_540 = arith.constant 0 : index
    %c0_541 = arith.constant 0 : index
    %1056 = vector.load %arg2[%c14_539, %c0_540, %c0_541] : memref<16x16x8xf32, #tpu.memory_space<vmem>>, vector<1x16x8xf32>
    %1057 = vector.shape_cast %1056 : vector<1x16x8xf32> to vector<16x8xf32>
    %1058 = vector.broadcast %1055 : vector<1x8xf32> to vector<16x8xf32>
    %1059 = arith.mulf %1058, %1057 : vector<16x8xf32>
    %1060 = arith.addf %1054, %1059 : vector<16x8xf32>
    %1061 = vector.extract_strided_slice %971 {offsets = [15, 0], sizes = [1, 8], strides = [1, 1]} : vector<16x8xf32> to vector<1x8xf32>
    %c15_542 = arith.constant 15 : index
    %c0_543 = arith.constant 0 : index
    %c0_544 = arith.constant 0 : index
    %1062 = vector.load %arg2[%c15_542, %c0_543, %c0_544] : memref<16x16x8xf32, #tpu.memory_space<vmem>>, vector<1x16x8xf32>
    %1063 = vector.shape_cast %1062 : vector<1x16x8xf32> to vector<16x8xf32>
    %1064 = vector.broadcast %1061 : vector<1x8xf32> to vector<16x8xf32>
    %1065 = arith.mulf %1064, %1063 : vector<16x8xf32>
    %1066 = arith.addf %1060, %1065 : vector<16x8xf32>
    %c11_545 = arith.constant 11 : index
    %c0_546 = arith.constant 0 : index
    %c0_547 = arith.constant 0 : index
    %1067 = vector.load %arg1[%c11_545, %c0_546, %c0_547] : memref<16x16x8xf32, #tpu.memory_space<vmem>>, vector<1x16x8xf32>
    %1068 = vector.shape_cast %1067 : vector<1x16x8xf32> to vector<16x8xf32>
    %1069 = vector.extract_strided_slice %1068 {offsets = [0, 0], sizes = [1, 8], strides = [1, 1]} : vector<16x8xf32> to vector<1x8xf32>
    %c0_548 = arith.constant 0 : index
    %c0_549 = arith.constant 0 : index
    %c0_550 = arith.constant 0 : index
    %1070 = vector.load %arg2[%c0_548, %c0_549, %c0_550] : memref<16x16x8xf32, #tpu.memory_space<vmem>>, vector<1x16x8xf32>
    %1071 = vector.shape_cast %1070 : vector<1x16x8xf32> to vector<16x8xf32>
    %1072 = vector.broadcast %1069 : vector<1x8xf32> to vector<16x8xf32>
    %1073 = arith.mulf %1072, %1071 : vector<16x8xf32>
    %1074 = vector.extract_strided_slice %1068 {offsets = [1, 0], sizes = [1, 8], strides = [1, 1]} : vector<16x8xf32> to vector<1x8xf32>
    %c1_551 = arith.constant 1 : index
    %c0_552 = arith.constant 0 : index
    %c0_553 = arith.constant 0 : index
    %1075 = vector.load %arg2[%c1_551, %c0_552, %c0_553] : memref<16x16x8xf32, #tpu.memory_space<vmem>>, vector<1x16x8xf32>
    %1076 = vector.shape_cast %1075 : vector<1x16x8xf32> to vector<16x8xf32>
    %1077 = vector.broadcast %1074 : vector<1x8xf32> to vector<16x8xf32>
    %1078 = arith.mulf %1077, %1076 : vector<16x8xf32>
    %1079 = arith.addf %1073, %1078 : vector<16x8xf32>
    %1080 = vector.extract_strided_slice %1068 {offsets = [2, 0], sizes = [1, 8], strides = [1, 1]} : vector<16x8xf32> to vector<1x8xf32>
    %c2_554 = arith.constant 2 : index
    %c0_555 = arith.constant 0 : index
    %c0_556 = arith.constant 0 : index
    %1081 = vector.load %arg2[%c2_554, %c0_555, %c0_556] : memref<16x16x8xf32, #tpu.memory_space<vmem>>, vector<1x16x8xf32>
    %1082 = vector.shape_cast %1081 : vector<1x16x8xf32> to vector<16x8xf32>
    %1083 = vector.broadcast %1080 : vector<1x8xf32> to vector<16x8xf32>
    %1084 = arith.mulf %1083, %1082 : vector<16x8xf32>
    %1085 = arith.addf %1079, %1084 : vector<16x8xf32>
    %1086 = vector.extract_strided_slice %1068 {offsets = [3, 0], sizes = [1, 8], strides = [1, 1]} : vector<16x8xf32> to vector<1x8xf32>
    %c3_557 = arith.constant 3 : index
    %c0_558 = arith.constant 0 : index
    %c0_559 = arith.constant 0 : index
    %1087 = vector.load %arg2[%c3_557, %c0_558, %c0_559] : memref<16x16x8xf32, #tpu.memory_space<vmem>>, vector<1x16x8xf32>
    %1088 = vector.shape_cast %1087 : vector<1x16x8xf32> to vector<16x8xf32>
    %1089 = vector.broadcast %1086 : vector<1x8xf32> to vector<16x8xf32>
    %1090 = arith.mulf %1089, %1088 : vector<16x8xf32>
    %1091 = arith.addf %1085, %1090 : vector<16x8xf32>
    %1092 = vector.extract_strided_slice %1068 {offsets = [4, 0], sizes = [1, 8], strides = [1, 1]} : vector<16x8xf32> to vector<1x8xf32>
    %c4_560 = arith.constant 4 : index
    %c0_561 = arith.constant 0 : index
    %c0_562 = arith.constant 0 : index
    %1093 = vector.load %arg2[%c4_560, %c0_561, %c0_562] : memref<16x16x8xf32, #tpu.memory_space<vmem>>, vector<1x16x8xf32>
    %1094 = vector.shape_cast %1093 : vector<1x16x8xf32> to vector<16x8xf32>
    %1095 = vector.broadcast %1092 : vector<1x8xf32> to vector<16x8xf32>
    %1096 = arith.mulf %1095, %1094 : vector<16x8xf32>
    %1097 = arith.addf %1091, %1096 : vector<16x8xf32>
    %1098 = vector.extract_strided_slice %1068 {offsets = [5, 0], sizes = [1, 8], strides = [1, 1]} : vector<16x8xf32> to vector<1x8xf32>
    %c5_563 = arith.constant 5 : index
    %c0_564 = arith.constant 0 : index
    %c0_565 = arith.constant 0 : index
    %1099 = vector.load %arg2[%c5_563, %c0_564, %c0_565] : memref<16x16x8xf32, #tpu.memory_space<vmem>>, vector<1x16x8xf32>
    %1100 = vector.shape_cast %1099 : vector<1x16x8xf32> to vector<16x8xf32>
    %1101 = vector.broadcast %1098 : vector<1x8xf32> to vector<16x8xf32>
    %1102 = arith.mulf %1101, %1100 : vector<16x8xf32>
    %1103 = arith.addf %1097, %1102 : vector<16x8xf32>
    %1104 = vector.extract_strided_slice %1068 {offsets = [6, 0], sizes = [1, 8], strides = [1, 1]} : vector<16x8xf32> to vector<1x8xf32>
    %c6_566 = arith.constant 6 : index
    %c0_567 = arith.constant 0 : index
    %c0_568 = arith.constant 0 : index
    %1105 = vector.load %arg2[%c6_566, %c0_567, %c0_568] : memref<16x16x8xf32, #tpu.memory_space<vmem>>, vector<1x16x8xf32>
    %1106 = vector.shape_cast %1105 : vector<1x16x8xf32> to vector<16x8xf32>
    %1107 = vector.broadcast %1104 : vector<1x8xf32> to vector<16x8xf32>
    %1108 = arith.mulf %1107, %1106 : vector<16x8xf32>
    %1109 = arith.addf %1103, %1108 : vector<16x8xf32>
    %1110 = vector.extract_strided_slice %1068 {offsets = [7, 0], sizes = [1, 8], strides = [1, 1]} : vector<16x8xf32> to vector<1x8xf32>
    %c7_569 = arith.constant 7 : index
    %c0_570 = arith.constant 0 : index
    %c0_571 = arith.constant 0 : index
    %1111 = vector.load %arg2[%c7_569, %c0_570, %c0_571] : memref<16x16x8xf32, #tpu.memory_space<vmem>>, vector<1x16x8xf32>
    %1112 = vector.shape_cast %1111 : vector<1x16x8xf32> to vector<16x8xf32>
    %1113 = vector.broadcast %1110 : vector<1x8xf32> to vector<16x8xf32>
    %1114 = arith.mulf %1113, %1112 : vector<16x8xf32>
    %1115 = arith.addf %1109, %1114 : vector<16x8xf32>
    %1116 = vector.extract_strided_slice %1068 {offsets = [8, 0], sizes = [1, 8], strides = [1, 1]} : vector<16x8xf32> to vector<1x8xf32>
    %c8_572 = arith.constant 8 : index
    %c0_573 = arith.constant 0 : index
    %c0_574 = arith.constant 0 : index
    %1117 = vector.load %arg2[%c8_572, %c0_573, %c0_574] : memref<16x16x8xf32, #tpu.memory_space<vmem>>, vector<1x16x8xf32>
    %1118 = vector.shape_cast %1117 : vector<1x16x8xf32> to vector<16x8xf32>
    %1119 = vector.broadcast %1116 : vector<1x8xf32> to vector<16x8xf32>
    %1120 = arith.mulf %1119, %1118 : vector<16x8xf32>
    %1121 = arith.addf %1115, %1120 : vector<16x8xf32>
    %1122 = vector.extract_strided_slice %1068 {offsets = [9, 0], sizes = [1, 8], strides = [1, 1]} : vector<16x8xf32> to vector<1x8xf32>
    %c9_575 = arith.constant 9 : index
    %c0_576 = arith.constant 0 : index
    %c0_577 = arith.constant 0 : index
    %1123 = vector.load %arg2[%c9_575, %c0_576, %c0_577] : memref<16x16x8xf32, #tpu.memory_space<vmem>>, vector<1x16x8xf32>
    %1124 = vector.shape_cast %1123 : vector<1x16x8xf32> to vector<16x8xf32>
    %1125 = vector.broadcast %1122 : vector<1x8xf32> to vector<16x8xf32>
    %1126 = arith.mulf %1125, %1124 : vector<16x8xf32>
    %1127 = arith.addf %1121, %1126 : vector<16x8xf32>
    %1128 = vector.extract_strided_slice %1068 {offsets = [10, 0], sizes = [1, 8], strides = [1, 1]} : vector<16x8xf32> to vector<1x8xf32>
    %c10_578 = arith.constant 10 : index
    %c0_579 = arith.constant 0 : index
    %c0_580 = arith.constant 0 : index
    %1129 = vector.load %arg2[%c10_578, %c0_579, %c0_580] : memref<16x16x8xf32, #tpu.memory_space<vmem>>, vector<1x16x8xf32>
    %1130 = vector.shape_cast %1129 : vector<1x16x8xf32> to vector<16x8xf32>
    %1131 = vector.broadcast %1128 : vector<1x8xf32> to vector<16x8xf32>
    %1132 = arith.mulf %1131, %1130 : vector<16x8xf32>
    %1133 = arith.addf %1127, %1132 : vector<16x8xf32>
    %1134 = vector.extract_strided_slice %1068 {offsets = [11, 0], sizes = [1, 8], strides = [1, 1]} : vector<16x8xf32> to vector<1x8xf32>
    %c11_581 = arith.constant 11 : index
    %c0_582 = arith.constant 0 : index
    %c0_583 = arith.constant 0 : index
    %1135 = vector.load %arg2[%c11_581, %c0_582, %c0_583] : memref<16x16x8xf32, #tpu.memory_space<vmem>>, vector<1x16x8xf32>
    %1136 = vector.shape_cast %1135 : vector<1x16x8xf32> to vector<16x8xf32>
    %1137 = vector.broadcast %1134 : vector<1x8xf32> to vector<16x8xf32>
    %1138 = arith.mulf %1137, %1136 : vector<16x8xf32>
    %1139 = arith.addf %1133, %1138 : vector<16x8xf32>
    %1140 = vector.extract_strided_slice %1068 {offsets = [12, 0], sizes = [1, 8], strides = [1, 1]} : vector<16x8xf32> to vector<1x8xf32>
    %c12_584 = arith.constant 12 : index
    %c0_585 = arith.constant 0 : index
    %c0_586 = arith.constant 0 : index
    %1141 = vector.load %arg2[%c12_584, %c0_585, %c0_586] : memref<16x16x8xf32, #tpu.memory_space<vmem>>, vector<1x16x8xf32>
    %1142 = vector.shape_cast %1141 : vector<1x16x8xf32> to vector<16x8xf32>
    %1143 = vector.broadcast %1140 : vector<1x8xf32> to vector<16x8xf32>
    %1144 = arith.mulf %1143, %1142 : vector<16x8xf32>
    %1145 = arith.addf %1139, %1144 : vector<16x8xf32>
    %1146 = vector.extract_strided_slice %1068 {offsets = [13, 0], sizes = [1, 8], strides = [1, 1]} : vector<16x8xf32> to vector<1x8xf32>
    %c13_587 = arith.constant 13 : index
    %c0_588 = arith.constant 0 : index
    %c0_589 = arith.constant 0 : index
    %1147 = vector.load %arg2[%c13_587, %c0_588, %c0_589] : memref<16x16x8xf32, #tpu.memory_space<vmem>>, vector<1x16x8xf32>
    %1148 = vector.shape_cast %1147 : vector<1x16x8xf32> to vector<16x8xf32>
    %1149 = vector.broadcast %1146 : vector<1x8xf32> to vector<16x8xf32>
    %1150 = arith.mulf %1149, %1148 : vector<16x8xf32>
    %1151 = arith.addf %1145, %1150 : vector<16x8xf32>
    %1152 = vector.extract_strided_slice %1068 {offsets = [14, 0], sizes = [1, 8], strides = [1, 1]} : vector<16x8xf32> to vector<1x8xf32>
    %c14_590 = arith.constant 14 : index
    %c0_591 = arith.constant 0 : index
    %c0_592 = arith.constant 0 : index
    %1153 = vector.load %arg2[%c14_590, %c0_591, %c0_592] : memref<16x16x8xf32, #tpu.memory_space<vmem>>, vector<1x16x8xf32>
    %1154 = vector.shape_cast %1153 : vector<1x16x8xf32> to vector<16x8xf32>
    %1155 = vector.broadcast %1152 : vector<1x8xf32> to vector<16x8xf32>
    %1156 = arith.mulf %1155, %1154 : vector<16x8xf32>
    %1157 = arith.addf %1151, %1156 : vector<16x8xf32>
    %1158 = vector.extract_strided_slice %1068 {offsets = [15, 0], sizes = [1, 8], strides = [1, 1]} : vector<16x8xf32> to vector<1x8xf32>
    %c15_593 = arith.constant 15 : index
    %c0_594 = arith.constant 0 : index
    %c0_595 = arith.constant 0 : index
    %1159 = vector.load %arg2[%c15_593, %c0_594, %c0_595] : memref<16x16x8xf32, #tpu.memory_space<vmem>>, vector<1x16x8xf32>
    %1160 = vector.shape_cast %1159 : vector<1x16x8xf32> to vector<16x8xf32>
    %1161 = vector.broadcast %1158 : vector<1x8xf32> to vector<16x8xf32>
    %1162 = arith.mulf %1161, %1160 : vector<16x8xf32>
    %1163 = arith.addf %1157, %1162 : vector<16x8xf32>
    %c12_596 = arith.constant 12 : index
    %c0_597 = arith.constant 0 : index
    %c0_598 = arith.constant 0 : index
    %1164 = vector.load %arg1[%c12_596, %c0_597, %c0_598] : memref<16x16x8xf32, #tpu.memory_space<vmem>>, vector<1x16x8xf32>
    %1165 = vector.shape_cast %1164 : vector<1x16x8xf32> to vector<16x8xf32>
    %1166 = vector.extract_strided_slice %1165 {offsets = [0, 0], sizes = [1, 8], strides = [1, 1]} : vector<16x8xf32> to vector<1x8xf32>
    %c0_599 = arith.constant 0 : index
    %c0_600 = arith.constant 0 : index
    %c0_601 = arith.constant 0 : index
    %1167 = vector.load %arg2[%c0_599, %c0_600, %c0_601] : memref<16x16x8xf32, #tpu.memory_space<vmem>>, vector<1x16x8xf32>
    %1168 = vector.shape_cast %1167 : vector<1x16x8xf32> to vector<16x8xf32>
    %1169 = vector.broadcast %1166 : vector<1x8xf32> to vector<16x8xf32>
    %1170 = arith.mulf %1169, %1168 : vector<16x8xf32>
    %1171 = vector.extract_strided_slice %1165 {offsets = [1, 0], sizes = [1, 8], strides = [1, 1]} : vector<16x8xf32> to vector<1x8xf32>
    %c1_602 = arith.constant 1 : index
    %c0_603 = arith.constant 0 : index
    %c0_604 = arith.constant 0 : index
    %1172 = vector.load %arg2[%c1_602, %c0_603, %c0_604] : memref<16x16x8xf32, #tpu.memory_space<vmem>>, vector<1x16x8xf32>
    %1173 = vector.shape_cast %1172 : vector<1x16x8xf32> to vector<16x8xf32>
    %1174 = vector.broadcast %1171 : vector<1x8xf32> to vector<16x8xf32>
    %1175 = arith.mulf %1174, %1173 : vector<16x8xf32>
    %1176 = arith.addf %1170, %1175 : vector<16x8xf32>
    %1177 = vector.extract_strided_slice %1165 {offsets = [2, 0], sizes = [1, 8], strides = [1, 1]} : vector<16x8xf32> to vector<1x8xf32>
    %c2_605 = arith.constant 2 : index
    %c0_606 = arith.constant 0 : index
    %c0_607 = arith.constant 0 : index
    %1178 = vector.load %arg2[%c2_605, %c0_606, %c0_607] : memref<16x16x8xf32, #tpu.memory_space<vmem>>, vector<1x16x8xf32>
    %1179 = vector.shape_cast %1178 : vector<1x16x8xf32> to vector<16x8xf32>
    %1180 = vector.broadcast %1177 : vector<1x8xf32> to vector<16x8xf32>
    %1181 = arith.mulf %1180, %1179 : vector<16x8xf32>
    %1182 = arith.addf %1176, %1181 : vector<16x8xf32>
    %1183 = vector.extract_strided_slice %1165 {offsets = [3, 0], sizes = [1, 8], strides = [1, 1]} : vector<16x8xf32> to vector<1x8xf32>
    %c3_608 = arith.constant 3 : index
    %c0_609 = arith.constant 0 : index
    %c0_610 = arith.constant 0 : index
    %1184 = vector.load %arg2[%c3_608, %c0_609, %c0_610] : memref<16x16x8xf32, #tpu.memory_space<vmem>>, vector<1x16x8xf32>
    %1185 = vector.shape_cast %1184 : vector<1x16x8xf32> to vector<16x8xf32>
    %1186 = vector.broadcast %1183 : vector<1x8xf32> to vector<16x8xf32>
    %1187 = arith.mulf %1186, %1185 : vector<16x8xf32>
    %1188 = arith.addf %1182, %1187 : vector<16x8xf32>
    %1189 = vector.extract_strided_slice %1165 {offsets = [4, 0], sizes = [1, 8], strides = [1, 1]} : vector<16x8xf32> to vector<1x8xf32>
    %c4_611 = arith.constant 4 : index
    %c0_612 = arith.constant 0 : index
    %c0_613 = arith.constant 0 : index
    %1190 = vector.load %arg2[%c4_611, %c0_612, %c0_613] : memref<16x16x8xf32, #tpu.memory_space<vmem>>, vector<1x16x8xf32>
    %1191 = vector.shape_cast %1190 : vector<1x16x8xf32> to vector<16x8xf32>
    %1192 = vector.broadcast %1189 : vector<1x8xf32> to vector<16x8xf32>
    %1193 = arith.mulf %1192, %1191 : vector<16x8xf32>
    %1194 = arith.addf %1188, %1193 : vector<16x8xf32>
    %1195 = vector.extract_strided_slice %1165 {offsets = [5, 0], sizes = [1, 8], strides = [1, 1]} : vector<16x8xf32> to vector<1x8xf32>
    %c5_614 = arith.constant 5 : index
    %c0_615 = arith.constant 0 : index
    %c0_616 = arith.constant 0 : index
    %1196 = vector.load %arg2[%c5_614, %c0_615, %c0_616] : memref<16x16x8xf32, #tpu.memory_space<vmem>>, vector<1x16x8xf32>
    %1197 = vector.shape_cast %1196 : vector<1x16x8xf32> to vector<16x8xf32>
    %1198 = vector.broadcast %1195 : vector<1x8xf32> to vector<16x8xf32>
    %1199 = arith.mulf %1198, %1197 : vector<16x8xf32>
    %1200 = arith.addf %1194, %1199 : vector<16x8xf32>
    %1201 = vector.extract_strided_slice %1165 {offsets = [6, 0], sizes = [1, 8], strides = [1, 1]} : vector<16x8xf32> to vector<1x8xf32>
    %c6_617 = arith.constant 6 : index
    %c0_618 = arith.constant 0 : index
    %c0_619 = arith.constant 0 : index
    %1202 = vector.load %arg2[%c6_617, %c0_618, %c0_619] : memref<16x16x8xf32, #tpu.memory_space<vmem>>, vector<1x16x8xf32>
    %1203 = vector.shape_cast %1202 : vector<1x16x8xf32> to vector<16x8xf32>
    %1204 = vector.broadcast %1201 : vector<1x8xf32> to vector<16x8xf32>
    %1205 = arith.mulf %1204, %1203 : vector<16x8xf32>
    %1206 = arith.addf %1200, %1205 : vector<16x8xf32>
    %1207 = vector.extract_strided_slice %1165 {offsets = [7, 0], sizes = [1, 8], strides = [1, 1]} : vector<16x8xf32> to vector<1x8xf32>
    %c7_620 = arith.constant 7 : index
    %c0_621 = arith.constant 0 : index
    %c0_622 = arith.constant 0 : index
    %1208 = vector.load %arg2[%c7_620, %c0_621, %c0_622] : memref<16x16x8xf32, #tpu.memory_space<vmem>>, vector<1x16x8xf32>
    %1209 = vector.shape_cast %1208 : vector<1x16x8xf32> to vector<16x8xf32>
    %1210 = vector.broadcast %1207 : vector<1x8xf32> to vector<16x8xf32>
    %1211 = arith.mulf %1210, %1209 : vector<16x8xf32>
    %1212 = arith.addf %1206, %1211 : vector<16x8xf32>
    %1213 = vector.extract_strided_slice %1165 {offsets = [8, 0], sizes = [1, 8], strides = [1, 1]} : vector<16x8xf32> to vector<1x8xf32>
    %c8_623 = arith.constant 8 : index
    %c0_624 = arith.constant 0 : index
    %c0_625 = arith.constant 0 : index
    %1214 = vector.load %arg2[%c8_623, %c0_624, %c0_625] : memref<16x16x8xf32, #tpu.memory_space<vmem>>, vector<1x16x8xf32>
    %1215 = vector.shape_cast %1214 : vector<1x16x8xf32> to vector<16x8xf32>
    %1216 = vector.broadcast %1213 : vector<1x8xf32> to vector<16x8xf32>
    %1217 = arith.mulf %1216, %1215 : vector<16x8xf32>
    %1218 = arith.addf %1212, %1217 : vector<16x8xf32>
    %1219 = vector.extract_strided_slice %1165 {offsets = [9, 0], sizes = [1, 8], strides = [1, 1]} : vector<16x8xf32> to vector<1x8xf32>
    %c9_626 = arith.constant 9 : index
    %c0_627 = arith.constant 0 : index
    %c0_628 = arith.constant 0 : index
    %1220 = vector.load %arg2[%c9_626, %c0_627, %c0_628] : memref<16x16x8xf32, #tpu.memory_space<vmem>>, vector<1x16x8xf32>
    %1221 = vector.shape_cast %1220 : vector<1x16x8xf32> to vector<16x8xf32>
    %1222 = vector.broadcast %1219 : vector<1x8xf32> to vector<16x8xf32>
    %1223 = arith.mulf %1222, %1221 : vector<16x8xf32>
    %1224 = arith.addf %1218, %1223 : vector<16x8xf32>
    %1225 = vector.extract_strided_slice %1165 {offsets = [10, 0], sizes = [1, 8], strides = [1, 1]} : vector<16x8xf32> to vector<1x8xf32>
    %c10_629 = arith.constant 10 : index
    %c0_630 = arith.constant 0 : index
    %c0_631 = arith.constant 0 : index
    %1226 = vector.load %arg2[%c10_629, %c0_630, %c0_631] : memref<16x16x8xf32, #tpu.memory_space<vmem>>, vector<1x16x8xf32>
    %1227 = vector.shape_cast %1226 : vector<1x16x8xf32> to vector<16x8xf32>
    %1228 = vector.broadcast %1225 : vector<1x8xf32> to vector<16x8xf32>
    %1229 = arith.mulf %1228, %1227 : vector<16x8xf32>
    %1230 = arith.addf %1224, %1229 : vector<16x8xf32>
    %1231 = vector.extract_strided_slice %1165 {offsets = [11, 0], sizes = [1, 8], strides = [1, 1]} : vector<16x8xf32> to vector<1x8xf32>
    %c11_632 = arith.constant 11 : index
    %c0_633 = arith.constant 0 : index
    %c0_634 = arith.constant 0 : index
    %1232 = vector.load %arg2[%c11_632, %c0_633, %c0_634] : memref<16x16x8xf32, #tpu.memory_space<vmem>>, vector<1x16x8xf32>
    %1233 = vector.shape_cast %1232 : vector<1x16x8xf32> to vector<16x8xf32>
    %1234 = vector.broadcast %1231 : vector<1x8xf32> to vector<16x8xf32>
    %1235 = arith.mulf %1234, %1233 : vector<16x8xf32>
    %1236 = arith.addf %1230, %1235 : vector<16x8xf32>
    %1237 = vector.extract_strided_slice %1165 {offsets = [12, 0], sizes = [1, 8], strides = [1, 1]} : vector<16x8xf32> to vector<1x8xf32>
    %c12_635 = arith.constant 12 : index
    %c0_636 = arith.constant 0 : index
    %c0_637 = arith.constant 0 : index
    %1238 = vector.load %arg2[%c12_635, %c0_636, %c0_637] : memref<16x16x8xf32, #tpu.memory_space<vmem>>, vector<1x16x8xf32>
    %1239 = vector.shape_cast %1238 : vector<1x16x8xf32> to vector<16x8xf32>
    %1240 = vector.broadcast %1237 : vector<1x8xf32> to vector<16x8xf32>
    %1241 = arith.mulf %1240, %1239 : vector<16x8xf32>
    %1242 = arith.addf %1236, %1241 : vector<16x8xf32>
    %1243 = vector.extract_strided_slice %1165 {offsets = [13, 0], sizes = [1, 8], strides = [1, 1]} : vector<16x8xf32> to vector<1x8xf32>
    %c13_638 = arith.constant 13 : index
    %c0_639 = arith.constant 0 : index
    %c0_640 = arith.constant 0 : index
    %1244 = vector.load %arg2[%c13_638, %c0_639, %c0_640] : memref<16x16x8xf32, #tpu.memory_space<vmem>>, vector<1x16x8xf32>
    %1245 = vector.shape_cast %1244 : vector<1x16x8xf32> to vector<16x8xf32>
    %1246 = vector.broadcast %1243 : vector<1x8xf32> to vector<16x8xf32>
    %1247 = arith.mulf %1246, %1245 : vector<16x8xf32>
    %1248 = arith.addf %1242, %1247 : vector<16x8xf32>
    %1249 = vector.extract_strided_slice %1165 {offsets = [14, 0], sizes = [1, 8], strides = [1, 1]} : vector<16x8xf32> to vector<1x8xf32>
    %c14_641 = arith.constant 14 : index
    %c0_642 = arith.constant 0 : index
    %c0_643 = arith.constant 0 : index
    %1250 = vector.load %arg2[%c14_641, %c0_642, %c0_643] : memref<16x16x8xf32, #tpu.memory_space<vmem>>, vector<1x16x8xf32>
    %1251 = vector.shape_cast %1250 : vector<1x16x8xf32> to vector<16x8xf32>
    %1252 = vector.broadcast %1249 : vector<1x8xf32> to vector<16x8xf32>
    %1253 = arith.mulf %1252, %1251 : vector<16x8xf32>
    %1254 = arith.addf %1248, %1253 : vector<16x8xf32>
    %1255 = vector.extract_strided_slice %1165 {offsets = [15, 0], sizes = [1, 8], strides = [1, 1]} : vector<16x8xf32> to vector<1x8xf32>
    %c15_644 = arith.constant 15 : index
    %c0_645 = arith.constant 0 : index
    %c0_646 = arith.constant 0 : index
    %1256 = vector.load %arg2[%c15_644, %c0_645, %c0_646] : memref<16x16x8xf32, #tpu.memory_space<vmem>>, vector<1x16x8xf32>
    %1257 = vector.shape_cast %1256 : vector<1x16x8xf32> to vector<16x8xf32>
    %1258 = vector.broadcast %1255 : vector<1x8xf32> to vector<16x8xf32>
    %1259 = arith.mulf %1258, %1257 : vector<16x8xf32>
    %1260 = arith.addf %1254, %1259 : vector<16x8xf32>
    %c13_647 = arith.constant 13 : index
    %c0_648 = arith.constant 0 : index
    %c0_649 = arith.constant 0 : index
    %1261 = vector.load %arg1[%c13_647, %c0_648, %c0_649] : memref<16x16x8xf32, #tpu.memory_space<vmem>>, vector<1x16x8xf32>
    %1262 = vector.shape_cast %1261 : vector<1x16x8xf32> to vector<16x8xf32>
    %1263 = vector.extract_strided_slice %1262 {offsets = [0, 0], sizes = [1, 8], strides = [1, 1]} : vector<16x8xf32> to vector<1x8xf32>
    %c0_650 = arith.constant 0 : index
    %c0_651 = arith.constant 0 : index
    %c0_652 = arith.constant 0 : index
    %1264 = vector.load %arg2[%c0_650, %c0_651, %c0_652] : memref<16x16x8xf32, #tpu.memory_space<vmem>>, vector<1x16x8xf32>
    %1265 = vector.shape_cast %1264 : vector<1x16x8xf32> to vector<16x8xf32>
    %1266 = vector.broadcast %1263 : vector<1x8xf32> to vector<16x8xf32>
    %1267 = arith.mulf %1266, %1265 : vector<16x8xf32>
    %1268 = vector.extract_strided_slice %1262 {offsets = [1, 0], sizes = [1, 8], strides = [1, 1]} : vector<16x8xf32> to vector<1x8xf32>
    %c1_653 = arith.constant 1 : index
    %c0_654 = arith.constant 0 : index
    %c0_655 = arith.constant 0 : index
    %1269 = vector.load %arg2[%c1_653, %c0_654, %c0_655] : memref<16x16x8xf32, #tpu.memory_space<vmem>>, vector<1x16x8xf32>
    %1270 = vector.shape_cast %1269 : vector<1x16x8xf32> to vector<16x8xf32>
    %1271 = vector.broadcast %1268 : vector<1x8xf32> to vector<16x8xf32>
    %1272 = arith.mulf %1271, %1270 : vector<16x8xf32>
    %1273 = arith.addf %1267, %1272 : vector<16x8xf32>
    %1274 = vector.extract_strided_slice %1262 {offsets = [2, 0], sizes = [1, 8], strides = [1, 1]} : vector<16x8xf32> to vector<1x8xf32>
    %c2_656 = arith.constant 2 : index
    %c0_657 = arith.constant 0 : index
    %c0_658 = arith.constant 0 : index
    %1275 = vector.load %arg2[%c2_656, %c0_657, %c0_658] : memref<16x16x8xf32, #tpu.memory_space<vmem>>, vector<1x16x8xf32>
    %1276 = vector.shape_cast %1275 : vector<1x16x8xf32> to vector<16x8xf32>
    %1277 = vector.broadcast %1274 : vector<1x8xf32> to vector<16x8xf32>
    %1278 = arith.mulf %1277, %1276 : vector<16x8xf32>
    %1279 = arith.addf %1273, %1278 : vector<16x8xf32>
    %1280 = vector.extract_strided_slice %1262 {offsets = [3, 0], sizes = [1, 8], strides = [1, 1]} : vector<16x8xf32> to vector<1x8xf32>
    %c3_659 = arith.constant 3 : index
    %c0_660 = arith.constant 0 : index
    %c0_661 = arith.constant 0 : index
    %1281 = vector.load %arg2[%c3_659, %c0_660, %c0_661] : memref<16x16x8xf32, #tpu.memory_space<vmem>>, vector<1x16x8xf32>
    %1282 = vector.shape_cast %1281 : vector<1x16x8xf32> to vector<16x8xf32>
    %1283 = vector.broadcast %1280 : vector<1x8xf32> to vector<16x8xf32>
    %1284 = arith.mulf %1283, %1282 : vector<16x8xf32>
    %1285 = arith.addf %1279, %1284 : vector<16x8xf32>
    %1286 = vector.extract_strided_slice %1262 {offsets = [4, 0], sizes = [1, 8], strides = [1, 1]} : vector<16x8xf32> to vector<1x8xf32>
    %c4_662 = arith.constant 4 : index
    %c0_663 = arith.constant 0 : index
    %c0_664 = arith.constant 0 : index
    %1287 = vector.load %arg2[%c4_662, %c0_663, %c0_664] : memref<16x16x8xf32, #tpu.memory_space<vmem>>, vector<1x16x8xf32>
    %1288 = vector.shape_cast %1287 : vector<1x16x8xf32> to vector<16x8xf32>
    %1289 = vector.broadcast %1286 : vector<1x8xf32> to vector<16x8xf32>
    %1290 = arith.mulf %1289, %1288 : vector<16x8xf32>
    %1291 = arith.addf %1285, %1290 : vector<16x8xf32>
    %1292 = vector.extract_strided_slice %1262 {offsets = [5, 0], sizes = [1, 8], strides = [1, 1]} : vector<16x8xf32> to vector<1x8xf32>
    %c5_665 = arith.constant 5 : index
    %c0_666 = arith.constant 0 : index
    %c0_667 = arith.constant 0 : index
    %1293 = vector.load %arg2[%c5_665, %c0_666, %c0_667] : memref<16x16x8xf32, #tpu.memory_space<vmem>>, vector<1x16x8xf32>
    %1294 = vector.shape_cast %1293 : vector<1x16x8xf32> to vector<16x8xf32>
    %1295 = vector.broadcast %1292 : vector<1x8xf32> to vector<16x8xf32>
    %1296 = arith.mulf %1295, %1294 : vector<16x8xf32>
    %1297 = arith.addf %1291, %1296 : vector<16x8xf32>
    %1298 = vector.extract_strided_slice %1262 {offsets = [6, 0], sizes = [1, 8], strides = [1, 1]} : vector<16x8xf32> to vector<1x8xf32>
    %c6_668 = arith.constant 6 : index
    %c0_669 = arith.constant 0 : index
    %c0_670 = arith.constant 0 : index
    %1299 = vector.load %arg2[%c6_668, %c0_669, %c0_670] : memref<16x16x8xf32, #tpu.memory_space<vmem>>, vector<1x16x8xf32>
    %1300 = vector.shape_cast %1299 : vector<1x16x8xf32> to vector<16x8xf32>
    %1301 = vector.broadcast %1298 : vector<1x8xf32> to vector<16x8xf32>
    %1302 = arith.mulf %1301, %1300 : vector<16x8xf32>
    %1303 = arith.addf %1297, %1302 : vector<16x8xf32>
    %1304 = vector.extract_strided_slice %1262 {offsets = [7, 0], sizes = [1, 8], strides = [1, 1]} : vector<16x8xf32> to vector<1x8xf32>
    %c7_671 = arith.constant 7 : index
    %c0_672 = arith.constant 0 : index
    %c0_673 = arith.constant 0 : index
    %1305 = vector.load %arg2[%c7_671, %c0_672, %c0_673] : memref<16x16x8xf32, #tpu.memory_space<vmem>>, vector<1x16x8xf32>
    %1306 = vector.shape_cast %1305 : vector<1x16x8xf32> to vector<16x8xf32>
    %1307 = vector.broadcast %1304 : vector<1x8xf32> to vector<16x8xf32>
    %1308 = arith.mulf %1307, %1306 : vector<16x8xf32>
    %1309 = arith.addf %1303, %1308 : vector<16x8xf32>
    %1310 = vector.extract_strided_slice %1262 {offsets = [8, 0], sizes = [1, 8], strides = [1, 1]} : vector<16x8xf32> to vector<1x8xf32>
    %c8_674 = arith.constant 8 : index
    %c0_675 = arith.constant 0 : index
    %c0_676 = arith.constant 0 : index
    %1311 = vector.load %arg2[%c8_674, %c0_675, %c0_676] : memref<16x16x8xf32, #tpu.memory_space<vmem>>, vector<1x16x8xf32>
    %1312 = vector.shape_cast %1311 : vector<1x16x8xf32> to vector<16x8xf32>
    %1313 = vector.broadcast %1310 : vector<1x8xf32> to vector<16x8xf32>
    %1314 = arith.mulf %1313, %1312 : vector<16x8xf32>
    %1315 = arith.addf %1309, %1314 : vector<16x8xf32>
    %1316 = vector.extract_strided_slice %1262 {offsets = [9, 0], sizes = [1, 8], strides = [1, 1]} : vector<16x8xf32> to vector<1x8xf32>
    %c9_677 = arith.constant 9 : index
    %c0_678 = arith.constant 0 : index
    %c0_679 = arith.constant 0 : index
    %1317 = vector.load %arg2[%c9_677, %c0_678, %c0_679] : memref<16x16x8xf32, #tpu.memory_space<vmem>>, vector<1x16x8xf32>
    %1318 = vector.shape_cast %1317 : vector<1x16x8xf32> to vector<16x8xf32>
    %1319 = vector.broadcast %1316 : vector<1x8xf32> to vector<16x8xf32>
    %1320 = arith.mulf %1319, %1318 : vector<16x8xf32>
    %1321 = arith.addf %1315, %1320 : vector<16x8xf32>
    %1322 = vector.extract_strided_slice %1262 {offsets = [10, 0], sizes = [1, 8], strides = [1, 1]} : vector<16x8xf32> to vector<1x8xf32>
    %c10_680 = arith.constant 10 : index
    %c0_681 = arith.constant 0 : index
    %c0_682 = arith.constant 0 : index
    %1323 = vector.load %arg2[%c10_680, %c0_681, %c0_682] : memref<16x16x8xf32, #tpu.memory_space<vmem>>, vector<1x16x8xf32>
    %1324 = vector.shape_cast %1323 : vector<1x16x8xf32> to vector<16x8xf32>
    %1325 = vector.broadcast %1322 : vector<1x8xf32> to vector<16x8xf32>
    %1326 = arith.mulf %1325, %1324 : vector<16x8xf32>
    %1327 = arith.addf %1321, %1326 : vector<16x8xf32>
    %1328 = vector.extract_strided_slice %1262 {offsets = [11, 0], sizes = [1, 8], strides = [1, 1]} : vector<16x8xf32> to vector<1x8xf32>
    %c11_683 = arith.constant 11 : index
    %c0_684 = arith.constant 0 : index
    %c0_685 = arith.constant 0 : index
    %1329 = vector.load %arg2[%c11_683, %c0_684, %c0_685] : memref<16x16x8xf32, #tpu.memory_space<vmem>>, vector<1x16x8xf32>
    %1330 = vector.shape_cast %1329 : vector<1x16x8xf32> to vector<16x8xf32>
    %1331 = vector.broadcast %1328 : vector<1x8xf32> to vector<16x8xf32>
    %1332 = arith.mulf %1331, %1330 : vector<16x8xf32>
    %1333 = arith.addf %1327, %1332 : vector<16x8xf32>
    %1334 = vector.extract_strided_slice %1262 {offsets = [12, 0], sizes = [1, 8], strides = [1, 1]} : vector<16x8xf32> to vector<1x8xf32>
    %c12_686 = arith.constant 12 : index
    %c0_687 = arith.constant 0 : index
    %c0_688 = arith.constant 0 : index
    %1335 = vector.load %arg2[%c12_686, %c0_687, %c0_688] : memref<16x16x8xf32, #tpu.memory_space<vmem>>, vector<1x16x8xf32>
    %1336 = vector.shape_cast %1335 : vector<1x16x8xf32> to vector<16x8xf32>
    %1337 = vector.broadcast %1334 : vector<1x8xf32> to vector<16x8xf32>
    %1338 = arith.mulf %1337, %1336 : vector<16x8xf32>
    %1339 = arith.addf %1333, %1338 : vector<16x8xf32>
    %1340 = vector.extract_strided_slice %1262 {offsets = [13, 0], sizes = [1, 8], strides = [1, 1]} : vector<16x8xf32> to vector<1x8xf32>
    %c13_689 = arith.constant 13 : index
    %c0_690 = arith.constant 0 : index
    %c0_691 = arith.constant 0 : index
    %1341 = vector.load %arg2[%c13_689, %c0_690, %c0_691] : memref<16x16x8xf32, #tpu.memory_space<vmem>>, vector<1x16x8xf32>
    %1342 = vector.shape_cast %1341 : vector<1x16x8xf32> to vector<16x8xf32>
    %1343 = vector.broadcast %1340 : vector<1x8xf32> to vector<16x8xf32>
    %1344 = arith.mulf %1343, %1342 : vector<16x8xf32>
    %1345 = arith.addf %1339, %1344 : vector<16x8xf32>
    %1346 = vector.extract_strided_slice %1262 {offsets = [14, 0], sizes = [1, 8], strides = [1, 1]} : vector<16x8xf32> to vector<1x8xf32>
    %c14_692 = arith.constant 14 : index
    %c0_693 = arith.constant 0 : index
    %c0_694 = arith.constant 0 : index
    %1347 = vector.load %arg2[%c14_692, %c0_693, %c0_694] : memref<16x16x8xf32, #tpu.memory_space<vmem>>, vector<1x16x8xf32>
    %1348 = vector.shape_cast %1347 : vector<1x16x8xf32> to vector<16x8xf32>
    %1349 = vector.broadcast %1346 : vector<1x8xf32> to vector<16x8xf32>
    %1350 = arith.mulf %1349, %1348 : vector<16x8xf32>
    %1351 = arith.addf %1345, %1350 : vector<16x8xf32>
    %1352 = vector.extract_strided_slice %1262 {offsets = [15, 0], sizes = [1, 8], strides = [1, 1]} : vector<16x8xf32> to vector<1x8xf32>
    %c15_695 = arith.constant 15 : index
    %c0_696 = arith.constant 0 : index
    %c0_697 = arith.constant 0 : index
    %1353 = vector.load %arg2[%c15_695, %c0_696, %c0_697] : memref<16x16x8xf32, #tpu.memory_space<vmem>>, vector<1x16x8xf32>
    %1354 = vector.shape_cast %1353 : vector<1x16x8xf32> to vector<16x8xf32>
    %1355 = vector.broadcast %1352 : vector<1x8xf32> to vector<16x8xf32>
    %1356 = arith.mulf %1355, %1354 : vector<16x8xf32>
    %1357 = arith.addf %1351, %1356 : vector<16x8xf32>
    %c14_698 = arith.constant 14 : index
    %c0_699 = arith.constant 0 : index
    %c0_700 = arith.constant 0 : index
    %1358 = vector.load %arg1[%c14_698, %c0_699, %c0_700] : memref<16x16x8xf32, #tpu.memory_space<vmem>>, vector<1x16x8xf32>
    %1359 = vector.shape_cast %1358 : vector<1x16x8xf32> to vector<16x8xf32>
    %1360 = vector.extract_strided_slice %1359 {offsets = [0, 0], sizes = [1, 8], strides = [1, 1]} : vector<16x8xf32> to vector<1x8xf32>
    %c0_701 = arith.constant 0 : index
    %c0_702 = arith.constant 0 : index
    %c0_703 = arith.constant 0 : index
    %1361 = vector.load %arg2[%c0_701, %c0_702, %c0_703] : memref<16x16x8xf32, #tpu.memory_space<vmem>>, vector<1x16x8xf32>
    %1362 = vector.shape_cast %1361 : vector<1x16x8xf32> to vector<16x8xf32>
    %1363 = vector.broadcast %1360 : vector<1x8xf32> to vector<16x8xf32>
    %1364 = arith.mulf %1363, %1362 : vector<16x8xf32>
    %1365 = vector.extract_strided_slice %1359 {offsets = [1, 0], sizes = [1, 8], strides = [1, 1]} : vector<16x8xf32> to vector<1x8xf32>
    %c1_704 = arith.constant 1 : index
    %c0_705 = arith.constant 0 : index
    %c0_706 = arith.constant 0 : index
    %1366 = vector.load %arg2[%c1_704, %c0_705, %c0_706] : memref<16x16x8xf32, #tpu.memory_space<vmem>>, vector<1x16x8xf32>
    %1367 = vector.shape_cast %1366 : vector<1x16x8xf32> to vector<16x8xf32>
    %1368 = vector.broadcast %1365 : vector<1x8xf32> to vector<16x8xf32>
    %1369 = arith.mulf %1368, %1367 : vector<16x8xf32>
    %1370 = arith.addf %1364, %1369 : vector<16x8xf32>
    %1371 = vector.extract_strided_slice %1359 {offsets = [2, 0], sizes = [1, 8], strides = [1, 1]} : vector<16x8xf32> to vector<1x8xf32>
    %c2_707 = arith.constant 2 : index
    %c0_708 = arith.constant 0 : index
    %c0_709 = arith.constant 0 : index
    %1372 = vector.load %arg2[%c2_707, %c0_708, %c0_709] : memref<16x16x8xf32, #tpu.memory_space<vmem>>, vector<1x16x8xf32>
    %1373 = vector.shape_cast %1372 : vector<1x16x8xf32> to vector<16x8xf32>
    %1374 = vector.broadcast %1371 : vector<1x8xf32> to vector<16x8xf32>
    %1375 = arith.mulf %1374, %1373 : vector<16x8xf32>
    %1376 = arith.addf %1370, %1375 : vector<16x8xf32>
    %1377 = vector.extract_strided_slice %1359 {offsets = [3, 0], sizes = [1, 8], strides = [1, 1]} : vector<16x8xf32> to vector<1x8xf32>
    %c3_710 = arith.constant 3 : index
    %c0_711 = arith.constant 0 : index
    %c0_712 = arith.constant 0 : index
    %1378 = vector.load %arg2[%c3_710, %c0_711, %c0_712] : memref<16x16x8xf32, #tpu.memory_space<vmem>>, vector<1x16x8xf32>
    %1379 = vector.shape_cast %1378 : vector<1x16x8xf32> to vector<16x8xf32>
    %1380 = vector.broadcast %1377 : vector<1x8xf32> to vector<16x8xf32>
    %1381 = arith.mulf %1380, %1379 : vector<16x8xf32>
    %1382 = arith.addf %1376, %1381 : vector<16x8xf32>
    %1383 = vector.extract_strided_slice %1359 {offsets = [4, 0], sizes = [1, 8], strides = [1, 1]} : vector<16x8xf32> to vector<1x8xf32>
    %c4_713 = arith.constant 4 : index
    %c0_714 = arith.constant 0 : index
    %c0_715 = arith.constant 0 : index
    %1384 = vector.load %arg2[%c4_713, %c0_714, %c0_715] : memref<16x16x8xf32, #tpu.memory_space<vmem>>, vector<1x16x8xf32>
    %1385 = vector.shape_cast %1384 : vector<1x16x8xf32> to vector<16x8xf32>
    %1386 = vector.broadcast %1383 : vector<1x8xf32> to vector<16x8xf32>
    %1387 = arith.mulf %1386, %1385 : vector<16x8xf32>
    %1388 = arith.addf %1382, %1387 : vector<16x8xf32>
    %1389 = vector.extract_strided_slice %1359 {offsets = [5, 0], sizes = [1, 8], strides = [1, 1]} : vector<16x8xf32> to vector<1x8xf32>
    %c5_716 = arith.constant 5 : index
    %c0_717 = arith.constant 0 : index
    %c0_718 = arith.constant 0 : index
    %1390 = vector.load %arg2[%c5_716, %c0_717, %c0_718] : memref<16x16x8xf32, #tpu.memory_space<vmem>>, vector<1x16x8xf32>
    %1391 = vector.shape_cast %1390 : vector<1x16x8xf32> to vector<16x8xf32>
    %1392 = vector.broadcast %1389 : vector<1x8xf32> to vector<16x8xf32>
    %1393 = arith.mulf %1392, %1391 : vector<16x8xf32>
    %1394 = arith.addf %1388, %1393 : vector<16x8xf32>
    %1395 = vector.extract_strided_slice %1359 {offsets = [6, 0], sizes = [1, 8], strides = [1, 1]} : vector<16x8xf32> to vector<1x8xf32>
    %c6_719 = arith.constant 6 : index
    %c0_720 = arith.constant 0 : index
    %c0_721 = arith.constant 0 : index
    %1396 = vector.load %arg2[%c6_719, %c0_720, %c0_721] : memref<16x16x8xf32, #tpu.memory_space<vmem>>, vector<1x16x8xf32>
    %1397 = vector.shape_cast %1396 : vector<1x16x8xf32> to vector<16x8xf32>
    %1398 = vector.broadcast %1395 : vector<1x8xf32> to vector<16x8xf32>
    %1399 = arith.mulf %1398, %1397 : vector<16x8xf32>
    %1400 = arith.addf %1394, %1399 : vector<16x8xf32>
    %1401 = vector.extract_strided_slice %1359 {offsets = [7, 0], sizes = [1, 8], strides = [1, 1]} : vector<16x8xf32> to vector<1x8xf32>
    %c7_722 = arith.constant 7 : index
    %c0_723 = arith.constant 0 : index
    %c0_724 = arith.constant 0 : index
    %1402 = vector.load %arg2[%c7_722, %c0_723, %c0_724] : memref<16x16x8xf32, #tpu.memory_space<vmem>>, vector<1x16x8xf32>
    %1403 = vector.shape_cast %1402 : vector<1x16x8xf32> to vector<16x8xf32>
    %1404 = vector.broadcast %1401 : vector<1x8xf32> to vector<16x8xf32>
    %1405 = arith.mulf %1404, %1403 : vector<16x8xf32>
    %1406 = arith.addf %1400, %1405 : vector<16x8xf32>
    %1407 = vector.extract_strided_slice %1359 {offsets = [8, 0], sizes = [1, 8], strides = [1, 1]} : vector<16x8xf32> to vector<1x8xf32>
    %c8_725 = arith.constant 8 : index
    %c0_726 = arith.constant 0 : index
    %c0_727 = arith.constant 0 : index
    %1408 = vector.load %arg2[%c8_725, %c0_726, %c0_727] : memref<16x16x8xf32, #tpu.memory_space<vmem>>, vector<1x16x8xf32>
    %1409 = vector.shape_cast %1408 : vector<1x16x8xf32> to vector<16x8xf32>
    %1410 = vector.broadcast %1407 : vector<1x8xf32> to vector<16x8xf32>
    %1411 = arith.mulf %1410, %1409 : vector<16x8xf32>
    %1412 = arith.addf %1406, %1411 : vector<16x8xf32>
    %1413 = vector.extract_strided_slice %1359 {offsets = [9, 0], sizes = [1, 8], strides = [1, 1]} : vector<16x8xf32> to vector<1x8xf32>
    %c9_728 = arith.constant 9 : index
    %c0_729 = arith.constant 0 : index
    %c0_730 = arith.constant 0 : index
    %1414 = vector.load %arg2[%c9_728, %c0_729, %c0_730] : memref<16x16x8xf32, #tpu.memory_space<vmem>>, vector<1x16x8xf32>
    %1415 = vector.shape_cast %1414 : vector<1x16x8xf32> to vector<16x8xf32>
    %1416 = vector.broadcast %1413 : vector<1x8xf32> to vector<16x8xf32>
    %1417 = arith.mulf %1416, %1415 : vector<16x8xf32>
    %1418 = arith.addf %1412, %1417 : vector<16x8xf32>
    %1419 = vector.extract_strided_slice %1359 {offsets = [10, 0], sizes = [1, 8], strides = [1, 1]} : vector<16x8xf32> to vector<1x8xf32>
    %c10_731 = arith.constant 10 : index
    %c0_732 = arith.constant 0 : index
    %c0_733 = arith.constant 0 : index
    %1420 = vector.load %arg2[%c10_731, %c0_732, %c0_733] : memref<16x16x8xf32, #tpu.memory_space<vmem>>, vector<1x16x8xf32>
    %1421 = vector.shape_cast %1420 : vector<1x16x8xf32> to vector<16x8xf32>
    %1422 = vector.broadcast %1419 : vector<1x8xf32> to vector<16x8xf32>
    %1423 = arith.mulf %1422, %1421 : vector<16x8xf32>
    %1424 = arith.addf %1418, %1423 : vector<16x8xf32>
    %1425 = vector.extract_strided_slice %1359 {offsets = [11, 0], sizes = [1, 8], strides = [1, 1]} : vector<16x8xf32> to vector<1x8xf32>
    %c11_734 = arith.constant 11 : index
    %c0_735 = arith.constant 0 : index
    %c0_736 = arith.constant 0 : index
    %1426 = vector.load %arg2[%c11_734, %c0_735, %c0_736] : memref<16x16x8xf32, #tpu.memory_space<vmem>>, vector<1x16x8xf32>
    %1427 = vector.shape_cast %1426 : vector<1x16x8xf32> to vector<16x8xf32>
    %1428 = vector.broadcast %1425 : vector<1x8xf32> to vector<16x8xf32>
    %1429 = arith.mulf %1428, %1427 : vector<16x8xf32>
    %1430 = arith.addf %1424, %1429 : vector<16x8xf32>
    %1431 = vector.extract_strided_slice %1359 {offsets = [12, 0], sizes = [1, 8], strides = [1, 1]} : vector<16x8xf32> to vector<1x8xf32>
    %c12_737 = arith.constant 12 : index
    %c0_738 = arith.constant 0 : index
    %c0_739 = arith.constant 0 : index
    %1432 = vector.load %arg2[%c12_737, %c0_738, %c0_739] : memref<16x16x8xf32, #tpu.memory_space<vmem>>, vector<1x16x8xf32>
    %1433 = vector.shape_cast %1432 : vector<1x16x8xf32> to vector<16x8xf32>
    %1434 = vector.broadcast %1431 : vector<1x8xf32> to vector<16x8xf32>
    %1435 = arith.mulf %1434, %1433 : vector<16x8xf32>
    %1436 = arith.addf %1430, %1435 : vector<16x8xf32>
    %1437 = vector.extract_strided_slice %1359 {offsets = [13, 0], sizes = [1, 8], strides = [1, 1]} : vector<16x8xf32> to vector<1x8xf32>
    %c13_740 = arith.constant 13 : index
    %c0_741 = arith.constant 0 : index
    %c0_742 = arith.constant 0 : index
    %1438 = vector.load %arg2[%c13_740, %c0_741, %c0_742] : memref<16x16x8xf32, #tpu.memory_space<vmem>>, vector<1x16x8xf32>
    %1439 = vector.shape_cast %1438 : vector<1x16x8xf32> to vector<16x8xf32>
    %1440 = vector.broadcast %1437 : vector<1x8xf32> to vector<16x8xf32>
    %1441 = arith.mulf %1440, %1439 : vector<16x8xf32>
    %1442 = arith.addf %1436, %1441 : vector<16x8xf32>
    %1443 = vector.extract_strided_slice %1359 {offsets = [14, 0], sizes = [1, 8], strides = [1, 1]} : vector<16x8xf32> to vector<1x8xf32>
    %c14_743 = arith.constant 14 : index
    %c0_744 = arith.constant 0 : index
    %c0_745 = arith.constant 0 : index
    %1444 = vector.load %arg2[%c14_743, %c0_744, %c0_745] : memref<16x16x8xf32, #tpu.memory_space<vmem>>, vector<1x16x8xf32>
    %1445 = vector.shape_cast %1444 : vector<1x16x8xf32> to vector<16x8xf32>
    %1446 = vector.broadcast %1443 : vector<1x8xf32> to vector<16x8xf32>
    %1447 = arith.mulf %1446, %1445 : vector<16x8xf32>
    %1448 = arith.addf %1442, %1447 : vector<16x8xf32>
    %1449 = vector.extract_strided_slice %1359 {offsets = [15, 0], sizes = [1, 8], strides = [1, 1]} : vector<16x8xf32> to vector<1x8xf32>
    %c15_746 = arith.constant 15 : index
    %c0_747 = arith.constant 0 : index
    %c0_748 = arith.constant 0 : index
    %1450 = vector.load %arg2[%c15_746, %c0_747, %c0_748] : memref<16x16x8xf32, #tpu.memory_space<vmem>>, vector<1x16x8xf32>
    %1451 = vector.shape_cast %1450 : vector<1x16x8xf32> to vector<16x8xf32>
    %1452 = vector.broadcast %1449 : vector<1x8xf32> to vector<16x8xf32>
    %1453 = arith.mulf %1452, %1451 : vector<16x8xf32>
    %1454 = arith.addf %1448, %1453 : vector<16x8xf32>
    %c15_749 = arith.constant 15 : index
    %c0_750 = arith.constant 0 : index
    %c0_751 = arith.constant 0 : index
    %1455 = vector.load %arg1[%c15_749, %c0_750, %c0_751] : memref<16x16x8xf32, #tpu.memory_space<vmem>>, vector<1x16x8xf32>
    %1456 = vector.shape_cast %1455 : vector<1x16x8xf32> to vector<16x8xf32>
    %1457 = vector.extract_strided_slice %1456 {offsets = [0, 0], sizes = [1, 8], strides = [1, 1]} : vector<16x8xf32> to vector<1x8xf32>
    %c0_752 = arith.constant 0 : index
    %c0_753 = arith.constant 0 : index
    %c0_754 = arith.constant 0 : index
    %1458 = vector.load %arg2[%c0_752, %c0_753, %c0_754] : memref<16x16x8xf32, #tpu.memory_space<vmem>>, vector<1x16x8xf32>
    %1459 = vector.shape_cast %1458 : vector<1x16x8xf32> to vector<16x8xf32>
    %1460 = vector.broadcast %1457 : vector<1x8xf32> to vector<16x8xf32>
    %1461 = arith.mulf %1460, %1459 : vector<16x8xf32>
    %1462 = vector.extract_strided_slice %1456 {offsets = [1, 0], sizes = [1, 8], strides = [1, 1]} : vector<16x8xf32> to vector<1x8xf32>
    %c1_755 = arith.constant 1 : index
    %c0_756 = arith.constant 0 : index
    %c0_757 = arith.constant 0 : index
    %1463 = vector.load %arg2[%c1_755, %c0_756, %c0_757] : memref<16x16x8xf32, #tpu.memory_space<vmem>>, vector<1x16x8xf32>
    %1464 = vector.shape_cast %1463 : vector<1x16x8xf32> to vector<16x8xf32>
    %1465 = vector.broadcast %1462 : vector<1x8xf32> to vector<16x8xf32>
    %1466 = arith.mulf %1465, %1464 : vector<16x8xf32>
    %1467 = arith.addf %1461, %1466 : vector<16x8xf32>
    %1468 = vector.extract_strided_slice %1456 {offsets = [2, 0], sizes = [1, 8], strides = [1, 1]} : vector<16x8xf32> to vector<1x8xf32>
    %c2_758 = arith.constant 2 : index
    %c0_759 = arith.constant 0 : index
    %c0_760 = arith.constant 0 : index
    %1469 = vector.load %arg2[%c2_758, %c0_759, %c0_760] : memref<16x16x8xf32, #tpu.memory_space<vmem>>, vector<1x16x8xf32>
    %1470 = vector.shape_cast %1469 : vector<1x16x8xf32> to vector<16x8xf32>
    %1471 = vector.broadcast %1468 : vector<1x8xf32> to vector<16x8xf32>
    %1472 = arith.mulf %1471, %1470 : vector<16x8xf32>
    %1473 = arith.addf %1467, %1472 : vector<16x8xf32>
    %1474 = vector.extract_strided_slice %1456 {offsets = [3, 0], sizes = [1, 8], strides = [1, 1]} : vector<16x8xf32> to vector<1x8xf32>
    %c3_761 = arith.constant 3 : index
    %c0_762 = arith.constant 0 : index
    %c0_763 = arith.constant 0 : index
    %1475 = vector.load %arg2[%c3_761, %c0_762, %c0_763] : memref<16x16x8xf32, #tpu.memory_space<vmem>>, vector<1x16x8xf32>
    %1476 = vector.shape_cast %1475 : vector<1x16x8xf32> to vector<16x8xf32>
    %1477 = vector.broadcast %1474 : vector<1x8xf32> to vector<16x8xf32>
    %1478 = arith.mulf %1477, %1476 : vector<16x8xf32>
    %1479 = arith.addf %1473, %1478 : vector<16x8xf32>
    %1480 = vector.extract_strided_slice %1456 {offsets = [4, 0], sizes = [1, 8], strides = [1, 1]} : vector<16x8xf32> to vector<1x8xf32>
    %c4_764 = arith.constant 4 : index
    %c0_765 = arith.constant 0 : index
    %c0_766 = arith.constant 0 : index
    %1481 = vector.load %arg2[%c4_764, %c0_765, %c0_766] : memref<16x16x8xf32, #tpu.memory_space<vmem>>, vector<1x16x8xf32>
    %1482 = vector.shape_cast %1481 : vector<1x16x8xf32> to vector<16x8xf32>
    %1483 = vector.broadcast %1480 : vector<1x8xf32> to vector<16x8xf32>
    %1484 = arith.mulf %1483, %1482 : vector<16x8xf32>
    %1485 = arith.addf %1479, %1484 : vector<16x8xf32>
    %1486 = vector.extract_strided_slice %1456 {offsets = [5, 0], sizes = [1, 8], strides = [1, 1]} : vector<16x8xf32> to vector<1x8xf32>
    %c5_767 = arith.constant 5 : index
    %c0_768 = arith.constant 0 : index
    %c0_769 = arith.constant 0 : index
    %1487 = vector.load %arg2[%c5_767, %c0_768, %c0_769] : memref<16x16x8xf32, #tpu.memory_space<vmem>>, vector<1x16x8xf32>
    %1488 = vector.shape_cast %1487 : vector<1x16x8xf32> to vector<16x8xf32>
    %1489 = vector.broadcast %1486 : vector<1x8xf32> to vector<16x8xf32>
    %1490 = arith.mulf %1489, %1488 : vector<16x8xf32>
    %1491 = arith.addf %1485, %1490 : vector<16x8xf32>
    %1492 = vector.extract_strided_slice %1456 {offsets = [6, 0], sizes = [1, 8], strides = [1, 1]} : vector<16x8xf32> to vector<1x8xf32>
    %c6_770 = arith.constant 6 : index
    %c0_771 = arith.constant 0 : index
    %c0_772 = arith.constant 0 : index
    %1493 = vector.load %arg2[%c6_770, %c0_771, %c0_772] : memref<16x16x8xf32, #tpu.memory_space<vmem>>, vector<1x16x8xf32>
    %1494 = vector.shape_cast %1493 : vector<1x16x8xf32> to vector<16x8xf32>
    %1495 = vector.broadcast %1492 : vector<1x8xf32> to vector<16x8xf32>
    %1496 = arith.mulf %1495, %1494 : vector<16x8xf32>
    %1497 = arith.addf %1491, %1496 : vector<16x8xf32>
    %1498 = vector.extract_strided_slice %1456 {offsets = [7, 0], sizes = [1, 8], strides = [1, 1]} : vector<16x8xf32> to vector<1x8xf32>
    %c7_773 = arith.constant 7 : index
    %c0_774 = arith.constant 0 : index
    %c0_775 = arith.constant 0 : index
    %1499 = vector.load %arg2[%c7_773, %c0_774, %c0_775] : memref<16x16x8xf32, #tpu.memory_space<vmem>>, vector<1x16x8xf32>
    %1500 = vector.shape_cast %1499 : vector<1x16x8xf32> to vector<16x8xf32>
    %1501 = vector.broadcast %1498 : vector<1x8xf32> to vector<16x8xf32>
    %1502 = arith.mulf %1501, %1500 : vector<16x8xf32>
    %1503 = arith.addf %1497, %1502 : vector<16x8xf32>
    %1504 = vector.extract_strided_slice %1456 {offsets = [8, 0], sizes = [1, 8], strides = [1, 1]} : vector<16x8xf32> to vector<1x8xf32>
    %c8_776 = arith.constant 8 : index
    %c0_777 = arith.constant 0 : index
    %c0_778 = arith.constant 0 : index
    %1505 = vector.load %arg2[%c8_776, %c0_777, %c0_778] : memref<16x16x8xf32, #tpu.memory_space<vmem>>, vector<1x16x8xf32>
    %1506 = vector.shape_cast %1505 : vector<1x16x8xf32> to vector<16x8xf32>
    %1507 = vector.broadcast %1504 : vector<1x8xf32> to vector<16x8xf32>
    %1508 = arith.mulf %1507, %1506 : vector<16x8xf32>
    %1509 = arith.addf %1503, %1508 : vector<16x8xf32>
    %1510 = vector.extract_strided_slice %1456 {offsets = [9, 0], sizes = [1, 8], strides = [1, 1]} : vector<16x8xf32> to vector<1x8xf32>
    %c9_779 = arith.constant 9 : index
    %c0_780 = arith.constant 0 : index
    %c0_781 = arith.constant 0 : index
    %1511 = vector.load %arg2[%c9_779, %c0_780, %c0_781] : memref<16x16x8xf32, #tpu.memory_space<vmem>>, vector<1x16x8xf32>
    %1512 = vector.shape_cast %1511 : vector<1x16x8xf32> to vector<16x8xf32>
    %1513 = vector.broadcast %1510 : vector<1x8xf32> to vector<16x8xf32>
    %1514 = arith.mulf %1513, %1512 : vector<16x8xf32>
    %1515 = arith.addf %1509, %1514 : vector<16x8xf32>
    %1516 = vector.extract_strided_slice %1456 {offsets = [10, 0], sizes = [1, 8], strides = [1, 1]} : vector<16x8xf32> to vector<1x8xf32>
    %c10_782 = arith.constant 10 : index
    %c0_783 = arith.constant 0 : index
    %c0_784 = arith.constant 0 : index
    %1517 = vector.load %arg2[%c10_782, %c0_783, %c0_784] : memref<16x16x8xf32, #tpu.memory_space<vmem>>, vector<1x16x8xf32>
    %1518 = vector.shape_cast %1517 : vector<1x16x8xf32> to vector<16x8xf32>
    %1519 = vector.broadcast %1516 : vector<1x8xf32> to vector<16x8xf32>
    %1520 = arith.mulf %1519, %1518 : vector<16x8xf32>
    %1521 = arith.addf %1515, %1520 : vector<16x8xf32>
    %1522 = vector.extract_strided_slice %1456 {offsets = [11, 0], sizes = [1, 8], strides = [1, 1]} : vector<16x8xf32> to vector<1x8xf32>
    %c11_785 = arith.constant 11 : index
    %c0_786 = arith.constant 0 : index
    %c0_787 = arith.constant 0 : index
    %1523 = vector.load %arg2[%c11_785, %c0_786, %c0_787] : memref<16x16x8xf32, #tpu.memory_space<vmem>>, vector<1x16x8xf32>
    %1524 = vector.shape_cast %1523 : vector<1x16x8xf32> to vector<16x8xf32>
    %1525 = vector.broadcast %1522 : vector<1x8xf32> to vector<16x8xf32>
    %1526 = arith.mulf %1525, %1524 : vector<16x8xf32>
    %1527 = arith.addf %1521, %1526 : vector<16x8xf32>
    %1528 = vector.extract_strided_slice %1456 {offsets = [12, 0], sizes = [1, 8], strides = [1, 1]} : vector<16x8xf32> to vector<1x8xf32>
    %c12_788 = arith.constant 12 : index
    %c0_789 = arith.constant 0 : index
    %c0_790 = arith.constant 0 : index
    %1529 = vector.load %arg2[%c12_788, %c0_789, %c0_790] : memref<16x16x8xf32, #tpu.memory_space<vmem>>, vector<1x16x8xf32>
    %1530 = vector.shape_cast %1529 : vector<1x16x8xf32> to vector<16x8xf32>
    %1531 = vector.broadcast %1528 : vector<1x8xf32> to vector<16x8xf32>
    %1532 = arith.mulf %1531, %1530 : vector<16x8xf32>
    %1533 = arith.addf %1527, %1532 : vector<16x8xf32>
    %1534 = vector.extract_strided_slice %1456 {offsets = [13, 0], sizes = [1, 8], strides = [1, 1]} : vector<16x8xf32> to vector<1x8xf32>
    %c13_791 = arith.constant 13 : index
    %c0_792 = arith.constant 0 : index
    %c0_793 = arith.constant 0 : index
    %1535 = vector.load %arg2[%c13_791, %c0_792, %c0_793] : memref<16x16x8xf32, #tpu.memory_space<vmem>>, vector<1x16x8xf32>
    %1536 = vector.shape_cast %1535 : vector<1x16x8xf32> to vector<16x8xf32>
    %1537 = vector.broadcast %1534 : vector<1x8xf32> to vector<16x8xf32>
    %1538 = arith.mulf %1537, %1536 : vector<16x8xf32>
    %1539 = arith.addf %1533, %1538 : vector<16x8xf32>
    %1540 = vector.extract_strided_slice %1456 {offsets = [14, 0], sizes = [1, 8], strides = [1, 1]} : vector<16x8xf32> to vector<1x8xf32>
    %c14_794 = arith.constant 14 : index
    %c0_795 = arith.constant 0 : index
    %c0_796 = arith.constant 0 : index
    %1541 = vector.load %arg2[%c14_794, %c0_795, %c0_796] : memref<16x16x8xf32, #tpu.memory_space<vmem>>, vector<1x16x8xf32>
    %1542 = vector.shape_cast %1541 : vector<1x16x8xf32> to vector<16x8xf32>
    %1543 = vector.broadcast %1540 : vector<1x8xf32> to vector<16x8xf32>
    %1544 = arith.mulf %1543, %1542 : vector<16x8xf32>
    %1545 = arith.addf %1539, %1544 : vector<16x8xf32>
    %1546 = vector.extract_strided_slice %1456 {offsets = [15, 0], sizes = [1, 8], strides = [1, 1]} : vector<16x8xf32> to vector<1x8xf32>
    %c15_797 = arith.constant 15 : index
    %c0_798 = arith.constant 0 : index
    %c0_799 = arith.constant 0 : index
    %1547 = vector.load %arg2[%c15_797, %c0_798, %c0_799] : memref<16x16x8xf32, #tpu.memory_space<vmem>>, vector<1x16x8xf32>
    %1548 = vector.shape_cast %1547 : vector<1x16x8xf32> to vector<16x8xf32>
    %1549 = vector.broadcast %1546 : vector<1x8xf32> to vector<16x8xf32>
    %1550 = arith.mulf %1549, %1548 : vector<16x8xf32>
    %1551 = arith.addf %1545, %1550 : vector<16x8xf32>
    %1552 = arith.mulf %96, %96 : vector<16x8xf32>
    %1553 = arith.mulf %193, %193 : vector<16x8xf32>
    %1554 = arith.addf %1552, %1553 : vector<16x8xf32>
    %1555 = arith.mulf %290, %290 : vector<16x8xf32>
    %1556 = arith.addf %1554, %1555 : vector<16x8xf32>
    %1557 = arith.mulf %387, %387 : vector<16x8xf32>
    %1558 = arith.addf %1556, %1557 : vector<16x8xf32>
    %1559 = arith.mulf %484, %484 : vector<16x8xf32>
    %1560 = arith.addf %1558, %1559 : vector<16x8xf32>
    %1561 = arith.mulf %581, %581 : vector<16x8xf32>
    %1562 = arith.addf %1560, %1561 : vector<16x8xf32>
    %1563 = arith.mulf %678, %678 : vector<16x8xf32>
    %1564 = arith.addf %1562, %1563 : vector<16x8xf32>
    %1565 = arith.mulf %775, %775 : vector<16x8xf32>
    %1566 = arith.addf %1564, %1565 : vector<16x8xf32>
    %1567 = arith.mulf %872, %872 : vector<16x8xf32>
    %1568 = arith.addf %1566, %1567 : vector<16x8xf32>
    %1569 = arith.mulf %969, %969 : vector<16x8xf32>
    %1570 = arith.addf %1568, %1569 : vector<16x8xf32>
    %1571 = arith.mulf %1066, %1066 : vector<16x8xf32>
    %1572 = arith.addf %1570, %1571 : vector<16x8xf32>
    %1573 = arith.mulf %1163, %1163 : vector<16x8xf32>
    %1574 = arith.addf %1572, %1573 : vector<16x8xf32>
    %1575 = arith.mulf %1260, %1260 : vector<16x8xf32>
    %1576 = arith.addf %1574, %1575 : vector<16x8xf32>
    %1577 = arith.mulf %1357, %1357 : vector<16x8xf32>
    %1578 = arith.addf %1576, %1577 : vector<16x8xf32>
    %1579 = arith.mulf %1454, %1454 : vector<16x8xf32>
    %1580 = arith.addf %1578, %1579 : vector<16x8xf32>
    %1581 = arith.mulf %1551, %1551 : vector<16x8xf32>
    %1582 = arith.addf %1580, %1581 : vector<16x8xf32>
    %cst = arith.constant dense<0.000000e+00> : vector<8xf32>
    %1583 = vector.multi_reduction <add>, %1582, %cst [0] : vector<16x8xf32> to vector<8xf32>
    %1584 = vector.shape_cast %1583 : vector<8xf32> to vector<1x8xf32>
    %cst_800 = arith.constant 1.000000e-24 : f32
    %1585 = vector.broadcast %cst_800 : f32 to vector<1x8xf32>
    %1586 = arith.maximumf %1584, %1585 : vector<1x8xf32>
    %1587 = math.rsqrt %1586 : vector<1x8xf32>
    %1588 = vector.broadcast %1587 : vector<1x8xf32> to vector<16x8xf32>
    %1589 = arith.mulf %96, %1588 : vector<16x8xf32>
    %c0_801 = arith.constant 0 : index
    %c0_802 = arith.constant 0 : index
    %1590 = vector.load %arg3[%c0_801, %c0_802] : memref<256x8xf32, #tpu.memory_space<vmem>>, vector<16x8xf32>
    tpu.vector_store %arg3[%c0_801, %c0_802], %1589 {strides = array<i32>} : memref<256x8xf32, #tpu.memory_space<vmem>>, vector<16x8xf32>,
    %1591 = vector.broadcast %1587 : vector<1x8xf32> to vector<16x8xf32>
    %1592 = arith.mulf %193, %1591 : vector<16x8xf32>
    %c16 = arith.constant 16 : index
    %c0_803 = arith.constant 0 : index
    %1593 = vector.load %arg3[%c16, %c0_803] : memref<256x8xf32, #tpu.memory_space<vmem>>, vector<16x8xf32>
    tpu.vector_store %arg3[%c16, %c0_803], %1592 {strides = array<i32>} : memref<256x8xf32, #tpu.memory_space<vmem>>, vector<16x8xf32>,
    %1594 = vector.broadcast %1587 : vector<1x8xf32> to vector<16x8xf32>
    %1595 = arith.mulf %290, %1594 : vector<16x8xf32>
    %c32 = arith.constant 32 : index
    %c0_804 = arith.constant 0 : index
    %1596 = vector.load %arg3[%c32, %c0_804] : memref<256x8xf32, #tpu.memory_space<vmem>>, vector<16x8xf32>
    tpu.vector_store %arg3[%c32, %c0_804], %1595 {strides = array<i32>} : memref<256x8xf32, #tpu.memory_space<vmem>>, vector<16x8xf32>,
    %1597 = vector.broadcast %1587 : vector<1x8xf32> to vector<16x8xf32>
    %1598 = arith.mulf %387, %1597 : vector<16x8xf32>
    %c48 = arith.constant 48 : index
    %c0_805 = arith.constant 0 : index
    %1599 = vector.load %arg3[%c48, %c0_805] : memref<256x8xf32, #tpu.memory_space<vmem>>, vector<16x8xf32>
    tpu.vector_store %arg3[%c48, %c0_805], %1598 {strides = array<i32>} : memref<256x8xf32, #tpu.memory_space<vmem>>, vector<16x8xf32>,
    %1600 = vector.broadcast %1587 : vector<1x8xf32> to vector<16x8xf32>
    %1601 = arith.mulf %484, %1600 : vector<16x8xf32>
    %c64 = arith.constant 64 : index
    %c0_806 = arith.constant 0 : index
    %1602 = vector.load %arg3[%c64, %c0_806] : memref<256x8xf32, #tpu.memory_space<vmem>>, vector<16x8xf32>
    tpu.vector_store %arg3[%c64, %c0_806], %1601 {strides = array<i32>} : memref<256x8xf32, #tpu.memory_space<vmem>>, vector<16x8xf32>,
    %1603 = vector.broadcast %1587 : vector<1x8xf32> to vector<16x8xf32>
    %1604 = arith.mulf %581, %1603 : vector<16x8xf32>
    %c80 = arith.constant 80 : index
    %c0_807 = arith.constant 0 : index
    %1605 = vector.load %arg3[%c80, %c0_807] : memref<256x8xf32, #tpu.memory_space<vmem>>, vector<16x8xf32>
    tpu.vector_store %arg3[%c80, %c0_807], %1604 {strides = array<i32>} : memref<256x8xf32, #tpu.memory_space<vmem>>, vector<16x8xf32>,
    %1606 = vector.broadcast %1587 : vector<1x8xf32> to vector<16x8xf32>
    %1607 = arith.mulf %678, %1606 : vector<16x8xf32>
    %c96 = arith.constant 96 : index
    %c0_808 = arith.constant 0 : index
    %1608 = vector.load %arg3[%c96, %c0_808] : memref<256x8xf32, #tpu.memory_space<vmem>>, vector<16x8xf32>
    tpu.vector_store %arg3[%c96, %c0_808], %1607 {strides = array<i32>} : memref<256x8xf32, #tpu.memory_space<vmem>>, vector<16x8xf32>,
    %1609 = vector.broadcast %1587 : vector<1x8xf32> to vector<16x8xf32>
    %1610 = arith.mulf %775, %1609 : vector<16x8xf32>
    %c112 = arith.constant 112 : index
    %c0_809 = arith.constant 0 : index
    %1611 = vector.load %arg3[%c112, %c0_809] : memref<256x8xf32, #tpu.memory_space<vmem>>, vector<16x8xf32>
    tpu.vector_store %arg3[%c112, %c0_809], %1610 {strides = array<i32>} : memref<256x8xf32, #tpu.memory_space<vmem>>, vector<16x8xf32>,
    %1612 = vector.broadcast %1587 : vector<1x8xf32> to vector<16x8xf32>
    %1613 = arith.mulf %872, %1612 : vector<16x8xf32>
    %c128 = arith.constant 128 : index
    %c0_810 = arith.constant 0 : index
    %1614 = vector.load %arg3[%c128, %c0_810] : memref<256x8xf32, #tpu.memory_space<vmem>>, vector<16x8xf32>
    tpu.vector_store %arg3[%c128, %c0_810], %1613 {strides = array<i32>} : memref<256x8xf32, #tpu.memory_space<vmem>>, vector<16x8xf32>,
    %1615 = vector.broadcast %1587 : vector<1x8xf32> to vector<16x8xf32>
    %1616 = arith.mulf %969, %1615 : vector<16x8xf32>
    %c144 = arith.constant 144 : index
    %c0_811 = arith.constant 0 : index
    %1617 = vector.load %arg3[%c144, %c0_811] : memref<256x8xf32, #tpu.memory_space<vmem>>, vector<16x8xf32>
    tpu.vector_store %arg3[%c144, %c0_811], %1616 {strides = array<i32>} : memref<256x8xf32, #tpu.memory_space<vmem>>, vector<16x8xf32>,
    %1618 = vector.broadcast %1587 : vector<1x8xf32> to vector<16x8xf32>
    %1619 = arith.mulf %1066, %1618 : vector<16x8xf32>
    %c160 = arith.constant 160 : index
    %c0_812 = arith.constant 0 : index
    %1620 = vector.load %arg3[%c160, %c0_812] : memref<256x8xf32, #tpu.memory_space<vmem>>, vector<16x8xf32>
    tpu.vector_store %arg3[%c160, %c0_812], %1619 {strides = array<i32>} : memref<256x8xf32, #tpu.memory_space<vmem>>, vector<16x8xf32>,
    %1621 = vector.broadcast %1587 : vector<1x8xf32> to vector<16x8xf32>
    %1622 = arith.mulf %1163, %1621 : vector<16x8xf32>
    %c176 = arith.constant 176 : index
    %c0_813 = arith.constant 0 : index
    %1623 = vector.load %arg3[%c176, %c0_813] : memref<256x8xf32, #tpu.memory_space<vmem>>, vector<16x8xf32>
    tpu.vector_store %arg3[%c176, %c0_813], %1622 {strides = array<i32>} : memref<256x8xf32, #tpu.memory_space<vmem>>, vector<16x8xf32>,
    %1624 = vector.broadcast %1587 : vector<1x8xf32> to vector<16x8xf32>
    %1625 = arith.mulf %1260, %1624 : vector<16x8xf32>
    %c192 = arith.constant 192 : index
    %c0_814 = arith.constant 0 : index
    %1626 = vector.load %arg3[%c192, %c0_814] : memref<256x8xf32, #tpu.memory_space<vmem>>, vector<16x8xf32>
    tpu.vector_store %arg3[%c192, %c0_814], %1625 {strides = array<i32>} : memref<256x8xf32, #tpu.memory_space<vmem>>, vector<16x8xf32>,
    %1627 = vector.broadcast %1587 : vector<1x8xf32> to vector<16x8xf32>
    %1628 = arith.mulf %1357, %1627 : vector<16x8xf32>
    %c208 = arith.constant 208 : index
    %c0_815 = arith.constant 0 : index
    %1629 = vector.load %arg3[%c208, %c0_815] : memref<256x8xf32, #tpu.memory_space<vmem>>, vector<16x8xf32>
    tpu.vector_store %arg3[%c208, %c0_815], %1628 {strides = array<i32>} : memref<256x8xf32, #tpu.memory_space<vmem>>, vector<16x8xf32>,
    %1630 = vector.broadcast %1587 : vector<1x8xf32> to vector<16x8xf32>
    %1631 = arith.mulf %1454, %1630 : vector<16x8xf32>
    %c224 = arith.constant 224 : index
    %c0_816 = arith.constant 0 : index
    %1632 = vector.load %arg3[%c224, %c0_816] : memref<256x8xf32, #tpu.memory_space<vmem>>, vector<16x8xf32>
    tpu.vector_store %arg3[%c224, %c0_816], %1631 {strides = array<i32>} : memref<256x8xf32, #tpu.memory_space<vmem>>, vector<16x8xf32>,
    %1633 = vector.broadcast %1587 : vector<1x8xf32> to vector<16x8xf32>
    %1634 = arith.mulf %1551, %1633 : vector<16x8xf32>
    %c240 = arith.constant 240 : index
    %c0_817 = arith.constant 0 : index
    %1635 = vector.load %arg3[%c240, %c0_817] : memref<256x8xf32, #tpu.memory_space<vmem>>, vector<16x8xf32>
    tpu.vector_store %arg3[%c240, %c0_817], %1634 {strides = array<i32>} : memref<256x8xf32, #tpu.memory_space<vmem>>, vector<16x8xf32>,
    return
  }
  func.func @transform_0(%arg0: i32) -> (i32, i32, i32) {
    %c0_i32 = arith.constant 0 : i32
    %c0_i32_0 = arith.constant 0 : i32
    %c0_i32_1 = arith.constant 0 : i32
    return %c0_i32, %c0_i32_0, %arg0 : i32, i32, i32
  }
  func.func @transform_1(%arg0: i32) -> (i32, i32, i32) {
    %c0_i32 = arith.constant 0 : i32
    %c0_i32_0 = arith.constant 0 : i32
    %c0_i32_1 = arith.constant 0 : i32
    return %c0_i32, %c0_i32_0, %arg0 : i32, i32, i32
  }
  func.func @transform_2(%arg0: i32) -> (i32, i32) {
    %c0_i32 = arith.constant 0 : i32
    %c0_i32_0 = arith.constant 0 : i32
    return %c0_i32, %arg0 : i32, i32
  }
}

</mosaic_0001>

<bundles_post_ra>
// kernel: custom-call.2
= control target key start
LH: loop header
LB: loop body
LE: loop exit
PB: predicated region body
PF: predicated region fallthrough
CT: control target
= control target key end

     0   :  { %s1724_s30 = smov 0   ;;  %s1726_s10 = smov 0   ;;  %s2054_s0 = inlined_call_operand.vmem [shape: f32[4,8,8], index: 0, kind: input, shape index: {}]   ;;  %s2055_s1 = inlined_call_operand.vmem [shape: f32[4,8,8], index: 1, kind: input, shape index: {}]   ;;  %s2056_s2 = inlined_call_operand.vmem [shape: f32[4,8,8], index: 2, kind: input, shape index: {}]   ;;  %s2057_s3 = inlined_call_operand.vmem [shape: f32[4,8,8], index: 3, kind: input, shape index: {}]   ;;  %s2058_s4 = inlined_call_operand.vmem [shape: f32[4,8], index: 4, kind: output, shape index: {0}]   ;;  %s2059_s5 = inlined_call_operand.vmem [shape: f32[4,8], index: 5, kind: output, shape index: {1}]   ;;  %s2060_s6 = inlined_call_operand.vmem [shape: f32[4,8,8], index: 6, kind: output, shape index: {2}]   ;;  %s2061_s7 = inlined_call_operand.vmem [shape: f32[4,8,8], index: 7, kind: output, shape index: {3}]   ;;  %s2062_s8 = inlined_call_operand.vmem [shape: f32[4,8,8], index: 8, kind: output, shape index: {4}]   ;;  %s2063_s9 = inlined_call_operand.vmem [shape: f32[4,8,8], index: 9, kind: output, shape index: {5}]  }
   0x1   :  { %s1728_s11 = smov 0  }
   0x2 LB: > { %s1740_s12 = sadd.s32 4294967295, %s1661_s11   ;;  %s1743_s13 = sadd.s32 1, %s1661_s11   ;;  %s1661_s11 = sphi %s1728_s11, %s2070_s11   ;;  %s1657_s10 = sphi %s1726_s10, %s2069_s10   ;;  %s1653_s30 = sphi %s1724_s30, %s2068_s30  }
   0x3   : > { %s20_s14 = sshrl.u32 %s1661_s11, 3  ;;  %s21_s15 = sshrl.u32 %s1743_s13, 3 }
   0x4   : > { %s22_s16 = ssub.s32 %s20_s14, %s21_s15  ;;  %s25_s17 = sadd.s32 1, %s1657_s10 }
   0x5   : > { %p23_p0 = scmp.eq.s32.totalorder %s22_s16, 0  ;;  %p35_p1 = scmp.ne.s32.totalorder %s1657_s10, %s1653_s30 }
   0x6   : > { %p36_p2 = scmp.eq.s32.totalorder %s1740_s12, 3  ;;  %p1522_p4 = scmp.ge.s32.totalorder %s1661_s11, 4 }
   0x7   : > { %s1752_s18 = scalar_select %p23_p0, %s1657_s10, %s25_s17  }
   0x8   : > { %p1754_p3 = por %p36_p2, %p35_p1  ;;  %86 = sbr.rel (%p1522_p4) target bundleno = 18 (0x12), region = 16 }
   0x9   : > { %2064 = sst [smem:[#allocation25_spill]] %s1752_s18  ;;  %s88_s20 = sand.u32 (!%p1522_p4), 1, %s1661_s11  }
   0xa   : > { %s1524_s21 = sshll.u32 (!%p1522_p4), %s1661_s11, 3  ;;  %s1523_s22 = sshll.u32 (!%p1522_p4), %s88_s20, 3 }
   0xb   : > { %s92_s25 = scalar_lea.vmem (!%p1522_p4), %s2054_s0, %s1524_s21  ;;  %s90_s26 = scalar_lea.vmem (!%p1522_p4), [#allocation0], %s1523_s22 }
   0xc   : > { %s131_s29 = scalar_lea.vmem (!%p1522_p4), %s2055_s1, %s1524_s21  ;;  %s170_s16 = scalar_lea.vmem (!%p1522_p4), %s2056_s2, %s1524_s21 }
   0xd   : > { %v121_v0 = vld [vmem:[%s92_s25] sm:$0xff]  ;;  %s129_s17 = scalar_lea.vmem [#allocation1], %s1523_s22  ;;  %s209_s23 = scalar_lea.vmem %s2057_s3, %s1524_s21 }
   0xe   : > { %122 = vst [vmem:[%s90_s26] sm:$0xff] %v121_v0  ;;  %v160_v1 = vld [vmem:[%s131_s29] sm:$0xff]  ;;  %s168_s24 = scalar_lea.vmem [#allocation2], %s1523_s22  ;;  %s207_s25 = scalar_lea.vmem [#allocation3], %s1523_s22 }
   0xf   : > { %161 = vst [vmem:[%s129_s17] sm:$0xff] %v160_v1  ;;  %v199_v2 = vld [vmem:[%s170_s16] sm:$0xff] }
  0x10   : > { %200 = vst [vmem:[%s168_s24] sm:$0xff] %v199_v2  ;;  %v238_v3 = vld [vmem:[%s209_s23] sm:$0xff] }
  0x11   : > { %239 = vst [vmem:[%s207_s25] sm:$0xff] %v238_v3 }
  0x12 PF: > { %p1531_p5 = scmp.ge.s32.totalorder %s1661_s11, 1  ;;  %p244_p6 = scmp.lt.s32.totalorder %s1661_s11, 5 }
  0x14   : > { %p245_p7 = pnand %p1531_p5, %p244_p6 }
  0x16   : > { %248 = sbr.rel (%p245_p7) target bundleno = 946 (0x3b2), region = 156 }
  0x1b   : > { %s251_s26 = sand.u32 1, %s1740_s12   ;;  %s285_s27 = sand.u32 1, %s1653_s30   ;;  %v329_v4 = vlaneseq  ;;  %v1671_v9 = vmov 0.0  }
  0x1c   : > { %s1777_s28 = sshll.u32 %s251_s26, 3  ;;  %s1779_s18 = sshll.u32 %s285_s27, 2 }
  0x1d   : > { %v1781_v5 = vand.u32 127, %v329_v4  ;;  %v1783_v6 = vshrl.u32 %v329_v4, 7  ;;  %s253_s11 = scalar_lea.vmem [#allocation0], %s1777_s28  ;;  %s257_s21 = scalar_lea.vmem [#allocation1], %s1777_s28 }
  0x1e   : > { %v313_v7 = vld [vmem:[%s253_s11] sm:$0xff]  ;;  %v316_v8 = vld [vmem:[%s257_s21] sm:$0xff]  ;;  %s1788_s30 = scalar_lea.vmem [#allocation8], %s1777_s28  ;;  %s312_s22 = smov [#allocation12] }
  0x1f   : > { %324 = vst [vmem:[%s1788_s30] sm:$0xff] %v1671_v9  ;;  %s315_s29 = smov [#allocation13]  ;;  %s261_s14 = scalar_lea.vmem [#allocation2], %s1777_s28  ;;  %v331_v5 = vmov %v1781_v5  ;;  %v334_v6 = vmov %v1783_v6  ;;  %vm1411_vm2 = vcmp.lt.s32.totalorder %v1781_v5, 8 }
  0x20   : > { %v319_v10 = vld [vmem:[%s261_s14] sm:$0xff]  ;;  %s1793_s15 = scalar_lea.vmem [#allocation9], %s1777_s28  ;;  %314 = vst [vmem:[%s312_s22] sm:$0xff] %v313_v7  ;;  %s318_s16 = smov [#allocation14]  ;;  %vm338_vm0 = vcmp.eq.s32.totalorder %v334_v6, %v331_v5  ;;  %v344_v5 = vmov %v1781_v5  ;;  %v347_v6 = vmov %v1783_v6 }
  0x21   : > { %325 = vst [vmem:[%s1793_s15] sm:$0xff] %v1671_v9  ;;  %s321_s17 = smov [#allocation15]  ;;  %s265_s20 = scalar_lea.vmem [#allocation3], %s1777_s28  ;;  %vm351_vm1 = vcmp.eq.s32.totalorder %v347_v6, %v344_v5  ;;  %v1403_v5 = vmov %v1781_v5  ;;  %v1406_v6 = vmov %v1783_v6 }
  0x22   : > { %v322_v11 = vld [vmem:[%s265_s20] sm:$0xff]  ;;  %317 = vst [vmem:[%s315_s29] sm:$0xff] %v316_v8  ;;  %s328_s30 = smov %s1788_s30  ;;  %s1801_s23 = scalar_lea.vmem [#allocation10], %s1777_s28  ;;  %v1420_v5 = vmov %v1781_v5  ;;  %v1423_v6 = vmov %v1783_v6  ;;  %vm1416_vm3 = vcmp.eq.s32.totalorder %v1406_v6, %v1403_v5 }
  0x23   : > { %320 = vst [vmem:[%s318_s16] sm:$0xff] %v319_v10  ;;  %s1805_s24 = scalar_lea.vmem [#allocation11], %s1777_s28  ;;  %s287_s25 = scalar_lea.vmem [#allocation5], %s1779_s18  ;;  %v1437_v5 = vmov %v1781_v5  ;;  %v1440_v6 = vmov %v1783_v6 }
  0x24   : > { %323 = vst [vmem:[%s321_s17] sm:$0xff] %v322_v11  ;;  %s293_s26 = scalar_lea.vmem [#allocation7], %s1779_s18  ;;  %s1407_s27 = smov [#allocation12]  ;;  %v1454_v5 = vmov %v1781_v5  ;;  %v1457_v6 = vmov %v1783_v6 }
  0x25   : > { %326 = vst [vmem:[%s1801_s23] sm:$0xff] %v1671_v9  ;;  %s1424_s28 = smov [#allocation13]  ;;  %s1441_s11 = smov [#allocation14]  ;;  %vm1467_vm4 = vcmp.eq.s32.totalorder %v1457_v6, %v1454_v5 }
  0x26   : > { %327 = vst [vmem:[%s1805_s24] sm:$0xff] %v1671_v9  ;;  %v335_v12 = vld [vmem:[%s328_s30] sm:$0xff]  ;;  %s341_s24 = smov %s1805_s24  ;;  %s1458_s21 = smov [#allocation15] }
  0x27   : > { %v339_v13 = vsel %vm338_vm0, 1.0, %v335_v12  ;;  %v1413_v16 = vld [vmem:[%s1407_s27] sm:$0xff] }
  0x28   : > { %340 = vst [vmem:[%s328_s30] sm:$0xff] %v339_v13  ;;  %v1414_v18 = vsel %vm1411_vm2, %v1413_v16, 0.0 }
  0x29   : > { %v1430_v17 = vld [vmem:[%s1424_s28] sm:$0xff]  ;;  %v1415_v22 = vmul.f32 %v1414_v18, %v1414_v18 }
  0x2a   : > { %v1431_v19 = vsel %vm1411_vm2, %v1430_v17, 0.0  ;;  %v1447_v20 = vld [vmem:[%s1441_s11] sm:$0xff] }
  0x2b   : > { %v1464_v21 = vld [vmem:[%s1458_s21] sm:$0xff]  ;;  %v1432_v23 = vmul.f32 %v1431_v19, %v1431_v19  ;;  %v1448_v24 = vsel %vm1411_vm2, %v1447_v20, 0.0  ;;  %v1417_v29 = vsel %vm1416_vm3, 0.0, %v1415_v22 }
  0x2c   : > { %v1465_v25 = vsel %vm1411_vm2, %v1464_v21, 0.0  ;;  %v1449_v26 = vmul.f32 %v1448_v24, %v1448_v24 }
  0x2d   : > { %v348_v14 = vld [vmem:[%s341_s24] sm:$0xff]  ;;  %v1434_v27 = vadd.f32 %v1432_v23, %v1415_v22  ;;  %v1466_v28 = vmul.f32 %v1465_v25, %v1465_v25  ;;  %v1433_v31 = vadd.f32 %v1432_v23, %v1417_v29 }
  0x2e   : > { %v352_v15 = vsel %vm351_vm1, 1.0, %v348_v14 }
  0x2f   : > { %353 = vst [vmem:[%s341_s24] sm:$0xff] %v352_v15  ;;  %v1451_v30 = vadd.f32 %v1449_v26, %v1434_v27  ;;  %v1450_v33 = vadd.f32 %v1449_v26, %v1433_v31  ;;  %v1468_v34 = vsel %vm1467_vm4, 0.0, %v1466_v28 }
  0x31   : > { %v1470_v32 = vadd.f32 %v1466_v28, %v1451_v30  ;;  %v1469_v35 = vadd.f32 %v1468_v34, %v1450_v33 }
  0x33   : > { %1471 = vadd.xlane.f32.xlu0 %v1470_v32 }
  0x3b   : > { %1479 = vadd.xlane.f32.xlu0 %v1469_v35 }
  0xa6   : > { %v1472_v36 = vpop.xlane.xlu0 %1471 }
  0xa7   : > { %v1473_v37 = vrot.slane %v1472_v36, 4 }
  0xa9   : > { %v1474_v38 = vadd.f32 %v1473_v37, %v1472_v36 }
  0xab   : > { %v1475_v39 = vrot.slane %v1474_v38, 2 }
  0xad   : > { %v1476_v43 = vadd.f32 %v1475_v39, %v1474_v38 }
  0xae   : > { %v1480_v40 = vpop.xlane.xlu0 %1479 }
  0xaf   : > { %v1481_v41 = vrot.slane %v1480_v40, 4  ;;  %v1477_v46 = vrot.slane %v1476_v43, 1 }
  0xb1   : > { %v1482_v42 = vadd.f32 %v1481_v41, %v1480_v40  ;;  %v1478_v49 = vadd.f32 %v1477_v46, %v1476_v43 }
  0xb3   : > { %v1483_v44 = vrot.slane %v1482_v42, 2 }
  0xb5   : > { %v1484_v45 = vadd.f32 %v1483_v44, %v1482_v42 }
  0xb7   : > { %v1485_v47 = vrot.slane %v1484_v45, 1 }
  0xb9   : > { %v1486_v48 = vadd.f32 %v1485_v47, %v1484_v45 }
  0xbb   : > { %1572 = vpush %v1486_v48 }
  0xbc   : > { %1574 = vpush %v1478_v49 }
  0xec   : > { %s1573_s22 = spop %1572 }
  0xed   : > { %s1575_s29 = spop %1574 }
  0xee   : > { %s1489_s14 = smul.f32 1e-10, %s1575_s29 }
  0xf0   : > { %p1490_p8 = scmp.le.f32.partialorder %s1573_s22, %s1489_s14 }
  0xf1   : > { %s1830_s16 = smov (!%p1490_p8), 0  }
  0xf2   : > { %1493 = sbr.rel (%p1490_p8) target bundleno = 900 (0x384), region = 499 }
  0xf7 LB: >> { %s1835_s17 = smov 0   ;;  %s1665_s16 = sphi %s1830_s16, %s2066_s16  }
  0xf8 LB: >>> { %s458_s20 = smov [#allocation12]  ;;  %v462_v5 = vmov %v1781_v5  ;;  %v465_v6 = vmov %v1783_v6  ;;  %s478_s27 = smov [#allocation13]  ;;  %s1669_s17 = sphi %s1835_s17, %s457_s17  }
  0xf9   : >>> { %v482_v5 = vmov %v1781_v5  ;;  %v485_v6 = vmov %v1783_v6  ;;  %v466_v50 = vld [vmem:[%s458_s20] sm:$0xff]  ;;  %vm469_vm5 = vcmp.eq.s32.totalorder %v465_v6, %v462_v5  ;;  %s498_s28 = smov [#allocation15]  ;;  %s459_s11 = smov [#allocation16] }
  0xfa   : >>> { %vm489_vm6 = vcmp.eq.s32.totalorder %v485_v6, %v482_v5  ;;  %v502_v5 = vmov %v1781_v5  ;;  %v505_v6 = vmov %v1783_v6  ;;  %v470_v51 = vsel %vm469_vm5, %v466_v50, 0.0  ;;  %v486_v52 = vld [vmem:[%s478_s27] sm:$0xff]  ;;  %s479_s21 = smov [#allocation17]  ;;  %s499_s22 = smov [#allocation18] }
  0xfb   : >>> { %vm509_vm7 = vcmp.eq.s32.totalorder %v505_v6, %v502_v5  ;;  %v471_v53 = vrot.slane %v470_v51, 4  ;;  %v490_v54 = vsel %vm489_vm6, %v486_v52, 0.0  ;;  %v506_v55 = vld [vmem:[%s498_s28] sm:$0xff]  ;;  %s522_s29 = smov [#allocation17]  ;;  %s520_s14 = smov [#allocation16]  ;;  %v611_v5 = vmov %v1781_v5 }
  0xfc   : >>> { %v491_v56 = vrot.slane %v490_v54, 4  ;;  %v510_v57 = vsel %vm509_vm7, %v506_v55, 0.0  ;;  %s524_s20 = smov [#allocation18]  ;;  %s599_s27 = smov [#allocation19]  ;;  %v614_v6 = vmov %v1783_v6 }
  0xfd   : >>> { %v472_v58 = vadd.f32 %v471_v53, %v470_v51  ;;  %v511_v59 = vrot.slane %v510_v57, 4  ;;  %s601_s28 = smov [#allocation20]  ;;  %s1862_s30 = smov %s1788_s30 }
  0xfe   : >>> { %v492_v60 = vadd.f32 %v491_v56, %v490_v54  ;;  %s1865_s15 = smov %s1793_s15  ;;  %s1870_s23 = smov %s1801_s23 }
  0xff   : >>> { %v473_v61 = vrot.slane %v472_v58, 2  ;;  %v512_v62 = vadd.f32 %v511_v59, %v510_v57  ;;  %s1875_s24 = smov %s1805_s24  ;;  %s457_s17 = sadd.s32 1, %s1669_s17  }
 0x100   : >>> { %v493_v63 = vrot.slane %v492_v60, 2  ;;  %p454_p9 = scmp.ge.s32.totalorder %s457_s17, 15  }
 0x101   : >>> { %v474_v0 = vadd.f32 %v473_v61, %v472_v58  ;;  %v513_v1 = vrot.slane %v512_v62, 2 }
 0x102   : >>> { %v494_v2 = vadd.f32 %v493_v63, %v492_v60 }
 0x103   : >>> { %v475_v3 = vrot.slane %v474_v0, 1  ;;  %v514_v4 = vadd.f32 %v513_v1, %v512_v62 }
 0x104   : >>> { %v495_v7 = vrot.slane %v494_v2, 1 }
 0x105   : >>> { %v476_v8 = vadd.f32 %v475_v3, %v474_v0  ;;  %v515_v9 = vrot.slane %v514_v4, 1 }
 0x106   : >>> { %v496_v10 = vadd.f32 %v495_v7, %v494_v2 }
 0x107   : >>> { %477 = vst [vmem:[%s459_s11] sm:$0x1] %v476_v8  ;;  %v516_v11 = vadd.f32 %v515_v9, %v514_v4  ;;  %s518_s11 = smov [#allocation21] }
 0x108   : >>> { %497 = vst [vmem:[%s479_s21] sm:$0x1] %v496_v10  ;;  %s519_s21 = smov [#allocation22]  ;;  %s603_s11 = smov %s518_s11 }
 0x109   : >>> { %517 = vst [vmem:[%s499_s22] sm:$0x1] %v516_v11  ;;  %s605_s21 = smov %s519_s21  ;;  %s607_s22 = smov [#allocation21] }
 0x10e   : >>> { %v521_v19 = vld [vmem:[%s520_s14] sm:$0xff]  ;;  %s620_s14 = smov [#allocation23] }
 0x10f   : >>> { %v1846_v12 = vld [vmem:[%s522_s29] sm:$0xff]  ;;  %v575_v43 = vand.u32 2147483647, %v521_v19  ;;  %s622_s29 = smov [#allocation22] }
 0x110   : >>> { %v527_v13 = vmul.f32 2.0, %v1846_v12  ;;  %v525_v20 = vld [vmem:[%s524_s20] sm:$0xff]  ;;  %v576_v51 = vand.u32 2147483647, %v1846_v12  ;;  %s635_s20 = smov [#allocation24] }
 0x111   : >>> { %v526_v23 = vsub.f32 %v525_v20, %v521_v19  ;;  %v577_v44 = vand.u32 2147483647, %v525_v20 }
 0x112   : >>> { %1623 = vrcp.f32 %v527_v13  ;;  %v539_v16 = vand.u32 2147483648, %v527_v13  ;;  %vm533_vm8 = vweird.f32 %v527_v13  ;;  %v537_v18 = vand.u32 2147483647, %v527_v13 }
 0x113   : >>> { %v578_v46 = vmin.f32 %v575_v43, %v577_v44 }
 0x114   : >>> { %v540_v22 = vor.u32 1.1754944e-38, %v539_v16  ;;  %vm538_vm11 = vcmp.eq.f32.partialorder %v537_v18, 8.507059e+37 }
 0x115   : >>> { %v579_v52 = vmul.f32 1.1920929e-08, %v578_v46 }
 0x117   : >>> { %vm580_vm4 = vcmp.le.f32.partialorder %v576_v51, %v579_v52 }
 0x118   : >>> { %v1624_v14 = vpop.eup %1623 }
 0x119   : >>> { %v529_v15 = vmul.f32 %v1624_v14, %v527_v13  ;;  %vm534_vm9 = vweird.f32 %v1624_v14 }
 0x11a   : >>> { %vm535_vm10 = vmor %vm533_vm8, %vm534_vm9  ;;  %vm616_vm8 = vcmp.eq.s32.totalorder %v614_v6, %v611_v5  ;;  %v626_v5 = vmov %v1781_v5  ;;  %v629_v6 = vmov %v1783_v6 }
 0x11b   : >>> { %v530_v17 = vsub.f32 1.0, %v529_v15  ;;  %vm631_vm9 = vcmp.eq.s32.totalorder %v629_v6, %v626_v5  ;;  %v697_v5 = vmov %v1781_v5 }
 0x11c   : >>> { %v738_v5 = vmov %v1781_v5 }
 0x11d   : >>> { %v531_v21 = vmul.f32 %v1624_v14, %v530_v17  ;;  %v724_v5 = vmov %v1781_v5 }
 0x11f   : >>> { %v532_v24 = vadd.f32 %v1624_v14, %v531_v21 }
 0x121   : >>> { %v536_v25 = vsel %vm535_vm10, %v1624_v14, %v532_v24  ;;  %v871_v24 = vld [vmem:[%s1870_s23] sm:$0xff]  ;;  %vm821_vm10 = vcmp.eq.s32.totalorder %v1783_v6, 0 }
 0x122   : >>> { %v541_v26 = vsel %vm538_vm11, %v540_v22, %v536_v25  ;;  %vm833_vm11 = vcmp.eq.s32.totalorder %v1783_v6, 7  ;;  %v700_v6 = vmov %v1783_v6 }
 0x123   : >>> { %v542_v27 = vmul.f32 %v541_v26, %v526_v23  ;;  %v741_v6 = vmov %v1783_v6 }
 0x124   : >>> { %v727_v6 = vmov %v1783_v6 }
 0x125   : >>> { %v544_v28 = vmul.f32 %v542_v27, %v542_v27  ;;  %vm543_vm14 = vcmp.ge.f32.partialorder %v542_v27, 0.0 }
 0x127   : >>> { %v545_v29 = vadd.f32 1.0, %v544_v28 }
 0x129   : >>> { %1625 = vrsqrt.f32 %v545_v29  ;;  %vm553_vm12 = vcmp.eq.f32.partialorder %v545_v29, inf  ;;  %v556_v36 = vand.u32 2147483648, %v545_v29  ;;  %vm555_vm13 = vcmp.eq.f32.partialorder %v545_v29, 0.0 }
 0x12f   : >>> { %v1626_v30 = vpop.eup %1625 }
 0x130   : >>> { %v547_v31 = vmul.f32 %v1626_v30, %v545_v29 }
 0x132   : >>> { %v548_v32 = vmul.f32 %v1626_v30, %v547_v31 }
 0x134   : >>> { %v549_v33 = vmul.f32 0.5, %v548_v32 }
 0x136   : >>> { %v550_v34 = vsub.f32 1.5, %v549_v33 }
 0x138   : >>> { %v551_v35 = vmul.f32 %v1626_v30, %v550_v34 }
 0x13a   : >>> { %v552_v37 = vmul.f32 %v551_v35, %v545_v29 }
 0x13c   : >>> { %v554_v38 = vsel %vm553_vm12, %v545_v29, %v552_v37  ;;  %v872_v29 = vld [vmem:[%s1875_s24] sm:$0xff]  ;;  %vm705_vm12 = vcmp.eq.s32.totalorder %v700_v6, %v697_v5  ;;  %v711_v5 = vmov %v1781_v5  ;;  %v714_v6 = vmov %v1783_v6 }
 0x13d   : >>> { %v557_v39 = vsel %vm555_vm13, %v556_v36, %v554_v38  ;;  %vm746_vm13 = vcmp.eq.s32.totalorder %v741_v6, %v738_v5 }
 0x13e   : >>> { %v558_v40 = vxor.u32 2147483648, %v557_v39 }
 0x140   : >>> { %v559_v41 = vsel %vm543_vm14, %v557_v39, %v558_v40  ;;  %vm731_vm14 = vcmp.eq.s32.totalorder %v727_v6, %v724_v5 }
 0x141   : >>> { %v560_v42 = vadd.f32 %v559_v41, %v542_v27 }
 0x143   : >>> { %1627 = vrcp.f32 %v560_v42  ;;  %v572_v48 = vand.u32 2147483648, %v560_v42  ;;  %vm566_vm15 = vweird.f32 %v560_v42  ;;  %v570_v50 = vand.u32 2147483647, %v560_v42 }
 0x145   : >>> { %v573_v54 = vor.u32 1.1754944e-38, %v572_v48  ;;  %vm571_vm3 = vcmp.eq.f32.partialorder %v570_v50, 8.507059e+37 }
 0x149   : >>> { %v1628_v45 = vpop.eup %1627 }
 0x14a   : >>> { %v562_v47 = vmul.f32 %v1628_v45, %v560_v42  ;;  %vm567_vm0 = vweird.f32 %v1628_v45 }
 0x14b   : >>> { %vm568_vm1 = vmor %vm566_vm15, %vm567_vm0  ;;  %vm718_vm15 = vcmp.eq.s32.totalorder %v714_v6, %v711_v5  ;;  %vm777_vm0 = vcmp.eq.s32.totalorder %v1781_v5, 7  ;;  %v361_v6 = vmov (%p454_p9), %v1783_v6 }
 0x14c   : >>> { %v563_v49 = vsub.f32 1.0, %v562_v47 }
 0x14e   : >>> { %v564_v53 = vmul.f32 %v1628_v45, %v563_v49 }
 0x150   : >>> { %v565_v55 = vadd.f32 %v1628_v45, %v564_v53 }
 0x152   : >>> { %v569_v56 = vsel %vm568_vm1, %v1628_v45, %v565_v55  ;;  %vm760_vm1 = vcmp.eq.s32.totalorder %v1781_v5, 0 }
 0x153   : >>> { %v574_v57 = vsel %vm571_vm3, %v573_v54, %v569_v56  ;;  %vm764_vm3 = vcmp.eq.s32.totalorder %v1781_v5, 1  ;;  %v358_v5 = vmov (%p454_p9), %v1781_v5 }
 0x154   : >>> { %v581_v58 = vsel %vm580_vm4, 0.0, %v574_v57  ;;  %vm373_vm4 = vcmp.eq.s32.totalorder (%p454_p9), %v361_v6, %v358_v5  ;;  %v377_v5 = vmov (%p454_p9), %v1781_v5  ;;  %v380_v6 = vmov (%p454_p9), %v1783_v6 }
 0x155   : >>> { %v582_v59 = vmul.f32 %v581_v58, %v581_v58  ;;  %v595_v60 = vmul.f32 %v581_v58, %v1846_v12  ;;  %v394_v5 = vmov (%p454_p9), %v1781_v5  ;;  %v397_v6 = vmov (%p454_p9), %v1783_v6 }
 0x156   : >> { %v411_v5 = vmov (%p454_p9), %v1781_v5  ;;  %v414_v6 = vmov (%p454_p9), %v1783_v6 }
 0x157   : >>> { %v583_v61 = vadd.f32 1.0, %v582_v59  ;;  %v596_v62 = vsub.f32 %v521_v19, %v595_v60  ;;  %v598_v63 = vadd.f32 %v595_v60, %v525_v20  ;;  %v869_v19 = vld [vmem:[%s1862_s30] sm:$0xff] }
 0x158   : >>> { %v870_v20 = vld [vmem:[%s1865_s15] sm:$0xff] }
 0x159   : >>> { %1629 = vrsqrt.f32 %v583_v61  ;;  %600 = vst [vmem:[%s599_s27] sm:$0xff] %v596_v62  ;;  %vm590_vm5 = vweird.f32 %v583_v61  ;;  %s637_s27 = smov [#allocation23] }
 0x15a   : >>> { %602 = vst [vmem:[%s601_s28] sm:$0xff] %v598_v63  ;;  %s1855_s28 = smov [#allocation12] }
 0x15b   : >>> { %v645_v22 = vld [vmem:[%s1855_s28] sm:$0xff] }
 0x15f   : >>> { %v1630_v0 = vpop.eup %1629 }
 0x160   : >>> { %v585_v1 = vmul.f32 %v1630_v0, %v583_v61  ;;  %vm591_vm6 = vweird.f32 %v1630_v0 }
 0x161   : >>> { %vm592_vm7 = vmor %vm590_vm5, %vm591_vm6  ;;  %vm426_vm5 = vcmp.eq.s32.totalorder (%p454_p9), %v414_v6, %v411_v5 }
 0x162   : >>> { %v586_v2 = vmul.f32 %v1630_v0, %v585_v1 }
 0x164   : >>> { %v587_v3 = vmul.f32 0.5, %v586_v2 }
 0x166   : >>> { %v588_v4 = vsub.f32 1.5, %v587_v3 }
 0x168   : >>> { %v589_v7 = vmul.f32 %v1630_v0, %v588_v4 }
 0x16a   : >>> { %v593_v8 = vsel %vm592_vm7, %v1630_v0, %v589_v7 }
 0x16b   : >>> { %604 = vst [vmem:[%s603_s11] sm:$0xff] %v593_v8  ;;  %v594_v9 = vmul.f32 %v593_v8, %v581_v58  ;;  %s1857_s11 = smov [#allocation13] }
 0x16c   : >>> { %v646_v16 = vld [vmem:[%s1857_s11] sm:$0xff] }
 0x16d   : >>> { %606 = vst [vmem:[%s605_s21] sm:$0xff] %v594_v9  ;;  %s1859_s21 = smov [#allocation14] }
 0x16e   : >>> { %v647_v17 = vld [vmem:[%s1859_s21] sm:$0xff] }
 0x172   : >>> { %v608_v10 = vld [vmem:[%s607_s22] ss:$0 sm:$0xff]  ;;  %s861_s22 = smov [#allocation23] }
 0x173   : >>> { %v617_v11 = vsel %vm616_vm8, %v608_v10, 0.0 }
 0x174   : >>> { %618 = vadd.xlane.f32.xlu0 %v617_v11  ;;  %v623_v12 = vld [vmem:[%s622_s29] ss:$0 sm:$0xff]  ;;  %s1867_s29 = smov [#allocation15] }
 0x175   : >>> { %v632_v13 = vsel %vm631_vm9, %v623_v12, 0.0  ;;  %v648_v23 = vld [vmem:[%s1867_s29] sm:$0xff] }
 0x17c   : >>> { %633 = vadd.xlane.f32.xlu0 %v632_v13 }
 0x1e7   : >>> { %v619_v14 = vpop.xlane.xlu0 %618 }
 0x1e8   : >>> { %621 = vst [vmem:[%s620_s14] sm:$0xff] %v619_v14  ;;  %s639_s14 = smov [#allocation24] }
 0x1ef   : >>> { %v634_v15 = vpop.xlane.xlu0 %633  ;;  %v638_v18 = vld [vmem:[%s637_s27] sm:$0xff]  ;;  %s665_s27 = smov [#allocation21] }
 0x1f0   : >>> { %636 = vst [vmem:[%s635_s20] sm:$0xff] %v634_v15  ;;  %s863_s20 = smov [#allocation24]  ;;  %v862_v21 = vld [vmem:[%s861_s22] sm:$0xff]  ;;  %v652_v25 = vmul.f32 %v646_v16, %v638_v18  ;;  %v656_v26 = vmul.f32 %v647_v17, %v638_v18  ;;  %v649_v46 = vmul.f32 %v645_v22, %v638_v18  ;;  %v659_v48 = vmul.f32 %v648_v23, %v638_v18  ;;  %s667_s22 = smov [#allocation22] }
 0x1f1   : >>> { %v873_v30 = vmul.f32 %v869_v19, %v862_v21  ;;  %v876_v31 = vmul.f32 %v870_v20, %v862_v21  ;;  %v880_v38 = vmul.f32 %v871_v24, %v862_v21  ;;  %v883_v42 = vmul.f32 %v872_v29, %v862_v21  ;;  %v666_v52 = vld [vmem:[%s665_s27] ss:$0 sm:$0xff]  ;;  %s693_s27 = smov [#allocation12] }
 0x1f2   : >>> { %v668_v53 = vld [vmem:[%s667_s22] ss:$0 sm:$0xff]  ;;  %s734_s22 = smov [#allocation15] }
 0x1f7   : >>> { %v640_v27 = vld [vmem:[%s639_s14] sm:$0xff]  ;;  %s1889_s14 = smov [#allocation14] }
 0x1f8   : >>> { %v864_v28 = vld [vmem:[%s863_s20] sm:$0xff]  ;;  %v653_v32 = vmul.f32 %v648_v23, %v640_v27  ;;  %v655_v33 = vmul.f32 %v645_v22, %v640_v27  ;;  %v650_v39 = vmul.f32 %v647_v17, %v640_v27  ;;  %v658_v43 = vmul.f32 %v646_v16, %v640_v27  ;;  %s735_s20 = smov [#allocation20] }
 0x1f9   : >>> { %v874_v34 = vmul.f32 %v871_v24, %v864_v28  ;;  %v877_v35 = vmul.f32 %v872_v29, %v864_v28  ;;  %v879_v36 = vmul.f32 %v869_v19, %v864_v28  ;;  %v882_v37 = vmul.f32 %v870_v20, %v864_v28  ;;  %v742_v23 = vld [vmem:[%s735_s20] ss:$0 sm:$0xff]  ;;  %s1672_s20 = smov 1  }
 0x1fa   : >>> { %v654_v40 = vsub.f32 %v652_v25, %v653_v32  ;;  %v657_v41 = vadd.f32 %v656_v26, %v655_v33  ;;  %v651_v50 = vsub.f32 %v649_v46, %v650_v39  ;;  %v660_v51 = vadd.f32 %v659_v48, %v658_v43 }
 0x1fb   : >>> { %v875_v44 = vsub.f32 %v873_v30, %v874_v34  ;;  %v878_v45 = vsub.f32 %v876_v31, %v877_v35  ;;  %v881_v47 = vadd.f32 %v880_v38, %v879_v36  ;;  %v884_v49 = vadd.f32 %v883_v42, %v882_v37 }
 0x1fc   : >>> { %662 = vst [vmem:[%s1857_s11] sm:$0xff] %v654_v40  ;;  %s1891_s11 = smov [#allocation13] }
 0x1fd   : >>> { %663 = vst [vmem:[%s1859_s21] sm:$0xff] %v657_v41  ;;  %s1903_s21 = smov [#allocation12] }
 0x1fe   : >>> { %885 = vst [vmem:[%s1862_s30] sm:$0xff] %v875_v44  ;;  %s889_s30 = smov %s1788_s30 }
 0x1ff   : >>> { %886 = vst [vmem:[%s1865_s15] sm:$0xff] %v878_v45  ;;  %s1897_s15 = smov %s1793_s15 }
 0x200   : >>> { %887 = vst [vmem:[%s1870_s23] sm:$0xff] %v881_v47  ;;  %s890_s23 = smov %s1801_s23 }
 0x201   : >>> { %888 = vst [vmem:[%s1875_s24] sm:$0xff] %v884_v49  ;;  %s1907_s24 = smov %s1805_s24 }
 0x202   : >>> { %661 = vst [vmem:[%s1855_s28] sm:$0xff] %v651_v50  ;;  %s672_s28 = smov [#allocation15] }
 0x203   : >>> { %664 = vst [vmem:[%s1867_s29] sm:$0xff] %v660_v51  ;;  %v674_v55 = vld [vmem:[%s1891_s11] sm:$0xff]  ;;  %s694_s29 = smov [#allocation19] }
 0x204   : >>> { %v675_v54 = vld [vmem:[%s1889_s14] sm:$0xff]  ;;  %v678_v4 = vmul.f32 %v674_v55, %v668_v53  ;;  %v681_v12 = vmul.f32 %v674_v55, %v666_v52 }
 0x205   : >>> { %v891_v56 = vld [vmem:[%s889_s30] ss:$0 sm:$0xff]  ;;  %v1551_v58 = vld [vmem:[%s889_s30 + $0x7] ss:$0 sm:$0xff]  ;;  %v686_v9 = vmul.f32 %v675_v54, %v668_v53  ;;  %v683_v10 = vmul.f32 %v675_v54, %v666_v52 }
 0x206   : >>> { %v1550_v57 = vld [vmem:[%s889_s30 - $0x1] sm:$0xfe]  ;;  %v1555_v62 = vld [vmem:[%s1897_s15 + $0x7] ss:$0 sm:$0xff] }
 0x207   : >>> { %v898_v59 = vsel %vm821_vm10, %v891_v56, %v1550_v57  ;;  %v915_v60 = vld [vmem:[%s1897_s15] ss:$0 sm:$0xff]  ;;  %v1553_v0 = vld [vmem:[%s890_s23 + $0x1] sm:$0x7f] }
 0x208   : >>> { %v1554_v61 = vld [vmem:[%s1897_s15 - $0x1] sm:$0xfe]  ;;  %901 = vst [vmem:[%s889_s30] sm:$0xff] %v898_v59  ;;  %v910_v2 = vsel %vm833_vm11, %v1551_v58, %v1553_v0 }
 0x209   : >>> { %v902_v63 = vld [vmem:[%s890_s23] ss:$0 sm:$0xff]  ;;  %v922_v1 = vsel %vm821_vm10, %v915_v60, %v1554_v61  ;;  %v1557_v3 = vld [vmem:[%s1907_s24 + $0x1] sm:$0x7f] }
 0x20a   : >>> { %1552 = vst [vmem:[%s889_s30 + $0x1] sm:$0x1] %v902_v63  ;;  %v926_v7 = vld [vmem:[%s1907_s24] ss:$0 sm:$0xff]  ;;  %v934_v8 = vsel %vm833_vm11, %v1555_v62, %v1557_v3 }
 0x20b   : >>> { %912 = vst [vmem:[%s890_s23] sm:$0xff] %v910_v2  ;;  %v673_v11 = vld [vmem:[%s1903_s21] sm:$0xff] }
 0x20c   : >>> { %925 = vst [vmem:[%s1897_s15] sm:$0xff] %v922_v1  ;;  %v676_v13 = vld [vmem:[%s672_s28] sm:$0xff]  ;;  %v677_v14 = vmul.f32 %v673_v11, %v666_v52  ;;  %v680_v15 = vmul.f32 %v673_v11, %v668_v53 }
 0x20d   : >>> { %1556 = vst [vmem:[%s1897_s15 + $0x1] sm:$0x1] %v926_v7  ;;  %v684_v16 = vmul.f32 %v676_v13, %v668_v53  ;;  %v687_v17 = vmul.f32 %v676_v13, %v666_v52  ;;  %v701_v22 = vld [vmem:[%s694_s29] ss:$0 sm:$0xff]  ;;  %s1941_s29 = smov [#allocation14] }
 0x20e   : >>> { %936 = vst [vmem:[%s1907_s24] sm:$0xff] %v934_v8  ;;  %v679_v18 = vsub.f32 %v677_v14, %v678_v4  ;;  %v682_v21 = vadd.f32 %v681_v12, %v680_v15 }
 0x20f   : >>> { %v688_v19 = vadd.f32 %v687_v17, %v686_v9  ;;  %v685_v20 = vsub.f32 %v683_v10, %v684_v16 }
 0x210   : >>> { %689 = vst [vmem:[%s1903_s21] sm:$0xff] %v679_v18  ;;  %s708_s21 = smov [#allocation13] }
 0x211   : >>> { %692 = vst [vmem:[%s672_s28] sm:$0xff] %v688_v19  ;;  %s1939_s28 = smov [#allocation15] }
 0x212   : >>> { %691 = vst [vmem:[%s1889_s14] sm:$0xff] %v685_v20  ;;  %s721_s14 = smov [#allocation14] }
 0x213   : >>> { %690 = vst [vmem:[%s1891_s11] sm:$0xff] %v682_v21  ;;  %s1937_s11 = smov [#allocation12] }
 0x217   : >>> { %v702_v24 = vld [vmem:[%s693_s27] sm:$0xff] }
 0x218   : >>> { %v743_v25 = vld [vmem:[%s734_s22] sm:$0xff]  ;;  %v706_v26 = vsel %vm705_vm12, %v701_v22, %v702_v24 }
 0x219   : >>> { %v747_v27 = vsel %vm746_vm13, %v742_v23, %v743_v25  ;;  %v728_v28 = vld [vmem:[%s721_s14] sm:$0xff]  ;;  %707 = vst [vmem:[%s693_s27] sm:$0xff] %v706_v26  ;;  %s750_s27 = smov [#allocation13] }
 0x21a   : >>> { %748 = vst [vmem:[%s734_s22] sm:$0xff] %v747_v27  ;;  %v732_v29 = vsel %vm731_vm14, 0.0, %v728_v28  ;;  %v715_v30 = vld [vmem:[%s708_s21] sm:$0xff]  ;;  %s1673_s22 = smov 127  }
 0x21b   : >>> { %733 = vst [vmem:[%s721_s14] sm:$0xff] %v732_v29  ;;  %v719_v31 = vsel %vm718_vm15, 0.0, %v715_v30  ;;  %s1949_s14 = smov [#allocation13] }
 0x21c   : >>> { %720 = vst [vmem:[%s708_s21] sm:$0xff] %v719_v31  ;;  %s814_s21 = smov [#allocation14] }
 0x220   : >>> { %v755_v32 = vld [vmem:[%s1937_s11] sm:$0xff] }
 0x221   : >>> { %v783_v33 = vld [vmem:[%s1939_s28] sm:$0xff]  ;;  %756 = vrot.lane.b32.xlu1 %v755_v32, %s1672_s20 }
 0x222   : >>> { %784 = vrot.lane.b32.xlu0 %v783_v33, %s1672_s20  ;;  %v787_v34 = vld [vmem:[%s1941_s29] sm:$0xff] }
 0x223   : >>> { %788 = vrot.lane.b32.xlu2 %v787_v34, %s1672_s20  ;;  %v772_v35 = vld [vmem:[%s750_s27] sm:$0xff] }
 0x229   : >>> { %752 = vrot.lane.b32.xlu1 %v772_v35, %s1672_s20  ;;  %s813_s20 = smov [#allocation12] }
 0x22b   : >>> { %773 = vrot.lane.b32.xlu2 %v772_v35, %s1673_s22 }
 0x231   : >>> { %805 = vrot.lane.b32.xlu1 %v783_v33, %s1673_s22  ;;  %s398_s22 = smov (%p454_p9), [#allocation14] }
 0x27d   : >>> { %v789_v36 = vpop.permute.xlu2 %788 }
 0x27e   : >>> { %v793_v44 = vsel %vm760_vm1, %v787_v34, %v789_v36 }
 0x285   : >>> { %v774_v37 = vpop.permute.xlu2 %773 }
 0x286   : >>> { %v778_v38 = vsel %vm777_vm0, %v755_v32, %v774_v37 }
 0x287   : >>> { %780 = vst [vmem:[%s750_s27] sm:$0xff] %v778_v38  ;;  %s381_s27 = smov (%p454_p9), [#allocation13] }
 0x28e   : >>> { %v839_v39 = vld [vmem:[%s1949_s14] ss:$0 sm:$0xff]  ;;  %v1547_v41 = vld [vmem:[%s1949_s14 + $0x7] ss:$0 sm:$0xff] }
 0x28f   : >>> { %v1546_v40 = vld [vmem:[%s1949_s14 - $0x1] sm:$0xfe] }
 0x290   : >>> { %v846_v42 = vsel %vm821_vm10, %v839_v39, %v1546_v40 }
 0x291   : >>> { %849 = vst [vmem:[%s1949_s14] sm:$0xff] %v846_v42 }
 0x293   : >>> { %v757_v43 = vpop.permute.xlu1 %756 }
 0x294   : >>> { %v785_v45 = vpop.permute.xlu0 %784  ;;  %v761_v48 = vsel %vm760_vm1, %v755_v32, %v757_v43 }
 0x295   : >>> { %v797_v46 = vsel %vm764_vm3, %v785_v45, %v793_v44 }
 0x296   : >>> { %v803_v47 = vsel %vm1411_vm2, %v797_v46, 0.0 }
 0x297   : >>> { %811 = vst [vmem:[%s1941_s29] sm:$0xff] %v803_v47  ;;  %s362_s29 = smov (%p454_p9), [#allocation12] }
 0x29b   : >>> { %v753_v49 = vpop.permute.xlu1 %752 }
 0x29c   : >>> { %v765_v50 = vsel %vm764_vm3, %v753_v49, %v761_v48 }
 0x29d   : >>> { %v771_v51 = vsel %vm1411_vm2, %v765_v50, 0.0 }
 0x29e   : >>> { %779 = vst [vmem:[%s1937_s11] sm:$0xff] %v771_v51  ;;  %v1545_v53 = vld [vmem:[%s814_s21 + $0x1] sm:$0x7f]  ;;  %v826_v60 = vld [vmem:[%s814_s21] ss:$0 sm:$0xff]  ;;  %s838_s11 = smov [#allocation15] }
 0x2a3   : >>> { %v806_v52 = vpop.permute.xlu1 %805 }
 0x2a4   : >>> { %v810_v54 = vsel %vm777_vm0, %v787_v34, %v806_v52 }
 0x2a5   : >>> { %v815_v55 = vld [vmem:[%s813_s20] ss:$0 sm:$0xff]  ;;  %v1543_v57 = vld [vmem:[%s813_s20 + $0x7] ss:$0 sm:$0xff]  ;;  %812 = vst [vmem:[%s1939_s28] sm:$0xff] %v810_v54  ;;  %s937_s28 = sadd.s32 (%p454_p9), 1, %s1665_s16  }
 0x2a6   : >>> { %v1542_v56 = vld [vmem:[%s813_s20 - $0x1] sm:$0xfe]  ;;  %v834_v59 = vsel %vm833_vm11, %v1543_v57, %v1545_v53  ;;  %p450_p10 = scmp.ge.s32.totalorder (%p454_p9), %s937_s28, 15  ;;  %s2066_s16 = smov (%p454_p9), %s937_s28 }
 0x2a7   : >>> { %v822_v58 = vsel %vm821_vm10, %v815_v55, %v1542_v56  ;;  %836 = vst [vmem:[%s814_s21] sm:$0xff] %v834_v59 }
 0x2a8   : >>> { %825 = vst [vmem:[%s813_s20] sm:$0xff] %v822_v58 }
 0x2a9   : >>> { %1544 = vst [vmem:[%s813_s20 + $0x1] sm:$0x1] %v826_v60 }
 0x2ac   : >>> { %v850_v61 = vld [vmem:[%s838_s11] ss:$0 sm:$0xff]  ;;  %v1549_v62 = vld [vmem:[%s838_s11 + $0x1] sm:$0x7f] }
 0x2ad   : >>> { %1548 = vst [vmem:[%s1949_s14 + $0x1] sm:$0x1] %v850_v61  ;;  %v858_v63 = vsel %vm833_vm11, %v1547_v41, %v1549_v62  ;;  %456 = sbr.rel (!%p454_p9) target bundleno = 248 (0xf8), region = 494  ;;  %s415_s14 = smov (%p454_p9), [#allocation15] }
 0x2ae   : >>> { %860 = vst [vmem:[%s838_s11] sm:$0xff] %v858_v63  ;;  %v404_v4 = vld [vmem:[%s398_s22] sm:$0xff] (%p454_p9) }
 0x2af   : >> { %v405_v10 = vsel (%p454_p9), %vm1411_vm2, %v404_v4, 0.0 }
 0x2b0   : >> { %v368_v0 = vld [vmem:[%s362_s29] sm:$0xff] (%p454_p9)  ;;  %v406_v12 = vmul.f32 (%p454_p9), %v405_v10, %v405_v10 }
 0x2b1   : >> { %v369_v2 = vsel (%p454_p9), %vm1411_vm2, %v368_v0, 0.0 }
 0x2b2   : >> { %v370_v8 = vmul.f32 %v369_v2, %v369_v2 }
 0x2b4   : >> { %v387_v1 = vld [vmem:[%s381_s27] sm:$0xff]  ;;  %v374_v15 = vsel %vm373_vm4, 0.0, %v370_v8 }
 0x2b5   : >> { %v388_v3 = vsel %vm1411_vm2, %v387_v1, 0.0  ;;  %v421_v7 = vld [vmem:[%s415_s14] sm:$0xff] }
 0x2b6   : >> { %v389_v9 = vmul.f32 %v388_v3, %v388_v3  ;;  %v422_v11 = vsel %vm1411_vm2, %v421_v7, 0.0 }
 0x2b7   : >> { %v423_v14 = vmul.f32 %v422_v11, %v422_v11 }
 0x2b8   : >> { %v391_v13 = vadd.f32 %v389_v9, %v370_v8  ;;  %v390_v17 = vadd.f32 %v389_v9, %v374_v15 }
 0x2b9   : >> { %v427_v20 = vsel %vm426_vm5, 0.0, %v423_v14 }
 0x2ba   : >> { %v408_v16 = vadd.f32 %v406_v12, %v391_v13  ;;  %v407_v19 = vadd.f32 %v406_v12, %v390_v17 }
 0x2bc   : >> { %v429_v18 = vadd.f32 %v423_v14, %v408_v16  ;;  %v428_v21 = vadd.f32 %v427_v20, %v407_v19 }
 0x2be   : >> { %430 = vadd.xlane.f32.xlu0 %v429_v18 }
 0x2c6   : >> { %438 = vadd.xlane.f32.xlu0 %v428_v21 }
 0x331   : >> { %v431_v22 = vpop.xlane.xlu0 %430 }
 0x332   : >> { %v432_v23 = vrot.slane %v431_v22, 4 }
 0x334   : >> { %v433_v24 = vadd.f32 %v432_v23, %v431_v22 }
 0x336   : >> { %v434_v25 = vrot.slane %v433_v24, 2 }
 0x338   : >> { %v435_v29 = vadd.f32 %v434_v25, %v433_v24 }
 0x339   : >> { %v439_v26 = vpop.xlane.xlu0 %438 }
 0x33a   : >> { %v440_v27 = vrot.slane %v439_v26, 4  ;;  %v436_v32 = vrot.slane %v435_v29, 1 }
 0x33c   : >> { %v441_v28 = vadd.f32 %v440_v27, %v439_v26  ;;  %v437_v35 = vadd.f32 %v436_v32, %v435_v29 }
 0x33e   : >> { %v442_v30 = vrot.slane %v441_v28, 2 }
 0x340   : >> { %v443_v31 = vadd.f32 %v442_v30, %v441_v28 }
 0x342   : >> { %v444_v33 = vrot.slane %v443_v31, 1 }
 0x344   : >> { %v445_v34 = vadd.f32 %v444_v33, %v443_v31 }
 0x346   : >> { %1576 = vpush %v445_v34 }
 0x347   : >> { %1578 = vpush %v437_v35 }
 0x377   : >> { %s1577_s17 = spop %1576 }
 0x378   : >> { %s1579_s21 = spop %1578 }
 0x379   : >> { %s448_s20 = smul.f32 1e-10, %s1579_s21 }
 0x37b   : >> { %p449_p11 = scmp.le.f32.partialorder %s1577_s17, %s448_s20 }
 0x37d   : >> { %p451_p12 = por %p450_p10, %p449_p11 }
 0x37f   : > { %939 = sbr.rel (!%p451_p12) target bundleno = 247 (0xf7), region = 505 }
 0x384 PF: > { %s944_s11 = smov [#allocation12]  ;;  %v948_v5 = vmov %v1781_v5  ;;  %v951_v6 = vmov %v1783_v6  ;;  %s964_s29 = smov [#allocation15] }
 0x385   : > { %v968_v5 = vmov %v1781_v5  ;;  %v971_v6 = vmov %v1783_v6  ;;  %v952_v36 = vld [vmem:[%s944_s11] sm:$0xff]  ;;  %vm955_vm6 = vcmp.eq.s32.totalorder %v951_v6, %v948_v5  ;;  %s940_s16 = sand.u32 7, %s1740_s12   ;;  %s1023_s22 = sshrl.u32 (%p1754_p3), %s1740_s12, 3 }
 0x386   : > { %vm975_vm7 = vcmp.eq.s32.totalorder %v971_v6, %v968_v5  ;;  %v956_v37 = vsel %vm955_vm6, %v952_v36, 0.0  ;;  %v972_v39 = vld [vmem:[%s964_s29] sm:$0xff]  ;;  %s941_s28 = scalar_lea.vmem [#allocation4], %s940_s16  ;;  %s943_s27 = scalar_lea.vmem [#allocation6], %s940_s16 }
 0x387   : > { %v957_v38 = vrot.slane %v956_v37, 4  ;;  %v976_v40 = vsel %vm975_vm7, %v972_v39, 0.0  ;;  %s945_s28 = smov %s941_s28  ;;  %s965_s27 = smov %s943_s27 }
 0x388   : > { %v977_v42 = vrot.slane %v976_v40, 4  ;;  %s1564_s14 = sshll.u32 (%p1754_p3), %s1023_s22, 2 }
 0x389   : > { %v958_v41 = vadd.f32 %v957_v38, %v956_v37  ;;  %s1025_s20 = scalar_lea.vmem (%p1754_p3), %s2058_s4, %s1564_s14 }
 0x38a   : > { %v978_v44 = vadd.f32 %v977_v42, %v976_v40 }
 0x38b   : > { %v959_v43 = vrot.slane %v958_v41, 2 }
 0x38c   : > { %v979_v46 = vrot.slane %v978_v44, 2 }
 0x38d   : > { %v960_v45 = vadd.f32 %v959_v43, %v958_v41 }
 0x38e   : > { %v980_v48 = vadd.f32 %v979_v46, %v978_v44 }
 0x38f   : > { %v961_v47 = vrot.slane %v960_v45, 1 }
 0x390   : > { %v981_v5 = vrot.slane %v980_v48, 1 }
 0x391   : > { %v962_v49 = vadd.f32 %v961_v47, %v960_v45 }
 0x392   : > { %v982_v6 = vadd.f32 %v981_v5, %v980_v48 }
 0x393   : > { %963 = vst [vmem:[%s945_s28] sm:$0x1] %v962_v49 }
 0x394   : > { %983 = vst [vmem:[%s965_s27] sm:$0x1] %v982_v6 }
 0x398   : > { %1022 = sbr.rel (!%p1754_p3) target bundleno = 932 (0x3a4), region = 174 }
 0x39a   : > { %v986_v50 = vld [vmem:[#allocation4] sm:$0xf] }
 0x39b   : > { %989 = vst [vmem:[%s287_s25] sm:$0xf] %v986_v50  ;;  %v992_v51 = vld [vmem:[#allocation6] sm:$0xf] }
 0x39c   : > { %995 = vst [vmem:[%s293_s26] sm:$0xf] %v992_v51 }
 0x3a2   : > { %v1042_v52 = vld [vmem:[%s287_s25] sm:$0xf] }
 0x3a3   : > { %1043 = vst [vmem:[%s1025_s20] sm:$0xf] %v1042_v52 }
 0x3a4 PF: > { %1061 = sbr.rel (!%p1754_p3) target bundleno = 940 (0x3ac), region = 208  ;;  %s1062_s11 = sshrl.u32 (%p1754_p3), %s1740_s12, 3 }
 0x3a5   : > { %s1565_s29 = sshll.u32 (%p1754_p3), %s1062_s11, 2 }
 0x3a6   : > { %s1064_s25 = scalar_lea.vmem (%p1754_p3), %s2059_s5, %s1565_s29 }
 0x3aa   : > { %v1081_v53 = vld [vmem:[%s293_s26] sm:$0xf] }
 0x3ab   : > { %1082 = vst [vmem:[%s1064_s25] sm:$0xf] %v1081_v53 }
 0x3ac PF: > { %s1566_s27 = sshll.u32 %s1740_s12, 3  ;;  %v1128_v54 = vld [vmem:[%s1788_s30] sm:$0xff]  ;;  %v1163_v55 = vld [vmem:[%s1793_s15] sm:$0xff] }
 0x3ad   : > { %s1099_s18 = scalar_lea.vmem %s2060_s6, %s1566_s27  ;;  %s1134_s17 = scalar_lea.vmem %s2061_s7, %s1566_s27  ;;  %v1198_v56 = vld [vmem:[%s1801_s23] sm:$0xff]  ;;  %v1233_v57 = vld [vmem:[%s1805_s24] sm:$0xff] }
 0x3ae   : > { %1129 = vst [vmem:[%s1099_s18] sm:$0xff] %v1128_v54  ;;  %s1169_s11 = scalar_lea.vmem %s2062_s8, %s1566_s27  ;;  %s1204_s12 = scalar_lea.vmem %s2063_s9, %s1566_s27 }
 0x3af   : > { %1164 = vst [vmem:[%s1134_s17] sm:$0xff] %v1163_v55 }
 0x3b0   : > { %1199 = vst [vmem:[%s1169_s11] sm:$0xff] %v1198_v56 }
 0x3b1   : > { %1234 = vst [vmem:[%s1204_s12] sm:$0xff] %v1233_v57 }
 0x3b2 PF: > { %s2067_s15 = sld [smem:[#allocation25_spill]]  ;;  %p13_p13 = scmp.ge.s32.totalorder %s1743_s13, 6  }
 0x3b3   : > { %s2068_s30 = smov %s1657_s10  ;;  %s2070_s11 = smov %s1743_s13 }
 0x3b4   :  { %15 = sbr.rel (!%p13_p13) target bundleno = 2 (0x2), region = 516 }
 0x3b8   : > { %s2069_s10 = smov %s2067_s15 }

// kernel: sop_forward.2
= control target key start
LH: loop header
LB: loop body
LE: loop exit
PB: predicated region body
PF: predicated region fallthrough
CT: control target
= control target key end

     0   :  { %vm12_vm0 = vcmask 64512   ;;  %v862_v0 = vmov -inf   ;;  %s1001_s12 = smov 0   ;;  %s1767_s0 = inlined_call_operand.vmem [shape: f32[16,16,8], index: 0, kind: input, shape index: {}]   ;;  %s1768_s1 = inlined_call_operand.vmem [shape: f32[256,8], index: 1, kind: output, shape index: {}]  }
   0x1   :  { %13 = vst.msk [vmem:[%s1768_s1] sm:$0xff] %vm12_vm0, %v862_v0 }
   0x2   :  { %14 = vst.msk [vmem:[%s1768_s1 + $0x8] sm:$0xff] %vm12_vm0, %v862_v0 }
   0x3   :  { %15 = vst.msk [vmem:[%s1768_s1 + $0x10] sm:$0xff] %vm12_vm0, %v862_v0 }
   0x4   :  { %16 = vst.msk [vmem:[%s1768_s1 + $0x18] sm:$0xff] %vm12_vm0, %v862_v0 }
   0x5   :  { %17 = vst.msk [vmem:[%s1768_s1 + $0x20] sm:$0xff] %vm12_vm0, %v862_v0 }
   0x6   :  { %18 = vst.msk [vmem:[%s1768_s1 + $0x28] sm:$0xff] %vm12_vm0, %v862_v0 }
   0x7   :  { %19 = vst.msk [vmem:[%s1768_s1 + $0x30] sm:$0xff] %vm12_vm0, %v862_v0 }
   0x8   :  { %20 = vst.msk [vmem:[%s1768_s1 + $0x38] sm:$0xff] %vm12_vm0, %v862_v0 }
   0x9   :  { %21 = vst.msk [vmem:[%s1768_s1 + $0x40] sm:$0xff] %vm12_vm0, %v862_v0 }
   0xa   :  { %22 = vst.msk [vmem:[%s1768_s1 + $0x48] sm:$0xff] %vm12_vm0, %v862_v0 }
   0xb   :  { %23 = vst.msk [vmem:[%s1768_s1 + $0x50] sm:$0xff] %vm12_vm0, %v862_v0 }
   0xc   :  { %24 = vst.msk [vmem:[%s1768_s1 + $0x58] sm:$0xff] %vm12_vm0, %v862_v0 }
   0xd   :  { %25 = vst.msk [vmem:[%s1768_s1 + $0x60] sm:$0xff] %vm12_vm0, %v862_v0 }
   0xe   :  { %26 = vst.msk [vmem:[%s1768_s1 + $0x68] sm:$0xff] %vm12_vm0, %v862_v0 }
   0xf   :  { %27 = vst.msk [vmem:[%s1768_s1 + $0x70] sm:$0xff] %vm12_vm0, %v862_v0 }
  0x10   :  { %28 = vst.msk [vmem:[%s1768_s1 + $0x78] sm:$0xff] %vm12_vm0, %v862_v0 }
  0x11   :  { %29 = vst.msk [vmem:[%s1768_s1 + $0x80] sm:$0xff] %vm12_vm0, %v862_v0 }
  0x12   :  { %30 = vst.msk [vmem:[%s1768_s1 + $0x88] sm:$0xff] %vm12_vm0, %v862_v0 }
  0x13   :  { %31 = vst.msk [vmem:[%s1768_s1 + $0x90] sm:$0xff] %vm12_vm0, %v862_v0 }
  0x14   :  { %32 = vst.msk [vmem:[%s1768_s1 + $0x98] sm:$0xff] %vm12_vm0, %v862_v0 }
  0x15   :  { %33 = vst.msk [vmem:[%s1768_s1 + $0xa0] sm:$0xff] %vm12_vm0, %v862_v0 }
  0x16   :  { %34 = vst.msk [vmem:[%s1768_s1 + $0xa8] sm:$0xff] %vm12_vm0, %v862_v0 }
  0x17   :  { %35 = vst.msk [vmem:[%s1768_s1 + $0xb0] sm:$0xff] %vm12_vm0, %v862_v0 }
  0x18   :  { %36 = vst.msk [vmem:[%s1768_s1 + $0xb8] sm:$0xff] %vm12_vm0, %v862_v0 }
  0x19   :  { %37 = vst.msk [vmem:[%s1768_s1 + $0xc0] sm:$0xff] %vm12_vm0, %v862_v0 }
  0x1a   :  { %38 = vst.msk [vmem:[%s1768_s1 + $0xc8] sm:$0xff] %vm12_vm0, %v862_v0 }
  0x1b   :  { %39 = vst.msk [vmem:[%s1768_s1 + $0xd0] sm:$0xff] %vm12_vm0, %v862_v0 }
  0x1c   :  { %40 = vst.msk [vmem:[%s1768_s1 + $0xd8] sm:$0xff] %vm12_vm0, %v862_v0 }
  0x1d   :  { %41 = vst.msk [vmem:[%s1768_s1 + $0xe0] sm:$0xff] %vm12_vm0, %v862_v0 }
  0x1e   :  { %42 = vst.msk [vmem:[%s1768_s1 + $0xe8] sm:$0xff] %vm12_vm0, %v862_v0 }
  0x1f   :  { %43 = vst.msk [vmem:[%s1768_s1 + $0xf0] sm:$0xff] %vm12_vm0, %v862_v0 }
  0x20   :  { %44 = vst.msk [vmem:[%s1768_s1 + $0xf8] sm:$0xff] %vm12_vm0, %v862_v0 }
  0x21 LB: > { %s836_s13 = sshll.u32 %s860_s12, 7  ;;  %v102_v48 = vld [vmem:[%s1768_s1] sm:$0xff]  ;;  %s50_s12 = sadd.s32 1, %s860_s12   ;;  %s860_s12 = sphi %s1001_s12, %s50_s12  }
  0x22   : > { %s1010_s16 = scalar_lea.vmem %s1767_s0, %s836_s13  ;;  %p47_p0 = scmp.ge.s32.totalorder %s50_s12, 2  }
  0x23   : > { %v1013_v1 = vld [vmem:[%s1010_s16] sm:$0xff]  ;;  %v1016_v2 = vld [vmem:[%s1010_s16 + $0x10] sm:$0xff] }
  0x24   : > { %v1019_v3 = vld [vmem:[%s1010_s16 + $0x20] sm:$0xff]  ;;  %v1022_v4 = vld [vmem:[%s1010_s16 + $0x30] sm:$0xff]  ;;  %v70_v7 = vperm.slane %v1013_v1, 0  ;;  %v71_v8 = vperm.slane %v1016_v2, 0  ;;  %v105_v15 = vperm.slane %v1013_v1, 1  ;;  %v106_v38 = vperm.slane %v1016_v2, 1 }
  0x25   : > { %v1025_v5 = vld [vmem:[%s1010_s16 + $0x40] sm:$0xff]  ;;  %v1028_v6 = vld [vmem:[%s1010_s16 + $0x50] sm:$0xff]  ;;  %v72_v9 = vperm.slane %v1019_v3, 0  ;;  %v73_v12 = vperm.slane %v1022_v4, 0  ;;  %v107_v39 = vperm.slane %v1019_v3, 1  ;;  %v108_v41 = vperm.slane %v1022_v4, 1 }
  0x26   : > { %v1034_v10 = vld [vmem:[%s1010_s16 + $0x60] sm:$0xff]  ;;  %v1037_v11 = vld [vmem:[%s1010_s16 + $0x70] sm:$0xff]  ;;  %v74_v13 = vperm.slane %v1025_v5, 0  ;;  %v75_v14 = vperm.slane %v1028_v6, 0  ;;  %v78_v18 = vmul.f32 %v70_v7, %v1013_v1  ;;  %v79_v19 = vmul.f32 %v71_v8, %v1016_v2 }
  0x27   : > { %v76_v16 = vperm.slane %v1034_v10, 0  ;;  %v77_v17 = vperm.slane %v1037_v11, 0  ;;  %v80_v20 = vmul.f32 %v72_v9, %v1019_v3  ;;  %v81_v21 = vmul.f32 %v73_v12, %v1022_v4 }
  0x28   : > { %v82_v22 = vmul.f32 %v74_v13, %v1025_v5  ;;  %v83_v23 = vmul.f32 %v75_v14, %v1028_v6  ;;  %v87_v26 = vsel %vm12_vm0, %v78_v18, -inf  ;;  %v88_v27 = vsel %vm12_vm0, %v79_v19, -inf }
  0x29   : > { %v84_v24 = vmul.f32 %v76_v16, %v1034_v10  ;;  %v85_v25 = vmul.f32 %v77_v17, %v1037_v11  ;;  %v89_v28 = vsel %vm12_vm0, %v80_v20, -inf  ;;  %v90_v29 = vsel %vm12_vm0, %v81_v21, -inf }
  0x2a   : > { %v91_v30 = vsel %vm12_vm0, %v82_v22, -inf  ;;  %v93_v31 = vsel %vm12_vm0, %v83_v23, -inf  ;;  %v109_v42 = vperm.slane %v1025_v5, 1  ;;  %v110_v43 = vperm.slane %v1028_v6, 1 }
  0x2b   : > { %v92_v32 = vmax.f32 %v87_v26, %v91_v30  ;;  %v94_v33 = vmax.f32 %v88_v27, %v93_v31  ;;  %v95_v34 = vsel %vm12_vm0, %v84_v24, -inf  ;;  %v97_v35 = vsel %vm12_vm0, %v85_v25, -inf  ;;  %v136_v25 = vld [vmem:[%s1768_s1 + $0x10] sm:$0xff] }
  0x2c   : > { %v96_v36 = vmax.f32 %v89_v28, %v95_v34  ;;  %v98_v37 = vmax.f32 %v90_v29, %v97_v35  ;;  %v111_v45 = vperm.slane %v1034_v10, 1  ;;  %v112_v46 = vperm.slane %v1037_v11, 1 }
  0x2d   : > { %v99_v40 = vmax.f32 %v92_v32, %v94_v33  ;;  %v113_v47 = vmul.f32 %v105_v15, %v1013_v1  ;;  %v114_v49 = vmul.f32 %v106_v38, %v1016_v2  ;;  %v115_v50 = vmul.f32 %v107_v39, %v1019_v3 }
  0x2e   : > { %v100_v44 = vmax.f32 %v96_v36, %v98_v37  ;;  %v116_v51 = vmul.f32 %v108_v41, %v1022_v4  ;;  %v117_v52 = vmul.f32 %v109_v42, %v1025_v5  ;;  %v118_v54 = vmul.f32 %v110_v43, %v1028_v6 }
  0x2f   : > { %v119_v55 = vmul.f32 %v111_v45, %v1034_v10  ;;  %v120_v56 = vmul.f32 %v112_v46, %v1037_v11  ;;  %v121_v57 = vsel %vm12_vm0, %v113_v47, -inf  ;;  %v122_v58 = vsel %vm12_vm0, %v114_v49, -inf }
  0x30   : > { %v101_v53 = vmax.f32 %v99_v40, %v100_v44  ;;  %v123_v59 = vsel %vm12_vm0, %v115_v50, -inf  ;;  %v124_v60 = vsel %vm12_vm0, %v116_v51, -inf  ;;  %v125_v62 = vsel %vm12_vm0, %v117_v52, -inf }
  0x31   : > { %v127_v63 = vsel %vm12_vm0, %v118_v54, -inf  ;;  %v129_v0 = vsel %vm12_vm0, %v119_v55, -inf  ;;  %v126_v7 = vmax.f32 %v121_v57, %v125_v62  ;;  %v131_v12 = vsel %vm12_vm0, %v120_v56, -inf }
  0x32   : > { %v103_v61 = vmax.f32 %v102_v48, %v101_v53  ;;  %v128_v8 = vmax.f32 %v122_v58, %v127_v63  ;;  %v130_v9 = vmax.f32 %v123_v59, %v129_v0  ;;  %v132_v13 = vmax.f32 %v124_v60, %v131_v12  ;;  %v170_v58 = vld [vmem:[%s1768_s1 + $0x20] sm:$0xff] }
  0x33   : > { %v139_v14 = vperm.slane %v1013_v1, 2  ;;  %v140_v15 = vperm.slane %v1016_v2, 2  ;;  %v141_v16 = vperm.slane %v1019_v3, 2  ;;  %v142_v18 = vperm.slane %v1022_v4, 2 }
  0x34   : > { %104 = vst.msk [vmem:[%s1768_s1] sm:$0xff] %vm12_vm0, %v103_v61  ;;  %v133_v17 = vmax.f32 %v126_v7, %v128_v8  ;;  %v143_v19 = vperm.slane %v1025_v5, 2  ;;  %v144_v20 = vperm.slane %v1028_v6, 2  ;;  %v134_v21 = vmax.f32 %v130_v9, %v132_v13 }
  0x35   : > { %v145_v22 = vperm.slane %v1034_v10, 2  ;;  %v146_v23 = vperm.slane %v1037_v11, 2  ;;  %v147_v24 = vmul.f32 %v139_v14, %v1013_v1  ;;  %v148_v26 = vmul.f32 %v140_v15, %v1016_v2 }
  0x36   : > { %v149_v27 = vmul.f32 %v141_v16, %v1019_v3  ;;  %v150_v28 = vmul.f32 %v142_v18, %v1022_v4  ;;  %v151_v29 = vmul.f32 %v143_v19, %v1025_v5  ;;  %v135_v30 = vmax.f32 %v133_v17, %v134_v21 }
  0x37   : > { %v152_v31 = vmul.f32 %v144_v20, %v1028_v6  ;;  %v153_v32 = vmul.f32 %v145_v22, %v1034_v10  ;;  %v154_v33 = vmul.f32 %v146_v23, %v1037_v11  ;;  %v155_v34 = vsel %vm12_vm0, %v147_v24, -inf }
  0x38   : > { %v156_v35 = vsel %vm12_vm0, %v148_v26, -inf  ;;  %v157_v36 = vsel %vm12_vm0, %v149_v27, -inf  ;;  %v158_v37 = vsel %vm12_vm0, %v150_v28, -inf  ;;  %v137_v38 = vmax.f32 %v136_v25, %v135_v30 }
  0x39   : > { %v159_v39 = vsel %vm12_vm0, %v151_v29, -inf  ;;  %v161_v40 = vsel %vm12_vm0, %v152_v31, -inf  ;;  %v163_v41 = vsel %vm12_vm0, %v153_v32, -inf  ;;  %v165_v45 = vsel %vm12_vm0, %v154_v33, -inf }
  0x3a   : > { %v160_v42 = vmax.f32 %v155_v34, %v159_v39  ;;  %v162_v43 = vmax.f32 %v156_v35, %v161_v40  ;;  %v164_v44 = vmax.f32 %v157_v36, %v163_v41  ;;  %138 = vst.msk [vmem:[%s1768_s1 + $0x10] sm:$0xff] %vm12_vm0, %v137_v38  ;;  %v166_v46 = vmax.f32 %v158_v37, %v165_v45  ;;  %v204_v35 = vld [vmem:[%s1768_s1 + $0x30] sm:$0xff] }
  0x3b   : > { %v173_v47 = vperm.slane %v1013_v1, 3  ;;  %v174_v48 = vperm.slane %v1016_v2, 3  ;;  %v175_v49 = vperm.slane %v1019_v3, 3  ;;  %v176_v51 = vperm.slane %v1022_v4, 3 }
  0x3c   : > { %v167_v50 = vmax.f32 %v160_v42, %v162_v43  ;;  %v177_v52 = vperm.slane %v1025_v5, 3  ;;  %v178_v53 = vperm.slane %v1028_v6, 3  ;;  %v168_v54 = vmax.f32 %v164_v44, %v166_v46 }
  0x3d   : > { %v179_v55 = vperm.slane %v1034_v10, 3  ;;  %v180_v56 = vperm.slane %v1037_v11, 3  ;;  %v181_v57 = vmul.f32 %v173_v47, %v1013_v1  ;;  %v182_v59 = vmul.f32 %v174_v48, %v1016_v2 }
  0x3e   : > { %v183_v60 = vmul.f32 %v175_v49, %v1019_v3  ;;  %v184_v61 = vmul.f32 %v176_v51, %v1022_v4  ;;  %v185_v62 = vmul.f32 %v177_v52, %v1025_v5  ;;  %v169_v63 = vmax.f32 %v167_v50, %v168_v54 }
  0x3f   : > { %v186_v0 = vmul.f32 %v178_v53, %v1028_v6  ;;  %v187_v7 = vmul.f32 %v179_v55, %v1034_v10  ;;  %v188_v8 = vmul.f32 %v180_v56, %v1037_v11  ;;  %v189_v9 = vsel %vm12_vm0, %v181_v57, -inf }
  0x40   : > { %v190_v12 = vsel %vm12_vm0, %v182_v59, -inf  ;;  %v191_v13 = vsel %vm12_vm0, %v183_v60, -inf  ;;  %v192_v14 = vsel %vm12_vm0, %v184_v61, -inf  ;;  %v171_v15 = vmax.f32 %v170_v58, %v169_v63 }
  0x41   : > { %v193_v16 = vsel %vm12_vm0, %v185_v62, -inf  ;;  %v195_v17 = vsel %vm12_vm0, %v186_v0, -inf  ;;  %v197_v18 = vsel %vm12_vm0, %v187_v7, -inf  ;;  %v199_v22 = vsel %vm12_vm0, %v188_v8, -inf }
  0x42   : > { %v194_v19 = vmax.f32 %v189_v9, %v193_v16  ;;  %v196_v20 = vmax.f32 %v190_v12, %v195_v17  ;;  %v198_v21 = vmax.f32 %v191_v13, %v197_v18  ;;  %172 = vst.msk [vmem:[%s1768_s1 + $0x20] sm:$0xff] %vm12_vm0, %v171_v15  ;;  %v200_v23 = vmax.f32 %v192_v14, %v199_v22  ;;  %v238_v12 = vld [vmem:[%s1768_s1 + $0x40] sm:$0xff] }
  0x43   : > { %v207_v24 = vperm.slane %v1013_v1, 4  ;;  %v208_v25 = vperm.slane %v1016_v2, 4  ;;  %v209_v26 = vperm.slane %v1019_v3, 4  ;;  %v210_v28 = vperm.slane %v1022_v4, 4 }
  0x44   : > { %v201_v27 = vmax.f32 %v194_v19, %v196_v20  ;;  %v211_v29 = vperm.slane %v1025_v5, 4  ;;  %v212_v30 = vperm.slane %v1028_v6, 4  ;;  %v202_v31 = vmax.f32 %v198_v21, %v200_v23 }
  0x45   : > { %v213_v32 = vperm.slane %v1034_v10, 4  ;;  %v214_v33 = vperm.slane %v1037_v11, 4  ;;  %v215_v34 = vmul.f32 %v207_v24, %v1013_v1  ;;  %v216_v36 = vmul.f32 %v208_v25, %v1016_v2 }
  0x46   : > { %v217_v37 = vmul.f32 %v209_v26, %v1019_v3  ;;  %v218_v38 = vmul.f32 %v210_v28, %v1022_v4  ;;  %v219_v39 = vmul.f32 %v211_v29, %v1025_v5  ;;  %v203_v40 = vmax.f32 %v201_v27, %v202_v31 }
  0x47   : > { %v220_v41 = vmul.f32 %v212_v30, %v1028_v6  ;;  %v221_v42 = vmul.f32 %v213_v32, %v1034_v10  ;;  %v222_v43 = vmul.f32 %v214_v33, %v1037_v11  ;;  %v223_v44 = vsel %vm12_vm0, %v215_v34, -inf }
  0x48   : > { %v224_v45 = vsel %vm12_vm0, %v216_v36, -inf  ;;  %v225_v46 = vsel %vm12_vm0, %v217_v37, -inf  ;;  %v226_v47 = vsel %vm12_vm0, %v218_v38, -inf  ;;  %v205_v48 = vmax.f32 %v204_v35, %v203_v40 }
  0x49   : > { %v227_v49 = vsel %vm12_vm0, %v219_v39, -inf  ;;  %v229_v50 = vsel %vm12_vm0, %v220_v41, -inf  ;;  %v231_v51 = vsel %vm12_vm0, %v221_v42, -inf  ;;  %v233_v55 = vsel %vm12_vm0, %v222_v43, -inf }
  0x4a   : > { %v228_v52 = vmax.f32 %v223_v44, %v227_v49  ;;  %v230_v53 = vmax.f32 %v224_v45, %v229_v50  ;;  %v232_v54 = vmax.f32 %v225_v46, %v231_v51  ;;  %206 = vst.msk [vmem:[%s1768_s1 + $0x30] sm:$0xff] %vm12_vm0, %v205_v48  ;;  %v234_v56 = vmax.f32 %v226_v47, %v233_v55  ;;  %v272_v45 = vld [vmem:[%s1768_s1 + $0x50] sm:$0xff] }
  0x4b   : > { %v241_v57 = vperm.slane %v1013_v1, 5  ;;  %v242_v58 = vperm.slane %v1016_v2, 5  ;;  %v243_v59 = vperm.slane %v1019_v3, 5  ;;  %v244_v61 = vperm.slane %v1022_v4, 5 }
  0x4c   : > { %v235_v60 = vmax.f32 %v228_v52, %v230_v53  ;;  %v245_v62 = vperm.slane %v1025_v5, 5  ;;  %v246_v63 = vperm.slane %v1028_v6, 5  ;;  %v236_v0 = vmax.f32 %v232_v54, %v234_v56 }
  0x4d   : > { %v247_v7 = vperm.slane %v1034_v10, 5  ;;  %v248_v8 = vperm.slane %v1037_v11, 5  ;;  %v249_v9 = vmul.f32 %v241_v57, %v1013_v1  ;;  %v250_v13 = vmul.f32 %v242_v58, %v1016_v2 }
  0x4e   : > { %v251_v14 = vmul.f32 %v243_v59, %v1019_v3  ;;  %v252_v15 = vmul.f32 %v244_v61, %v1022_v4  ;;  %v253_v16 = vmul.f32 %v245_v62, %v1025_v5  ;;  %v237_v17 = vmax.f32 %v235_v60, %v236_v0 }
  0x4f   : > { %v254_v18 = vmul.f32 %v246_v63, %v1028_v6  ;;  %v255_v19 = vmul.f32 %v247_v7, %v1034_v10  ;;  %v256_v20 = vmul.f32 %v248_v8, %v1037_v11  ;;  %v257_v21 = vsel %vm12_vm0, %v249_v9, -inf }
  0x50   : > { %v258_v22 = vsel %vm12_vm0, %v250_v13, -inf  ;;  %v259_v23 = vsel %vm12_vm0, %v251_v14, -inf  ;;  %v260_v24 = vsel %vm12_vm0, %v252_v15, -inf  ;;  %v239_v25 = vmax.f32 %v238_v12, %v237_v17 }
  0x51   : > { %v261_v26 = vsel %vm12_vm0, %v253_v16, -inf  ;;  %v263_v27 = vsel %vm12_vm0, %v254_v18, -inf  ;;  %v265_v28 = vsel %vm12_vm0, %v255_v19, -inf  ;;  %v267_v32 = vsel %vm12_vm0, %v256_v20, -inf }
  0x52   : > { %v262_v29 = vmax.f32 %v257_v21, %v261_v26  ;;  %v264_v30 = vmax.f32 %v258_v22, %v263_v27  ;;  %v266_v31 = vmax.f32 %v259_v23, %v265_v28  ;;  %240 = vst.msk [vmem:[%s1768_s1 + $0x40] sm:$0xff] %vm12_vm0, %v239_v25  ;;  %v268_v33 = vmax.f32 %v260_v24, %v267_v32  ;;  %v306_v22 = vld [vmem:[%s1768_s1 + $0x60] sm:$0xff] }
  0x53   : > { %v275_v34 = vperm.slane %v1013_v1, 6  ;;  %v276_v35 = vperm.slane %v1016_v2, 6  ;;  %v277_v36 = vperm.slane %v1019_v3, 6  ;;  %v278_v38 = vperm.slane %v1022_v4, 6 }
  0x54   : > { %v269_v37 = vmax.f32 %v262_v29, %v264_v30  ;;  %v279_v39 = vperm.slane %v1025_v5, 6  ;;  %v280_v40 = vperm.slane %v1028_v6, 6  ;;  %v270_v41 = vmax.f32 %v266_v31, %v268_v33  ;;  %v1266_v31 = vld [vmem:[%s1010_s16 + $0x8] sm:$0xff] }
  0x55   : > { %v281_v42 = vperm.slane %v1034_v10, 6  ;;  %v282_v43 = vperm.slane %v1037_v11, 6  ;;  %v283_v44 = vmul.f32 %v275_v34, %v1013_v1  ;;  %v284_v46 = vmul.f32 %v276_v35, %v1016_v2 }
  0x56   : > { %v285_v47 = vmul.f32 %v277_v36, %v1019_v3  ;;  %v286_v48 = vmul.f32 %v278_v38, %v1022_v4  ;;  %v287_v49 = vmul.f32 %v279_v39, %v1025_v5  ;;  %v271_v50 = vmax.f32 %v269_v37, %v270_v41  ;;  %v1273_v36 = vld [vmem:[%s1010_s16 + $0x18] sm:$0xff]  ;;  %v1276_v37 = vld [vmem:[%s1010_s16 + $0x28] sm:$0xff] }
  0x57   : > { %v288_v51 = vmul.f32 %v280_v40, %v1028_v6  ;;  %v289_v52 = vmul.f32 %v281_v42, %v1034_v10  ;;  %v290_v53 = vmul.f32 %v282_v43, %v1037_v11  ;;  %v291_v54 = vsel %vm12_vm0, %v283_v44, -inf  ;;  %v1282_v42 = vld [vmem:[%s1010_s16 + $0x38] sm:$0xff]  ;;  %v1285_v43 = vld [vmem:[%s1010_s16 + $0x48] sm:$0xff] }
  0x58   : > { %v292_v55 = vsel %vm12_vm0, %v284_v46, -inf  ;;  %v293_v56 = vsel %vm12_vm0, %v285_v47, -inf  ;;  %v294_v57 = vsel %vm12_vm0, %v286_v48, -inf  ;;  %v273_v58 = vmax.f32 %v272_v45, %v271_v50  ;;  %v1288_v44 = vld [vmem:[%s1010_s16 + $0x58] sm:$0xff] }
  0x59   : > { %v295_v59 = vsel %vm12_vm0, %v287_v49, -inf  ;;  %v297_v60 = vsel %vm12_vm0, %v288_v51, -inf  ;;  %v299_v61 = vsel %vm12_vm0, %v289_v52, -inf  ;;  %v301_v7 = vsel %vm12_vm0, %v290_v53, -inf  ;;  %v1292_v49 = vld [vmem:[%s1010_s16 + $0x68] sm:$0xff]  ;;  %v1295_v50 = vld [vmem:[%s1010_s16 + $0x78] sm:$0xff] }
  0x5a   : > { %v296_v62 = vmax.f32 %v291_v54, %v295_v59  ;;  %v298_v63 = vmax.f32 %v292_v55, %v297_v60  ;;  %v300_v0 = vmax.f32 %v293_v56, %v299_v61  ;;  %274 = vst.msk [vmem:[%s1768_s1 + $0x50] sm:$0xff] %vm12_vm0, %v273_v58  ;;  %v302_v8 = vmax.f32 %v294_v57, %v301_v7 }
  0x5b   : > { %v309_v9 = vperm.slane %v1013_v1, 7  ;;  %v310_v12 = vperm.slane %v1016_v2, 7  ;;  %v311_v13 = vperm.slane %v1019_v3, 7  ;;  %v312_v15 = vperm.slane %v1022_v4, 7 }
  0x5c   : > { %v303_v14 = vmax.f32 %v296_v62, %v298_v63  ;;  %v313_v16 = vperm.slane %v1025_v5, 7  ;;  %v314_v17 = vperm.slane %v1028_v6, 7  ;;  %v304_v18 = vmax.f32 %v300_v0, %v302_v8  ;;  %v340_v63 = vld [vmem:[%s1768_s1 + $0x70] sm:$0xff] }
  0x5d   : > { %v315_v19 = vperm.slane %v1034_v10, 7  ;;  %v316_v20 = vperm.slane %v1037_v11, 7  ;;  %v317_v21 = vmul.f32 %v309_v9, %v1013_v1  ;;  %v318_v23 = vmul.f32 %v310_v12, %v1016_v2 }
  0x5e   : > { %v319_v24 = vmul.f32 %v311_v13, %v1019_v3  ;;  %v320_v25 = vmul.f32 %v312_v15, %v1022_v4  ;;  %v321_v26 = vmul.f32 %v313_v16, %v1025_v5  ;;  %v305_v27 = vmax.f32 %v303_v14, %v304_v18 }
  0x5f   : > { %v322_v28 = vmul.f32 %v314_v17, %v1028_v6  ;;  %v323_v29 = vmul.f32 %v315_v19, %v1034_v10  ;;  %v324_v30 = vmul.f32 %v316_v20, %v1037_v11  ;;  %v325_v32 = vsel %vm12_vm0, %v317_v21, -inf }
  0x60   : > { %v326_v33 = vsel %vm12_vm0, %v318_v23, -inf  ;;  %v327_v34 = vsel %vm12_vm0, %v319_v24, -inf  ;;  %v328_v35 = vsel %vm12_vm0, %v320_v25, -inf  ;;  %v307_v38 = vmax.f32 %v306_v22, %v305_v27 }
  0x61   : > { %v329_v39 = vsel %vm12_vm0, %v321_v26, -inf  ;;  %v331_v40 = vsel %vm12_vm0, %v322_v28, -inf  ;;  %v333_v41 = vsel %vm12_vm0, %v323_v29, -inf  ;;  %v335_v48 = vsel %vm12_vm0, %v324_v30, -inf }
  0x62   : > { %v330_v45 = vmax.f32 %v325_v32, %v329_v39  ;;  %v332_v46 = vmax.f32 %v326_v33, %v331_v40  ;;  %v334_v47 = vmax.f32 %v327_v34, %v333_v41  ;;  %308 = vst.msk [vmem:[%s1768_s1 + $0x60] sm:$0xff] %vm12_vm0, %v307_v38  ;;  %v336_v51 = vmax.f32 %v328_v35, %v335_v48 }
  0x63   : > { %v343_v52 = vperm.slane %v1266_v31, 0  ;;  %v344_v53 = vperm.slane %v1273_v36, 0  ;;  %v345_v54 = vperm.slane %v1276_v37, 0  ;;  %v346_v56 = vperm.slane %v1282_v42, 0 }
  0x64   : > { %v337_v55 = vmax.f32 %v330_v45, %v332_v46  ;;  %v347_v57 = vperm.slane %v1285_v43, 0  ;;  %v348_v58 = vperm.slane %v1288_v44, 0  ;;  %v338_v59 = vmax.f32 %v334_v47, %v336_v51  ;;  %v397_v46 = vld [vmem:[%s1768_s1 + $0x80] sm:$0xff] }
  0x65   : > { %v349_v60 = vperm.slane %v1292_v49, 0  ;;  %v350_v61 = vperm.slane %v1295_v50, 0  ;;  %v351_v62 = vmul.f32 %v343_v52, %v1013_v1  ;;  %v353_v0 = vmul.f32 %v344_v53, %v1016_v2 }
  0x66   : > { %v355_v7 = vmul.f32 %v345_v54, %v1019_v3  ;;  %v357_v8 = vmul.f32 %v346_v56, %v1022_v4  ;;  %v359_v9 = vmul.f32 %v347_v57, %v1025_v5  ;;  %v339_v12 = vmax.f32 %v337_v55, %v338_v59 }
  0x67   : > { %v361_v13 = vmul.f32 %v348_v58, %v1028_v6  ;;  %v363_v14 = vmul.f32 %v349_v60, %v1034_v10  ;;  %v365_v15 = vmul.f32 %v350_v61, %v1037_v11  ;;  %v367_v16 = vsel %vm12_vm0, %v351_v62, -inf }
  0x68   : > { %v368_v17 = vsel %vm12_vm0, %v353_v0, -inf  ;;  %v369_v18 = vsel %vm12_vm0, %v355_v7, -inf  ;;  %v371_v19 = vsel %vm12_vm0, %v357_v8, -inf  ;;  %v341_v20 = vmax.f32 %v340_v63, %v339_v12 }
  0x69   : > { %v370_v21 = vmax.f32 %v367_v16, %v369_v18  ;;  %v372_v22 = vmax.f32 %v368_v17, %v371_v19  ;;  %v373_v23 = vsel %vm12_vm0, %v359_v9, -inf  ;;  %v375_v24 = vsel %vm12_vm0, %v361_v13, -inf  ;;  %v398_v17 = vld [vmem:[%s1768_s1 + $0x88] sm:$0xff] }
  0x6a   : > { %v377_v25 = vsel %vm12_vm0, %v363_v14, -inf  ;;  %v379_v26 = vsel %vm12_vm0, %v365_v15, -inf  ;;  %v352_v27 = vmul.f32 %v343_v52, %v1266_v31  ;;  %342 = vst.msk [vmem:[%s1768_s1 + $0x70] sm:$0xff] %vm12_vm0, %v341_v20  ;;  %v354_v30 = vmul.f32 %v344_v53, %v1273_v36 }
  0x6b   : > { %v374_v28 = vmax.f32 %v370_v21, %v373_v23  ;;  %v376_v29 = vmax.f32 %v372_v22, %v375_v24  ;;  %v356_v32 = vmul.f32 %v345_v54, %v1276_v37  ;;  %v358_v33 = vmul.f32 %v346_v56, %v1282_v42 }
  0x6c   : > { %v360_v34 = vmul.f32 %v347_v57, %v1285_v43  ;;  %v362_v35 = vmul.f32 %v348_v58, %v1288_v44  ;;  %v364_v38 = vmul.f32 %v349_v60, %v1292_v49  ;;  %v366_v41 = vmul.f32 %v350_v61, %v1295_v50 }
  0x6d   : > { %v378_v39 = vmax.f32 %v374_v28, %v377_v25  ;;  %v380_v40 = vmax.f32 %v376_v29, %v379_v26  ;;  %v382_v45 = vsel %vm12_vm0, %v352_v27, -inf  ;;  %v383_v47 = vsel %vm12_vm0, %v354_v30, -inf }
  0x6e   : > { %v384_v48 = vsel %vm12_vm0, %v356_v32, -inf  ;;  %v386_v51 = vsel %vm12_vm0, %v358_v33, -inf  ;;  %v388_v52 = vsel %vm12_vm0, %v360_v34, -inf  ;;  %v390_v56 = vsel %vm12_vm0, %v362_v35, -inf }
  0x6f   : > { %v381_v53 = vmax.f32 %v378_v39, %v380_v40  ;;  %v385_v54 = vmax.f32 %v382_v45, %v384_v48  ;;  %v387_v55 = vmax.f32 %v383_v47, %v386_v51  ;;  %v392_v57 = vsel %vm12_vm0, %v364_v38, -inf }
  0x70   : > { %v394_v58 = vsel %vm12_vm0, %v366_v41, -inf  ;;  %v403_v59 = vperm.slane %v1266_v31, 1  ;;  %v404_v60 = vperm.slane %v1273_v36, 1  ;;  %v405_v0 = vperm.slane %v1276_v37, 1 }
  0x71   : > { %v399_v61 = vmax.f32 %v397_v46, %v381_v53  ;;  %v389_v62 = vmax.f32 %v385_v54, %v388_v52  ;;  %v391_v63 = vmax.f32 %v387_v55, %v390_v56  ;;  %v406_v7 = vperm.slane %v1282_v42, 1 }
  0x72   : > { %v407_v8 = vperm.slane %v1285_v43, 1  ;;  %v408_v9 = vperm.slane %v1288_v44, 1  ;;  %v409_v12 = vperm.slane %v1292_v49, 1  ;;  %v410_v15 = vperm.slane %v1295_v50, 1 }
  0x73   : > { %401 = vst.msk [vmem:[%s1768_s1 + $0x80] sm:$0xff] %vm12_vm0, %v399_v61  ;;  %v393_v13 = vmax.f32 %v389_v62, %v392_v57  ;;  %v395_v14 = vmax.f32 %v391_v63, %v394_v58  ;;  %v411_v16 = vmul.f32 %v403_v59, %v1013_v1  ;;  %v413_v18 = vmul.f32 %v404_v60, %v1016_v2  ;;  %v457_v58 = vld [vmem:[%s1768_s1 + $0x90] sm:$0xff] }
  0x74   : > { %v415_v19 = vmul.f32 %v405_v0, %v1019_v3  ;;  %v417_v20 = vmul.f32 %v406_v7, %v1022_v4  ;;  %v419_v21 = vmul.f32 %v407_v8, %v1025_v5  ;;  %v421_v23 = vmul.f32 %v408_v9, %v1028_v6 }
  0x75   : > { %v396_v22 = vmax.f32 %v393_v13, %v395_v14  ;;  %v423_v24 = vmul.f32 %v409_v12, %v1034_v10  ;;  %v425_v25 = vmul.f32 %v410_v15, %v1037_v11  ;;  %v427_v26 = vsel %vm12_vm0, %v411_v16, -inf }
  0x76   : > { %v428_v27 = vsel %vm12_vm0, %v413_v18, -inf  ;;  %v429_v28 = vsel %vm12_vm0, %v415_v19, -inf  ;;  %v431_v29 = vsel %vm12_vm0, %v417_v20, -inf  ;;  %v433_v34 = vsel %vm12_vm0, %v419_v21, -inf }
  0x77   : > { %v400_v30 = vmax.f32 %v398_v17, %v396_v22  ;;  %v430_v32 = vmax.f32 %v427_v26, %v429_v28  ;;  %v432_v33 = vmax.f32 %v428_v27, %v431_v29  ;;  %v435_v35 = vsel %vm12_vm0, %v421_v23, -inf  ;;  %v458_v27 = vld [vmem:[%s1768_s1 + $0x98] sm:$0xff] }
  0x78   : > { %v437_v38 = vsel %vm12_vm0, %v423_v24, -inf  ;;  %v439_v39 = vsel %vm12_vm0, %v425_v25, -inf  ;;  %v412_v40 = vmul.f32 %v403_v59, %v1266_v31  ;;  %v414_v46 = vmul.f32 %v404_v60, %v1273_v36 }
  0x79   : > { %402 = vst.msk [vmem:[%s1768_s1 + $0x88] sm:$0xff] %vm12_vm0, %v400_v30  ;;  %v434_v41 = vmax.f32 %v430_v32, %v433_v34  ;;  %v436_v45 = vmax.f32 %v432_v33, %v435_v35  ;;  %v416_v47 = vmul.f32 %v405_v0, %v1276_v37  ;;  %v418_v48 = vmul.f32 %v406_v7, %v1282_v42 }
  0x7a   : > { %v420_v51 = vmul.f32 %v407_v8, %v1285_v43  ;;  %v422_v52 = vmul.f32 %v408_v9, %v1288_v44  ;;  %v424_v53 = vmul.f32 %v409_v12, %v1292_v49  ;;  %v426_v56 = vmul.f32 %v410_v15, %v1295_v50 }
  0x7b   : > { %v438_v54 = vmax.f32 %v434_v41, %v437_v38  ;;  %v440_v55 = vmax.f32 %v436_v45, %v439_v39  ;;  %v442_v57 = vsel %vm12_vm0, %v412_v40, -inf  ;;  %v443_v59 = vsel %vm12_vm0, %v414_v46, -inf }
  0x7c   : > { %v444_v60 = vsel %vm12_vm0, %v416_v47, -inf  ;;  %v446_v61 = vsel %vm12_vm0, %v418_v48, -inf  ;;  %v448_v62 = vsel %vm12_vm0, %v420_v51, -inf  ;;  %v450_v8 = vsel %vm12_vm0, %v422_v52, -inf }
  0x7d   : > { %v441_v63 = vmax.f32 %v438_v54, %v440_v55  ;;  %v445_v0 = vmax.f32 %v442_v57, %v444_v60  ;;  %v447_v7 = vmax.f32 %v443_v59, %v446_v61  ;;  %v452_v9 = vsel %vm12_vm0, %v424_v53, -inf }
  0x7e   : > { %v454_v12 = vsel %vm12_vm0, %v426_v56, -inf  ;;  %v463_v13 = vperm.slane %v1266_v31, 2  ;;  %v464_v14 = vperm.slane %v1273_v36, 2  ;;  %v465_v18 = vperm.slane %v1276_v37, 2 }
  0x7f   : > { %v459_v15 = vmax.f32 %v457_v58, %v441_v63  ;;  %v449_v16 = vmax.f32 %v445_v0, %v448_v62  ;;  %v451_v17 = vmax.f32 %v447_v7, %v450_v8  ;;  %v466_v19 = vperm.slane %v1282_v42, 2 }
  0x80   : > { %v467_v20 = vperm.slane %v1285_v43, 2  ;;  %v468_v21 = vperm.slane %v1288_v44, 2  ;;  %v469_v22 = vperm.slane %v1292_v49, 2  ;;  %v470_v25 = vperm.slane %v1295_v50, 2 }
  0x81   : > { %461 = vst.msk [vmem:[%s1768_s1 + $0x90] sm:$0xff] %vm12_vm0, %v459_v15  ;;  %v453_v23 = vmax.f32 %v449_v16, %v452_v9  ;;  %v455_v24 = vmax.f32 %v451_v17, %v454_v12  ;;  %v471_v26 = vmul.f32 %v463_v13, %v1013_v1  ;;  %v473_v28 = vmul.f32 %v464_v14, %v1016_v2  ;;  %v517_v12 = vld [vmem:[%s1768_s1 + $0xa0] sm:$0xff] }
  0x82   : > { %v475_v29 = vmul.f32 %v465_v18, %v1019_v3  ;;  %v477_v30 = vmul.f32 %v466_v19, %v1022_v4  ;;  %v479_v32 = vmul.f32 %v467_v20, %v1025_v5  ;;  %v481_v34 = vmul.f32 %v468_v21, %v1028_v6 }
  0x83   : > { %v456_v33 = vmax.f32 %v453_v23, %v455_v24  ;;  %v483_v35 = vmul.f32 %v469_v22, %v1034_v10  ;;  %v485_v38 = vmul.f32 %v470_v25, %v1037_v11  ;;  %v487_v39 = vsel %vm12_vm0, %v471_v26, -inf }
  0x84   : > { %v488_v40 = vsel %vm12_vm0, %v473_v28, -inf  ;;  %v489_v41 = vsel %vm12_vm0, %v475_v29, -inf  ;;  %v491_v45 = vsel %vm12_vm0, %v477_v30, -inf  ;;  %v493_v51 = vsel %vm12_vm0, %v479_v32, -inf }
  0x85   : > { %v460_v46 = vmax.f32 %v458_v27, %v456_v33  ;;  %v490_v47 = vmax.f32 %v487_v39, %v489_v41  ;;  %v492_v48 = vmax.f32 %v488_v40, %v491_v45  ;;  %v495_v52 = vsel %vm12_vm0, %v481_v34, -inf  ;;  %v518_v40 = vld [vmem:[%s1768_s1 + $0xa8] sm:$0xff] }
  0x86   : > { %v497_v53 = vsel %vm12_vm0, %v483_v35, -inf  ;;  %v499_v54 = vsel %vm12_vm0, %v485_v38, -inf  ;;  %v472_v55 = vmul.f32 %v463_v13, %v1266_v31  ;;  %v474_v58 = vmul.f32 %v464_v14, %v1273_v36 }
  0x87   : > { %462 = vst.msk [vmem:[%s1768_s1 + $0x98] sm:$0xff] %vm12_vm0, %v460_v46  ;;  %v494_v56 = vmax.f32 %v490_v47, %v493_v51  ;;  %v496_v57 = vmax.f32 %v492_v48, %v495_v52  ;;  %v476_v59 = vmul.f32 %v465_v18, %v1276_v37  ;;  %v478_v60 = vmul.f32 %v466_v19, %v1282_v42 }
  0x88   : > { %v480_v61 = vmul.f32 %v467_v20, %v1285_v43  ;;  %v482_v62 = vmul.f32 %v468_v21, %v1288_v44  ;;  %v484_v63 = vmul.f32 %v469_v22, %v1292_v49  ;;  %v486_v8 = vmul.f32 %v470_v25, %v1295_v50 }
  0x89   : > { %v498_v0 = vmax.f32 %v494_v56, %v497_v53  ;;  %v500_v7 = vmax.f32 %v496_v57, %v499_v54  ;;  %v502_v9 = vsel %vm12_vm0, %v472_v55, -inf  ;;  %v503_v13 = vsel %vm12_vm0, %v474_v58, -inf }
  0x8a   : > { %v504_v14 = vsel %vm12_vm0, %v476_v59, -inf  ;;  %v506_v15 = vsel %vm12_vm0, %v478_v60, -inf  ;;  %v508_v16 = vsel %vm12_vm0, %v480_v61, -inf  ;;  %v510_v20 = vsel %vm12_vm0, %v482_v62, -inf }
  0x8b   : > { %v501_v17 = vmax.f32 %v498_v0, %v500_v7  ;;  %v505_v18 = vmax.f32 %v502_v9, %v504_v14  ;;  %v507_v19 = vmax.f32 %v503_v13, %v506_v15  ;;  %v512_v21 = vsel %vm12_vm0, %v484_v63, -inf  ;;  %v577_v14 = vld [vmem:[%s1768_s1 + $0xb0] sm:$0xff] }
  0x8c   : > { %v514_v22 = vsel %vm12_vm0, %v486_v8, -inf  ;;  %v523_v23 = vperm.slane %v1266_v31, 3  ;;  %v524_v24 = vperm.slane %v1273_v36, 3  ;;  %v525_v28 = vperm.slane %v1276_v37, 3 }
  0x8d   : > { %v519_v25 = vmax.f32 %v517_v12, %v501_v17  ;;  %v509_v26 = vmax.f32 %v505_v18, %v508_v16  ;;  %v511_v27 = vmax.f32 %v507_v19, %v510_v20  ;;  %v526_v29 = vperm.slane %v1282_v42, 3 }
  0x8e   : > { %v527_v30 = vperm.slane %v1285_v43, 3  ;;  %v528_v32 = vperm.slane %v1288_v44, 3  ;;  %v529_v33 = vperm.slane %v1292_v49, 3  ;;  %v530_v38 = vperm.slane %v1295_v50, 3 }
  0x8f   : > { %521 = vst.msk [vmem:[%s1768_s1 + $0xa0] sm:$0xff] %vm12_vm0, %v519_v25  ;;  %v513_v34 = vmax.f32 %v509_v26, %v512_v21  ;;  %v515_v35 = vmax.f32 %v511_v27, %v514_v22  ;;  %v531_v39 = vmul.f32 %v523_v23, %v1013_v1  ;;  %v533_v41 = vmul.f32 %v524_v24, %v1016_v2 }
  0x90   : > { %v535_v45 = vmul.f32 %v525_v28, %v1019_v3  ;;  %v537_v46 = vmul.f32 %v526_v29, %v1022_v4  ;;  %v539_v47 = vmul.f32 %v527_v30, %v1025_v5  ;;  %v541_v51 = vmul.f32 %v528_v32, %v1028_v6 }
  0x91   : > { %v516_v48 = vmax.f32 %v513_v34, %v515_v35  ;;  %v543_v52 = vmul.f32 %v529_v33, %v1034_v10  ;;  %v545_v53 = vmul.f32 %v530_v38, %v1037_v11  ;;  %v547_v1 = vsel %vm12_vm0, %v531_v39, -inf }
  0x92   : > { %v548_v54 = vsel %vm12_vm0, %v533_v41, -inf  ;;  %v549_v55 = vsel %vm12_vm0, %v535_v45, -inf  ;;  %v551_v2 = vsel %vm12_vm0, %v537_v46, -inf  ;;  %v553_v5 = vsel %vm12_vm0, %v539_v47, -inf  ;;  %v1526_v41 = vld [vmem:[%s1010_s16] sm:$0xff]  ;;  %v578_v46 = vld [vmem:[%s1768_s1 + $0xb8] sm:$0xff] }
  0x93   : > { %v520_v3 = vmax.f32 %v518_v40, %v516_v48  ;;  %v550_v56 = vmax.f32 %v547_v1, %v549_v55  ;;  %v552_v4 = vmax.f32 %v548_v54, %v551_v2  ;;  %v555_v57 = vsel %vm12_vm0, %v541_v51, -inf  ;;  %v1533_v47 = vld [vmem:[%s1010_s16 + $0x10] sm:$0xff]  ;;  %v1537_v51 = vld [vmem:[%s1010_s16 + $0x20] sm:$0xff] }
  0x94   : > { %v557_v6 = vsel %vm12_vm0, %v543_v52, -inf  ;;  %v559_v10 = vsel %vm12_vm0, %v545_v53, -inf  ;;  %v532_v11 = vmul.f32 %v523_v23, %v1266_v31  ;;  %v534_v60 = vmul.f32 %v524_v24, %v1273_v36  ;;  %v1541_v53 = vld [vmem:[%s1010_s16 + $0x30] sm:$0xff]  ;;  %v1545_v54 = vld [vmem:[%s1010_s16 + $0x40] sm:$0xff] }
  0x95   : > { %522 = vst.msk [vmem:[%s1768_s1 + $0xa8] sm:$0xff] %vm12_vm0, %v520_v3  ;;  %v554_v58 = vmax.f32 %v550_v56, %v553_v5  ;;  %v556_v59 = vmax.f32 %v552_v4, %v555_v57  ;;  %v536_v61 = vmul.f32 %v525_v28, %v1276_v37  ;;  %v538_v62 = vmul.f32 %v526_v29, %v1282_v42  ;;  %v1549_v3 = vld [vmem:[%s1010_s16 + $0x50] sm:$0xff]  ;;  %v1553_v4 = vld [vmem:[%s1010_s16 + $0x60] sm:$0xff] }
  0x96   : > { %v540_v63 = vmul.f32 %v527_v30, %v1285_v43  ;;  %v542_v0 = vmul.f32 %v528_v32, %v1288_v44  ;;  %v544_v7 = vmul.f32 %v529_v33, %v1292_v49  ;;  %v546_v12 = vmul.f32 %v530_v38, %v1295_v50  ;;  %v1557_v57 = vld [vmem:[%s1010_s16 + $0x70] sm:$0xff] }
  0x97   : > { %v558_v8 = vmax.f32 %v554_v58, %v557_v6  ;;  %v560_v9 = vmax.f32 %v556_v59, %v559_v10  ;;  %v562_v13 = vsel %vm12_vm0, %v532_v11, -inf  ;;  %v563_v15 = vsel %vm12_vm0, %v534_v60, -inf }
  0x98   : > { %v564_v16 = vsel %vm12_vm0, %v536_v61, -inf  ;;  %v566_v17 = vsel %vm12_vm0, %v538_v62, -inf  ;;  %v568_v18 = vsel %vm12_vm0, %v540_v63, -inf  ;;  %v570_v22 = vsel %vm12_vm0, %v542_v0, -inf }
  0x99   : > { %v561_v19 = vmax.f32 %v558_v8, %v560_v9  ;;  %v565_v20 = vmax.f32 %v562_v13, %v564_v16  ;;  %v567_v21 = vmax.f32 %v563_v15, %v566_v17  ;;  %v572_v23 = vsel %vm12_vm0, %v544_v7, -inf }
  0x9a   : > { %v574_v24 = vsel %vm12_vm0, %v546_v12, -inf  ;;  %v583_v25 = vperm.slane %v1266_v31, 4  ;;  %v584_v26 = vperm.slane %v1273_v36, 4  ;;  %v585_v30 = vperm.slane %v1276_v37, 4 }
  0x9b   : > { %v579_v27 = vmax.f32 %v577_v14, %v561_v19  ;;  %v569_v28 = vmax.f32 %v565_v20, %v568_v18  ;;  %v571_v29 = vmax.f32 %v567_v21, %v570_v22  ;;  %v586_v32 = vperm.slane %v1282_v42, 4 }
  0x9c   : > { %v587_v33 = vperm.slane %v1285_v43, 4  ;;  %v588_v34 = vperm.slane %v1288_v44, 4  ;;  %v589_v35 = vperm.slane %v1292_v49, 4  ;;  %v590_v40 = vperm.slane %v1295_v50, 4 }
  0x9d   : > { %581 = vst.msk [vmem:[%s1768_s1 + $0xb0] sm:$0xff] %vm12_vm0, %v579_v27  ;;  %v573_v38 = vmax.f32 %v569_v28, %v572_v23  ;;  %v575_v39 = vmax.f32 %v571_v29, %v574_v24  ;;  %v591_v45 = vmul.f32 %v1526_v41, %v583_v25  ;;  %v593_v48 = vmul.f32 %v1533_v47, %v584_v26  ;;  %v637_v24 = vld [vmem:[%s1768_s1 + $0xc0] sm:$0xff] }
  0x9e   : > { %v595_v52 = vmul.f32 %v1537_v51, %v585_v30  ;;  %v597_v1 = vmul.f32 %v1541_v53, %v586_v32  ;;  %v599_v55 = vmul.f32 %v1545_v54, %v587_v33  ;;  %v601_v56 = vmul.f32 %v1549_v3, %v588_v34 }
  0x9f   : > { %v576_v2 = vmax.f32 %v573_v38, %v575_v39  ;;  %v603_v5 = vmul.f32 %v1553_v4, %v589_v35  ;;  %v605_v6 = vmul.f32 %v1557_v57, %v590_v40  ;;  %v607_v10 = vsel %vm12_vm0, %v591_v45, -inf }
  0xa0   : > { %v608_v11 = vsel %vm12_vm0, %v593_v48, -inf  ;;  %v609_v58 = vsel %vm12_vm0, %v595_v52, -inf  ;;  %v611_v59 = vsel %vm12_vm0, %v597_v1, -inf  ;;  %v613_v63 = vsel %vm12_vm0, %v599_v55, -inf }
  0xa1   : > { %v580_v60 = vmax.f32 %v578_v46, %v576_v2  ;;  %v610_v61 = vmax.f32 %v607_v10, %v609_v58  ;;  %v612_v62 = vmax.f32 %v608_v11, %v611_v59  ;;  %v615_v0 = vsel %vm12_vm0, %v601_v56, -inf  ;;  %v638_v11 = vld [vmem:[%s1768_s1 + $0xc8] sm:$0xff] }
  0xa2   : > { %v617_v7 = vsel %vm12_vm0, %v603_v5, -inf  ;;  %v619_v8 = vsel %vm12_vm0, %v605_v6, -inf  ;;  %v592_v9 = vmul.f32 %v583_v25, %v1266_v31  ;;  %v594_v14 = vmul.f32 %v584_v26, %v1273_v36 }
  0xa3   : > { %582 = vst.msk [vmem:[%s1768_s1 + $0xb8] sm:$0xff] %vm12_vm0, %v580_v60  ;;  %v614_v12 = vmax.f32 %v610_v61, %v613_v63  ;;  %v616_v13 = vmax.f32 %v612_v62, %v615_v0  ;;  %v596_v15 = vmul.f32 %v585_v30, %v1276_v37  ;;  %v598_v16 = vmul.f32 %v586_v32, %v1282_v42 }
  0xa4   : > { %v600_v17 = vmul.f32 %v587_v33, %v1285_v43  ;;  %v602_v18 = vmul.f32 %v588_v34, %v1288_v44  ;;  %v604_v19 = vmul.f32 %v589_v35, %v1292_v49  ;;  %v606_v22 = vmul.f32 %v590_v40, %v1295_v50 }
  0xa5   : > { %v618_v20 = vmax.f32 %v614_v12, %v617_v7  ;;  %v620_v21 = vmax.f32 %v616_v13, %v619_v8  ;;  %v622_v23 = vsel %vm12_vm0, %v592_v9, -inf  ;;  %v623_v25 = vsel %vm12_vm0, %v594_v14, -inf }
  0xa6   : > { %v624_v26 = vsel %vm12_vm0, %v596_v15, -inf  ;;  %v626_v27 = vsel %vm12_vm0, %v598_v16, -inf  ;;  %v628_v28 = vsel %vm12_vm0, %v600_v17, -inf  ;;  %v630_v33 = vsel %vm12_vm0, %v602_v18, -inf }
  0xa7   : > { %v621_v29 = vmax.f32 %v618_v20, %v620_v21  ;;  %v625_v30 = vmax.f32 %v622_v23, %v624_v26  ;;  %v627_v32 = vmax.f32 %v623_v25, %v626_v27  ;;  %v632_v34 = vsel %vm12_vm0, %v604_v19, -inf }
  0xa8   : > { %v634_v35 = vsel %vm12_vm0, %v606_v22, -inf  ;;  %v643_v38 = vperm.slane %v1266_v31, 5  ;;  %v644_v39 = vperm.slane %v1273_v36, 5  ;;  %v645_v48 = vperm.slane %v1276_v37, 5 }
  0xa9   : > { %v639_v40 = vmax.f32 %v637_v24, %v621_v29  ;;  %v629_v45 = vmax.f32 %v625_v30, %v628_v28  ;;  %v631_v46 = vmax.f32 %v627_v32, %v630_v33  ;;  %v646_v52 = vperm.slane %v1282_v42, 5 }
  0xaa   : > { %v647_v1 = vperm.slane %v1285_v43, 5  ;;  %v648_v55 = vperm.slane %v1288_v44, 5  ;;  %v649_v2 = vperm.slane %v1292_v49, 5  ;;  %v650_v6 = vperm.slane %v1295_v50, 5 }
  0xab   : > { %641 = vst.msk [vmem:[%s1768_s1 + $0xc0] sm:$0xff] %vm12_vm0, %v639_v40  ;;  %v633_v56 = vmax.f32 %v629_v45, %v632_v34  ;;  %v635_v5 = vmax.f32 %v631_v46, %v634_v35  ;;  %v651_v10 = vmul.f32 %v1526_v41, %v643_v38  ;;  %v653_v58 = vmul.f32 %v1533_v47, %v644_v39  ;;  %v697_v35 = vld [vmem:[%s1768_s1 + $0xd0] sm:$0xff] }
  0xac   : > { %v655_v59 = vmul.f32 %v1537_v51, %v645_v48  ;;  %v657_v60 = vmul.f32 %v1541_v53, %v646_v52  ;;  %v659_v61 = vmul.f32 %v1545_v54, %v647_v1  ;;  %v661_v63 = vmul.f32 %v1549_v3, %v648_v55 }
  0xad   : > { %v636_v62 = vmax.f32 %v633_v56, %v635_v5  ;;  %v663_v0 = vmul.f32 %v1553_v4, %v649_v2  ;;  %v665_v7 = vmul.f32 %v1557_v57, %v650_v6  ;;  %v667_v8 = vsel %vm12_vm0, %v651_v10, -inf }
  0xae   : > { %v668_v9 = vsel %vm12_vm0, %v653_v58, -inf  ;;  %v669_v12 = vsel %vm12_vm0, %v655_v59, -inf  ;;  %v671_v13 = vsel %vm12_vm0, %v657_v60, -inf  ;;  %v673_v17 = vsel %vm12_vm0, %v659_v61, -inf }
  0xaf   : > { %v640_v14 = vmax.f32 %v638_v11, %v636_v62  ;;  %v670_v15 = vmax.f32 %v667_v8, %v669_v12  ;;  %v672_v16 = vmax.f32 %v668_v9, %v671_v13  ;;  %v675_v18 = vsel %vm12_vm0, %v661_v63, -inf  ;;  %v698_v9 = vld [vmem:[%s1768_s1 + $0xd8] sm:$0xff] }
  0xb0   : > { %v677_v19 = vsel %vm12_vm0, %v663_v0, -inf  ;;  %v679_v20 = vsel %vm12_vm0, %v665_v7, -inf  ;;  %v652_v21 = vmul.f32 %v643_v38, %v1266_v31  ;;  %v654_v24 = vmul.f32 %v644_v39, %v1273_v36 }
  0xb1   : > { %642 = vst.msk [vmem:[%s1768_s1 + $0xc8] sm:$0xff] %vm12_vm0, %v640_v14  ;;  %v674_v22 = vmax.f32 %v670_v15, %v673_v17  ;;  %v676_v23 = vmax.f32 %v672_v16, %v675_v18  ;;  %v656_v25 = vmul.f32 %v645_v48, %v1276_v37  ;;  %v658_v26 = vmul.f32 %v646_v52, %v1282_v42 }
  0xb2   : > { %v660_v27 = vmul.f32 %v647_v1, %v1285_v43  ;;  %v662_v28 = vmul.f32 %v648_v55, %v1288_v44  ;;  %v664_v29 = vmul.f32 %v649_v2, %v1292_v49  ;;  %v666_v33 = vmul.f32 %v650_v6, %v1295_v50 }
  0xb3   : > { %v678_v30 = vmax.f32 %v674_v22, %v677_v19  ;;  %v680_v32 = vmax.f32 %v676_v23, %v679_v20  ;;  %v682_v34 = vsel %vm12_vm0, %v652_v21, -inf  ;;  %v683_v38 = vsel %vm12_vm0, %v654_v24, -inf }
  0xb4   : > { %v684_v39 = vsel %vm12_vm0, %v656_v25, -inf  ;;  %v686_v40 = vsel %vm12_vm0, %v658_v26, -inf  ;;  %v688_v45 = vsel %vm12_vm0, %v660_v27, -inf  ;;  %v690_v1 = vsel %vm12_vm0, %v662_v28, -inf }
  0xb5   : > { %v681_v46 = vmax.f32 %v678_v30, %v680_v32  ;;  %v685_v48 = vmax.f32 %v682_v34, %v684_v39  ;;  %v687_v52 = vmax.f32 %v683_v38, %v686_v40  ;;  %v692_v55 = vsel %vm12_vm0, %v664_v29, -inf }
  0xb6   : > { %v694_v2 = vsel %vm12_vm0, %v666_v33, -inf  ;;  %v703_v56 = vperm.slane %v1266_v31, 6  ;;  %v704_v5 = vperm.slane %v1273_v36, 6  ;;  %v705_v58 = vperm.slane %v1276_v37, 6 }
  0xb7   : > { %v699_v6 = vmax.f32 %v697_v35, %v681_v46  ;;  %v689_v10 = vmax.f32 %v685_v48, %v688_v45  ;;  %v691_v11 = vmax.f32 %v687_v52, %v690_v1  ;;  %v706_v59 = vperm.slane %v1282_v42, 6 }
  0xb8   : > { %v707_v60 = vperm.slane %v1285_v43, 6  ;;  %v708_v61 = vperm.slane %v1288_v44, 6  ;;  %v709_v62 = vperm.slane %v1292_v49, 6  ;;  %v710_v7 = vperm.slane %v1295_v50, 6 }
  0xb9   : > { %701 = vst.msk [vmem:[%s1768_s1 + $0xd0] sm:$0xff] %vm12_vm0, %v699_v6  ;;  %v693_v63 = vmax.f32 %v689_v10, %v692_v55  ;;  %v695_v0 = vmax.f32 %v691_v11, %v694_v2  ;;  %v711_v8 = vmul.f32 %v1526_v41, %v703_v56  ;;  %v713_v12 = vmul.f32 %v1533_v47, %v704_v5  ;;  %v757_v2 = vld [vmem:[%s1768_s1 + $0xe0] sm:$0xff] }
  0xba   : > { %v715_v13 = vmul.f32 %v1537_v51, %v705_v58  ;;  %v717_v14 = vmul.f32 %v1541_v53, %v706_v59  ;;  %v719_v15 = vmul.f32 %v1545_v54, %v707_v60  ;;  %v721_v17 = vmul.f32 %v1549_v3, %v708_v61 }
  0xbb   : > { %v696_v16 = vmax.f32 %v693_v63, %v695_v0  ;;  %v723_v18 = vmul.f32 %v1553_v4, %v709_v62  ;;  %v725_v19 = vmul.f32 %v1557_v57, %v710_v7  ;;  %v727_v20 = vsel %vm12_vm0, %v711_v8, -inf }
  0xbc   : > { %v728_v21 = vsel %vm12_vm0, %v713_v12, -inf  ;;  %v729_v22 = vsel %vm12_vm0, %v715_v13, -inf  ;;  %v731_v23 = vsel %vm12_vm0, %v717_v14, -inf  ;;  %v733_v27 = vsel %vm12_vm0, %v719_v15, -inf }
  0xbd   : > { %v700_v24 = vmax.f32 %v698_v9, %v696_v16  ;;  %v730_v25 = vmax.f32 %v727_v20, %v729_v22  ;;  %v732_v26 = vmax.f32 %v728_v21, %v731_v23  ;;  %v735_v28 = vsel %vm12_vm0, %v721_v17, -inf  ;;  %v758_v21 = vld [vmem:[%s1768_s1 + $0xe8] sm:$0xff] }
  0xbe   : > { %v737_v29 = vsel %vm12_vm0, %v723_v18, -inf  ;;  %v739_v30 = vsel %vm12_vm0, %v725_v19, -inf  ;;  %v712_v32 = vmul.f32 %v703_v56, %v1266_v31  ;;  %v714_v35 = vmul.f32 %v704_v5, %v1273_v36 }
  0xbf   : > { %702 = vst.msk [vmem:[%s1768_s1 + $0xd8] sm:$0xff] %vm12_vm0, %v700_v24  ;;  %v734_v33 = vmax.f32 %v730_v25, %v733_v27  ;;  %v736_v34 = vmax.f32 %v732_v26, %v735_v28  ;;  %v716_v38 = vmul.f32 %v705_v58, %v1276_v37  ;;  %v718_v39 = vmul.f32 %v706_v59, %v1282_v42 }
  0xc0   : > { %v720_v40 = vmul.f32 %v707_v60, %v1285_v43  ;;  %v722_v45 = vmul.f32 %v708_v61, %v1288_v44  ;;  %v724_v46 = vmul.f32 %v709_v62, %v1292_v49  ;;  %v726_v1 = vmul.f32 %v710_v7, %v1295_v50 }
  0xc1   : > { %v738_v48 = vmax.f32 %v734_v33, %v737_v29  ;;  %v740_v52 = vmax.f32 %v736_v34, %v739_v30  ;;  %v742_v55 = vsel %vm12_vm0, %v712_v32, -inf  ;;  %v743_v56 = vsel %vm12_vm0, %v714_v35, -inf }
  0xc2   : > { %v744_v5 = vsel %vm12_vm0, %v716_v38, -inf  ;;  %v746_v6 = vsel %vm12_vm0, %v718_v39, -inf  ;;  %v748_v10 = vsel %vm12_vm0, %v720_v40, -inf  ;;  %v750_v60 = vsel %vm12_vm0, %v722_v45, -inf }
  0xc3   : > { %v741_v11 = vmax.f32 %v738_v48, %v740_v52  ;;  %v745_v58 = vmax.f32 %v742_v55, %v744_v5  ;;  %v747_v59 = vmax.f32 %v743_v56, %v746_v6  ;;  %v752_v61 = vsel %vm12_vm0, %v724_v46, -inf }
  0xc4   : > { %v754_v62 = vsel %vm12_vm0, %v726_v1, -inf  ;;  %v763_v63 = vperm.slane %v1266_v31, 7  ;;  %v764_v0 = vperm.slane %v1273_v36, 7  ;;  %v765_v12 = vperm.slane %v1276_v37, 7 }
  0xc5   : > { %v759_v7 = vmax.f32 %v757_v2, %v741_v11  ;;  %v749_v8 = vmax.f32 %v745_v58, %v748_v10  ;;  %v751_v9 = vmax.f32 %v747_v59, %v750_v60  ;;  %v766_v13 = vperm.slane %v1282_v42, 7 }
  0xc6   : > { %v767_v14 = vperm.slane %v1285_v43, 7  ;;  %v768_v15 = vperm.slane %v1288_v44, 7  ;;  %v769_v16 = vperm.slane %v1292_v49, 7  ;;  %v770_v19 = vperm.slane %v1295_v50, 7 }
  0xc7   : > { %761 = vst.msk [vmem:[%s1768_s1 + $0xe0] sm:$0xff] %vm12_vm0, %v759_v7  ;;  %v753_v17 = vmax.f32 %v749_v8, %v752_v61  ;;  %v755_v18 = vmax.f32 %v751_v9, %v754_v62  ;;  %v771_v20 = vmul.f32 %v1526_v41, %v763_v63  ;;  %v773_v22 = vmul.f32 %v1533_v47, %v764_v0  ;;  %v818_v62 = vld [vmem:[%s1768_s1 + $0xf8] sm:$0xff] }
  0xc8   : > { %v775_v23 = vmul.f32 %v1537_v51, %v765_v12  ;;  %v777_v24 = vmul.f32 %v1541_v53, %v766_v13  ;;  %v779_v25 = vmul.f32 %v1545_v54, %v767_v14  ;;  %v781_v27 = vmul.f32 %v1549_v3, %v768_v15 }
  0xc9   : > { %v756_v26 = vmax.f32 %v753_v17, %v755_v18  ;;  %v783_v28 = vmul.f32 %v1553_v4, %v769_v16  ;;  %v785_v29 = vmul.f32 %v1557_v57, %v770_v19  ;;  %v787_v41 = vsel %vm12_vm0, %v771_v20, -inf }
  0xca   : > { %v788_v30 = vsel %vm12_vm0, %v773_v22, -inf  ;;  %v789_v32 = vsel %vm12_vm0, %v775_v23, -inf  ;;  %v791_v47 = vsel %vm12_vm0, %v777_v24, -inf  ;;  %v793_v54 = vsel %vm12_vm0, %v779_v25, -inf }
  0xcb   : > { %v760_v51 = vmax.f32 %v758_v21, %v756_v26  ;;  %v790_v33 = vmax.f32 %v787_v41, %v789_v32  ;;  %v792_v53 = vmax.f32 %v788_v30, %v791_v47  ;;  %v795_v34 = vsel %vm12_vm0, %v781_v27, -inf }
  0xcc   : > { %v797_v3 = vsel %vm12_vm0, %v783_v28, -inf  ;;  %v799_v4 = vsel %vm12_vm0, %v785_v29, -inf  ;;  %v772_v57 = vmul.f32 %v763_v63, %v1266_v31  ;;  %v774_v39 = vmul.f32 %v764_v0, %v1273_v36  ;;  %v817_v36 = vld [vmem:[%s1768_s1 + $0xf0] sm:$0xff] }
  0xcd   : > { %762 = vst.msk [vmem:[%s1768_s1 + $0xe8] sm:$0xff] %vm12_vm0, %v760_v51  ;;  %v794_v35 = vmax.f32 %v790_v33, %v793_v54  ;;  %v796_v38 = vmax.f32 %v792_v53, %v795_v34  ;;  %v776_v40 = vmul.f32 %v765_v12, %v1276_v37  ;;  %v778_v45 = vmul.f32 %v766_v13, %v1282_v42 }
  0xce   : > { %v780_v46 = vmul.f32 %v767_v14, %v1285_v43  ;;  %v782_v48 = vmul.f32 %v768_v15, %v1288_v44  ;;  %v784_v52 = vmul.f32 %v769_v16, %v1292_v49  ;;  %v786_v55 = vmul.f32 %v770_v19, %v1295_v50 }
  0xcf   : > { %v798_v31 = vmax.f32 %v794_v35, %v797_v3  ;;  %v800_v1 = vmax.f32 %v796_v38, %v799_v4  ;;  %v802_v2 = vsel %vm12_vm0, %v772_v57, -inf  ;;  %v803_v37 = vsel %vm12_vm0, %v774_v39, -inf }
  0xd0   : > { %v804_v42 = vsel %vm12_vm0, %v776_v40, -inf  ;;  %v806_v43 = vsel %vm12_vm0, %v778_v45, -inf  ;;  %v808_v44 = vsel %vm12_vm0, %v780_v46, -inf  ;;  %v810_v6 = vsel %vm12_vm0, %v782_v48, -inf }
  0xd1   : > { %v801_v56 = vmax.f32 %v798_v31, %v800_v1  ;;  %v805_v49 = vmax.f32 %v802_v2, %v804_v42  ;;  %v807_v5 = vmax.f32 %v803_v37, %v806_v43  ;;  %v812_v50 = vsel %vm12_vm0, %v784_v52, -inf }
  0xd2   : > { %v814_v10 = vsel %vm12_vm0, %v786_v55, -inf }
  0xd3   : > { %v819_v11 = vmax.f32 %v817_v36, %v801_v56  ;;  %v809_v58 = vmax.f32 %v805_v49, %v808_v44  ;;  %v811_v59 = vmax.f32 %v807_v5, %v810_v6 }
  0xd5   : > { %821 = vst.msk [vmem:[%s1768_s1 + $0xf0] sm:$0xff] %vm12_vm0, %v819_v11  ;;  %v813_v60 = vmax.f32 %v809_v58, %v812_v50  ;;  %v815_v61 = vmax.f32 %v811_v59, %v814_v10 }
  0xd7   : > { %v816_v63 = vmax.f32 %v813_v60, %v815_v61  ;;  %49 = sbr.rel (!%p47_p0) target bundleno = 33 (0x21), region = 36 }
  0xd9   : > { %v820_v0 = vmax.f32 %v818_v62, %v816_v63 }
  0xdb   : > { %822 = vst.msk [vmem:[%s1768_s1 + $0xf8] sm:$0xff] %vm12_vm0, %v820_v0 }

// kernel: sop_forward.3
= control target key start
LH: loop header
LB: loop body
LE: loop exit
PB: predicated region body
PF: predicated region fallthrough
CT: control target
= control target key end

     0   :  { %vm1415_vm0 = vcmask 64512   ;;  %s3382_s0 = inlined_call_operand.vmem [shape: f32[16,16,8], index: 0, kind: input, shape index: {}]   ;;  %s3383_s1 = inlined_call_operand.vmem [shape: f32[16,16,8], index: 1, kind: input, shape index: {}]   ;;  %s3384_s2 = inlined_call_operand.vmem [shape: f32[256,8], index: 2, kind: output, shape index: {}]  }
   0x1   :  { %v11_v0 = vld [vmem:[%s3382_s0] sm:$0xff]  ;;  %v1656_v2 = vld [vmem:[%s3383_s1 + $0x8] sm:$0xff]  ;;  %v1661_v4 = vld [vmem:[%s3383_s1 + $0x10] sm:$0xff] }
   0x2   :  { %v1651_v1 = vld [vmem:[%s3383_s1] sm:$0xff]  ;;  %v15_v3 = vperm.slane %v11_v0, 0  ;;  %v1666_v5 = vld [vmem:[%s3383_s1 + $0x18] sm:$0xff]  ;;  %v21_v6 = vperm.slane %v11_v0, 1  ;;  %v29_v7 = vperm.slane %v11_v0, 2  ;;  %v1676_v9 = vld [vmem:[%s3383_s1 + $0x28] sm:$0xff] }
   0x3   :  { %v1671_v8 = vld [vmem:[%s3383_s1 + $0x20] sm:$0xff]  ;;  %3454 = vst [vmem:[#allocation3_spill] sm:$0xff] %v1676_v9  ;;  %v1681_v10 = vld [vmem:[%s3383_s1 + $0x30] sm:$0xff]  ;;  %v37_v11 = vperm.slane %v11_v0, 3  ;;  %v45_v12 = vperm.slane %v11_v0, 4  ;;  %v1690_v17 = vld [vmem:[%s3383_s1 + $0x38] sm:$0xff] }
   0x4   :  { %3453 = vst [vmem:[#allocation2_spill] sm:$0xff] %v1671_v8  ;;  %v16_v13 = vmul.f32 %v15_v3, %v1651_v1  ;;  %v17_v14 = vmul.f32 %v15_v3, %v1656_v2  ;;  %v22_v15 = vmul.f32 %v1661_v4, %v21_v6  ;;  %v23_v16 = vmul.f32 %v1666_v5, %v21_v6  ;;  %v1695_v18 = vld [vmem:[%s3383_s1 + $0x40] sm:$0xff]  ;;  %v1702_v21 = vld [vmem:[%s3383_s1 + $0x48] sm:$0xff]  ;;  %v1709_v27 = vld [vmem:[%s3383_s1 + $0x50] sm:$0xff] }
   0x5   :  { %v30_v19 = vmul.f32 %v1671_v8, %v29_v7  ;;  %v31_v20 = vmul.f32 %v1676_v9, %v29_v7  ;;  %v53_v22 = vperm.slane %v11_v0, 5  ;;  %v38_v25 = vmul.f32 %v1681_v10, %v37_v11  ;;  %v1715_v29 = vld [vmem:[%s3383_s1 + $0x58] sm:$0xff]  ;;  %v1722_v35 = vld [vmem:[%s3383_s1 + $0x60] sm:$0xff]  ;;  %v1727_v36 = vld [vmem:[%s3383_s1 + $0x68] sm:$0xff] }
   0x6   :  { %v24_v23 = vadd.f32 %v22_v15, %v16_v13  ;;  %v25_v24 = vadd.f32 %v23_v16, %v17_v14  ;;  %v39_v26 = vmul.f32 %v1690_v17, %v37_v11  ;;  %v46_v28 = vmul.f32 %v1695_v18, %v45_v12  ;;  %v1732_v37 = vld [vmem:[%s3382_s0 + $0x8] sm:$0xff]  ;;  %v1738_v42 = vld [vmem:[%s3383_s1 + $0x70] sm:$0xff]  ;;  %v1743_v43 = vld [vmem:[%s3383_s1 + $0x78] sm:$0xff] }
   0x7   :  { %v47_v32 = vmul.f32 %v1702_v21, %v45_v12  ;;  %v61_v33 = vperm.slane %v11_v0, 6  ;;  %v54_v34 = vmul.f32 %v1709_v27, %v53_v22  ;;  %v55_v40 = vmul.f32 %v1715_v29, %v53_v22  ;;  %v1752_v50 = vld [vmem:[%s3382_s0 + $0x10] sm:$0xff]  ;;  %v1759_v55 = vld [vmem:[%s3383_s1 + $0x80] sm:$0xff]  ;;  %v1764_v56 = vld [vmem:[%s3383_s1 + $0x88] sm:$0xff] }
   0x8   :  { %v32_v30 = vadd.f32 %v30_v19, %v24_v23  ;;  %v33_v31 = vadd.f32 %v31_v20, %v25_v24  ;;  %v69_v41 = vperm.slane %v11_v0, 7  ;;  %v77_v48 = vperm.slane %v1732_v37, 0  ;;  %v1769_v57 = vld [vmem:[%s3383_s1 + $0x90] sm:$0xff]  ;;  %v1778_v0 = vld [vmem:[%s3383_s1 + $0x98] sm:$0xff]  ;;  %v1794_v24 = vld [vmem:[%s3383_s1 + $0xa0] sm:$0xff] }
   0x9   :  { %v62_v46 = vmul.f32 %v1722_v35, %v61_v33  ;;  %v63_v47 = vmul.f32 %v1727_v36, %v61_v33  ;;  %v85_v49 = vperm.slane %v1732_v37, 1  ;;  %v141_v60 = vperm.slane %v1752_v50, 0  ;;  %3455 = vst [vmem:[#allocation4_spill] sm:$0xff] %v1778_v0 }
   0xa   :  { %v40_v38 = vadd.f32 %v38_v25, %v32_v30  ;;  %v41_v39 = vadd.f32 %v39_v26, %v33_v31  ;;  %v70_v53 = vmul.f32 %v1738_v42, %v69_v41  ;;  %v71_v54 = vmul.f32 %v1743_v43, %v69_v41  ;;  %3456 = vst [vmem:[#allocation5_spill] sm:$0xff] %v1794_v24 }
   0xb   :  { %v144_v61 = vperm.slane %v1752_v50, 1  ;;  %v78_v62 = vmul.f32 %v1759_v55, %v77_v48  ;;  %v79_v63 = vmul.f32 %v1764_v56, %v77_v48  ;;  %v86_v3 = vmul.f32 %v1769_v57, %v85_v49 }
   0xc   :  { %v48_v44 = vadd.f32 %v46_v28, %v40_v38  ;;  %v49_v45 = vadd.f32 %v47_v32, %v41_v39  ;;  %v142_v11 = vmul.f32 %v141_v60, %v1651_v1  ;;  %v143_v12 = vmul.f32 %v141_v60, %v1656_v2  ;;  %v1803_v38 = vld [vmem:[%s3383_s1 + $0xa8] sm:$0xff]  ;;  %v1808_v39 = vld [vmem:[%s3382_s0 + $0x18] sm:$0xff] }
   0xd   :  { %v145_v13 = vmul.f32 %v1661_v4, %v144_v61  ;;  %v146_v14 = vmul.f32 %v1666_v5, %v144_v61  ;;  %v149_v15 = vperm.slane %v1752_v50, 2  ;;  %v154_v16 = vperm.slane %v1752_v50, 3  ;;  %3457 = vst [vmem:[#allocation6_spill] sm:$0xff] %v1803_v38 }
   0xe   :  { %v56_v51 = vadd.f32 %v54_v34, %v48_v44  ;;  %v57_v52 = vadd.f32 %v55_v40, %v49_v45  ;;  %v87_v19 = vmul.f32 %v1778_v0, %v85_v49  ;;  %v93_v20 = vperm.slane %v1732_v37, 2 }
   0xf   :  { %v159_v22 = vperm.slane %v1752_v50, 4  ;;  %v164_v23 = vperm.slane %v1752_v50, 5  ;;  %v147_v25 = vadd.f32 %v145_v13, %v142_v11  ;;  %v148_v26 = vadd.f32 %v146_v14, %v143_v12  ;;  %v1837_v13 = vld [vmem:[%s3383_s1 + $0xc0] sm:$0xff] }
  0x10   :  { %v64_v58 = vadd.f32 %v62_v46, %v56_v51  ;;  %v65_v59 = vadd.f32 %v63_v47, %v57_v52  ;;  %v150_v28 = vmul.f32 %v1671_v8, %v149_v15  ;;  %v151_v30 = vmul.f32 %v1676_v9, %v149_v15 }
  0x11   :  { %v155_v33 = vmul.f32 %v1681_v10, %v154_v16  ;;  %v156_v34 = vmul.f32 %v1690_v17, %v154_v16  ;;  %v160_v44 = vmul.f32 %v1695_v18, %v159_v22  ;;  %v161_v45 = vmul.f32 %v1702_v21, %v159_v22 }
  0x12   :  { %v72_v6 = vadd.f32 %v70_v53, %v64_v58  ;;  %v73_v7 = vadd.f32 %v71_v54, %v65_v59  ;;  %v152_v40 = vadd.f32 %v150_v28, %v147_v25  ;;  %v153_v41 = vadd.f32 %v151_v30, %v148_v26  ;;  %v1846_v26 = vld [vmem:[%s3383_s1 + $0xc8] sm:$0xff] }
  0x13   :  { %v94_v46 = vmul.f32 %v1794_v24, %v93_v20  ;;  %v101_v47 = vperm.slane %v1732_v37, 3  ;;  %v165_v48 = vmul.f32 %v1709_v27, %v164_v23  ;;  %v166_v49 = vmul.f32 %v1715_v29, %v164_v23 }
  0x14   :  { %v80_v31 = vadd.f32 %v78_v62, %v72_v6  ;;  %v81_v32 = vadd.f32 %v79_v63, %v73_v7  ;;  %v157_v51 = vadd.f32 %v155_v33, %v152_v40  ;;  %v158_v52 = vadd.f32 %v156_v34, %v153_v41  ;;  %v1823_v62 = vld [vmem:[%s3383_s1 + $0xb0] sm:$0xff]  ;;  %v1828_v63 = vld [vmem:[%s3383_s1 + $0xb8] sm:$0xff] }
  0x15   :  { %v169_v53 = vperm.slane %v1752_v50, 6  ;;  %v174_v54 = vperm.slane %v1752_v50, 7  ;;  %v95_v60 = vmul.f32 %v1803_v38, %v93_v20  ;;  %v179_v61 = vperm.slane %v1808_v39, 0  ;;  %3458 = vst [vmem:[#allocation7_spill] sm:$0xff] %v1823_v62  ;;  %v1854_v34 = vld [vmem:[%s3383_s1 + $0xd0] sm:$0xff]  ;;  %v1859_v40 = vld [vmem:[%s3383_s1 + $0xd8] sm:$0xff] }
  0x16   :  { %v88_v58 = vadd.f32 %v86_v3, %v80_v31  ;;  %v89_v59 = vadd.f32 %v87_v19, %v81_v32  ;;  %3459 = vst [vmem:[#allocation8_spill] sm:$0xff] %v1828_v63  ;;  %v162_v6 = vadd.f32 %v160_v44, %v157_v51  ;;  %v163_v7 = vadd.f32 %v161_v45, %v158_v52 }
  0x17   :  { %v170_v50 = vmul.f32 %v1722_v35, %v169_v53  ;;  %v171_v3 = vmul.f32 %v1727_v36, %v169_v53  ;;  %v109_v11 = vperm.slane %v1732_v37, 4  ;;  %v184_v12 = vperm.slane %v1808_v39, 1  ;;  %v1869_v53 = vld [vmem:[%s3382_s0 + $0x20] sm:$0xff] }
  0x18   :  { %v167_v14 = vadd.f32 %v165_v48, %v162_v6  ;;  %v168_v15 = vadd.f32 %v166_v49, %v163_v7  ;;  %v175_v16 = vmul.f32 %v1738_v42, %v174_v54  ;;  %v176_v19 = vmul.f32 %v1743_v43, %v174_v54 }
  0x19   :  { %v96_v20 = vadd.f32 %v94_v46, %v88_v58  ;;  %v97_v22 = vadd.f32 %v95_v60, %v89_v59  ;;  %v102_v23 = vmul.f32 %v1823_v62, %v101_v47  ;;  %v103_v25 = vmul.f32 %v1828_v63, %v101_v47  ;;  %v1876_v59 = vld [vmem:[%s3383_s1 + $0xe0] sm:$0xff]  ;;  %v1881_v60 = vld [vmem:[%s3383_s1 + $0xe8] sm:$0xff] }
  0x1a   :  { %v117_v28 = vperm.slane %v1732_v37, 5  ;;  %v172_v30 = vadd.f32 %v170_v50, %v167_v14  ;;  %v173_v31 = vadd.f32 %v171_v3, %v168_v15  ;;  %v180_v32 = vmul.f32 %v1759_v55, %v179_v61  ;;  %3460 = vst [vmem:[#allocation9_spill] sm:$0xff] %v1881_v60 }
  0x1b   :  { %v110_v33 = vmul.f32 %v1837_v13, %v109_v11  ;;  %v189_v41 = vperm.slane %v1808_v39, 2  ;;  %v181_v46 = vmul.f32 %v1764_v56, %v179_v61  ;;  %v185_v47 = vmul.f32 %v1769_v57, %v184_v12 }
  0x1c   :  { %v177_v44 = vadd.f32 %v175_v16, %v172_v30  ;;  %v178_v45 = vadd.f32 %v176_v19, %v173_v31  ;;  %v104_v48 = vadd.f32 %v102_v23, %v96_v20  ;;  %v105_v49 = vadd.f32 %v103_v25, %v97_v22 }
  0x1d   :  { %v111_v51 = vmul.f32 %v1846_v26, %v109_v11  ;;  %v125_v52 = vperm.slane %v1732_v37, 6  ;;  %v118_v54 = vmul.f32 %v1854_v34, %v117_v28  ;;  %v119_v58 = vmul.f32 %v1859_v40, %v117_v28 }
  0x1e   :  { %v182_v61 = vadd.f32 %v180_v32, %v177_v44  ;;  %v133_v6 = vperm.slane %v1732_v37, 7  ;;  %v186_v7 = vmul.f32 %v1778_v0, %v184_v12  ;;  %v190_v50 = vmul.f32 %v1794_v24, %v189_v41 }
  0x1f   :  { %v194_v3 = vperm.slane %v1808_v39, 3  ;;  %v183_v11 = vadd.f32 %v181_v46, %v178_v45  ;;  %v222_v15 = vperm.slane %v1869_v53, 0  ;;  %v225_v16 = vperm.slane %v1869_v53, 1 }
  0x20   :  { %v187_v14 = vadd.f32 %v185_v47, %v182_v61  ;;  %v112_v19 = vadd.f32 %v110_v33, %v104_v48  ;;  %v113_v20 = vadd.f32 %v111_v51, %v105_v49  ;;  %v126_v22 = vmul.f32 %v1876_v59, %v125_v52 }
  0x21   :  { %v127_v23 = vmul.f32 %v1881_v60, %v125_v52  ;;  %v191_v37 = vmul.f32 %v1803_v38, %v189_v41  ;;  %v199_v12 = vperm.slane %v1808_v39, 4  ;;  %v223_v25 = vmul.f32 %v222_v15, %v1651_v1 }
  0x22   :  { %v224_v28 = vmul.f32 %v222_v15, %v1656_v2  ;;  %v226_v30 = vmul.f32 %v1661_v4, %v225_v16  ;;  %v227_v31 = vmul.f32 %v1666_v5, %v225_v16  ;;  %v230_v32 = vperm.slane %v1869_v53, 2 }
  0x23   :  { %v235_v33 = vperm.slane %v1869_v53, 3  ;;  %v188_v44 = vadd.f32 %v186_v7, %v183_v11  ;;  %v192_v45 = vadd.f32 %v190_v50, %v187_v14  ;;  %v195_v46 = vmul.f32 %v1823_v62, %v194_v3 }
  0x24   :  { %v240_v41 = vperm.slane %v1869_v53, 4  ;;  %v228_v47 = vadd.f32 %v226_v30, %v223_v25  ;;  %v229_v48 = vadd.f32 %v227_v31, %v224_v28  ;;  %v231_v49 = vmul.f32 %v1671_v8, %v230_v32 }
  0x25   :  { %v232_v51 = vmul.f32 %v1676_v9, %v230_v32  ;;  %v204_v52 = vperm.slane %v1808_v39, 5  ;;  %v236_v61 = vmul.f32 %v1681_v10, %v235_v33  ;;  %v237_v15 = vmul.f32 %v1690_v17, %v235_v33  ;;  %v1914_v33 = vld [vmem:[%s3383_s1 + $0xf0] sm:$0xff] }
  0x26   :  { %v245_v16 = vperm.slane %v1869_v53, 5  ;;  %v233_v7 = vadd.f32 %v231_v49, %v228_v47  ;;  %v241_v11 = vmul.f32 %v1695_v18, %v240_v41  ;;  %v242_v14 = vmul.f32 %v1702_v21, %v240_v41  ;;  %3461 = vst [vmem:[#allocation10_spill] sm:$0xff] %v1914_v33  ;;  %v1919_v47 = vld [vmem:[%s3383_s1 + $0xf8] sm:$0xff] }
  0x27   :  { %v234_v50 = vadd.f32 %v232_v51, %v229_v48  ;;  %v193_v25 = vadd.f32 %v191_v37, %v188_v44  ;;  %v196_v28 = vmul.f32 %v1828_v63, %v194_v3  ;;  %v197_v30 = vadd.f32 %v195_v46, %v192_v45  ;;  %3462 = vst [vmem:[#allocation11_spill] sm:$0xff] %v1919_v47 }
  0x28   :  { %v200_v31 = vmul.f32 %v1837_v13, %v199_v12  ;;  %v120_v32 = vadd.f32 %v118_v54, %v112_v19  ;;  %v121_v62 = vadd.f32 %v119_v58, %v113_v20  ;;  %v238_v38 = vadd.f32 %v236_v61, %v233_v7 }
  0x29   :  { %v239_v24 = vadd.f32 %v237_v15, %v234_v50  ;;  %v201_v37 = vmul.f32 %v1846_v26, %v199_v12  ;;  %v246_v3 = vmul.f32 %v1709_v27, %v245_v16  ;;  %v247_v54 = vmul.f32 %v1715_v29, %v245_v16 }
  0x2a   :  { %v243_v44 = vadd.f32 %v241_v11, %v238_v38  ;;  %v250_v58 = vperm.slane %v1869_v53, 6  ;;  %v198_v19 = vadd.f32 %v196_v28, %v193_v25  ;;  %v202_v20 = vadd.f32 %v200_v31, %v197_v30 }
  0x2b   :  { %v244_v45 = vadd.f32 %v242_v14, %v239_v24  ;;  %v205_v46 = vmul.f32 %v1854_v34, %v204_v52  ;;  %v209_v41 = vperm.slane %v1808_v39, 6  ;;  %v128_v48 = vadd.f32 %v126_v22, %v120_v32  ;;  %v1932_v24 = vld [vmem:[%s3382_s0 + $0x28] sm:$0xff] }
  0x2c   :  { %v129_v49 = vadd.f32 %v127_v23, %v121_v62  ;;  %v134_v51 = vmul.f32 %v1914_v33, %v133_v6  ;;  %v135_v12 = vmul.f32 %v1919_v47, %v133_v6  ;;  %v206_v38 = vmul.f32 %v1859_v40, %v204_v52  ;;  %v1944_v52 = vld [vmem:[%s3382_s0 + $0x30] sm:$0xff] }
  0x2d   :  { %v214_v61 = vperm.slane %v1808_v39, 7  ;;  %v255_v15 = vperm.slane %v1869_v53, 7  ;;  %v248_v16 = vadd.f32 %v246_v3, %v243_v44  ;;  %v249_v7 = vadd.f32 %v247_v54, %v244_v45 }
  0x2e   :  { %v251_v22 = vmul.f32 %v1722_v35, %v250_v58  ;;  %v252_v62 = vmul.f32 %v1727_v36, %v250_v58  ;;  %v203_v23 = vadd.f32 %v201_v37, %v198_v19  ;;  %v207_v50 = vadd.f32 %v205_v46, %v202_v20 }
  0x2f   :  { %v210_v6 = vmul.f32 %v1876_v59, %v209_v41  ;;  %v260_v11 = vperm.slane %v1932_v24, 0  ;;  %v1946_v39 = vadd.f32 %v134_v51, %v128_v48  ;;  %v1948_v53 = vadd.f32 %v135_v12, %v129_v49 }
  0x30   :  { %v265_v14 = vperm.slane %v1932_v24, 1  ;;  %v211_v25 = vmul.f32 %v1881_v60, %v209_v41  ;;  %v1953_v28 = vmul.f32 %v1914_v33, %v214_v61  ;;  %v256_v30 = vmul.f32 %v1738_v42, %v255_v15 }
  0x31   :  { %3463 = vst [vmem:[#allocation12_spill] sm:$0xff] %v1946_v39  ;;  %v257_v31 = vmul.f32 %v1743_v43, %v255_v15  ;;  %v253_v32 = vadd.f32 %v251_v22, %v248_v16  ;;  %v254_v37 = vadd.f32 %v252_v62, %v249_v7  ;;  %v303_v3 = vperm.slane %v1944_v52, 0 }
  0x32   :  { %3464 = vst [vmem:[#allocation13_spill] sm:$0xff] %v1948_v53  ;;  %v306_v44 = vperm.slane %v1944_v52, 1  ;;  %v208_v45 = vadd.f32 %v206_v38, %v203_v23  ;;  %v1959_v54 = vadd.f32 %v210_v6, %v207_v50  ;;  %v1962_v58 = vmul.f32 %v1919_v47, %v214_v61  ;;  %v3466_v47 = vld [vmem:[#allocation5_spill] sm:$0xff] }
  0x33   :  { %v261_v19 = vmul.f32 %v1759_v55, %v260_v11  ;;  %v262_v20 = vmul.f32 %v1764_v56, %v260_v11  ;;  %v266_v46 = vmul.f32 %v1769_v57, %v265_v14  ;;  %v304_v41 = vmul.f32 %v303_v3, %v1651_v1 }
  0x34   :  { %3465 = vst [vmem:[#allocation14_spill] sm:$0xff] %v1962_v58  ;;  %v305_v48 = vmul.f32 %v303_v3, %v1656_v2  ;;  %v307_v49 = vmul.f32 %v1661_v4, %v306_v44  ;;  %v308_v51 = vmul.f32 %v1666_v5, %v306_v44  ;;  %v311_v12 = vperm.slane %v1944_v52, 2 }
  0x35   :  { %v316_v38 = vperm.slane %v1944_v52, 3  ;;  %v258_v61 = vadd.f32 %v256_v30, %v253_v32  ;;  %v259_v15 = vadd.f32 %v257_v31, %v254_v37  ;;  %v321_v16 = vperm.slane %v1944_v52, 4  ;;  %v1984_v30 = vld [vmem:[%s3382_s0 + $0x38] sm:$0xff] }
  0x36   :  { %v326_v7 = vperm.slane %v1944_v52, 5  ;;  %v309_v22 = vadd.f32 %v307_v49, %v304_v41  ;;  %v310_v62 = vadd.f32 %v308_v51, %v305_v48  ;;  %v312_v23 = vmul.f32 %v1671_v8, %v311_v12 }
  0x37   :  { %v313_v50 = vmul.f32 %v1676_v9, %v311_v12  ;;  %v267_v6 = vmul.f32 %v1778_v0, %v265_v14  ;;  %v270_v11 = vperm.slane %v1932_v24, 2  ;;  %v317_v3 = vmul.f32 %v1681_v10, %v316_v38 }
  0x38   :  { %v318_v44 = vmul.f32 %v1690_v17, %v316_v38  ;;  %v314_v31 = vadd.f32 %v312_v23, %v309_v22  ;;  %v322_v37 = vmul.f32 %v1695_v18, %v321_v16  ;;  %v323_v41 = vmul.f32 %v1702_v21, %v321_v16 }
  0x39   :  { %v315_v32 = vadd.f32 %v313_v50, %v310_v62  ;;  %v263_v48 = vadd.f32 %v261_v19, %v258_v61  ;;  %v264_v49 = vadd.f32 %v262_v20, %v259_v15  ;;  %v327_v14 = vmul.f32 %v1709_v27, %v326_v7  ;;  %v3467_v50 = vld [vmem:[#allocation6_spill] sm:$0xff] }
  0x3a   :  { %v328_v51 = vmul.f32 %v1715_v29, %v326_v7  ;;  %v319_v12 = vadd.f32 %v317_v3, %v314_v31  ;;  %v331_v38 = vperm.slane %v1944_v52, 6  ;;  %v336_v39 = vperm.slane %v1944_v52, 7 }
  0x3b   :  { %v320_v53 = vadd.f32 %v318_v44, %v315_v32  ;;  %v271_v58 = vmul.f32 %v3466_v47, %v270_v11  ;;  %v275_v22 = vperm.slane %v1932_v24, 3  ;;  %v280_v62 = vperm.slane %v1932_v24, 4 }
  0x3c   :  { %v341_v16 = vperm.slane %v1984_v30, 0  ;;  %v324_v19 = vadd.f32 %v322_v37, %v319_v12  ;;  %v332_v61 = vmul.f32 %v1722_v35, %v331_v38  ;;  %v333_v15 = vmul.f32 %v1727_v36, %v331_v38  ;;  %v3468_v37 = vld [vmem:[#allocation7_spill] sm:$0xff] }
  0x3d   :  { %v325_v20 = vadd.f32 %v323_v41, %v320_v53  ;;  %v268_v7 = vadd.f32 %v266_v46, %v263_v48  ;;  %v269_v23 = vadd.f32 %v267_v6, %v264_v49  ;;  %v272_v3 = vmul.f32 %v3467_v50, %v270_v11 }
  0x3e   :  { %v346_v52 = vperm.slane %v1984_v30, 1  ;;  %v329_v44 = vadd.f32 %v327_v14, %v324_v19  ;;  %v337_v32 = vmul.f32 %v1738_v42, %v336_v39  ;;  %v338_v33 = vmul.f32 %v1743_v43, %v336_v39 }
  0x3f   :  { %v330_v31 = vadd.f32 %v328_v51, %v325_v20  ;;  %v2002_v60 = vadd.f32 %v211_v25, %v208_v45  ;;  %v276_v53 = vmul.f32 %v3468_v37, %v275_v22  ;;  %v285_v41 = vperm.slane %v1932_v24, 5 }
  0x40   :  { %v342_v12 = vmul.f32 %v1759_v55, %v341_v16  ;;  %v334_v46 = vadd.f32 %v332_v61, %v329_v44  ;;  %v343_v11 = vmul.f32 %v1764_v56, %v341_v16  ;;  %v351_v48 = vperm.slane %v1984_v30, 2 }
  0x41   :  { %v335_v6 = vadd.f32 %v333_v15, %v330_v31  ;;  %v273_v49 = vadd.f32 %v271_v58, %v268_v7  ;;  %v274_v14 = vadd.f32 %v272_v3, %v269_v23  ;;  %v277_v51 = vmul.f32 %v1828_v63, %v275_v22  ;;  %v2020_v58 = vld [vmem:[%s3382_s0 + $0x40] sm:$0xff] }
  0x42   :  { %v281_v39 = vmul.f32 %v1837_v13, %v280_v62  ;;  %v282_v25 = vmul.f32 %v1846_v26, %v280_v62  ;;  %v339_v45 = vadd.f32 %v337_v32, %v334_v46  ;;  %v347_v19 = vmul.f32 %v1769_v57, %v346_v52 }
  0x43   :  { %v340_v38 = vadd.f32 %v338_v33, %v335_v6  ;;  %v286_v20 = vmul.f32 %v1854_v34, %v285_v41  ;;  %v287_v61 = vmul.f32 %v1859_v40, %v285_v41  ;;  %v348_v16 = vmul.f32 %v1778_v0, %v346_v52 }
  0x44   :  { %v356_v15 = vperm.slane %v1984_v30, 3  ;;  %v290_v22 = vperm.slane %v1932_v24, 6  ;;  %v344_v62 = vadd.f32 %v342_v12, %v339_v45  ;;  %v352_v33 = vmul.f32 %v3466_v47, %v351_v48 }
  0x45   :  { %v345_v7 = vadd.f32 %v343_v11, %v340_v38  ;;  %v278_v23 = vadd.f32 %v276_v53, %v273_v49  ;;  %v279_v3 = vadd.f32 %v277_v51, %v274_v14  ;;  %v361_v31 = vperm.slane %v1984_v30, 4 }
  0x46   :  { %v349_v52 = vadd.f32 %v347_v19, %v344_v62  ;;  %v353_v32 = vmul.f32 %v3467_v50, %v351_v48  ;;  %v384_v41 = vperm.slane %v2020_v58, 0  ;;  %v387_v46 = vperm.slane %v2020_v58, 1 }
  0x47   :  { %v350_v6 = vadd.f32 %v348_v16, %v345_v7  ;;  %v357_v0 = vmul.f32 %v3468_v37, %v356_v15  ;;  %v392_v12 = vperm.slane %v2020_v58, 2  ;;  %v397_v11 = vperm.slane %v2020_v58, 3 }
  0x48   :  { %v354_v53 = vadd.f32 %v352_v33, %v349_v52  ;;  %v385_v49 = vmul.f32 %v384_v41, %v1651_v1  ;;  %v386_v14 = vmul.f32 %v384_v41, %v1656_v2  ;;  %v402_v51 = vperm.slane %v2020_v58, 4 }
  0x49   :  { %v388_v48 = vmul.f32 %v1661_v4, %v387_v46  ;;  %v389_v45 = vmul.f32 %v1666_v5, %v387_v46  ;;  %v393_v38 = vmul.f32 %v1671_v8, %v392_v12  ;;  %v394_v19 = vmul.f32 %v1676_v9, %v392_v12 }
  0x4a   :  { %v283_v16 = vadd.f32 %v281_v39, %v278_v23  ;;  %v358_v62 = vmul.f32 %v1828_v63, %v356_v15  ;;  %v366_v7 = vperm.slane %v1984_v30, 5  ;;  %v407_v33 = vperm.slane %v2020_v58, 5 }
  0x4b   :  { %v390_v52 = vadd.f32 %v388_v48, %v385_v49  ;;  %v391_v44 = vadd.f32 %v389_v45, %v386_v14  ;;  %v398_v41 = vmul.f32 %v1681_v10, %v397_v11  ;;  %v399_v37 = vmul.f32 %v1690_v17, %v397_v11 }
  0x4c   :  { %v355_v50 = vadd.f32 %v353_v32, %v350_v6  ;;  %v359_v47 = vadd.f32 %v357_v0, %v354_v53  ;;  %v362_v46 = vmul.f32 %v1837_v13, %v361_v31  ;;  %v403_v8 = vmul.f32 %v1695_v18, %v402_v51 }
  0x4d   :  { %v395_v12 = vadd.f32 %v393_v38, %v390_v52  ;;  %v396_v39 = vadd.f32 %v394_v19, %v391_v44  ;;  %v404_v15 = vmul.f32 %v1702_v21, %v402_v51  ;;  %v412_v23 = vperm.slane %v2020_v58, 6 }
  0x4e   :  { %v284_v63 = vadd.f32 %v282_v25, %v279_v3  ;;  %v288_v9 = vadd.f32 %v286_v20, %v283_v16  ;;  %v291_v49 = vmul.f32 %v1876_v59, %v290_v22  ;;  %v371_v14 = vperm.slane %v1984_v30, 6  ;;  %v2057_v25 = vld [vmem:[%s3382_s0 + $0x48] sm:$0xff]  ;;  %v3472_v16 = vld [vmem:[#allocation10_spill] sm:$0xff] }
  0x4f   :  { %v363_v11 = vmul.f32 %v1846_v26, %v361_v31  ;;  %v400_v32 = vadd.f32 %v398_v41, %v395_v12  ;;  %v401_v0 = vadd.f32 %v399_v37, %v396_v39  ;;  %v408_v6 = vmul.f32 %v1709_v27, %v407_v33  ;;  %v3473_v39 = vld [vmem:[#allocation14_spill] sm:$0xff] }
  0x50   :  { %v360_v53 = vadd.f32 %v358_v62, %v355_v50  ;;  %v364_v48 = vadd.f32 %v362_v46, %v359_v47  ;;  %v367_v44 = vmul.f32 %v1854_v34, %v366_v7  ;;  %v409_v51 = vmul.f32 %v1715_v29, %v407_v33  ;;  %v3470_v50 = vld [vmem:[#allocation9_spill] sm:$0xff] }
  0x51   :  { %v405_v20 = vadd.f32 %v403_v8, %v400_v32  ;;  %v406_v3 = vadd.f32 %v404_v15, %v401_v0  ;;  %v413_v45 = vmul.f32 %v1722_v35, %v412_v23  ;;  %v417_v31 = vperm.slane %v2020_v58, 7  ;;  %v3477_v15 = vld [vmem:[#allocation11_spill] sm:$0xff] }
  0x52   :  { %v2063_v37 = vadd.f32 %v1953_v28, %v1959_v54  ;;  %v289_v47 = vadd.f32 %v287_v61, %v284_v63  ;;  %v292_v38 = vmul.f32 %v3470_v50, %v290_v22  ;;  %v3471_v19 = vperm.slane %v1932_v24, 7 }
  0x53   :  { %v293_v33 = vadd.f32 %v291_v49, %v288_v9  ;;  %v368_v52 = vmul.f32 %v1859_v40, %v366_v7  ;;  %v376_v8 = vperm.slane %v1984_v30, 7  ;;  %v410_v41 = vadd.f32 %v408_v6, %v405_v20 }
  0x54   :  { %3469 = vst [vmem:[#allocation15_spill] sm:$0xff] %v2063_v37  ;;  %v296_v62 = vmul.f32 %v3472_v16, %v3471_v19  ;;  %v365_v46 = vadd.f32 %v363_v11, %v360_v53  ;;  %v369_v12 = vadd.f32 %v367_v44, %v364_v48  ;;  %v372_v58 = vmul.f32 %v1876_v59, %v371_v14 }
  0x55   :  { %v422_v28 = vperm.slane %v2057_v25, 0  ;;  %v411_v54 = vadd.f32 %v409_v51, %v406_v3  ;;  %v414_v63 = vmul.f32 %v1727_v36, %v412_v23  ;;  %v415_v61 = vadd.f32 %v413_v45, %v410_v41  ;;  %v2090_v23 = vld [vmem:[%s3382_s0 + $0x50] sm:$0xff] }
  0x56   :  { %v418_v22 = vmul.f32 %v1738_v42, %v417_v31  ;;  %v2077_v9 = vadd.f32 %v3473_v39, %v2002_v60  ;;  %v2079_v7 = vadd.f32 %v292_v38, %v289_v47  ;;  %v3476_v30 = vmov %v3471_v19 }
  0x57   :  { %v2084_v49 = vmul.f32 %v3477_v15, %v3476_v30  ;;  %v427_v11 = vperm.slane %v2057_v25, 1  ;;  %v2092_v32 = vadd.f32 %v296_v62, %v293_v33  ;;  %v2095_v0 = vmul.f32 %v3470_v50, %v371_v14  ;;  %v3483_v62 = vld [vmem:[#allocation4_spill] sm:$0xff] }
  0x58   :  { %3474 = vst [vmem:[#allocation9_spill] sm:$0xff] %v2077_v9  ;;  %v2098_v60 = vmul.f32 %v3472_v16, %v376_v8  ;;  %v2101_v24 = vmul.f32 %v3477_v15, %v376_v8  ;;  %v2103_v6 = vadd.f32 %v368_v52, %v365_v46  ;;  %v2105_v53 = vadd.f32 %v372_v58, %v369_v12  ;;  %v3484_v12 = vld [vmem:[#allocation2_spill] sm:$0xff] }
  0x59   :  { %3475 = vst [vmem:[#allocation14_spill] sm:$0xff] %v2079_v7  ;;  %v419_v48 = vmul.f32 %v1743_v43, %v417_v31  ;;  %v423_v44 = vmul.f32 %v1759_v55, %v422_v28  ;;  %v416_v51 = vadd.f32 %v414_v63, %v411_v54  ;;  %v420_v20 = vadd.f32 %v418_v22, %v415_v61  ;;  %v3487_v7 = vld [vmem:[#allocation6_spill] sm:$0xff] }
  0x5a   :  { %3478 = vst [vmem:[#allocation16_spill] sm:$0xff] %v2084_v49  ;;  %v465_v3 = vperm.slane %v2090_v23, 0  ;;  %v468_v14 = vperm.slane %v2090_v23, 1  ;;  %v424_v45 = vmul.f32 %v1764_v56, %v422_v28  ;;  %v428_v47 = vmul.f32 %v1769_v57, %v427_v11  ;;  %v3485_v28 = vld [vmem:[#allocation3_spill] sm:$0xff] }
  0x5b   :  { %3479 = vst [vmem:[#allocation17_spill] sm:$0xff] %v2092_v32  ;;  %v473_v38 = vperm.slane %v2090_v23, 2  ;;  %v478_v19 = vperm.slane %v2090_v23, 3  ;;  %v429_v33 = vmul.f32 %v3483_v62, %v427_v11  ;;  %v483_v8 = vperm.slane %v2090_v23, 4 }
  0x5c   :  { %3480 = vst [vmem:[#allocation18_spill] sm:$0xff] %v2098_v60  ;;  %v466_v31 = vmul.f32 %v465_v3, %v1651_v1  ;;  %v467_v52 = vmul.f32 %v465_v3, %v1656_v2  ;;  %v469_v41 = vmul.f32 %v1661_v4, %v468_v14  ;;  %v470_v46 = vmul.f32 %v1666_v5, %v468_v14 }
  0x5d   :  { %3481 = vst [vmem:[#allocation19_spill] sm:$0xff] %v2101_v24  ;;  %v474_v58 = vmul.f32 %v3484_v12, %v473_v38  ;;  %v475_v54 = vmul.f32 %v3485_v28, %v473_v38  ;;  %v421_v63 = vadd.f32 %v419_v48, %v416_v51  ;;  %v425_v61 = vadd.f32 %v423_v44, %v420_v20  ;;  %v2134_v48 = vld [vmem:[%s3382_s0 + $0x58] sm:$0xff] }
  0x5e   :  { %3482 = vst [vmem:[#allocation20_spill] sm:$0xff] %v2105_v53  ;;  %v432_v22 = vperm.slane %v2057_v25, 2  ;;  %v488_v39 = vperm.slane %v2090_v23, 5  ;;  %v471_v30 = vadd.f32 %v469_v41, %v466_v31  ;;  %v472_v11 = vadd.f32 %v470_v46, %v467_v52  ;;  %v3486_v41 = vld [vmem:[#allocation5_spill] sm:$0xff] }
  0x5f   :  { %v479_v3 = vmul.f32 %v1681_v10, %v478_v19  ;;  %v480_v32 = vmul.f32 %v1690_v17, %v478_v19  ;;  %v437_v9 = vperm.slane %v2057_v25, 3  ;;  %v442_v14 = vperm.slane %v2057_v25, 4 }
  0x60   :  { %v447_v37 = vperm.slane %v2057_v25, 5  ;;  %v484_v38 = vmul.f32 %v1695_v18, %v483_v8  ;;  %v476_v44 = vadd.f32 %v474_v58, %v471_v30  ;;  %v477_v51 = vadd.f32 %v475_v54, %v472_v11  ;;  %v3488_v11 = vld [vmem:[#allocation7_spill] sm:$0xff] }
  0x61   :  { %v485_v20 = vmul.f32 %v1702_v21, %v483_v8  ;;  %v493_v31 = vperm.slane %v2090_v23, 6  ;;  %v426_v19 = vadd.f32 %v424_v45, %v421_v63  ;;  %v430_v52 = vadd.f32 %v428_v47, %v425_v61  ;;  %v3489_v8 = vld [vmem:[#allocation8_spill] sm:$0xff] }
  0x62   :  { %v433_v46 = vmul.f32 %v3486_v41, %v432_v22  ;;  %v489_v24 = vmul.f32 %v1709_v27, %v488_v39  ;;  %v481_v60 = vadd.f32 %v479_v3, %v476_v44  ;;  %v482_v53 = vadd.f32 %v480_v32, %v477_v51 }
  0x63   :  { %v490_v15 = vmul.f32 %v1715_v29, %v488_v39  ;;  %v498_v49 = vperm.slane %v2090_v23, 7  ;;  %v434_v16 = vmul.f32 %v3487_v7, %v432_v22  ;;  %v503_v54 = vperm.slane %v2134_v48, 0 }
  0x64   :  { %v486_v45 = vadd.f32 %v484_v38, %v481_v60  ;;  %v487_v47 = vadd.f32 %v485_v20, %v482_v53  ;;  %v494_v63 = vmul.f32 %v1722_v35, %v493_v31  ;;  %v495_v61 = vmul.f32 %v1727_v36, %v493_v31 }
  0x65   :  { %v431_v30 = vadd.f32 %v429_v33, %v426_v19  ;;  %v435_v32 = vadd.f32 %v433_v46, %v430_v52  ;;  %v438_v39 = vmul.f32 %v3488_v11, %v437_v9  ;;  %v508_v23 = vperm.slane %v2134_v48, 1 }
  0x66   :  { %v491_v3 = vadd.f32 %v489_v24, %v486_v45  ;;  %v492_v22 = vadd.f32 %v490_v15, %v487_v47  ;;  %v499_v44 = vmul.f32 %v1738_v42, %v498_v49  ;;  %v500_v51 = vmul.f32 %v1743_v43, %v498_v49  ;;  %v2161_v15 = vld [vmem:[%s3382_s0 + $0x60] sm:$0xff] }
  0x67   :  { %v439_v58 = vmul.f32 %v3489_v8, %v437_v9  ;;  %v443_v60 = vmul.f32 %v1837_v13, %v442_v14  ;;  %v444_v53 = vmul.f32 %v1846_v26, %v442_v14  ;;  %v513_v38 = vperm.slane %v2134_v48, 2 }
  0x68   :  { %v496_v33 = vadd.f32 %v494_v63, %v491_v3  ;;  %v497_v20 = vadd.f32 %v495_v61, %v492_v22  ;;  %v504_v31 = vmul.f32 %v1759_v55, %v503_v54  ;;  %v505_v19 = vmul.f32 %v1764_v56, %v503_v54 }
  0x69   :  { %v436_v49 = vadd.f32 %v434_v16, %v431_v30  ;;  %v440_v24 = vadd.f32 %v438_v39, %v435_v32  ;;  %v448_v9 = vmul.f32 %v1854_v34, %v447_v37  ;;  %v449_v52 = vmul.f32 %v1859_v40, %v447_v37 }
  0x6a   :  { %v501_v14 = vadd.f32 %v499_v44, %v496_v33  ;;  %v502_v46 = vadd.f32 %v500_v51, %v497_v20  ;;  %v509_v45 = vmul.f32 %v1769_v57, %v508_v23  ;;  %v510_v47 = vmul.f32 %v3483_v62, %v508_v23 }
  0x6b   :  { %v514_v63 = vmul.f32 %v3486_v41, %v513_v38  ;;  %v518_v54 = vperm.slane %v2134_v48, 3  ;;  %v546_v61 = vperm.slane %v2161_v15, 0  ;;  %v549_v3 = vperm.slane %v2161_v15, 1 }
  0x6c   :  { %v506_v16 = vadd.f32 %v504_v31, %v501_v14  ;;  %v507_v30 = vadd.f32 %v505_v19, %v502_v46  ;;  %v554_v32 = vperm.slane %v2161_v15, 2  ;;  %v559_v37 = vperm.slane %v2161_v15, 3 }
  0x6d   :  { %v441_v39 = vadd.f32 %v439_v58, %v436_v49  ;;  %v445_v22 = vadd.f32 %v443_v60, %v440_v24  ;;  %v515_v57 = vmul.f32 %v3487_v7, %v513_v38  ;;  %v523_v23 = vperm.slane %v2134_v48, 4 }
  0x6e   :  { %v511_v44 = vadd.f32 %v509_v45, %v506_v16  ;;  %v512_v51 = vadd.f32 %v510_v47, %v507_v30  ;;  %v547_v33 = vmul.f32 %v546_v61, %v1651_v1  ;;  %v548_v20 = vmul.f32 %v546_v61, %v1656_v2 }
  0x6f   :  { %v550_v41 = vmul.f32 %v1661_v4, %v549_v3  ;;  %v551_v31 = vmul.f32 %v1666_v5, %v549_v3  ;;  %v555_v19 = vmul.f32 %v3484_v12, %v554_v32  ;;  %v556_v14 = vmul.f32 %v3485_v28, %v554_v32 }
  0x70   :  { %v516_v58 = vadd.f32 %v514_v63, %v511_v44  ;;  %v519_v60 = vmul.f32 %v3488_v11, %v518_v54  ;;  %v560_v38 = vmul.f32 %v1681_v10, %v559_v37  ;;  %v561_v49 = vmul.f32 %v1690_v17, %v559_v37 }
  0x71   :  { %v552_v24 = vadd.f32 %v550_v41, %v547_v33  ;;  %v553_v46 = vadd.f32 %v551_v31, %v548_v20  ;;  %v564_v1 = vperm.slane %v2161_v15, 4  ;;  %v569_v2 = vperm.slane %v2161_v15, 5 }
  0x72   :  { %v446_v4 = vadd.f32 %v444_v53, %v441_v39  ;;  %v3490_v5 = vperm.slane %v2057_v25, 6  ;;  %v517_v45 = vadd.f32 %v515_v57, %v512_v51  ;;  %v520_v28 = vmul.f32 %v3489_v8, %v518_v54 }
  0x73   :  { %v557_v47 = vadd.f32 %v555_v19, %v552_v24  ;;  %v558_v63 = vadd.f32 %v556_v14, %v553_v46  ;;  %v565_v10 = vmul.f32 %v1695_v18, %v564_v1  ;;  %v566_v17 = vmul.f32 %v1702_v21, %v564_v1  ;;  %v3498_v24 = vld [vmem:[#allocation11_spill] sm:$0xff] }
  0x74   :  { %v453_v12 = vmul.f32 %v1876_v59, %v3490_v5  ;;  %v450_v41 = vadd.f32 %v448_v9, %v445_v22  ;;  %v521_v61 = vadd.f32 %v519_v60, %v516_v58  ;;  %v524_v3 = vmul.f32 %v1837_v13, %v523_v23  ;;  %v3494_v58 = vld [vmem:[#allocation14_spill] sm:$0xff]  ;;  %v3495_v60 = vld [vmem:[#allocation16_spill] sm:$0xff] }
  0x75   :  { %v528_v16 = vperm.slane %v2134_v48, 5  ;;  %v562_v53 = vadd.f32 %v560_v38, %v557_v47  ;;  %v563_v30 = vadd.f32 %v561_v49, %v558_v63  ;;  %v570_v32 = vmul.f32 %v1709_v27, %v569_v2  ;;  %v3493_v27 = vld [vmem:[#allocation10_spill] sm:$0xff] }
  0x76   :  { %v574_v37 = vperm.slane %v2161_v15, 6  ;;  %v375_v54 = vadd.f32 %v2095_v0, %v2103_v6  ;;  %v451_v39 = vadd.f32 %v449_v52, %v446_v4  ;;  %v3491_v18 = vmov %v3490_v5 }
  0x77   :  { %v454_v21 = vmul.f32 %v3470_v50, %v3491_v18  ;;  %v525_v9 = vmul.f32 %v1846_v26, %v523_v23  ;;  %v522_v22 = vadd.f32 %v520_v28, %v517_v45  ;;  %v567_v57 = vadd.f32 %v565_v10, %v562_v53  ;;  %v3500_v45 = vld [vmem:[#allocation18_spill] sm:$0xff] }
  0x78   :  { %v568_v44 = vadd.f32 %v566_v17, %v563_v30  ;;  %v571_v51 = vmul.f32 %v1715_v29, %v569_v2  ;;  %v3492_v33 = vperm.slane %v2057_v25, 7  ;;  %v526_v31 = vadd.f32 %v524_v3, %v521_v61  ;;  %v2221_v2 = vld [vmem:[%s3382_s0 + $0x68] sm:$0xff] }
  0x79   :  { %v529_v19 = vmul.f32 %v1854_v34, %v528_v16  ;;  %v533_v0 = vperm.slane %v2134_v48, 6  ;;  %v455_v6 = vadd.f32 %v453_v12, %v450_v41  ;;  %v572_v52 = vadd.f32 %v570_v32, %v567_v57  ;;  %v3499_v12 = vld [vmem:[#allocation20_spill] sm:$0xff]  ;;  %v3502_v25 = vld [vmem:[#allocation19_spill] sm:$0xff] }
  0x7a   :  { %v458_v20 = vmul.f32 %v3493_v27, %v3492_v33  ;;  %v575_v14 = vmul.f32 %v1722_v35, %v574_v37  ;;  %v579_v23 = vperm.slane %v2161_v15, 7  ;;  %v2212_v38 = vadd.f32 %v3495_v60, %v3494_v58  ;;  %v2293_v60 = vld [vmem:[%s3383_s1 + $0x28] sm:$0xff] }
  0x7b   :  { %v456_v29 = vadd.f32 %v454_v21, %v451_v39  ;;  %v3497_v49 = vmov %v3492_v33  ;;  %v538_v1 = vperm.slane %v2134_v48, 7  ;;  %v527_v4 = vadd.f32 %v525_v9, %v522_v22 }
  0x7c   :  { %3496 = vst [vmem:[#allocation4_spill] sm:$0xff] %v2212_v38  ;;  %v459_v46 = vmul.f32 %v3498_v24, %v3497_v49  ;;  %v530_v35 = vmul.f32 %v1859_v40, %v528_v16  ;;  %v573_v15 = vadd.f32 %v571_v51, %v568_v44  ;;  %v576_v5 = vmul.f32 %v1727_v36, %v574_v37  ;;  %v2240_v36 = vld [vmem:[%s3382_s0 + $0x70] sm:$0xff] }
  0x7d   :  { %v2227_v28 = vadd.f32 %v3500_v45, %v3499_v12  ;;  %v2230_v47 = vadd.f32 %v3502_v25, %v375_v54  ;;  %v531_v63 = vadd.f32 %v529_v19, %v526_v31  ;;  %v534_v48 = vmul.f32 %v1876_v59, %v533_v0 }
  0x7e   :  { %v2233_v10 = vadd.f32 %v458_v20, %v455_v6  ;;  %v577_v17 = vadd.f32 %v575_v14, %v572_v52  ;;  %v580_v41 = vmul.f32 %v1738_v42, %v579_v23  ;;  %v584_v61 = vperm.slane %v2221_v2, 0  ;;  %v2268_v20 = vld [vmem:[%s3383_s1 + $0x8] sm:$0xff] }
  0x7f   :  { %3501 = vst [vmem:[#allocation2_spill] sm:$0xff] %v2227_v28  ;;  %v2242_v3 = vadd.f32 %v459_v46, %v456_v29  ;;  %v535_v16 = vmul.f32 %v3470_v50, %v533_v0  ;;  %v2246_v53 = vmul.f32 %v3493_v27, %v538_v1  ;;  %v2249_v30 = vmul.f32 %v3498_v24, %v538_v1  ;;  %v2280_v0 = vld [vmem:[%s3383_s1 + $0x18] sm:$0xff] }
  0x80   :  { %3503 = vst [vmem:[#allocation3_spill] sm:$0xff] %v2230_v47  ;;  %v532_v32 = vadd.f32 %v530_v35, %v527_v4  ;;  %v578_v37 = vadd.f32 %v576_v5, %v573_v15  ;;  %v581_v42 = vmul.f32 %v1743_v43, %v579_v23  ;;  %v589_v54 = vperm.slane %v2221_v2, 1  ;;  %v2262_v43 = vld [vmem:[%s3383_s1] sm:$0xff]  ;;  %v2305_v4 = vld [vmem:[%s3383_s1 + $0x38] sm:$0xff]  ;;  %v2311_v5 = vld [vmem:[%s3383_s1 + $0x90] sm:$0xff] }
  0x81   :  { %3504 = vst [vmem:[#allocation6_spill] sm:$0xff] %v2233_v10  ;;  %v536_v39 = vadd.f32 %v534_v48, %v531_v63  ;;  %v594_v18 = vperm.slane %v2221_v2, 2  ;;  %v627_v21 = vperm.slane %v2240_v36, 0  ;;  %v630_v9 = vperm.slane %v2240_v36, 1  ;;  %v2287_v23 = vld [vmem:[%s3383_s1 + $0x20] sm:$0xff] }
  0x82   :  { %3505 = vst [vmem:[#allocation7_spill] sm:$0xff] %v2242_v3  ;;  %v582_v22 = vadd.f32 %v580_v41, %v577_v17  ;;  %v585_v57 = vmul.f32 %v1759_v55, %v584_v61  ;;  %v635_v44 = vperm.slane %v2240_v36, 2  ;;  %v640_v51 = vperm.slane %v2240_v36, 3  ;;  %v2274_v55 = vld [vmem:[%s3383_s1 + $0x10] sm:$0xff] }
  0x83   :  { %v628_v33 = vmul.f32 %v2262_v43, %v627_v21  ;;  %v629_v31 = vmul.f32 %v2268_v20, %v627_v21  ;;  %v631_v19 = vmul.f32 %v2274_v55, %v630_v9  ;;  %v632_v6 = vmul.f32 %v2280_v0, %v630_v9  ;;  %3506 = vst [vmem:[#allocation8_spill] sm:$0xff] %v2287_v23  ;;  %v2327_v21 = vld [vmem:[%s3383_s1 + $0x48] sm:$0xff] }
  0x84   :  { %v583_v52 = vadd.f32 %v581_v42, %v578_v37  ;;  %v586_v14 = vmul.f32 %v1764_v56, %v584_v61  ;;  %v636_v58 = vmul.f32 %v2287_v23, %v635_v44  ;;  %v637_v29 = vmul.f32 %v2293_v60, %v635_v44  ;;  %v2299_v56 = vld [vmem:[%s3383_s1 + $0x30] sm:$0xff]  ;;  %3507 = vst [vmem:[#allocation10_spill] sm:$0xff] %v2311_v5  ;;  %v2321_v37 = vld [vmem:[%s3383_s1 + $0x40] sm:$0xff] }
  0x85   :  { %v633_v49 = vadd.f32 %v631_v19, %v628_v33  ;;  %v634_v46 = vadd.f32 %v632_v6, %v629_v31  ;;  %v641_v1 = vmul.f32 %v2299_v56, %v640_v51  ;;  %v642_v35 = vmul.f32 %v2305_v4, %v640_v51  ;;  %v2340_v51 = vld [vmem:[%s3383_s1 + $0x58] sm:$0xff] }
  0x86   :  { %v587_v15 = vadd.f32 %v585_v57, %v582_v22  ;;  %v590_v12 = vmul.f32 %v2311_v5, %v589_v54  ;;  %v645_v45 = vperm.slane %v2240_v36, 4  ;;  %v650_v25 = vperm.slane %v2240_v36, 5  ;;  %v2334_v57 = vld [vmem:[%s3383_s1 + $0x50] sm:$0xff]  ;;  %v3508_v6 = vld [vmem:[#allocation5_spill] sm:$0xff] }
  0x87   :  { %v591_v63 = vmul.f32 %v3483_v62, %v589_v54  ;;  %v638_v48 = vadd.f32 %v636_v58, %v633_v49  ;;  %v639_v17 = vadd.f32 %v637_v29, %v634_v46  ;;  %v655_v41 = vperm.slane %v2240_v36, 6  ;;  %v2353_v49 = vld [vmem:[%s3383_s1 + $0x60] sm:$0xff] }
  0x88   :  { %v588_v61 = vadd.f32 %v586_v14, %v583_v52  ;;  %v646_v42 = vmul.f32 %v2321_v37, %v645_v45  ;;  %v647_v9 = vmul.f32 %v2327_v21, %v645_v45  ;;  %v660_v62 = vperm.slane %v2240_v36, 7  ;;  %v2348_v14 = vld [vmem:[%s3382_s0 + $0x78] sm:$0xff] }
  0x89   :  { %v643_v54 = vadd.f32 %v641_v1, %v638_v48  ;;  %v644_v22 = vadd.f32 %v642_v35, %v639_v17  ;;  %v651_v44 = vmul.f32 %v2334_v57, %v650_v25  ;;  %v652_v33 = vmul.f32 %v2340_v51, %v650_v25  ;;  %v2375_v17 = vld [vmem:[%s3383_s1 + $0x78] sm:$0xff] }
  0x8a   :  { %v537_v31 = vadd.f32 %v535_v16, %v532_v32  ;;  %v592_v19 = vadd.f32 %v590_v12, %v587_v15  ;;  %v595_v36 = vmul.f32 %v3508_v6, %v594_v18  ;;  %v599_v52 = vperm.slane %v2221_v2, 3  ;;  %v2359_v16 = vld [vmem:[%s3383_s1 + $0x68] sm:$0xff]  ;;  %v2369_v12 = vld [vmem:[%s3383_s1 + $0x70] sm:$0xff] }
  0x8b   :  { %v648_v58 = vadd.f32 %v646_v42, %v643_v54  ;;  %v649_v29 = vadd.f32 %v647_v9, %v644_v22  ;;  %v656_v46 = vmul.f32 %v2353_v49, %v655_v41  ;;  %v657_v32 = vmul.f32 %v2359_v16, %v655_v41 }
  0x8c   :  { %v2363_v1 = vadd.f32 %v2246_v53, %v536_v39  ;;  %v593_v35 = vadd.f32 %v591_v63, %v588_v61  ;;  %v596_v15 = vmul.f32 %v3487_v7, %v594_v18  ;;  %v661_v45 = vmul.f32 %v2369_v12, %v660_v62 }
  0x8d   :  { %v653_v25 = vadd.f32 %v651_v44, %v648_v58  ;;  %v654_v48 = vadd.f32 %v652_v33, %v649_v29  ;;  %v662_v53 = vmul.f32 %v2375_v17, %v660_v62  ;;  %v665_v39 = vperm.slane %v2348_v14, 0  ;;  %v2389_v62 = vld [vmem:[%s3382_s0 + $0x80] sm:$0xff] }
  0x8e   :  { %3509 = vst [vmem:[#allocation14_spill] sm:$0xff] %v2363_v1  ;;  %v2380_v7 = vadd.f32 %v2249_v30, %v537_v31  ;;  %v600_v18 = vmul.f32 %v3488_v11, %v599_v52  ;;  %v604_v63 = vperm.slane %v2221_v2, 4  ;;  %v609_v41 = vperm.slane %v2221_v2, 5 }
  0x8f   :  { %v597_v61 = vadd.f32 %v595_v36, %v592_v19  ;;  %v614_v42 = vperm.slane %v2221_v2, 6  ;;  %v658_v9 = vadd.f32 %v656_v46, %v653_v25  ;;  %v659_v54 = vadd.f32 %v657_v32, %v654_v48  ;;  %v2397_v19 = vld [vmem:[%s3383_s1 + $0x80] sm:$0xff]  ;;  %v2403_v36 = vld [vmem:[%s3383_s1 + $0x88] sm:$0xff] }
  0x90   :  { %3510 = vst [vmem:[#allocation16_spill] sm:$0xff] %v2380_v7  ;;  %v598_v22 = vadd.f32 %v596_v15, %v593_v35  ;;  %v601_v30 = vmul.f32 %v3489_v8, %v599_v52  ;;  %v3416_v44 = vperm.slane %v2221_v2, 7  ;;  %v670_v11 = vperm.slane %v2348_v14, 1 }
  0x91   :  { %v663_v33 = vadd.f32 %v661_v45, %v658_v9  ;;  %v664_v31 = vadd.f32 %v662_v53, %v659_v54  ;;  %v666_v6 = vmul.f32 %v2397_v19, %v665_v39  ;;  %v667_v8 = vmul.f32 %v2403_v36, %v665_v39 }
  0x92   :  { %v605_v52 = vmul.f32 %v1837_v13, %v604_v63  ;;  %v606_v58 = vmul.f32 %v1846_v26, %v604_v63  ;;  %v708_v29 = vperm.slane %v2389_v62, 0  ;;  %v711_v46 = vperm.slane %v2389_v62, 1 }
  0x93   :  { %v602_v32 = vadd.f32 %v600_v18, %v597_v61  ;;  %v610_v35 = vmul.f32 %v1854_v34, %v609_v41  ;;  %v611_v15 = vmul.f32 %v1859_v40, %v609_v41  ;;  %v2413_v45 = vmul.f32 %v1876_v59, %v614_v42  ;;  %v2428_v40 = vld [vmem:[%s3383_s1 + $0x98] sm:$0xff] }
  0x94   :  { %v603_v25 = vadd.f32 %v601_v30, %v598_v22  ;;  %v2416_v48 = vmul.f32 %v3470_v50, %v614_v42  ;;  %v2421_v13 = vmul.f32 %v3493_v27, %v3416_v44  ;;  %v675_v26 = vperm.slane %v2348_v14, 2  ;;  %3512 = vst [vmem:[#allocation20_spill] sm:$0xff] %v2428_v40 }
  0x95   :  { %v668_v53 = vadd.f32 %v666_v6, %v663_v33  ;;  %v669_v39 = vadd.f32 %v667_v8, %v664_v31  ;;  %v671_v34 = vmul.f32 %v2311_v5, %v670_v11  ;;  %v672_v59 = vmul.f32 %v2428_v40, %v670_v11  ;;  %v2443_v33 = vld [vmem:[%s3383_s1 + $0xa0] sm:$0xff]  ;;  %v2449_v6 = vld [vmem:[%s3383_s1 + $0xa8] sm:$0xff] }
  0x96   :  { %3511 = vst [vmem:[#allocation11_spill] sm:$0xff] %v2421_v13  ;;  %v709_v50 = vmul.f32 %v2262_v43, %v708_v29  ;;  %v710_v18 = vmul.f32 %v2268_v20, %v708_v29  ;;  %v712_v27 = vmul.f32 %v2274_v55, %v711_v46  ;;  %v713_v63 = vmul.f32 %v2280_v0, %v711_v46 }
  0x97   :  { %v607_v41 = vadd.f32 %v605_v52, %v602_v32  ;;  %v680_v61 = vperm.slane %v2348_v14, 3  ;;  %v716_v42 = vperm.slane %v2389_v62, 2  ;;  %v721_v9 = vperm.slane %v2389_v62, 3  ;;  %3513 = vst [vmem:[#allocation18_spill] sm:$0xff] %v2443_v33 }
  0x98   :  { %v714_v54 = vadd.f32 %v712_v27, %v709_v50  ;;  %v715_v22 = vadd.f32 %v713_v63, %v710_v18  ;;  %v726_v30 = vperm.slane %v2389_v62, 4  ;;  %v731_v11 = vperm.slane %v2389_v62, 5  ;;  %3514 = vst [vmem:[#allocation19_spill] sm:$0xff] %v2449_v6 }
  0x99   :  { %v676_v31 = vmul.f32 %v2443_v33, %v675_v26  ;;  %v677_v8 = vmul.f32 %v2449_v6, %v675_v26  ;;  %v717_v52 = vmul.f32 %v2287_v23, %v716_v42  ;;  %v718_v29 = vmul.f32 %v2293_v60, %v716_v42  ;;  %v2461_v26 = vld [vmem:[%s3383_s1 + $0xb0] sm:$0xff] }
  0x9a   :  { %v673_v46 = vadd.f32 %v671_v34, %v668_v53  ;;  %v674_v32 = vadd.f32 %v672_v59, %v669_v39  ;;  %v722_v50 = vmul.f32 %v2299_v56, %v721_v9  ;;  %v723_v18 = vmul.f32 %v2305_v4, %v721_v9  ;;  %3515 = vst [vmem:[#allocation5_spill] sm:$0xff] %v2461_v26 }
  0x9b   :  { %v719_v27 = vadd.f32 %v717_v52, %v714_v54  ;;  %v720_v63 = vadd.f32 %v718_v29, %v715_v22  ;;  %v727_v44 = vmul.f32 %v2321_v37, %v726_v30  ;;  %v728_v7 = vmul.f32 %v2327_v21, %v726_v30  ;;  %v2478_v29 = vld [vmem:[%s3382_s0 + $0x88] sm:$0xff] }
  0x9c   :  { %v608_v1 = vadd.f32 %v606_v58, %v603_v25  ;;  %v681_v42 = vmul.f32 %v2461_v26, %v680_v61  ;;  %v732_v53 = vmul.f32 %v2334_v57, %v731_v11  ;;  %v736_v39 = vperm.slane %v2389_v62, 6  ;;  %v2471_v58 = vld [vmem:[%s3383_s1 + $0xb8] sm:$0xff] }
  0x9d   :  { %v724_v34 = vadd.f32 %v722_v50, %v719_v27  ;;  %v725_v59 = vadd.f32 %v723_v18, %v720_v63  ;;  %v733_v9 = vmul.f32 %v2340_v51, %v731_v11  ;;  %v741_v54 = vperm.slane %v2389_v62, 7  ;;  %3516 = vst [vmem:[#allocation21_spill] sm:$0xff] %v2471_v58 }
  0x9e   :  { %v678_v22 = vadd.f32 %v676_v31, %v673_v46  ;;  %v679_v30 = vadd.f32 %v677_v8, %v674_v32  ;;  %v682_v25 = vmul.f32 %v2471_v58, %v680_v61  ;;  %v685_v52 = vperm.slane %v2348_v14, 4 }
  0x9f   :  { %v729_v50 = vadd.f32 %v727_v44, %v724_v34  ;;  %v730_v11 = vadd.f32 %v728_v7, %v725_v59  ;;  %v737_v62 = vmul.f32 %v2353_v49, %v736_v39  ;;  %v738_v31 = vmul.f32 %v2359_v16, %v736_v39  ;;  %v2489_v7 = vld [vmem:[%s3383_s1 + $0xc0] sm:$0xff] }
  0xa0   :  { %v612_v8 = vadd.f32 %v610_v35, %v607_v41  ;;  %v613_v46 = vadd.f32 %v611_v15, %v608_v1  ;;  %v690_v32 = vperm.slane %v2348_v14, 5  ;;  %v695_v18 = vperm.slane %v2348_v14, 6  ;;  %3517 = vst [vmem:[#allocation22_spill] sm:$0xff] %v2489_v7  ;;  %v2495_v1 = vld [vmem:[%s3383_s1 + $0xc8] sm:$0xff] }
  0xa1   :  { %v734_v61 = vadd.f32 %v732_v53, %v729_v50  ;;  %v735_v27 = vadd.f32 %v733_v9, %v730_v11  ;;  %v742_v63 = vmul.f32 %v2369_v12, %v741_v54  ;;  %v746_v3 = vperm.slane %v2478_v29, 0  ;;  %v2543_v11 = vld [vmem:[%s3383_s1 + $0xe8] sm:$0xff] }
  0xa2   :  { %v683_v10 = vadd.f32 %v681_v42, %v678_v22  ;;  %v686_v44 = vmul.f32 %v2489_v7, %v685_v52  ;;  %v687_v35 = vmul.f32 %v2495_v1, %v685_v52  ;;  %v700_v15 = vperm.slane %v2348_v14, 7  ;;  %v2514_v14 = vld [vmem:[%s3383_s1 + $0xd0] sm:$0xff]  ;;  %v2535_v52 = vld [vmem:[%s3383_s1 + $0xe0] sm:$0xff] }
  0xa3   :  { %v684_v41 = vadd.f32 %v682_v25, %v679_v30  ;;  %v739_v53 = vadd.f32 %v737_v62, %v734_v61  ;;  %v740_v39 = vadd.f32 %v738_v31, %v735_v27  ;;  %v743_v42 = vmul.f32 %v2375_v17, %v741_v54  ;;  %v2530_v25 = vld [vmem:[%s3382_s0 + $0x90] sm:$0xff] }
  0xa4   :  { %v2501_v34 = vadd.f32 %v2413_v45, %v612_v8  ;;  %v2504_v59 = vadd.f32 %v2416_v48, %v613_v46  ;;  %v3520_v9 = vperm.slane %v2221_v2, 7  ;;  %v691_v30 = vmul.f32 %v2514_v14, %v690_v32  ;;  %v2520_v45 = vld [vmem:[%s3383_s1 + $0xd8] sm:$0xff]  ;;  %v2551_v31 = vld [vmem:[%s3383_s1 + $0xf0] sm:$0xff] }
  0xa5   :  { %v2523_v48 = vmul.f32 %v2520_v45, %v690_v32  ;;  %v744_v54 = vadd.f32 %v742_v63, %v739_v53  ;;  %v747_v2 = vmul.f32 %v2397_v19, %v746_v3  ;;  %v2538_v50 = vmul.f32 %v2535_v52, %v695_v18  ;;  %3523 = vst [vmem:[#allocation27_spill] sm:$0xff] %v2551_v31  ;;  %v2559_v46 = vld [vmem:[%s3383_s1 + $0xf8] sm:$0xff] }
  0xa6   :  { %3518 = vst [vmem:[#allocation23_spill] sm:$0xff] %v2501_v34  ;;  %v2509_v22 = vmul.f32 %v3498_v24, %v3520_v9  ;;  %v751_v24 = vperm.slane %v2478_v29, 1  ;;  %v2546_v62 = vmul.f32 %v2543_v11, %v695_v18  ;;  %v2554_v8 = vmul.f32 %v2551_v31, %v700_v15 }
  0xa7   :  { %3519 = vst [vmem:[#allocation24_spill] sm:$0xff] %v2504_v59  ;;  %v2562_v32 = vmul.f32 %v2559_v46, %v700_v15  ;;  %v688_v61 = vadd.f32 %v686_v44, %v683_v10  ;;  %v689_v27 = vadd.f32 %v687_v35, %v684_v41  ;;  %v745_v18 = vadd.f32 %v743_v42, %v740_v39 }
  0xa8   :  { %3521 = vst [vmem:[#allocation25_spill] sm:$0xff] %v2509_v22  ;;  %v748_v63 = vmul.f32 %v2403_v36, %v746_v3  ;;  %v756_v53 = vperm.slane %v2478_v29, 2  ;;  %v761_v9 = vperm.slane %v2478_v29, 3  ;;  %v789_v47 = vperm.slane %v2530_v25, 0 }
  0xa9   :  { %3522 = vst [vmem:[#allocation26_spill] sm:$0xff] %v2546_v62  ;;  %v792_v28 = vperm.slane %v2530_v25, 1  ;;  %v749_v38 = vadd.f32 %v747_v2, %v744_v54  ;;  %v797_v22 = vperm.slane %v2530_v25, 2  ;;  %v802_v15 = vperm.slane %v2530_v25, 3 }
  0xaa   :  { %3524 = vst [vmem:[#allocation28_spill] sm:$0xff] %v2554_v8  ;;  %v752_v8 = vmul.f32 %v2311_v5, %v751_v24  ;;  %v790_v10 = vmul.f32 %v2262_v43, %v789_v47  ;;  %v791_v44 = vmul.f32 %v2268_v20, %v789_v47  ;;  %v750_v41 = vadd.f32 %v748_v63, %v745_v18 }
  0xab   :  { %3525 = vst [vmem:[#allocation29_spill] sm:$0xff] %v2559_v46  ;;  %v793_v3 = vmul.f32 %v2274_v55, %v792_v28  ;;  %v794_v35 = vmul.f32 %v2280_v0, %v792_v28  ;;  %v753_v39 = vmul.f32 %v2428_v40, %v751_v24  ;;  %v798_v42 = vmul.f32 %v2287_v23, %v797_v22 }
  0xac   :  { %3526 = vst [vmem:[#allocation30_spill] sm:$0xff] %v2562_v32  ;;  %v799_v54 = vmul.f32 %v2293_v60, %v797_v22  ;;  %v803_v59 = vmul.f32 %v2299_v56, %v802_v15  ;;  %v804_v13 = vmul.f32 %v2305_v4, %v802_v15  ;;  %v757_v34 = vmul.f32 %v2443_v33, %v756_v53 }
  0xad   :  { %v795_v2 = vadd.f32 %v793_v3, %v790_v10  ;;  %v796_v32 = vadd.f32 %v794_v35, %v791_v44  ;;  %v758_v47 = vmul.f32 %v2449_v6, %v756_v53  ;;  %v807_v46 = vperm.slane %v2530_v25, 4  ;;  %v2592_v53 = vld [vmem:[%s3382_s0 + $0x98] sm:$0xff] }
  0xae   :  { %v812_v28 = vperm.slane %v2530_v25, 5  ;;  %v754_v18 = vadd.f32 %v752_v8, %v749_v38  ;;  %v817_v31 = vperm.slane %v2530_v25, 6  ;;  %v755_v22 = vadd.f32 %v753_v39, %v750_v41 }
  0xaf   :  { %v800_v24 = vadd.f32 %v798_v42, %v795_v2  ;;  %v801_v63 = vadd.f32 %v799_v54, %v796_v32  ;;  %v808_v10 = vmul.f32 %v2321_v37, %v807_v46  ;;  %v809_v44 = vmul.f32 %v2327_v21, %v807_v46 }
  0xb0   :  { %v822_v15 = vperm.slane %v2530_v25, 7  ;;  %v813_v38 = vmul.f32 %v2334_v57, %v812_v28  ;;  %v814_v8 = vmul.f32 %v2340_v51, %v812_v28  ;;  %v2596_v32 = vadd.f32 %v691_v30, %v688_v61 }
  0xb1   :  { %v805_v3 = vadd.f32 %v803_v59, %v800_v24  ;;  %v806_v35 = vadd.f32 %v804_v13, %v801_v63  ;;  %v762_v41 = vmul.f32 %v2461_v26, %v761_v9  ;;  %v763_v39 = vmul.f32 %v2471_v58, %v761_v9 }
  0xb2   :  { %v766_v46 = vperm.slane %v2478_v29, 4  ;;  %v818_v54 = vmul.f32 %v2353_v49, %v817_v31  ;;  %v819_v2 = vmul.f32 %v2359_v16, %v817_v31  ;;  %v759_v59 = vadd.f32 %v757_v34, %v754_v18 }
  0xb3   :  { %v810_v25 = vadd.f32 %v808_v10, %v805_v3  ;;  %v811_v42 = vadd.f32 %v809_v44, %v806_v35  ;;  %v760_v13 = vadd.f32 %v758_v47, %v755_v22  ;;  %v823_v24 = vmul.f32 %v2369_v12, %v822_v15 }
  0xb4   :  { %v827_v28 = vperm.slane %v2592_v53, 0  ;;  %v824_v63 = vmul.f32 %v2375_v17, %v822_v15  ;;  %v832_v9 = vperm.slane %v2592_v53, 1  ;;  %v2608_v62 = vadd.f32 %v2523_v48, %v689_v27  ;;  %v2618_v15 = vld [vmem:[%s3382_s0 + $0xa0] sm:$0xff] }
  0xb5   :  { %v815_v30 = vadd.f32 %v813_v38, %v810_v25  ;;  %v816_v61 = vadd.f32 %v814_v8, %v811_v42  ;;  %v767_v10 = vmul.f32 %v2489_v7, %v766_v46  ;;  %v771_v44 = vperm.slane %v2478_v29, 5 }
  0xb6   :  { %v837_v34 = vperm.slane %v2592_v53, 2  ;;  %v828_v18 = vmul.f32 %v2397_v19, %v827_v28  ;;  %v829_v22 = vmul.f32 %v2403_v36, %v827_v28  ;;  %v764_v3 = vadd.f32 %v762_v41, %v759_v59 }
  0xb7   :  { %v820_v31 = vadd.f32 %v818_v54, %v815_v30  ;;  %v821_v47 = vadd.f32 %v819_v2, %v816_v61  ;;  %v765_v48 = vadd.f32 %v763_v39, %v760_v13  ;;  %v768_v27 = vmul.f32 %v2495_v1, %v766_v46 }
  0xb8   :  { %v842_v35 = vperm.slane %v2592_v53, 3  ;;  %v833_v25 = vmul.f32 %v2311_v5, %v832_v9  ;;  %v834_v42 = vmul.f32 %v2428_v40, %v832_v9  ;;  %v776_v54 = vperm.slane %v2478_v29, 6 }
  0xb9   :  { %v825_v38 = vadd.f32 %v823_v24, %v820_v31  ;;  %v826_v8 = vadd.f32 %v824_v63, %v821_v47  ;;  %v781_v2 = vperm.slane %v2478_v29, 7  ;;  %v870_v28 = vperm.slane %v2618_v15, 0 }
  0xba   :  { %v873_v30 = vperm.slane %v2618_v15, 1  ;;  %v772_v41 = vmul.f32 %v2514_v14, %v771_v44  ;;  %v838_v59 = vmul.f32 %v2443_v33, %v837_v34  ;;  %v769_v13 = vadd.f32 %v767_v10, %v764_v3 }
  0xbb   :  { %v830_v39 = vadd.f32 %v828_v18, %v825_v38  ;;  %v831_v46 = vadd.f32 %v829_v22, %v826_v8  ;;  %v770_v24 = vadd.f32 %v768_v27, %v765_v48  ;;  %v773_v61 = vmul.f32 %v2520_v45, %v771_v44 }
  0xbc   :  { %v839_v63 = vmul.f32 %v2449_v6, %v837_v34  ;;  %v843_v29 = vmul.f32 %v2461_v26, %v842_v35  ;;  %v847_v47 = vperm.slane %v2592_v53, 4  ;;  %v871_v40 = vmul.f32 %v2262_v43, %v870_v28 }
  0xbd   :  { %v835_v9 = vadd.f32 %v833_v25, %v830_v39  ;;  %v836_v31 = vadd.f32 %v834_v42, %v831_v46  ;;  %v872_v5 = vmul.f32 %v2268_v20, %v870_v28  ;;  %v874_v18 = vmul.f32 %v2274_v55, %v873_v30 }
  0xbe   :  { %v875_v22 = vmul.f32 %v2280_v0, %v873_v30  ;;  %v844_v3 = vmul.f32 %v2471_v58, %v842_v35  ;;  %v878_v44 = vperm.slane %v2618_v15, 2  ;;  %v883_v34 = vperm.slane %v2618_v15, 3 }
  0xbf   :  { %v840_v10 = vadd.f32 %v838_v59, %v835_v9  ;;  %v852_v48 = vperm.slane %v2592_v53, 5  ;;  %v876_v27 = vadd.f32 %v874_v18, %v871_v40  ;;  %v888_v8 = vperm.slane %v2618_v15, 4 }
  0xc0   :  { %v877_v38 = vadd.f32 %v875_v22, %v872_v5  ;;  %v848_v25 = vmul.f32 %v2489_v7, %v847_v47  ;;  %v879_v42 = vmul.f32 %v2287_v23, %v878_v44  ;;  %v880_v28 = vmul.f32 %v2293_v60, %v878_v44 }
  0xc1   :  { %v893_v30 = vperm.slane %v2618_v15, 5  ;;  %v841_v39 = vadd.f32 %v839_v63, %v836_v31  ;;  %v845_v35 = vadd.f32 %v843_v29, %v840_v10  ;;  %v884_v46 = vmul.f32 %v2299_v56, %v883_v34 }
  0xc2   :  { %v885_v59 = vmul.f32 %v2305_v4, %v883_v34  ;;  %v881_v9 = vadd.f32 %v879_v42, %v876_v27  ;;  %v882_v58 = vadd.f32 %v880_v28, %v877_v38  ;;  %v889_v5 = vmul.f32 %v2321_v37, %v888_v8 }
  0xc3   :  { %v890_v40 = vmul.f32 %v2327_v21, %v888_v8  ;;  %v774_v18 = vadd.f32 %v772_v41, %v769_v13  ;;  %v775_v22 = vadd.f32 %v773_v61, %v770_v24  ;;  %v777_v7 = vmul.f32 %v2535_v52, %v776_v54  ;;  %v3528_v8 = vld [vmem:[#allocation27_spill] sm:$0xff] }
  0xc4   :  { %v778_v44 = vmul.f32 %v2543_v11, %v776_v54  ;;  %v886_v26 = vadd.f32 %v884_v46, %v881_v9  ;;  %v887_v6 = vadd.f32 %v885_v59, %v882_v58  ;;  %v894_v63 = vmul.f32 %v2334_v57, %v893_v30  ;;  %v3527_v58 = vld [vmem:[#allocation26_spill] sm:$0xff]  ;;  %v3530_v59 = vld [vmem:[#allocation23_spill] sm:$0xff] }
  0xc5   :  { %v898_v31 = vperm.slane %v2618_v15, 6  ;;  %v846_v29 = vadd.f32 %v844_v3, %v841_v39  ;;  %v849_v10 = vmul.f32 %v2495_v1, %v847_v47  ;;  %v853_v34 = vmul.f32 %v2514_v14, %v852_v48  ;;  %v3529_v3 = vld [vmem:[#allocation29_spill] sm:$0xff]  ;;  %v3531_v9 = vld [vmem:[#allocation11_spill] sm:$0xff] }
  0xc6   :  { %v857_v27 = vperm.slane %v2592_v53, 6  ;;  %v850_v38 = vadd.f32 %v848_v25, %v845_v35  ;;  %v891_v41 = vadd.f32 %v889_v5, %v886_v26  ;;  %v892_v13 = vadd.f32 %v890_v40, %v887_v6  ;;  %v3533_v5 = vld [vmem:[#allocation24_spill] sm:$0xff] }
  0xc7   :  { %v895_v24 = vmul.f32 %v2340_v51, %v893_v30  ;;  %v698_v54 = vadd.f32 %v2538_v50, %v2596_v32  ;;  %v699_v61 = vadd.f32 %v3527_v58, %v2608_v62  ;;  %v782_v42 = vmul.f32 %v3528_v8, %v781_v2  ;;  %v2673_v62 = vld [vmem:[%s3382_s0 + $0xa8] sm:$0xff] }
  0xc8   :  { %v783_v28 = vmul.f32 %v3529_v3, %v781_v2  ;;  %v779_v47 = vadd.f32 %v777_v7, %v774_v18  ;;  %v896_v39 = vadd.f32 %v894_v63, %v891_v41  ;;  %v899_v46 = vmul.f32 %v2353_v49, %v898_v31  ;;  %v3536_v18 = vld [vmem:[#allocation28_spill] sm:$0xff] }
  0xc9   :  { %v903_v25 = vperm.slane %v2618_v15, 7  ;;  %v780_v26 = vadd.f32 %v778_v44, %v775_v22  ;;  %v854_v6 = vmul.f32 %v2520_v45, %v852_v48  ;;  %v858_v30 = vmul.f32 %v2535_v52, %v857_v27  ;;  %v3534_v48 = vld [vmem:[#allocation25_spill] sm:$0xff]  ;;  %v3538_v22 = vld [vmem:[#allocation30_spill] sm:$0xff] }
  0xca   :  { %v862_v50 = vperm.slane %v2592_v53, 7  ;;  %v851_v32 = vadd.f32 %v849_v10, %v846_v29  ;;  %v855_v2 = vadd.f32 %v853_v34, %v850_v38  ;;  %v897_v7 = vadd.f32 %v895_v24, %v892_v13  ;;  %v1554_v34 = vld [vmem:[%s3382_s0 + $0xb0] sm:$0xff] }
  0xcb   :  { %v900_v35 = vmul.f32 %v2359_v16, %v898_v31  ;;  %v2678_v15 = vadd.f32 %v3531_v9, %v3530_v59  ;;  %v2682_v40 = vadd.f32 %v3534_v48, %v3533_v5  ;;  %v2685_v53 = vadd.f32 %v3536_v18, %v698_v54 }
  0xcc   :  { %v2688_v44 = vadd.f32 %v3538_v22, %v699_v61  ;;  %v2690_v63 = vadd.f32 %v782_v42, %v779_v47  ;;  %v901_v29 = vadd.f32 %v899_v46, %v896_v39  ;;  %v904_v10 = vmul.f32 %v2369_v12, %v903_v25 }
  0xcd   :  { %3532 = vst [vmem:[#allocation26_spill] sm:$0xff] %v2678_v15  ;;  %v908_v31 = vperm.slane %v2673_v62, 0  ;;  %v2697_v38 = vadd.f32 %v783_v28, %v780_v26  ;;  %v859_v41 = vmul.f32 %v2543_v11, %v857_v27  ;;  %v863_v13 = vmul.f32 %v3528_v8, %v862_v50 }
  0xce   :  { %3535 = vst [vmem:[#allocation27_spill] sm:$0xff] %v2682_v40  ;;  %v2702_v24 = vmul.f32 %v3529_v3, %v862_v50  ;;  %v856_v54 = vadd.f32 %v854_v6, %v851_v32  ;;  %v860_v58 = vadd.f32 %v858_v30, %v855_v2  ;;  %v902_v61 = vadd.f32 %v900_v35, %v897_v7 }
  0xcf   :  { %3537 = vst [vmem:[#allocation29_spill] sm:$0xff] %v2685_v53  ;;  %v905_v42 = vmul.f32 %v2375_v17, %v903_v25  ;;  %v913_v47 = vperm.slane %v2673_v62, 1  ;;  %v918_v39 = vperm.slane %v2673_v62, 2  ;;  %v951_v46 = vperm.slane %v1554_v34, 0 }
  0xd0   :  { %3539 = vst [vmem:[#allocation23_spill] sm:$0xff] %v2688_v44  ;;  %v954_v59 = vperm.slane %v1554_v34, 1  ;;  %v906_v28 = vadd.f32 %v904_v10, %v901_v29  ;;  %v909_v26 = vmul.f32 %v2397_v19, %v908_v31  ;;  %v959_v27 = vperm.slane %v1554_v34, 2  ;;  %v3543_v10 = vld [vmem:[#allocation10_spill] sm:$0xff]  ;;  %v3544_v44 = vld [vmem:[#allocation20_spill] sm:$0xff] }
  0xd1   :  { %3540 = vst [vmem:[#allocation11_spill] sm:$0xff] %v2690_v63  ;;  %v964_v9 = vperm.slane %v1554_v34, 3  ;;  %v952_v5 = vmul.f32 %v2262_v43, %v951_v46  ;;  %v953_v50 = vmul.f32 %v2268_v20, %v951_v46  ;;  %v907_v25 = vadd.f32 %v905_v42, %v902_v61 }
  0xd2   :  { %3541 = vst [vmem:[#allocation24_spill] sm:$0xff] %v2697_v38  ;;  %v955_v6 = vmul.f32 %v2274_v55, %v954_v59  ;;  %v956_v30 = vmul.f32 %v2280_v0, %v954_v59  ;;  %v910_v32 = vmul.f32 %v2403_v36, %v908_v31  ;;  %v960_v2 = vmul.f32 %v2287_v23, %v959_v27 }
  0xd3   :  { %3542 = vst [vmem:[#allocation25_spill] sm:$0xff] %v2702_v24  ;;  %v961_v7 = vmul.f32 %v2293_v60, %v959_v27  ;;  %v965_v18 = vmul.f32 %v2299_v56, %v964_v9  ;;  %v966_v22 = vmul.f32 %v2305_v4, %v964_v9  ;;  %v911_v29 = vadd.f32 %v909_v26, %v906_v28  ;;  %v2724_v9 = vld [vmem:[%s3382_s0 + $0xb8] sm:$0xff] }
  0xd4   :  { %v957_v35 = vadd.f32 %v955_v6, %v952_v5  ;;  %v958_v48 = vadd.f32 %v956_v30, %v953_v50  ;;  %v914_v46 = vmul.f32 %v3543_v10, %v913_v47  ;;  %v969_v38 = vperm.slane %v1554_v34, 4 }
  0xd5   :  { %v974_v63 = vperm.slane %v1554_v34, 5  ;;  %v915_v59 = vmul.f32 %v3544_v44, %v913_v47  ;;  %v979_v31 = vperm.slane %v1554_v34, 6  ;;  %v912_v53 = vadd.f32 %v910_v32, %v907_v25 }
  0xd6   :  { %v962_v61 = vadd.f32 %v960_v2, %v957_v35  ;;  %v963_v42 = vadd.f32 %v961_v7, %v958_v48  ;;  %v970_v40 = vmul.f32 %v2321_v37, %v969_v38  ;;  %v971_v27 = vmul.f32 %v2327_v21, %v969_v38  ;;  %v3546_v48 = vld [vmem:[#allocation19_spill] sm:$0xff] }
  0xd7   :  { %v984_v5 = vperm.slane %v1554_v34, 7  ;;  %v975_v50 = vmul.f32 %v2334_v57, %v974_v63  ;;  %v976_v47 = vmul.f32 %v2340_v51, %v974_v63  ;;  %v2728_v6 = vadd.f32 %v859_v41, %v856_v54 }
  0xd8   :  { %v967_v28 = vadd.f32 %v965_v18, %v962_v61  ;;  %v968_v26 = vadd.f32 %v966_v22, %v963_v42  ;;  %v916_v30 = vadd.f32 %v914_v46, %v911_v29  ;;  %v919_v25 = vmul.f32 %v2443_v33, %v918_v39 }
  0xd9   :  { %3545 = vst [vmem:[#allocation28_spill] sm:$0xff] %v2728_v6  ;;  %v923_v32 = vperm.slane %v2673_v62, 3  ;;  %v980_v2 = vmul.f32 %v2353_v49, %v979_v31  ;;  %v981_v7 = vmul.f32 %v2359_v16, %v979_v31  ;;  %v917_v35 = vadd.f32 %v915_v59, %v912_v53 }
  0xda   :  { %v972_v38 = vadd.f32 %v970_v40, %v967_v28  ;;  %v973_v34 = vadd.f32 %v971_v27, %v968_v26  ;;  %v920_v18 = vmul.f32 %v3546_v48, %v918_v39  ;;  %v985_v22 = vmul.f32 %v2369_v12, %v984_v5  ;;  %v3548_v40 = vld [vmem:[#allocation5_spill] sm:$0xff]  ;;  %v2748_v26 = vld [vmem:[%s3382_s0 + $0xc0] sm:$0xff] }
  0xdb   :  { %v989_v63 = vperm.slane %v2724_v9, 0  ;;  %v986_v29 = vmul.f32 %v2375_v17, %v984_v5  ;;  %v994_v46 = vperm.slane %v2724_v9, 1  ;;  %v2739_v61 = vadd.f32 %v863_v13, %v860_v58 }
  0xdc   :  { %v977_v41 = vadd.f32 %v975_v50, %v972_v38  ;;  %v978_v54 = vadd.f32 %v976_v47, %v973_v34  ;;  %v924_v42 = vmul.f32 %v3548_v40, %v923_v32  ;;  %v928_v27 = vperm.slane %v2673_v62, 4  ;;  %v3549_v50 = vld [vmem:[#allocation21_spill] sm:$0xff] }
  0xdd   :  { %3547 = vst [vmem:[#allocation30_spill] sm:$0xff] %v2739_v61  ;;  %v933_v53 = vperm.slane %v2673_v62, 5  ;;  %v921_v59 = vadd.f32 %v919_v25, %v916_v30  ;;  %v990_v28 = vmul.f32 %v2397_v19, %v989_v63  ;;  %v922_v5 = vadd.f32 %v920_v18, %v917_v35 }
  0xde   :  { %v982_v39 = vadd.f32 %v980_v2, %v977_v41  ;;  %v983_v31 = vadd.f32 %v981_v7, %v978_v54  ;;  %v925_v13 = vmul.f32 %v3549_v50, %v923_v32  ;;  %v999_v47 = vperm.slane %v2724_v9, 2  ;;  %v3550_v2 = vld [vmem:[#allocation22_spill] sm:$0xff] }
  0xdf   :  { %v991_v30 = vmul.f32 %v2403_v36, %v989_v63  ;;  %v995_v25 = vmul.f32 %v3543_v10, %v994_v46  ;;  %v929_v7 = vmul.f32 %v3550_v2, %v928_v27  ;;  %v1032_v54 = vperm.slane %v2748_v26, 0 }
  0xe0   :  { %v987_v38 = vadd.f32 %v985_v22, %v982_v39  ;;  %v988_v34 = vadd.f32 %v986_v29, %v983_v31  ;;  %v1035_v35 = vperm.slane %v2748_v26, 1  ;;  %v926_v18 = vadd.f32 %v924_v42, %v921_v59 }
  0xe1   :  { %v930_v32 = vmul.f32 %v2495_v1, %v928_v27  ;;  %v934_v58 = vmul.f32 %v2514_v14, %v933_v53  ;;  %v927_v22 = vadd.f32 %v925_v13, %v922_v5  ;;  %v935_v29 = vmul.f32 %v2520_v45, %v933_v53 }
  0xe2   :  { %v992_v61 = vadd.f32 %v990_v28, %v987_v38  ;;  %v3551_v63 = vperm.slane %v2673_v62, 6  ;;  %v1004_v31 = vperm.slane %v2724_v9, 3  ;;  %v993_v41 = vadd.f32 %v991_v30, %v988_v34 }
  0xe3   :  { %v996_v15 = vmul.f32 %v3544_v44, %v994_v46  ;;  %v1000_v42 = vmul.f32 %v2443_v33, %v999_v47  ;;  %v1033_v27 = vmul.f32 %v2262_v43, %v1032_v54  ;;  %v1034_v59 = vmul.f32 %v2268_v20, %v1032_v54 }
  0xe4   :  { %v2765_v39 = vmul.f32 %v2535_v52, %v3551_v63  ;;  %v997_v24 = vadd.f32 %v995_v25, %v992_v61  ;;  %v1036_v28 = vmul.f32 %v2274_v55, %v1035_v35  ;;  %v1037_v53 = vmul.f32 %v2280_v0, %v1035_v35 }
  0xe5   :  { %v931_v5 = vadd.f32 %v929_v7, %v926_v18  ;;  %v1001_v13 = vmul.f32 %v3546_v48, %v999_v47  ;;  %v1040_v38 = vperm.slane %v2748_v26, 2  ;;  %v1045_v34 = vperm.slane %v2748_v26, 3 }
  0xe6   :  { %v1038_v30 = vadd.f32 %v1036_v28, %v1033_v27  ;;  %v1039_v46 = vadd.f32 %v1037_v53, %v1034_v59  ;;  %v1050_v61 = vperm.slane %v2748_v26, 4  ;;  %v1055_v25 = vperm.slane %v2748_v26, 5 }
  0xe7   :  { %v1005_v63 = vmul.f32 %v3548_v40, %v1004_v31  ;;  %v1009_v54 = vperm.slane %v2724_v9, 4  ;;  %v1041_v6 = vmul.f32 %v2287_v23, %v1040_v38  ;;  %v1042_v7 = vmul.f32 %v2293_v60, %v1040_v38 }
  0xe8   :  { %v998_v35 = vadd.f32 %v996_v15, %v993_v41  ;;  %v1002_v47 = vadd.f32 %v1000_v42, %v997_v24  ;;  %v1046_v18 = vmul.f32 %v2299_v56, %v1045_v34  ;;  %v1047_v48 = vmul.f32 %v2305_v4, %v1045_v34 }
  0xe9   :  { %v1043_v27 = vadd.f32 %v1041_v6, %v1038_v30  ;;  %v1044_v59 = vadd.f32 %v1042_v7, %v1039_v46  ;;  %v1051_v28 = vmul.f32 %v2321_v37, %v1050_v61  ;;  %v1052_v53 = vmul.f32 %v2327_v21, %v1050_v61 }
  0xea   :  { %v932_v33 = vadd.f32 %v930_v32, %v927_v22  ;;  %v1006_v40 = vmul.f32 %v3549_v50, %v1004_v31  ;;  %v1056_v44 = vmul.f32 %v2334_v57, %v1055_v25  ;;  %v1060_v23 = vperm.slane %v2748_v26, 6  ;;  %v2797_v32 = vld [vmem:[%s3382_s0 + $0xc8] sm:$0xff] }
  0xeb   :  { %v1048_v38 = vadd.f32 %v1046_v18, %v1043_v27  ;;  %v1049_v15 = vadd.f32 %v1047_v48, %v1044_v59  ;;  %v1057_v24 = vmul.f32 %v2340_v51, %v1055_v25  ;;  %v1065_v41 = vperm.slane %v2748_v26, 7 }
  0xec   :  { %v1003_v42 = vadd.f32 %v1001_v13, %v998_v35  ;;  %v1007_v6 = vadd.f32 %v1005_v63, %v1002_v47  ;;  %v1010_v34 = vmul.f32 %v3550_v2, %v1009_v54  ;;  %v1014_v30 = vperm.slane %v2724_v9, 5 }
  0xed   :  { %v1053_v22 = vadd.f32 %v1051_v28, %v1048_v38  ;;  %v1054_v31 = vadd.f32 %v1052_v53, %v1049_v15  ;;  %v1061_v46 = vmul.f32 %v2353_v49, %v1060_v23  ;;  %v1062_v48 = vmul.f32 %v2359_v16, %v1060_v23 }
  0xee   :  { %v936_v61 = vadd.f32 %v934_v58, %v931_v5  ;;  %v937_v25 = vadd.f32 %v935_v29, %v932_v33  ;;  %v3552_v26 = vperm.slane %v2673_v62, 6  ;;  %v1019_v63 = vperm.slane %v2724_v9, 6 }
  0xef   :  { %v1058_v7 = vadd.f32 %v1056_v44, %v1053_v22  ;;  %v1059_v35 = vadd.f32 %v1057_v24, %v1054_v31  ;;  %v1066_v47 = vmul.f32 %v2369_v12, %v1065_v41  ;;  %v1070_v18 = vperm.slane %v2797_v32, 0 }
  0xf0   :  { %v940_v13 = vmul.f32 %v2543_v11, %v3552_v26  ;;  %v1008_v27 = vadd.f32 %v1006_v40, %v1003_v42  ;;  %v1011_v59 = vmul.f32 %v2495_v1, %v1009_v54  ;;  %v1015_v28 = vmul.f32 %v2514_v14, %v1014_v30  ;;  %v1558_v42 = vld [vmem:[%s3382_s0 + $0xd0] sm:$0xff] }
  0xf1   :  { %v1024_v23 = vperm.slane %v2724_v9, 7  ;;  %v1012_v33 = vadd.f32 %v1010_v34, %v1007_v6  ;;  %v1063_v58 = vadd.f32 %v1061_v46, %v1058_v7  ;;  %v1064_v29 = vadd.f32 %v1062_v48, %v1059_v35 }
  0xf2   :  { %v1067_v5 = vmul.f32 %v2375_v17, %v1065_v41  ;;  %v2812_v53 = vadd.f32 %v2765_v39, %v936_v61  ;;  %v2814_v44 = vadd.f32 %v940_v13, %v937_v25  ;;  %v3553_v38 = vperm.slane %v2673_v62, 7 }
  0xf3   :  { %v1016_v9 = vmul.f32 %v2520_v45, %v1014_v30  ;;  %v1068_v24 = vadd.f32 %v1066_v47, %v1063_v58  ;;  %v1071_v41 = vmul.f32 %v2397_v19, %v1070_v18  ;;  %v1075_v39 = vperm.slane %v2797_v32, 1 }
  0xf4   :  { %v2819_v40 = vmul.f32 %v3528_v8, %v3553_v38  ;;  %v3554_v54 = vmov %v3553_v38  ;;  %v2833_v6 = vmul.f32 %v2535_v52, %v1019_v63  ;;  %v2836_v34 = vmul.f32 %v2543_v11, %v1019_v63 }
  0xf5   :  { %v2824_v15 = vmul.f32 %v3529_v3, %v3554_v54  ;;  %v2839_v62 = vmul.f32 %v3528_v8, %v1024_v23  ;;  %v2842_v30 = vmul.f32 %v3529_v3, %v1024_v23  ;;  %v1013_v22 = vadd.f32 %v1011_v59, %v1008_v27 }
  0xf6   :  { %v2844_v31 = vadd.f32 %v1015_v28, %v1012_v33  ;;  %v1069_v46 = vadd.f32 %v1067_v5, %v1064_v29  ;;  %v1072_v48 = vmul.f32 %v2403_v36, %v1070_v18  ;;  %v1080_v61 = vperm.slane %v2797_v32, 2  ;;  %v3557_v33 = vld [vmem:[#allocation20_spill] sm:$0xff] }
  0xf7   :  { %3555 = vst [vmem:[#allocation10_spill] sm:$0xff] %v2839_v62  ;;  %v1085_v25 = vperm.slane %v2797_v32, 3  ;;  %v1113_v26 = vperm.slane %v1558_v42, 0  ;;  %v1116_v13 = vperm.slane %v1558_v42, 1  ;;  %v1073_v63 = vadd.f32 %v1071_v41, %v1068_v24  ;;  %v3558_v29 = vld [vmem:[#allocation8_spill] sm:$0xff] }
  0xf8   :  { %3556 = vst [vmem:[#allocation21_spill] sm:$0xff] %v2842_v30  ;;  %v1076_v7 = vmul.f32 %v3543_v10, %v1075_v39  ;;  %v1121_v35 = vperm.slane %v1558_v42, 2  ;;  %v1126_v47 = vperm.slane %v1558_v42, 3  ;;  %v1074_v18 = vadd.f32 %v1072_v48, %v1069_v46 }
  0xf9   :  { %v1114_v23 = vmul.f32 %v2262_v43, %v1113_v26  ;;  %v1115_v27 = vmul.f32 %v2268_v20, %v1113_v26  ;;  %v1117_v59 = vmul.f32 %v2274_v55, %v1116_v13  ;;  %v1118_v28 = vmul.f32 %v2280_v0, %v1116_v13  ;;  %v3559_v43 = vld [vmem:[#allocation18_spill] sm:$0xff]  ;;  %v3560_v20 = vld [vmem:[#allocation19_spill] sm:$0xff] }
  0xfa   :  { %v1077_v58 = vmul.f32 %v3557_v33, %v1075_v39  ;;  %v1122_v5 = vmul.f32 %v3558_v29, %v1121_v35  ;;  %v1123_v38 = vmul.f32 %v2293_v60, %v1121_v35  ;;  %v1127_v10 = vmul.f32 %v2299_v56, %v1126_v47  ;;  %v2866_v56 = vld [vmem:[%s3382_s0 + $0xd8] sm:$0xff] }
  0xfb   :  { %v1119_v54 = vadd.f32 %v1117_v59, %v1114_v23  ;;  %v1120_v24 = vadd.f32 %v1118_v28, %v1115_v27  ;;  %v1128_v41 = vmul.f32 %v2305_v4, %v1126_v47  ;;  %v1081_v30 = vmul.f32 %v3559_v43, %v1080_v61  ;;  %v3561_v23 = vld [vmem:[#allocation5_spill] sm:$0xff] }
  0xfc   :  { %v1082_v26 = vmul.f32 %v3560_v20, %v1080_v61  ;;  %v1131_v55 = vperm.slane %v1558_v42, 4  ;;  %v1136_v62 = vperm.slane %v1558_v42, 5  ;;  %v1078_v0 = vadd.f32 %v1076_v7, %v1073_v63 }
  0xfd   :  { %v1124_v46 = vadd.f32 %v1122_v5, %v1119_v54  ;;  %v1125_v48 = vadd.f32 %v1123_v38, %v1120_v24  ;;  %v1141_v39 = vperm.slane %v1558_v42, 6  ;;  %v1079_v13 = vadd.f32 %v1077_v58, %v1074_v18 }
  0xfe   :  { %v1132_v29 = vmul.f32 %v2321_v37, %v1131_v55  ;;  %v1133_v60 = vmul.f32 %v2327_v21, %v1131_v55  ;;  %v1146_v35 = vperm.slane %v1558_v42, 7  ;;  %v1137_v61 = vmul.f32 %v2334_v57, %v1136_v62 }
  0xff   :  { %v1129_v4 = vadd.f32 %v1127_v10, %v1124_v46  ;;  %v1130_v47 = vadd.f32 %v1128_v41, %v1125_v48  ;;  %v1138_v63 = vmul.f32 %v2340_v51, %v1136_v62  ;;  %v2870_v7 = vadd.f32 %v1016_v9, %v1013_v22 }
 0x100   :  { %v1086_v27 = vmul.f32 %v3561_v23, %v1085_v25  ;;  %v1087_v37 = vmul.f32 %v3549_v50, %v1085_v25  ;;  %v1090_v21 = vperm.slane %v2797_v32, 4  ;;  %v1142_v28 = vmul.f32 %v2353_v49, %v1141_v39 }
 0x101   :  { %v1134_v42 = vadd.f32 %v1132_v29, %v1129_v4  ;;  %v1135_v59 = vadd.f32 %v1133_v60, %v1130_v47  ;;  %v1143_v18 = vmul.f32 %v2359_v16, %v1141_v39  ;;  %v1083_v58 = vadd.f32 %v1081_v30, %v1078_v0  ;;  %v2897_v39 = vld [vmem:[%s3383_s1 + $0x90] sm:$0xff] }
 0x102   :  { %v1084_v5 = vadd.f32 %v1082_v26, %v1079_v13  ;;  %v1147_v57 = vmul.f32 %v2369_v12, %v1146_v35  ;;  %v1151_v51 = vperm.slane %v2866_v56, 0  ;;  %v1148_v22 = vmul.f32 %v2375_v17, %v1146_v35  ;;  %v2890_v17 = vld [vmem:[%s3382_s0 + $0xe0] sm:$0xff] }
 0x103   :  { %v1139_v9 = vadd.f32 %v1137_v61, %v1134_v42  ;;  %v1140_v62 = vadd.f32 %v1138_v63, %v1135_v59  ;;  %v1156_v25 = vperm.slane %v2866_v56, 1  ;;  %v1091_v38 = vmul.f32 %v3550_v2, %v1090_v21 }
 0x104   :  { %v1095_v54 = vperm.slane %v2797_v32, 5  ;;  %v1100_v49 = vperm.slane %v2797_v32, 6  ;;  %v1161_v16 = vperm.slane %v2866_v56, 2  ;;  %v1152_v12 = vmul.f32 %v2397_v19, %v1151_v51 }
 0x105   :  { %v1144_v30 = vadd.f32 %v1142_v28, %v1139_v9  ;;  %v1145_v24 = vadd.f32 %v1143_v18, %v1140_v62  ;;  %v1153_v10 = vmul.f32 %v2403_v36, %v1151_v51  ;;  %v1088_v41 = vadd.f32 %v1086_v27, %v1083_v58  ;;  %v2914_v18 = vld [vmem:[%s3383_s1] sm:$0xff] }
 0x106   :  { %v1089_v26 = vadd.f32 %v1087_v37, %v1084_v5  ;;  %v1092_v55 = vmul.f32 %v2495_v1, %v1090_v21  ;;  %v1166_v0 = vperm.slane %v2866_v56, 3  ;;  %v1157_v19 = vmul.f32 %v2897_v39, %v1156_v25  ;;  %v2932_v5 = vld [vmem:[%s3383_s1 + $0x18] sm:$0xff] }
 0x107   :  { %v1149_v46 = vadd.f32 %v1147_v57, %v1144_v30  ;;  %v1150_v48 = vadd.f32 %v1148_v22, %v1145_v24  ;;  %v1158_v36 = vmul.f32 %v3557_v33, %v1156_v25  ;;  %v1096_v13 = vmul.f32 %v2514_v14, %v1095_v54  ;;  %v2942_v24 = vld [vmem:[%s3383_s1 + $0x20] sm:$0xff] }
 0x108   :  { %v1105_v29 = vperm.slane %v2797_v32, 7  ;;  %v1194_v60 = vperm.slane %v2890_v17, 0  ;;  %v1197_v35 = vperm.slane %v2890_v17, 1  ;;  %v1162_v61 = vmul.f32 %v3559_v43, %v1161_v16 }
 0x109   :  { %v1154_v4 = vadd.f32 %v1152_v12, %v1149_v46  ;;  %v1155_v47 = vadd.f32 %v1153_v10, %v1150_v48  ;;  %v1163_v63 = vmul.f32 %v3560_v20, %v1161_v16  ;;  %v1093_v27 = vadd.f32 %v1091_v38, %v1088_v41  ;;  %v2920_v20 = vld [vmem:[%s3383_s1 + $0x8] sm:$0xff]  ;;  %v2958_v46 = vld [vmem:[%s3383_s1 + $0x30] sm:$0xff] }
 0x10a   :  { %v1094_v37 = vadd.f32 %v1092_v55, %v1089_v26  ;;  %v1097_v21 = vmul.f32 %v2520_v45, %v1095_v54  ;;  %v1171_v33 = vperm.slane %v2866_v56, 4  ;;  %v1167_v32 = vmul.f32 %v3561_v23, %v1166_v0  ;;  %v2926_v23 = vld [vmem:[%s3383_s1 + $0x10] sm:$0xff]  ;;  %v2948_v10 = vld [vmem:[%s3383_s1 + $0x28] sm:$0xff] }
 0x10b   :  { %v1159_v42 = vadd.f32 %v1157_v19, %v1154_v4  ;;  %v1160_v59 = vadd.f32 %v1158_v36, %v1155_v47  ;;  %v1168_v28 = vmul.f32 %v3549_v50, %v1166_v0  ;;  %v1195_v43 = vmul.f32 %v2914_v18, %v1194_v60 }
 0x10c   :  { %v1196_v58 = vmul.f32 %v2920_v20, %v1194_v60  ;;  %v1198_v50 = vmul.f32 %v2926_v23, %v1197_v35  ;;  %v1199_v57 = vmul.f32 %v2932_v5, %v1197_v35  ;;  %v1202_v62 = vperm.slane %v2890_v17, 2  ;;  %v2964_v35 = vld [vmem:[%s3383_s1 + $0x38] sm:$0xff] }
 0x10d   :  { %v1164_v51 = vadd.f32 %v1162_v61, %v1159_v42  ;;  %v1165_v9 = vadd.f32 %v1163_v63, %v1160_v59  ;;  %v1207_v22 = vperm.slane %v2890_v17, 3  ;;  %v1172_v25 = vmul.f32 %v3550_v2, %v1171_v33  ;;  %v2972_v42 = vld [vmem:[%s3383_s1 + $0x40] sm:$0xff] }
 0x10e   :  { %v1176_v38 = vperm.slane %v2866_v56, 5  ;;  %v1200_v54 = vadd.f32 %v1198_v50, %v1195_v43  ;;  %v1201_v16 = vadd.f32 %v1199_v57, %v1196_v58  ;;  %v1203_v12 = vmul.f32 %v2942_v24, %v1202_v62  ;;  %v2986_v58 = vld [vmem:[%s3383_s1 + $0x48] sm:$0xff] }
 0x10f   :  { %v1169_v30 = vadd.f32 %v1167_v32, %v1164_v51  ;;  %v1204_v41 = vmul.f32 %v2948_v10, %v1202_v62  ;;  %v1212_v2 = vperm.slane %v2890_v17, 4  ;;  %v1101_v26 = vmul.f32 %v2535_v52, %v1100_v49  ;;  %v3562_v62 = vld [vmem:[#allocation28_spill] sm:$0xff] }
 0x110   :  { %v1102_v55 = vmul.f32 %v2543_v11, %v1100_v49  ;;  %v1173_v0 = vmul.f32 %v2495_v1, %v1171_v33  ;;  %v1208_v48 = vmul.f32 %v2958_v46, %v1207_v22  ;;  %v1170_v19 = vadd.f32 %v1168_v28, %v1165_v9 }
 0x111   :  { %v1205_v36 = vadd.f32 %v1203_v12, %v1200_v54  ;;  %v1206_v60 = vadd.f32 %v1204_v41, %v1201_v16  ;;  %v1209_v4 = vmul.f32 %v2964_v35, %v1207_v22  ;;  %v1098_v49 = vadd.f32 %v1096_v13, %v1093_v27  ;;  %v3563_v22 = vld [vmem:[#allocation25_spill] sm:$0xff] }
 0x112   :  { %v1099_v47 = vadd.f32 %v1097_v21, %v1094_v37  ;;  %v1177_v1 = vmul.f32 %v2514_v14, %v1176_v38  ;;  %v1181_v61 = vperm.slane %v2866_v56, 6  ;;  %v1174_v63 = vadd.f32 %v1172_v25, %v1169_v30  ;;  %v1610_v12 = vld [vmem:[%s3383_s1 + $0x58] sm:$0xff] }
 0x113   :  { %v1210_v33 = vadd.f32 %v1208_v48, %v1205_v36  ;;  %v1213_v59 = vmul.f32 %v2972_v42, %v1212_v2  ;;  %v1217_v32 = vperm.slane %v2890_v17, 5  ;;  %v1022_v28 = vadd.f32 %v2833_v6, %v2844_v31  ;;  %v1611_v48 = vld [vmem:[%s3383_s1 + $0x60] sm:$0xff]  ;;  %v3037_v36 = vld [vmem:[%s3382_s0 + $0xf0] sm:$0xff] }
 0x114   :  { %v1023_v13 = vadd.f32 %v2836_v34, %v2870_v7  ;;  %v1106_v14 = vmul.f32 %v3528_v8, %v1105_v29  ;;  %v1107_v27 = vmul.f32 %v3529_v3, %v1105_v29  ;;  %v1175_v37 = vadd.f32 %v1173_v0, %v1170_v19 }
 0x115   :  { %v1178_v21 = vmul.f32 %v2520_v45, %v1176_v38  ;;  %v1211_v43 = vadd.f32 %v1209_v4, %v1206_v60  ;;  %v1214_v50 = vmul.f32 %v2986_v58, %v1212_v2  ;;  %v1103_v57 = vadd.f32 %v1101_v26, %v1098_v49  ;;  %v2994_v45 = vld [vmem:[%s3383_s1 + $0x50] sm:$0xff]  ;;  %v3564_v2 = vld [vmem:[#allocation10_spill] sm:$0xff]  ;;  %v1612_v4 = vld [vmem:[%s3383_s1 + $0x68] sm:$0xff] }
 0x116   :  { %v1104_v6 = vadd.f32 %v1102_v55, %v1099_v47  ;;  %v1182_v31 = vmul.f32 %v2535_v52, %v1181_v61  ;;  %v1186_v34 = vperm.slane %v2866_v56, 7  ;;  %v1179_v7 = vadd.f32 %v1177_v1, %v1174_v63  ;;  %v1614_v1 = vld [vmem:[%s3383_s1 + $0x78] sm:$0xff] }
 0x117   :  { %v1215_v51 = vadd.f32 %v1213_v59, %v1210_v33  ;;  %v1218_v29 = vmul.f32 %v2994_v45, %v1217_v32  ;;  %v1222_v9 = vperm.slane %v2890_v17, 6  ;;  %v3000_v25 = vadd.f32 %v3563_v22, %v3562_v62 }
 0x118   :  { %v3004_v52 = vadd.f32 %v2819_v40, %v2812_v53  ;;  %v3008_v56 = vadd.f32 %v2824_v15, %v2814_v44  ;;  %v1227_v38 = vperm.slane %v2890_v17, 7  ;;  %v1180_v54 = vadd.f32 %v1178_v21, %v1175_v37  ;;  %v3565_v53 = vld [vmem:[#allocation21_spill] sm:$0xff] }
 0x119   :  { %v1183_v16 = vmul.f32 %v2543_v11, %v1181_v61  ;;  %v1216_v30 = vadd.f32 %v1214_v50, %v1211_v43  ;;  %v1219_v41 = vmul.f32 %v1610_v12, %v1217_v32  ;;  %v3016_v26 = vadd.f32 %v3564_v2, %v1022_v28  ;;  %v3028_v11 = vld [vmem:[%s3382_s0 + $0xe8] sm:$0xff] }
 0x11a   :  { %v3019_v40 = vadd.f32 %v3565_v53, %v1023_v13  ;;  %v3021_v55 = vadd.f32 %v1106_v14, %v1103_v57  ;;  %v3023_v44 = vadd.f32 %v1107_v27, %v1104_v6  ;;  %v1184_v15 = vadd.f32 %v1182_v31, %v1179_v7 }
 0x11b   :  { %v1187_v17 = vmul.f32 %v3528_v8, %v1186_v34  ;;  %v1220_v0 = vadd.f32 %v1218_v29, %v1215_v51  ;;  %v1223_v19 = vmul.f32 %v1611_v48, %v1222_v9  ;;  %v1188_v60 = vmul.f32 %v3529_v3, %v1186_v34  ;;  %v1613_v8 = vld [vmem:[%s3383_s1 + $0x70] sm:$0xff] }
 0x11c   :  { %v1224_v49 = vmul.f32 %v1612_v4, %v1222_v9  ;;  %v1228_v47 = vmul.f32 %v1613_v8, %v1227_v38  ;;  %v1229_v61 = vmul.f32 %v1614_v1, %v1227_v38  ;;  %v1185_v63 = vadd.f32 %v1183_v16, %v1180_v54 }
 0x11d   :  { %v1221_v33 = vadd.f32 %v1219_v41, %v1216_v30  ;;  %v1232_v59 = vperm.slane %v3028_v11, 0  ;;  %v1237_v3 = vperm.slane %v3028_v11, 1  ;;  %v1242_v32 = vperm.slane %v3028_v11, 2 }
 0x11e   :  { %v1247_v28 = vperm.slane %v3028_v11, 3  ;;  %v1275_v13 = vperm.slane %v3037_v36, 0  ;;  %v1278_v14 = vperm.slane %v3037_v36, 1  ;;  %v3055_v27 = vadd.f32 %v1187_v17, %v1184_v15  ;;  %v3084_v15 = vld [vmem:[%s3382_s0 + $0xf8] sm:$0xff] }
 0x11f   :  { %v1225_v37 = vadd.f32 %v1223_v19, %v1220_v0  ;;  %v1283_v21 = vperm.slane %v3037_v36, 2  ;;  %v1288_v43 = vperm.slane %v3037_v36, 3  ;;  %v3063_v34 = vadd.f32 %v1188_v60, %v1185_v63 }
 0x120   :  { %v1276_v50 = vmul.f32 %v2914_v18, %v1275_v13  ;;  %v1277_v57 = vmul.f32 %v2920_v20, %v1275_v13  ;;  %v1279_v6 = vmul.f32 %v2926_v23, %v1278_v14  ;;  %v1280_v31 = vmul.f32 %v2932_v5, %v1278_v14  ;;  %v1615_v18 = vld [vmem:[%s3383_s1 + $0x80] sm:$0xff]  ;;  %v1616_v23 = vld [vmem:[%s3383_s1 + $0x88] sm:$0xff] }
 0x121   :  { %v1226_v7 = vadd.f32 %v1224_v49, %v1221_v33  ;;  %v1284_v51 = vmul.f32 %v2942_v24, %v1283_v21  ;;  %v1285_v29 = vmul.f32 %v2948_v10, %v1283_v21  ;;  %v1289_v22 = vmul.f32 %v2958_v46, %v1288_v43 }
 0x122   :  { %v1281_v9 = vadd.f32 %v1279_v6, %v1276_v50  ;;  %v1282_v62 = vadd.f32 %v1280_v31, %v1277_v57  ;;  %v1290_v38 = vmul.f32 %v2964_v35, %v1288_v43  ;;  %v1233_v20 = vmul.f32 %v1615_v18, %v1232_v59  ;;  %v1620_v6 = vld [vmem:[%s3383_s1 + $0xb0] sm:$0xff] }
 0x123   :  { %v1234_v5 = vmul.f32 %v1616_v23, %v1232_v59  ;;  %v1293_v24 = vperm.slane %v3037_v36, 4  ;;  %v1298_v10 = vperm.slane %v3037_v36, 5  ;;  %v1230_v54 = vadd.f32 %v1228_v47, %v1225_v37 }
 0x124   :  { %v1286_v16 = vadd.f32 %v1284_v51, %v1281_v9  ;;  %v1287_v30 = vadd.f32 %v1285_v29, %v1282_v62  ;;  %v1303_v46 = vperm.slane %v3037_v36, 6  ;;  %v1231_v35 = vadd.f32 %v1229_v61, %v1226_v7  ;;  %v1619_v61 = vld [vmem:[%s3383_s1 + $0xa8] sm:$0xff] }
 0x125   :  { %v1294_v41 = vmul.f32 %v2972_v42, %v1293_v24  ;;  %v1295_v2 = vmul.f32 %v2986_v58, %v1293_v24  ;;  %v1308_v53 = vperm.slane %v3037_v36, 7  ;;  %v1299_v19 = vmul.f32 %v2994_v45, %v1298_v10  ;;  %v1617_v42 = vld [vmem:[%s3383_s1 + $0x98] sm:$0xff]  ;;  %v1618_v58 = vld [vmem:[%s3383_s1 + $0xa0] sm:$0xff] }
 0x126   :  { %v1291_v17 = vadd.f32 %v1289_v22, %v1286_v16  ;;  %v1292_v0 = vadd.f32 %v1290_v38, %v1287_v30  ;;  %v1300_v60 = vmul.f32 %v1610_v12, %v1298_v10  ;;  %v1238_v49 = vmul.f32 %v2897_v39, %v1237_v3 }
 0x127   :  { %v1239_v47 = vmul.f32 %v1617_v42, %v1237_v3  ;;  %v1243_v36 = vmul.f32 %v1618_v58, %v1242_v32  ;;  %v1244_v63 = vmul.f32 %v1619_v61, %v1242_v32  ;;  %v1304_v12 = vmul.f32 %v1611_v48, %v1303_v46  ;;  %v1621_v48 = vld [vmem:[%s3383_s1 + $0xb8] sm:$0xff] }
 0x128   :  { %v1296_v33 = vadd.f32 %v1294_v41, %v1291_v17  ;;  %v1297_v45 = vadd.f32 %v1295_v2, %v1292_v0  ;;  %v1305_v59 = vmul.f32 %v1612_v4, %v1303_v46  ;;  %v1235_v13 = vadd.f32 %v1233_v20, %v1230_v54  ;;  %v3566_v0 = vld [vmem:[#allocation12_spill] sm:$0xff] }
 0x129   :  { %v1236_v14 = vadd.f32 %v1234_v5, %v1231_v35  ;;  %v1309_v37 = vmul.f32 %v1613_v8, %v1308_v53  ;;  %v1313_v21 = vperm.slane %v3084_v15, 0  ;;  %v1310_v50 = vmul.f32 %v1614_v1, %v1308_v53  ;;  %v1624_v53 = vld [vmem:[%s3383_s1 + $0xd0] sm:$0xff] }
 0x12a   :  { %v1301_v3 = vadd.f32 %v1299_v19, %v1296_v33  ;;  %v1302_v43 = vadd.f32 %v1300_v60, %v1297_v45  ;;  %v1318_v57 = vperm.slane %v3084_v15, 1  ;;  %v1248_v31 = vmul.f32 %v1620_v6, %v1247_v28  ;;  %v3567_v60 = vld [vmem:[#allocation13_spill] sm:$0xff] }
 0x12b   :  { %v1249_v4 = vmul.f32 %v1621_v48, %v1247_v28  ;;  %v1252_v32 = vperm.slane %v3028_v11, 4  ;;  %v1323_v8 = vperm.slane %v3084_v15, 2  ;;  %v1314_v29 = vmul.f32 %v1615_v18, %v1313_v21  ;;  %v1622_v28 = vld [vmem:[%s3383_s1 + $0xc0] sm:$0xff]  ;;  %v1623_v18 = vld [vmem:[%s3383_s1 + $0xc8] sm:$0xff] }
 0x12c   :  { %v1306_v7 = vadd.f32 %v1304_v12, %v1301_v3  ;;  %v1307_v51 = vadd.f32 %v1305_v59, %v1302_v43  ;;  %v1315_v1 = vmul.f32 %v1616_v23, %v1313_v21  ;;  %v1240_v9 = vadd.f32 %v1238_v49, %v1235_v13  ;;  %v3568_v12 = vld [vmem:[#allocation15_spill] sm:$0xff]  ;;  %v3570_v59 = vld [vmem:[#allocation17_spill] sm:$0xff] }
 0x12d   :  { %v1241_v62 = vadd.f32 %v1239_v47, %v1236_v14  ;;  %v1257_v22 = vperm.slane %v3028_v11, 5  ;;  %v1328_v38 = vperm.slane %v3084_v15, 3  ;;  %v1319_v24 = vmul.f32 %v2897_v39, %v1318_v57  ;;  %v3571_v14 = vld [vmem:[#allocation4_spill] sm:$0xff] }
 0x12e   :  { %v1311_v20 = vadd.f32 %v1309_v37, %v1306_v7  ;;  %v1312_v5 = vadd.f32 %v1310_v50, %v1307_v51  ;;  %v1320_v10 = vmul.f32 %v1617_v42, %v1318_v57  ;;  %v1253_v54 = vmul.f32 %v1622_v28, %v1252_v32 }
 0x12f   :  { %v1254_v23 = vmul.f32 %v1623_v18, %v1252_v32  ;;  %v1262_v16 = vperm.slane %v3028_v11, 6  ;;  %v1267_v30 = vperm.slane %v3028_v11, 7  ;;  %v1324_v41 = vmul.f32 %v1618_v58, %v1323_v8 }
 0x130   :  { %v1316_v46 = vadd.f32 %v1314_v29, %v1311_v20  ;;  %v1317_v35 = vadd.f32 %v1315_v1, %v1312_v5  ;;  %v1325_v2 = vmul.f32 %v1619_v61, %v1323_v8  ;;  %v1245_v39 = vadd.f32 %v1243_v36, %v1240_v9  ;;  %v3569_v61 = vld [vmem:[#allocation9_spill] sm:$0xff]  ;;  %v3573_v8 = vld [vmem:[#allocation3_spill] sm:$0xff]  ;;  %v3574_v20 = vld [vmem:[#allocation6_spill] sm:$0xff] }
 0x131   :  { %v1258_v17 = vmul.f32 %v1624_v53, %v1257_v22  ;;  %v1353_v19 = vmul.f32 %v3566_v0, %v3566_v0  ;;  %v1354_v49 = vmul.f32 %v3567_v60, %v3567_v60  ;;  %v1246_v42 = vadd.f32 %v1244_v63, %v1241_v62  ;;  %v1625_v1 = vld [vmem:[%s3383_s1 + $0xd8] sm:$0xff] }
 0x132   :  { %v1321_v47 = vadd.f32 %v1319_v24, %v1316_v46  ;;  %v1322_v33 = vadd.f32 %v1320_v10, %v1317_v35  ;;  %v1329_v45 = vmul.f32 %v1620_v6, %v1328_v38  ;;  %v1355_v58 = vmul.f32 %v3568_v12, %v3568_v12  ;;  %v3572_v6 = vld [vmem:[#allocation2_spill] sm:$0xff]  ;;  %v3575_v24 = vld [vmem:[#allocation7_spill] sm:$0xff] }
 0x133   :  { %v1356_v36 = vmul.f32 %v3569_v61, %v3569_v61  ;;  %v1359_v13 = vmul.f32 %v3570_v59, %v3570_v59  ;;  %v1360_v37 = vmul.f32 %v3571_v14, %v3571_v14  ;;  %v1330_v43 = vmul.f32 %v1621_v48, %v1328_v38 }
 0x134   :  { %v1326_v21 = vadd.f32 %v1324_v41, %v1321_v47  ;;  %v1327_v3 = vadd.f32 %v1325_v2, %v1322_v33  ;;  %v1333_v63 = vperm.slane %v3084_v15, 4  ;;  %v1357_v50 = vadd.f32 %v1355_v58, %v1353_v19  ;;  %v1626_v33 = vld [vmem:[%s3383_s1 + $0xe0] sm:$0xff] }
 0x135   :  { %v1358_v57 = vadd.f32 %v1356_v36, %v1354_v49  ;;  %v1363_v32 = vmul.f32 %v3572_v6, %v3572_v6  ;;  %v1364_v7 = vmul.f32 %v3573_v8, %v3573_v8  ;;  %v1250_v51 = vadd.f32 %v1248_v31, %v1245_v39  ;;  %v3576_v39 = vld [vmem:[#allocation14_spill] sm:$0xff] }
 0x136   :  { %v1251_v29 = vadd.f32 %v1249_v4, %v1246_v42  ;;  %v1259_v9 = vmul.f32 %v1625_v1, %v1257_v22  ;;  %v1338_v62 = vperm.slane %v3084_v15, 5  ;;  %v1361_v48 = vadd.f32 %v1359_v13, %v1357_v50  ;;  %v3577_v22 = vld [vmem:[#allocation16_spill] sm:$0xff]  ;;  %v3578_v36 = vld [vmem:[#allocation26_spill] sm:$0xff] }
 0x137   :  { %v1362_v38 = vadd.f32 %v1360_v37, %v1358_v57  ;;  %v1367_v5 = vmul.f32 %v3574_v20, %v3574_v20  ;;  %v1368_v10 = vmul.f32 %v3575_v24, %v3575_v24  ;;  %v1331_v46 = vadd.f32 %v1329_v45, %v1326_v21  ;;  %v3579_v37 = vld [vmem:[#allocation27_spill] sm:$0xff]  ;;  %v3580_v57 = vld [vmem:[#allocation29_spill] sm:$0xff] }
 0x138   :  { %v1332_v35 = vadd.f32 %v1330_v43, %v1327_v3  ;;  %v1334_v41 = vmul.f32 %v1622_v28, %v1333_v63  ;;  %v1335_v31 = vmul.f32 %v1623_v18, %v1333_v63  ;;  %v1365_v4 = vadd.f32 %v1363_v32, %v1361_v48 }
 0x139   :  { %v1366_v2 = vadd.f32 %v1364_v7, %v1362_v38  ;;  %v1371_v19 = vmul.f32 %v3576_v39, %v3576_v39  ;;  %v1372_v49 = vmul.f32 %v3577_v22, %v3577_v22  ;;  %v1255_v42 = vadd.f32 %v1253_v54, %v1250_v51  ;;  %v3581_v7 = vld [vmem:[#allocation23_spill] sm:$0xff] }
 0x13a   :  { %v1256_v47 = vadd.f32 %v1254_v23, %v1251_v29  ;;  %v1263_v45 = vmul.f32 %v1626_v33, %v1262_v16  ;;  %v1343_v28 = vperm.slane %v3084_v15, 6  ;;  %v1369_v18 = vadd.f32 %v1367_v5, %v1365_v4  ;;  %v1627_v38 = vld [vmem:[%s3383_s1 + $0xe8] sm:$0xff] }
 0x13b   :  { %v1370_v58 = vadd.f32 %v1368_v10, %v1366_v2  ;;  %v1375_v13 = vmul.f32 %v3578_v36, %v3578_v36  ;;  %v1376_v21 = vmul.f32 %v3579_v37, %v3579_v37  ;;  %v1336_v3 = vadd.f32 %v1334_v41, %v1331_v46  ;;  %v3582_v10 = vld [vmem:[#allocation11_spill] sm:$0xff] }
 0x13c   :  { %v1337_v54 = vadd.f32 %v1335_v31, %v1332_v35  ;;  %v1339_v23 = vmul.f32 %v1624_v53, %v1338_v62  ;;  %v1340_v43 = vmul.f32 %v1625_v1, %v1338_v62  ;;  %v1373_v63 = vadd.f32 %v1371_v19, %v1369_v18  ;;  %v3583_v35 = vld [vmem:[#allocation24_spill] sm:$0xff] }
 0x13d   :  { %v1374_v50 = vadd.f32 %v1372_v49, %v1370_v58  ;;  %v1379_v32 = vmul.f32 %v3580_v57, %v3580_v57  ;;  %v1380_v51 = vmul.f32 %v3581_v7, %v3581_v7  ;;  %v1260_v29 = vadd.f32 %v1258_v17, %v1255_v42  ;;  %v3584_v49 = vld [vmem:[#allocation30_spill] sm:$0xff]  ;;  %v1628_v18 = vld [vmem:[%s3383_s1 + $0xf0] sm:$0xff] }
 0x13e   :  { %v1261_v48 = vadd.f32 %v1259_v9, %v1256_v47  ;;  %v1264_v5 = vmul.f32 %v1627_v38, %v1262_v16  ;;  %v1348_v53 = vperm.slane %v3084_v15, 7  ;;  %v1377_v1 = vadd.f32 %v1375_v13, %v1373_v63 }
 0x13f   :  { %v1378_v62 = vadd.f32 %v1376_v21, %v1374_v50  ;;  %v1383_v46 = vmul.f32 %v3582_v10, %v3582_v10  ;;  %v1384_v41 = vmul.f32 %v3583_v35, %v3583_v35  ;;  %v1341_v31 = vadd.f32 %v1339_v23, %v1336_v3 }
 0x140   :  { %v1342_v17 = vadd.f32 %v1340_v43, %v1337_v54  ;;  %v1344_v9 = vmul.f32 %v1626_v33, %v1343_v28  ;;  %v1345_v4 = vmul.f32 %v1627_v38, %v1343_v28  ;;  %v1381_v2 = vadd.f32 %v1379_v32, %v1377_v1  ;;  %v1629_v33 = vld [vmem:[%s3383_s1 + $0xf8] sm:$0xff] }
 0x141   :  { %v1382_v19 = vadd.f32 %v1380_v51, %v1378_v62  ;;  %v1387_v42 = vmul.f32 %v3584_v49, %v3584_v49  ;;  %v1388_v15 = vmul.f32 %v3000_v25, %v3000_v25  ;;  %v1265_v16 = vadd.f32 %v1263_v45, %v1260_v29 }
 0x142   :  { %v1266_v47 = vadd.f32 %v1264_v5, %v1261_v48  ;;  %v1268_v58 = vmul.f32 %v1628_v18, %v1267_v30  ;;  %v1269_v28 = vmul.f32 %v1629_v33, %v1267_v30  ;;  %v1385_v13 = vadd.f32 %v1383_v46, %v1381_v2 }
 0x143   :  { %v1386_v21 = vadd.f32 %v1384_v41, %v1382_v19  ;;  %v1391_v45 = vmul.f32 %v3004_v52, %v3004_v52  ;;  %v1392_v3 = vmul.f32 %v3008_v56, %v3008_v56  ;;  %v1346_v54 = vadd.f32 %v1344_v9, %v1341_v31 }
 0x144   :  { %v1347_v23 = vadd.f32 %v1345_v4, %v1342_v17  ;;  %v1349_v43 = vmul.f32 %v1628_v18, %v1348_v53  ;;  %v1350_v63 = vmul.f32 %v1629_v33, %v1348_v53  ;;  %v1389_v50 = vadd.f32 %v1387_v42, %v1385_v13 }
 0x145   :  { %v1390_v32 = vadd.f32 %v1388_v15, %v1386_v21  ;;  %v1395_v51 = vmul.f32 %v3016_v26, %v3016_v26  ;;  %v1396_v11 = vmul.f32 %v3019_v40, %v3019_v40  ;;  %v3196_v30 = vadd.f32 %v1268_v58, %v1265_v16 }
 0x146   :  { %v3198_v29 = vadd.f32 %v1269_v28, %v1266_v47  ;;  %v1393_v48 = vadd.f32 %v1391_v45, %v1389_v50  ;;  %v1399_v5 = vmul.f32 %v3021_v55, %v3021_v55  ;;  %v1400_v53 = vmul.f32 %v3023_v44, %v3023_v44 }
 0x147   :  { %v1394_v38 = vadd.f32 %v1392_v3, %v1390_v32  ;;  %v3204_v1 = vadd.f32 %v1349_v43, %v1346_v54  ;;  %v3206_v62 = vadd.f32 %v1350_v63, %v1347_v23  ;;  %v1403_v31 = vmul.f32 %v3055_v27, %v3055_v27 }
 0x148   :  { %v1397_v46 = vadd.f32 %v1395_v51, %v1393_v48  ;;  %v1404_v17 = vmul.f32 %v3063_v34, %v3063_v34  ;;  %v1407_v2 = vmul.f32 %v3196_v30, %v3196_v30  ;;  %v1408_v19 = vmul.f32 %v3198_v29, %v3198_v29 }
 0x149   :  { %v1398_v41 = vadd.f32 %v1396_v11, %v1394_v38  ;;  %v1411_v16 = vmul.f32 %v3204_v1, %v3204_v1  ;;  %v1412_v47 = vmul.f32 %v3206_v62, %v3206_v62 }
 0x14a   :  { %v1401_v9 = vadd.f32 %v1399_v5, %v1397_v46 }
 0x14b   :  { %v1402_v4 = vadd.f32 %v1400_v53, %v1398_v41 }
 0x14c   :  { %v1405_v42 = vadd.f32 %v1403_v31, %v1401_v9 }
 0x14d   :  { %v1406_v15 = vadd.f32 %v1404_v17, %v1402_v4 }
 0x14e   :  { %v1409_v18 = vadd.f32 %v1407_v2, %v1405_v42 }
 0x14f   :  { %v1410_v58 = vadd.f32 %v1408_v19, %v1406_v15 }
 0x150   :  { %v1413_v33 = vadd.f32 %v1411_v16, %v1409_v18 }
 0x151   :  { %v1414_v28 = vadd.f32 %v1412_v47, %v1410_v58 }
 0x152   :  { %v1416_v13 = vsel %vm1415_vm0, %v1413_v33, 0.0 }
 0x153   :  { %v1417_v21 = vsel %vm1415_vm0, %v1414_v28, 0.0 }
 0x154   :  { %v1418_v45 = vadd.f32 %v1417_v21, %v1416_v13 }
 0x156   :  { %v1419_v3 = vrot.slane %v1418_v45, 4 }
 0x158   :  { %v1420_v54 = vadd.f32 %v1419_v3, %v1418_v45 }
 0x15a   :  { %v1421_v23 = vrot.slane %v1420_v54, 2 }
 0x15c   :  { %v1422_v43 = vadd.f32 %v1421_v23, %v1420_v54 }
 0x15e   :  { %v1423_v63 = vrot.slane %v1422_v43, 1 }
 0x160   :  { %v1424_v50 = vadd.f32 %v1423_v63, %v1422_v43 }
 0x162   :  { %v1425_v32 = vmax.f32 %v1424_v50, 1e-24 }
 0x164   :  { %1564 = vrsqrt.f32 %v1425_v32  ;;  %vm1432_vm1 = vweird.f32 %v1425_v32 }
 0x16a   :  { %v1565_v51 = vpop.eup %1564 }
 0x16b   :  { %v1427_v11 = vmul.f32 %v1565_v51, %v1425_v32  ;;  %vm1433_vm2 = vweird.f32 %v1565_v51 }
 0x16c   :  { %vm1434_vm3 = vmor %vm1432_vm1, %vm1433_vm2 }
 0x16d   :  { %v1428_v48 = vmul.f32 %v1565_v51, %v1427_v11 }
 0x16f   :  { %v1429_v38 = vmul.f32 0.5, %v1428_v48 }
 0x171   :  { %v1430_v5 = vsub.f32 1.5, %v1429_v38 }
 0x173   :  { %v1431_v53 = vmul.f32 %v1565_v51, %v1430_v5 }
 0x175   :  { %v1435_v46 = vsel %vm1434_vm3, %v1565_v51, %v1431_v53 }
 0x176   :  { %v1436_v41 = vmul.f32 %v1435_v46, %v3566_v0  ;;  %v1437_v31 = vmul.f32 %v1435_v46, %v3567_v60  ;;  %v1440_v17 = vmul.f32 %v1435_v46, %v3568_v12  ;;  %v1441_v9 = vmul.f32 %v1435_v46, %v3569_v61 }
 0x177   :  { %v1444_v4 = vmul.f32 %v1435_v46, %v3570_v59  ;;  %v1445_v0 = vmul.f32 %v1435_v46, %v3571_v14  ;;  %v1448_v60 = vmul.f32 %v1435_v46, %v3572_v6  ;;  %v1449_v12 = vmul.f32 %v1435_v46, %v3573_v8 }
 0x178   :  { %1438 = vst.msk [vmem:[%s3384_s2] sm:$0xff] %vm1415_vm0, %v1436_v41  ;;  %v1452_v61 = vmul.f32 %v1435_v46, %v3574_v20  ;;  %v1453_v59 = vmul.f32 %v1435_v46, %v3575_v24  ;;  %v1456_v14 = vmul.f32 %v1435_v46, %v3576_v39  ;;  %v1457_v6 = vmul.f32 %v1435_v46, %v3577_v22 }
 0x179   :  { %1439 = vst.msk [vmem:[%s3384_s2 + $0x8] sm:$0xff] %vm1415_vm0, %v1437_v31  ;;  %v1460_v8 = vmul.f32 %v1435_v46, %v3578_v36  ;;  %v1461_v20 = vmul.f32 %v1435_v46, %v3579_v37  ;;  %v1464_v24 = vmul.f32 %v1435_v46, %v3580_v57  ;;  %v1465_v39 = vmul.f32 %v1435_v46, %v3581_v7 }
 0x17a   :  { %1442 = vst.msk [vmem:[%s3384_s2 + $0x10] sm:$0xff] %vm1415_vm0, %v1440_v17  ;;  %v1468_v22 = vmul.f32 %v1435_v46, %v3582_v10  ;;  %v1469_v36 = vmul.f32 %v1435_v46, %v3583_v35  ;;  %v1472_v37 = vmul.f32 %v1435_v46, %v3584_v49  ;;  %v1473_v57 = vmul.f32 %v1435_v46, %v3000_v25 }
 0x17b   :  { %1443 = vst.msk [vmem:[%s3384_s2 + $0x18] sm:$0xff] %vm1415_vm0, %v1441_v9  ;;  %v1476_v7 = vmul.f32 %v1435_v46, %v3004_v52  ;;  %v1477_v10 = vmul.f32 %v1435_v46, %v3008_v56  ;;  %v1480_v25 = vmul.f32 %v1435_v46, %v3016_v26  ;;  %v1481_v52 = vmul.f32 %v1435_v46, %v3019_v40 }
 0x17c   :  { %1446 = vst.msk [vmem:[%s3384_s2 + $0x20] sm:$0xff] %vm1415_vm0, %v1444_v4  ;;  %v1484_v56 = vmul.f32 %v1435_v46, %v3021_v55  ;;  %v1485_v26 = vmul.f32 %v1435_v46, %v3023_v44  ;;  %v1488_v40 = vmul.f32 %v1435_v46, %v3055_v27  ;;  %v1489_v55 = vmul.f32 %v1435_v46, %v3063_v34 }
 0x17d   :  { %1447 = vst.msk [vmem:[%s3384_s2 + $0x28] sm:$0xff] %vm1415_vm0, %v1445_v0  ;;  %v1492_v44 = vmul.f32 %v1435_v46, %v3196_v30  ;;  %v1493_v27 = vmul.f32 %v1435_v46, %v3198_v29  ;;  %v1496_v34 = vmul.f32 %v1435_v46, %v3204_v1  ;;  %v1497_v35 = vmul.f32 %v1435_v46, %v3206_v62 }
 0x17e   :  { %1450 = vst.msk [vmem:[%s3384_s2 + $0x30] sm:$0xff] %vm1415_vm0, %v1448_v60 }
 0x17f   :  { %1451 = vst.msk [vmem:[%s3384_s2 + $0x38] sm:$0xff] %vm1415_vm0, %v1449_v12 }
 0x180   :  { %1454 = vst.msk [vmem:[%s3384_s2 + $0x40] sm:$0xff] %vm1415_vm0, %v1452_v61 }
 0x181   :  { %1455 = vst.msk [vmem:[%s3384_s2 + $0x48] sm:$0xff] %vm1415_vm0, %v1453_v59 }
 0x182   :  { %1458 = vst.msk [vmem:[%s3384_s2 + $0x50] sm:$0xff] %vm1415_vm0, %v1456_v14 }
 0x183   :  { %1459 = vst.msk [vmem:[%s3384_s2 + $0x58] sm:$0xff] %vm1415_vm0, %v1457_v6 }
 0x184   :  { %1462 = vst.msk [vmem:[%s3384_s2 + $0x60] sm:$0xff] %vm1415_vm0, %v1460_v8 }
 0x185   :  { %1463 = vst.msk [vmem:[%s3384_s2 + $0x68] sm:$0xff] %vm1415_vm0, %v1461_v20 }
 0x186   :  { %1466 = vst.msk [vmem:[%s3384_s2 + $0x70] sm:$0xff] %vm1415_vm0, %v1464_v24 }
 0x187   :  { %1467 = vst.msk [vmem:[%s3384_s2 + $0x78] sm:$0xff] %vm1415_vm0, %v1465_v39 }
 0x188   :  { %1470 = vst.msk [vmem:[%s3384_s2 + $0x80] sm:$0xff] %vm1415_vm0, %v1468_v22 }
 0x189   :  { %1471 = vst.msk [vmem:[%s3384_s2 + $0x88] sm:$0xff] %vm1415_vm0, %v1469_v36 }
 0x18a   :  { %1474 = vst.msk [vmem:[%s3384_s2 + $0x90] sm:$0xff] %vm1415_vm0, %v1472_v37 }
 0x18b   :  { %1475 = vst.msk [vmem:[%s3384_s2 + $0x98] sm:$0xff] %vm1415_vm0, %v1473_v57 }
 0x18c   :  { %1478 = vst.msk [vmem:[%s3384_s2 + $0xa0] sm:$0xff] %vm1415_vm0, %v1476_v7 }
 0x18d   :  { %1479 = vst.msk [vmem:[%s3384_s2 + $0xa8] sm:$0xff] %vm1415_vm0, %v1477_v10 }
 0x18e   :  { %1482 = vst.msk [vmem:[%s3384_s2 + $0xb0] sm:$0xff] %vm1415_vm0, %v1480_v25 }
 0x18f   :  { %1483 = vst.msk [vmem:[%s3384_s2 + $0xb8] sm:$0xff] %vm1415_vm0, %v1481_v52 }
 0x190   :  { %1486 = vst.msk [vmem:[%s3384_s2 + $0xc0] sm:$0xff] %vm1415_vm0, %v1484_v56 }
 0x191   :  { %1487 = vst.msk [vmem:[%s3384_s2 + $0xc8] sm:$0xff] %vm1415_vm0, %v1485_v26 }
 0x192   :  { %1490 = vst.msk [vmem:[%s3384_s2 + $0xd0] sm:$0xff] %vm1415_vm0, %v1488_v40 }
 0x193   :  { %1491 = vst.msk [vmem:[%s3384_s2 + $0xd8] sm:$0xff] %vm1415_vm0, %v1489_v55 }
 0x194   :  { %1494 = vst.msk [vmem:[%s3384_s2 + $0xe0] sm:$0xff] %vm1415_vm0, %v1492_v44 }
 0x195   :  { %1495 = vst.msk [vmem:[%s3384_s2 + $0xe8] sm:$0xff] %vm1415_vm0, %v1493_v27 }
 0x196   :  { %1498 = vst.msk [vmem:[%s3384_s2 + $0xf0] sm:$0xff] %vm1415_vm0, %v1496_v34 }
 0x197   :  { %1499 = vst.msk [vmem:[%s3384_s2 + $0xf8] sm:$0xff] %vm1415_vm0, %v1497_v35 }

</bundles_post_ra>
